<compile_context>
chip_gen: v5e
topology: v5e:2x2
jax: 0.10.0
libtpu: 0.0.40
codegen_flags: <defaults>
</compile_context>

<pallas_src>
import functools

import jax
import jax.numpy as jnp
from jax.experimental import pallas as pl
from jax.experimental.pallas import tpu as pltpu

F_IN = 257      # frequency bins (fixed by the architecture)
F_ENC = 36      # bins after the (7,1)/s(7,1) conv
KH = 7
C_IN = 2
C_ENC = 4
H = 144         # GRU hidden size == MHA embed dim (num_heads = 144 -> head_dim = 1)
EPS = 1e-5


# --------------------------------------------------------------------------- #
# Fused kernel                                                                #
# --------------------------------------------------------------------------- #
def net_kernel(xt_ref, wenc_ref, encv_ref, alpha_ref, epool_ref, epoolT_ref,
               wih_ref, whh_ref, gbias_ref,
               wqkv_ref, bqkv_ref, wo_ref, bo_ref, sel_ref,
               wdec_ref, decv_ref, dpool_ref, dpoolT_ref,
               out_ref, hT_ref, zg_scr, *, B, T):
    """Fully fused forward pass, everything VMEM-resident.

    Activation layout: rows = (t, b) (row r = t*B + b), lane-dense columns:
      * input / output : (B*T, 2*257), col = c*257 + f
      * enc / GRU / MHA: (B*T, 144),   col = c*36  + f'   (channel-major)
    BatchNorm uses training-mode batch statistics (fresh nn.Module default).
    """
    f32 = jnp.float32
    BT = B * T
    xt = xt_ref[...]                                            # (BT, 514)

    # ---- encoder: Conv2d(2->4,(7,1),s=(7,1)) + BatchNorm2d(4) + PReLU -------
    y = jnp.dot(xt, wenc_ref[...], preferred_element_type=f32) + encv_ref[0]
    n_e = float(BT * F_ENC)                                     # elems / channel
    csum = jnp.dot(jnp.sum(y, axis=0, keepdims=True), epool_ref[...],
                   preferred_element_type=f32)                  # (1, 4)
    mean = jnp.dot(csum / n_e, epoolT_ref[...], preferred_element_type=f32)
    d = y - mean
    cvar = jnp.dot(jnp.sum(d * d, axis=0, keepdims=True), epool_ref[...],
                   preferred_element_type=f32) / n_e            # biased (train)
    var = jnp.dot(cvar, epoolT_ref[...], preferred_element_type=f32)
    yn = d * jax.lax.rsqrt(var + EPS) * encv_ref[1] + encv_ref[2]
    alpha = alpha_ref[...]                                      # (1, 1)
    z = jnp.where(yn >= 0.0, yn, alpha * yn)                    # (BT, 144)

    # ---- GRU(144, 144), h0 = zeros ------------------------------------------
    # Input projections hoisted out of the recurrence; per-gate (H, H) weights
    # keep every gate at 128-aligned lane offsets (no mid-lane slicing).
    gi_r = jnp.dot(z, wih_ref[0], preferred_element_type=f32) + gbias_ref[0]
    gi_z = jnp.dot(z, wih_ref[1], preferred_element_type=f32) + gbias_ref[1]
    gi_n = jnp.dot(z, wih_ref[2], preferred_element_type=f32) + gbias_ref[2]
    bh_n = gbias_ref[3]
    whh_r = whh_ref[0]
    whh_z = whh_ref[1]
    whh_n = whh_ref[2]

    h = jnp.zeros((B, H), f32)
    for t in range(T):                       # T is small & static: full unroll
        lo = t * B
        gh_r = jnp.dot(h, whh_r, preferred_element_type=f32)
        gh_z = jnp.dot(h, whh_z, preferred_element_type=f32)
        gh_n = jnp.dot(h, whh_n, preferred_element_type=f32) + bh_n
        r = jax.nn.sigmoid(gi_r[lo:lo + B] + gh_r)
        u = jax.nn.sigmoid(gi_z[lo:lo + B] + gh_z)
        n = jnp.tanh(gi_n[lo:lo + B] + r * gh_n)
        h = (1.0 - u) * n + u * h
        zg_scr[lo:lo + B, :] = h
    hT_ref[...] = h                          # final hidden state, rows = batch
    zg = zg_scr[...]                         # (BT, 144), rows (t, b)

    # ---- MultiheadAttention(144, num_heads=144): head_dim = 1, scale = 1 ----
    q = jnp.dot(zg, wqkv_ref[0], preferred_element_type=f32) + bqkv_ref[0]
    k = jnp.dot(zg, wqkv_ref[1], preferred_element_type=f32) + bqkv_ref[1]
    v = jnp.dot(zg, wqkv_ref[2], preferred_element_type=f32) + bqkv_ref[2]
    sel = sel_ref[...]                       # (BT, B): row t*B+b -> one_hot(b)

    def tiled(mat, tk):
        # key/value rows at time tk replicated to all query rows of the same
        # batch element, via a tiny selection matmul (always lowers cleanly).
        blk = mat[tk * B:(tk + 1) * B]                           # (B, 144)
        return jnp.dot(sel, blk, preferred_element_type=f32)     # (BT, 144)

    # Online softmax over the T key steps; with head_dim == 1 the score is an
    # elementwise product, so the whole attention is VPU/EUP work.
    s = q * tiled(k, 0)
    m = s
    den = jnp.ones_like(s)
    acc = tiled(v, 0)
    for tk in range(1, T):
        s = q * tiled(k, tk)
        m_new = jnp.maximum(m, s)
        a = jnp.exp(m - m_new)
        p = jnp.exp(s - m_new)
        den = a * den + p
        acc = a * acc + p * tiled(v, tk)
        m = m_new
    o = acc / den
    zo = jnp.dot(o, wo_ref[...], preferred_element_type=f32) + bo_ref[...]

    # ---- decoder: ConvT(4->2,(7,1),s=(7,1),outpad=(5,0)) + BN(2) + Tanh,
    #      then elementwise residual multiply with the input ------------------
    yd = jnp.dot(zo, wdec_ref[...], preferred_element_type=f32) + decv_ref[0]
    n_d = float(BT * F_IN)
    csum_d = jnp.dot(jnp.sum(yd, axis=0, keepdims=True), dpool_ref[...],
                     preferred_element_type=f32)                 # (1, 2)
    mean_d = jnp.dot(csum_d / n_d, dpoolT_ref[...], preferred_element_type=f32)
    dd = yd - mean_d
    cvar_d = jnp.dot(jnp.sum(dd * dd, axis=0, keepdims=True), dpool_ref[...],
                     preferred_element_type=f32) / n_d
    var_d = jnp.dot(cvar_d, dpoolT_ref[...], preferred_element_type=f32)
    ydn = dd * jax.lax.rsqrt(var_d + EPS) * decv_ref[1] + decv_ref[2]
    out_ref[...] = jnp.tanh(ydn) * xt


# --------------------------------------------------------------------------- #
# Wrapper (only the two unavoidable boundary relayouts stay in plain JAX)     #
# --------------------------------------------------------------------------- #
def net_forward(x, params):
    B, C, F, T = x.shape
    xt = jnp.transpose(x, (3, 0, 1, 2)).reshape(B * T, C * F)    # rows (t,b)
    sel = jnp.tile(jnp.eye(B, dtype=jnp.float32), (T, 1))        # (B*T, B)

    vmem = pl.BlockSpec(memory_space=pltpu.MemorySpace.VMEM)
    operands = (xt, params["w_enc_big"], params["enc_vecs"], params["alpha"],
                params["epool"], params["epoolT"],
                params["wih"], params["whh"], params["gbias"],
                params["wqkv"], params["bqkv"], params["wo"], params["bo"], sel,
                params["w_dec_big"], params["dec_vecs"],
                params["dpool"], params["dpoolT"])

    out_mat, hT = pl.pallas_call(
        functools.partial(net_kernel, B=B, T=T),
        out_shape=(jax.ShapeDtypeStruct((B * T, C * F), jnp.float32),
                   jax.ShapeDtypeStruct((B, H), jnp.float32)),
        in_specs=[vmem] * len(operands),
        out_specs=(vmem, vmem),
        scratch_shapes=[pltpu.VMEM((B * T, H), jnp.float32)],
        compiler_params=pltpu.CompilerParams(
            vmem_limit_bytes=32 * 1024 * 1024),
    )(*operands)

    out = jnp.transpose(out_mat.reshape(T, B, C, F), (1, 2, 3, 0))  # (B,2,257,T)
    return out, hT[None]                                            # h1: (1,B,H)


# --------------------------------------------------------------------------- #
# Deterministic parameter initialization (synthetic weights, pre-reshaped)    #
# --------------------------------------------------------------------------- #
def init_params(key):
    ks = jax.random.split(key, 16)

    def rnd(k, shape, scale=0.1):
        return (scale * jax.random.normal(k, shape)).astype(jnp.float32)

    # ---- encoder Conv2d(2,4,(7,1)) + BatchNorm2d(4) + PReLU -----------------
    w_conv = rnd(ks[0], (C_ENC, C_IN, KH))        # torch weight (co, ci, kH)
    b_conv = rnd(ks[1], (C_ENC,))
    g_enc = 1.0 + rnd(ks[2], (C_ENC,))
    be_enc = rnd(ks[3], (C_ENC,))
    alpha = jnp.full((1, 1), 0.25, jnp.float32)   # nn.PReLU() default

    # conv (kernel == stride) folded into a dense matrix:
    # w_enc_big[ci*257 + 7*f' + k, co*36 + f'] = w_conv[co, ci, k]
    ci = jnp.arange(C_IN)[:, None, None, None]
    co = jnp.arange(C_ENC)[None, :, None, None]
    fp = jnp.arange(F_ENC)[None, None, :, None]
    kk = jnp.arange(KH)[None, None, None, :]
    rows = jnp.broadcast_to(ci * F_IN + KH * fp + kk, (C_IN, C_ENC, F_ENC, KH))
    cols = jnp.broadcast_to(co * F_ENC + fp, (C_IN, C_ENC, F_ENC, KH))
    vals = jnp.broadcast_to(jnp.transpose(w_conv, (1, 0, 2))[:, :, None, :],
                            (C_IN, C_ENC, F_ENC, KH))
    w_enc_big = jnp.zeros((C_IN * F_IN, C_ENC * F_ENC), jnp.float32)
    w_enc_big = w_enc_big.at[rows, cols].set(vals)

    enc_vecs = jnp.stack([jnp.repeat(b_conv, F_ENC)[None, :],
                          jnp.repeat(g_enc, F_ENC)[None, :],
                          jnp.repeat(be_enc, F_ENC)[None, :]])          # (3,1,144)
    epool = jnp.repeat(jnp.eye(C_ENC, dtype=jnp.float32), F_ENC, axis=0)  # (144,4)
    epoolT = jnp.transpose(epool)

    # ---- GRU(144,144) (torch gate order r, z, n) ----------------------------
    w_ih = rnd(ks[4], (3 * H, H))
    w_hh = rnd(ks[5], (3 * H, H))
    b_ih = rnd(ks[6], (3 * H,))
    b_hh = rnd(ks[7], (3 * H,))
    wih = jnp.stack([jnp.transpose(w_ih[g * H:(g + 1) * H]) for g in range(3)])
    whh = jnp.stack([jnp.transpose(w_hh[g * H:(g + 1) * H]) for g in range(3)])
    gbias = jnp.stack([(b_ih[0:H] + b_hh[0:H])[None, :],            # r (folded)
                       (b_ih[H:2 * H] + b_hh[H:2 * H])[None, :],    # z (folded)
                       b_ih[2 * H:3 * H][None, :],                  # n (input)
                       b_hh[2 * H:3 * H][None, :]])                 # n (hidden)

    # ---- MultiheadAttention(144, 144) ---------------------------------------
    w_in = rnd(ks[8], (3 * H, H))          # in_proj_weight (q, k, v stacked)
    b_in = rnd(ks[9], (3 * H,))
    w_out = rnd(ks[10], (H, H))
    b_out = rnd(ks[11], (H,))
    wqkv = jnp.stack([jnp.transpose(w_in[g * H:(g + 1) * H]) for g in range(3)])
    bqkv = jnp.stack([b_in[g * H:(g + 1) * H][None, :] for g in range(3)])
    wo = jnp.transpose(w_out)
    bo = b_out[None, :]

    # ---- decoder ConvTranspose2d(4,2,(7,1),s=(7,1),output_padding=(5,0)) ----
    w_ct = rnd(ks[12], (C_ENC, C_IN, KH))  # torch ConvT weight (ci, co, kH)
    b_ct = rnd(ks[13], (C_IN,))
    g_dec = 1.0 + rnd(ks[14], (C_IN,))
    be_dec = rnd(ks[15], (C_IN,))

    # ConvT (kernel == stride) folded into a dense matrix; the 5 output_padding
    # rows get no matmul contribution (bias only), matching PyTorch.
    # w_dec_big[ci*36 + f', co*257 + 7*f' + k] = w_ct[ci, co, k]
    ci = jnp.arange(C_ENC)[:, None, None, None]
    co = jnp.arange(C_IN)[None, :, None, None]
    fp = jnp.arange(F_ENC)[None, None, :, None]
    kk = jnp.arange(KH)[None, None, None, :]
    rows = jnp.broadcast_to(ci * F_ENC + fp, (C_ENC, C_IN, F_ENC, KH))
    cols = jnp.broadcast_to(co * F_IN + KH * fp + kk, (C_ENC, C_IN, F_ENC, KH))
    vals = jnp.broadcast_to(w_ct[:, :, None, :], (C_ENC, C_IN, F_ENC, KH))
    w_dec_big = jnp.zeros((C_ENC * F_ENC, C_IN * F_IN), jnp.float32)
    w_dec_big = w_dec_big.at[rows, cols].set(vals)

    dec_vecs = jnp.stack([jnp.repeat(b_ct, F_IN)[None, :],
                          jnp.repeat(g_dec, F_IN)[None, :],
                          jnp.repeat(be_dec, F_IN)[None, :]])           # (3,1,514)
    dpool = jnp.repeat(jnp.eye(C_IN, dtype=jnp.float32), F_IN, axis=0)  # (514,2)
    dpoolT = jnp.transpose(dpool)

    return dict(w_enc_big=w_enc_big, enc_vecs=enc_vecs, alpha=alpha,
                epool=epool, epoolT=epoolT,
                wih=wih, whh=whh, gbias=gbias,
                wqkv=wqkv, bqkv=bqkv, wo=wo, bo=bo,
                w_dec_big=w_dec_big, dec_vecs=dec_vecs,
                dpool=dpool, dpoolT=dpoolT)


if __name__ == "__main__":
    key = jax.random.PRNGKey(0)
    pkey, xkey = jax.random.split(key)
    params = init_params(pkey)

    B, T = 2, 8
    x = jax.random.normal(xkey, (B, C_IN, F_IN, T), dtype=jnp.float32)

    fwd = jax.jit(lambda xx: net_forward(xx, params))
    out, h1 = fwd(x)
    jax.block_until_ready((out, h1))

    assert out.shape == (B, C_IN, F_IN, T), out.shape
    assert h1.shape == (1, B, H), h1.shape
    assert out.dtype == jnp.float32 and h1.dtype == jnp.float32
    print("KERNEL_OK")
</pallas_src>

<mosaic_0001>
module attributes {stable_mosaic.version = 11 : i64} {
  func.func @net_kernel(%arg0: memref<16x514xf32, #tpu.memory_space<vmem>>, %arg1: memref<514x144xf32, #tpu.memory_space<vmem>>, %arg2: memref<3x1x144xf32, #tpu.memory_space<vmem>>, %arg3: memref<1x1xf32, #tpu.memory_space<vmem>>, %arg4: memref<144x4xf32, #tpu.memory_space<vmem>>, %arg5: memref<4x144xf32, #tpu.memory_space<vmem>>, %arg6: memref<3x144x144xf32, #tpu.memory_space<vmem>>, %arg7: memref<3x144x144xf32, #tpu.memory_space<vmem>>, %arg8: memref<4x1x144xf32, #tpu.memory_space<vmem>>, %arg9: memref<3x144x144xf32, #tpu.memory_space<vmem>>, %arg10: memref<3x1x144xf32, #tpu.memory_space<vmem>>, %arg11: memref<144x144xf32, #tpu.memory_space<vmem>>, %arg12: memref<1x144xf32, #tpu.memory_space<vmem>>, %arg13: memref<16x2xf32, #tpu.memory_space<vmem>>, %arg14: memref<144x514xf32, #tpu.memory_space<vmem>>, %arg15: memref<3x1x514xf32, #tpu.memory_space<vmem>>, %arg16: memref<514x2xf32, #tpu.memory_space<vmem>>, %arg17: memref<2x514xf32, #tpu.memory_space<vmem>>, %arg18: memref<16x514xf32, #tpu.memory_space<vmem>>, %arg19: memref<2x144xf32, #tpu.memory_space<vmem>>, %arg20: memref<16x144xf32, #tpu.memory_space<vmem>>) attributes {dimension_semantics = [], scalar_prefetch = 0 : i64, scratch_operands = 1 : i64, tpu.core_type = #tpu.core_type<tc>} {
    %c0 = arith.constant 0 : index
    %c0_0 = arith.constant 0 : index
    %0 = vector.load %arg0[%c0, %c0_0] : memref<16x514xf32, #tpu.memory_space<vmem>>, vector<16x514xf32>
    %c0_1 = arith.constant 0 : index
    %c0_2 = arith.constant 0 : index
    %1 = vector.load %arg1[%c0_1, %c0_2] : memref<514x144xf32, #tpu.memory_space<vmem>>, vector<514x144xf32>
    %cst = arith.constant dense<0.000000e+00> : vector<16x144xf32>
    %2 = tpu.matmul %0, %1, %cst {dimension_numbers = #tpu.dot_dimension_numbers<[1], [0], [0], [1], [0, 0, 1, 1], [], []>} : vector<16x514xf32>, vector<514x144xf32>, vector<16x144xf32> -> vector<16x144xf32>
    %c0_3 = arith.constant 0 : index
    %c0_4 = arith.constant 0 : index
    %c0_5 = arith.constant 0 : index
    %3 = vector.load %arg2[%c0_3, %c0_4, %c0_5] : memref<3x1x144xf32, #tpu.memory_space<vmem>>, vector<1x1x144xf32>
    %4 = vector.shape_cast %3 : vector<1x1x144xf32> to vector<1x144xf32>
    %5 = vector.broadcast %4 : vector<1x144xf32> to vector<16x144xf32>
    %6 = arith.addf %2, %5 : vector<16x144xf32>
    %cst_6 = arith.constant dense<0.000000e+00> : vector<144xf32>
    %7 = vector.multi_reduction <add>, %6, %cst_6 [0] : vector<16x144xf32> to vector<144xf32>
    %8 = vector.shape_cast %7 : vector<144xf32> to vector<1x144xf32>
    %c0_7 = arith.constant 0 : index
    %c0_8 = arith.constant 0 : index
    %9 = vector.load %arg4[%c0_7, %c0_8] : memref<144x4xf32, #tpu.memory_space<vmem>>, vector<144x4xf32>
    %cst_9 = arith.constant dense<0.000000e+00> : vector<1x4xf32>
    %10 = tpu.matmul %8, %9, %cst_9 {dimension_numbers = #tpu.dot_dimension_numbers<[1], [0], [0], [1], [0, 0, 1, 1], [], []>} : vector<1x144xf32>, vector<144x4xf32>, vector<1x4xf32> -> vector<1x4xf32>
    %cst_10 = arith.constant 5.760000e+02 : f32
    %11 = vector.broadcast %cst_10 : f32 to vector<1x4xf32>
    %12 = arith.divf %10, %11 : vector<1x4xf32>
    %c0_11 = arith.constant 0 : index
    %c0_12 = arith.constant 0 : index
    %13 = vector.load %arg5[%c0_11, %c0_12] : memref<4x144xf32, #tpu.memory_space<vmem>>, vector<4x144xf32>
    %cst_13 = arith.constant dense<0.000000e+00> : vector<1x144xf32>
    %14 = tpu.matmul %12, %13, %cst_13 {dimension_numbers = #tpu.dot_dimension_numbers<[1], [0], [0], [1], [0, 0, 1, 1], [], []>} : vector<1x4xf32>, vector<4x144xf32>, vector<1x144xf32> -> vector<1x144xf32>
    %15 = vector.broadcast %14 : vector<1x144xf32> to vector<16x144xf32>
    %16 = arith.subf %6, %15 : vector<16x144xf32>
    %17 = arith.mulf %16, %16 : vector<16x144xf32>
    %cst_14 = arith.constant dense<0.000000e+00> : vector<144xf32>
    %18 = vector.multi_reduction <add>, %17, %cst_14 [0] : vector<16x144xf32> to vector<144xf32>
    %19 = vector.shape_cast %18 : vector<144xf32> to vector<1x144xf32>
    %c0_15 = arith.constant 0 : index
    %c0_16 = arith.constant 0 : index
    %20 = vector.load %arg4[%c0_15, %c0_16] : memref<144x4xf32, #tpu.memory_space<vmem>>, vector<144x4xf32>
    %cst_17 = arith.constant dense<0.000000e+00> : vector<1x4xf32>
    %21 = tpu.matmul %19, %20, %cst_17 {dimension_numbers = #tpu.dot_dimension_numbers<[1], [0], [0], [1], [0, 0, 1, 1], [], []>} : vector<1x144xf32>, vector<144x4xf32>, vector<1x4xf32> -> vector<1x4xf32>
    %cst_18 = arith.constant 5.760000e+02 : f32
    %22 = vector.broadcast %cst_18 : f32 to vector<1x4xf32>
    %23 = arith.divf %21, %22 : vector<1x4xf32>
    %c0_19 = arith.constant 0 : index
    %c0_20 = arith.constant 0 : index
    %24 = vector.load %arg5[%c0_19, %c0_20] : memref<4x144xf32, #tpu.memory_space<vmem>>, vector<4x144xf32>
    %cst_21 = arith.constant dense<0.000000e+00> : vector<1x144xf32>
    %25 = tpu.matmul %23, %24, %cst_21 {dimension_numbers = #tpu.dot_dimension_numbers<[1], [0], [0], [1], [0, 0, 1, 1], [], []>} : vector<1x4xf32>, vector<4x144xf32>, vector<1x144xf32> -> vector<1x144xf32>
    %cst_22 = arith.constant 9.99999974E-6 : f32
    %26 = vector.broadcast %cst_22 : f32 to vector<1x144xf32>
    %27 = arith.addf %25, %26 : vector<1x144xf32>
    %28 = math.rsqrt %27 : vector<1x144xf32>
    %29 = vector.broadcast %28 : vector<1x144xf32> to vector<16x144xf32>
    %30 = arith.mulf %16, %29 : vector<16x144xf32>
    %c1 = arith.constant 1 : index
    %c0_23 = arith.constant 0 : index
    %c0_24 = arith.constant 0 : index
    %31 = vector.load %arg2[%c1, %c0_23, %c0_24] : memref<3x1x144xf32, #tpu.memory_space<vmem>>, vector<1x1x144xf32>
    %32 = vector.shape_cast %31 : vector<1x1x144xf32> to vector<1x144xf32>
    %33 = vector.broadcast %32 : vector<1x144xf32> to vector<16x144xf32>
    %34 = arith.mulf %30, %33 : vector<16x144xf32>
    %c2 = arith.constant 2 : index
    %c0_25 = arith.constant 0 : index
    %c0_26 = arith.constant 0 : index
    %35 = vector.load %arg2[%c2, %c0_25, %c0_26] : memref<3x1x144xf32, #tpu.memory_space<vmem>>, vector<1x1x144xf32>
    %36 = vector.shape_cast %35 : vector<1x1x144xf32> to vector<1x144xf32>
    %37 = vector.broadcast %36 : vector<1x144xf32> to vector<16x144xf32>
    %38 = arith.addf %34, %37 : vector<16x144xf32>
    %c0_27 = arith.constant 0 : index
    %c0_28 = arith.constant 0 : index
    %39 = vector.load %arg3[%c0_27, %c0_28] : memref<1x1xf32, #tpu.memory_space<vmem>>, vector<1x1xf32>
    %cst_29 = arith.constant 0.000000e+00 : f32
    %40 = vector.broadcast %cst_29 : f32 to vector<16x144xf32>
    %41 = arith.cmpf oge, %38, %40 : vector<16x144xf32>
    %42 = vector.broadcast %39 : vector<1x1xf32> to vector<16x144xf32>
    %43 = arith.mulf %42, %38 : vector<16x144xf32>
    %44 = arith.select %41, %38, %43 : vector<16x144xi1>, vector<16x144xf32>
    %c0_30 = arith.constant 0 : index
    %c0_31 = arith.constant 0 : index
    %c0_32 = arith.constant 0 : index
    %45 = vector.load %arg6[%c0_30, %c0_31, %c0_32] : memref<3x144x144xf32, #tpu.memory_space<vmem>>, vector<1x144x144xf32>
    %46 = vector.shape_cast %45 : vector<1x144x144xf32> to vector<144x144xf32>
    %cst_33 = arith.constant dense<0.000000e+00> : vector<16x144xf32>
    %47 = tpu.matmul %44, %46, %cst_33 {dimension_numbers = #tpu.dot_dimension_numbers<[1], [0], [0], [1], [0, 0, 1, 1], [], []>} : vector<16x144xf32>, vector<144x144xf32>, vector<16x144xf32> -> vector<16x144xf32>
    %c0_34 = arith.constant 0 : index
    %c0_35 = arith.constant 0 : index
    %c0_36 = arith.constant 0 : index
    %48 = vector.load %arg8[%c0_34, %c0_35, %c0_36] : memref<4x1x144xf32, #tpu.memory_space<vmem>>, vector<1x1x144xf32>
    %49 = vector.shape_cast %48 : vector<1x1x144xf32> to vector<1x144xf32>
    %50 = vector.broadcast %49 : vector<1x144xf32> to vector<16x144xf32>
    %51 = arith.addf %47, %50 : vector<16x144xf32>
    %c1_37 = arith.constant 1 : index
    %c0_38 = arith.constant 0 : index
    %c0_39 = arith.constant 0 : index
    %52 = vector.load %arg6[%c1_37, %c0_38, %c0_39] : memref<3x144x144xf32, #tpu.memory_space<vmem>>, vector<1x144x144xf32>
    %53 = vector.shape_cast %52 : vector<1x144x144xf32> to vector<144x144xf32>
    %cst_40 = arith.constant dense<0.000000e+00> : vector<16x144xf32>
    %54 = tpu.matmul %44, %53, %cst_40 {dimension_numbers = #tpu.dot_dimension_numbers<[1], [0], [0], [1], [0, 0, 1, 1], [], []>} : vector<16x144xf32>, vector<144x144xf32>, vector<16x144xf32> -> vector<16x144xf32>
    %c1_41 = arith.constant 1 : index
    %c0_42 = arith.constant 0 : index
    %c0_43 = arith.constant 0 : index
    %55 = vector.load %arg8[%c1_41, %c0_42, %c0_43] : memref<4x1x144xf32, #tpu.memory_space<vmem>>, vector<1x1x144xf32>
    %56 = vector.shape_cast %55 : vector<1x1x144xf32> to vector<1x144xf32>
    %57 = vector.broadcast %56 : vector<1x144xf32> to vector<16x144xf32>
    %58 = arith.addf %54, %57 : vector<16x144xf32>
    %c2_44 = arith.constant 2 : index
    %c0_45 = arith.constant 0 : index
    %c0_46 = arith.constant 0 : index
    %59 = vector.load %arg6[%c2_44, %c0_45, %c0_46] : memref<3x144x144xf32, #tpu.memory_space<vmem>>, vector<1x144x144xf32>
    %60 = vector.shape_cast %59 : vector<1x144x144xf32> to vector<144x144xf32>
    %cst_47 = arith.constant dense<0.000000e+00> : vector<16x144xf32>
    %61 = tpu.matmul %44, %60, %cst_47 {dimension_numbers = #tpu.dot_dimension_numbers<[1], [0], [0], [1], [0, 0, 1, 1], [], []>} : vector<16x144xf32>, vector<144x144xf32>, vector<16x144xf32> -> vector<16x144xf32>
    %c2_48 = arith.constant 2 : index
    %c0_49 = arith.constant 0 : index
    %c0_50 = arith.constant 0 : index
    %62 = vector.load %arg8[%c2_48, %c0_49, %c0_50] : memref<4x1x144xf32, #tpu.memory_space<vmem>>, vector<1x1x144xf32>
    %63 = vector.shape_cast %62 : vector<1x1x144xf32> to vector<1x144xf32>
    %64 = vector.broadcast %63 : vector<1x144xf32> to vector<16x144xf32>
    %65 = arith.addf %61, %64 : vector<16x144xf32>
    %c3 = arith.constant 3 : index
    %c0_51 = arith.constant 0 : index
    %c0_52 = arith.constant 0 : index
    %66 = vector.load %arg8[%c3, %c0_51, %c0_52] : memref<4x1x144xf32, #tpu.memory_space<vmem>>, vector<1x1x144xf32>
    %67 = vector.shape_cast %66 : vector<1x1x144xf32> to vector<1x144xf32>
    %c0_53 = arith.constant 0 : index
    %c0_54 = arith.constant 0 : index
    %c0_55 = arith.constant 0 : index
    %68 = vector.load %arg7[%c0_53, %c0_54, %c0_55] : memref<3x144x144xf32, #tpu.memory_space<vmem>>, vector<1x144x144xf32>
    %69 = vector.shape_cast %68 : vector<1x144x144xf32> to vector<144x144xf32>
    %c1_56 = arith.constant 1 : index
    %c0_57 = arith.constant 0 : index
    %c0_58 = arith.constant 0 : index
    %70 = vector.load %arg7[%c1_56, %c0_57, %c0_58] : memref<3x144x144xf32, #tpu.memory_space<vmem>>, vector<1x144x144xf32>
    %71 = vector.shape_cast %70 : vector<1x144x144xf32> to vector<144x144xf32>
    %c2_59 = arith.constant 2 : index
    %c0_60 = arith.constant 0 : index
    %c0_61 = arith.constant 0 : index
    %72 = vector.load %arg7[%c2_59, %c0_60, %c0_61] : memref<3x144x144xf32, #tpu.memory_space<vmem>>, vector<1x144x144xf32>
    %73 = vector.shape_cast %72 : vector<1x144x144xf32> to vector<144x144xf32>
    %cst_62 = arith.constant 0.000000e+00 : f32
    %74 = vector.broadcast %cst_62 : f32 to vector<2x144xf32>
    %cst_63 = arith.constant dense<0.000000e+00> : vector<2x144xf32>
    %75 = tpu.matmul %74, %69, %cst_63 {dimension_numbers = #tpu.dot_dimension_numbers<[1], [0], [0], [1], [0, 0, 1, 1], [], []>} : vector<2x144xf32>, vector<144x144xf32>, vector<2x144xf32> -> vector<2x144xf32>
    %cst_64 = arith.constant dense<0.000000e+00> : vector<2x144xf32>
    %76 = tpu.matmul %74, %71, %cst_64 {dimension_numbers = #tpu.dot_dimension_numbers<[1], [0], [0], [1], [0, 0, 1, 1], [], []>} : vector<2x144xf32>, vector<144x144xf32>, vector<2x144xf32> -> vector<2x144xf32>
    %cst_65 = arith.constant dense<0.000000e+00> : vector<2x144xf32>
    %77 = tpu.matmul %74, %73, %cst_65 {dimension_numbers = #tpu.dot_dimension_numbers<[1], [0], [0], [1], [0, 0, 1, 1], [], []>} : vector<2x144xf32>, vector<144x144xf32>, vector<2x144xf32> -> vector<2x144xf32>
    %78 = vector.broadcast %67 : vector<1x144xf32> to vector<2x144xf32>
    %79 = arith.addf %77, %78 : vector<2x144xf32>
    %80 = vector.extract_strided_slice %51 {offsets = [0, 0], sizes = [2, 144], strides = [1, 1]} : vector<16x144xf32> to vector<2x144xf32>
    %81 = arith.addf %80, %75 : vector<2x144xf32>
    %82 = arith.negf %81 : vector<2x144xf32>
    %83 = math.exp %82 : vector<2x144xf32>
    %cst_66 = arith.constant 1.000000e+00 : f32
    %84 = vector.broadcast %cst_66 : f32 to vector<2x144xf32>
    %85 = arith.addf %84, %83 : vector<2x144xf32>
    %86 = arith.divf %84, %85 : vector<2x144xf32>
    %87 = vector.extract_strided_slice %58 {offsets = [0, 0], sizes = [2, 144], strides = [1, 1]} : vector<16x144xf32> to vector<2x144xf32>
    %88 = arith.addf %87, %76 : vector<2x144xf32>
    %89 = arith.negf %88 : vector<2x144xf32>
    %90 = math.exp %89 : vector<2x144xf32>
    %cst_67 = arith.constant 1.000000e+00 : f32
    %91 = vector.broadcast %cst_67 : f32 to vector<2x144xf32>
    %92 = arith.addf %91, %90 : vector<2x144xf32>
    %93 = arith.divf %91, %92 : vector<2x144xf32>
    %94 = vector.extract_strided_slice %65 {offsets = [0, 0], sizes = [2, 144], strides = [1, 1]} : vector<16x144xf32> to vector<2x144xf32>
    %95 = arith.mulf %86, %79 : vector<2x144xf32>
    %96 = arith.addf %94, %95 : vector<2x144xf32>
    %97 = math.tanh %96 : vector<2x144xf32>
    %cst_68 = arith.constant 1.000000e+00 : f32
    %98 = vector.broadcast %cst_68 : f32 to vector<2x144xf32>
    %99 = arith.subf %98, %93 : vector<2x144xf32>
    %100 = arith.mulf %99, %97 : vector<2x144xf32>
    %101 = arith.mulf %93, %74 : vector<2x144xf32>
    %102 = arith.addf %100, %101 : vector<2x144xf32>
    %c0_69 = arith.constant 0 : index
    %c0_70 = arith.constant 0 : index
    %103 = vector.load %arg20[%c0_69, %c0_70] : memref<16x144xf32, #tpu.memory_space<vmem>>, vector<2x144xf32>
    tpu.vector_store %arg20[%c0_69, %c0_70], %102 {strides = array<i32>} : memref<16x144xf32, #tpu.memory_space<vmem>>, vector<2x144xf32>,
    %cst_71 = arith.constant dense<0.000000e+00> : vector<2x144xf32>
    %104 = tpu.matmul %102, %69, %cst_71 {dimension_numbers = #tpu.dot_dimension_numbers<[1], [0], [0], [1], [0, 0, 1, 1], [], []>} : vector<2x144xf32>, vector<144x144xf32>, vector<2x144xf32> -> vector<2x144xf32>
    %cst_72 = arith.constant dense<0.000000e+00> : vector<2x144xf32>
    %105 = tpu.matmul %102, %71, %cst_72 {dimension_numbers = #tpu.dot_dimension_numbers<[1], [0], [0], [1], [0, 0, 1, 1], [], []>} : vector<2x144xf32>, vector<144x144xf32>, vector<2x144xf32> -> vector<2x144xf32>
    %cst_73 = arith.constant dense<0.000000e+00> : vector<2x144xf32>
    %106 = tpu.matmul %102, %73, %cst_73 {dimension_numbers = #tpu.dot_dimension_numbers<[1], [0], [0], [1], [0, 0, 1, 1], [], []>} : vector<2x144xf32>, vector<144x144xf32>, vector<2x144xf32> -> vector<2x144xf32>
    %107 = vector.broadcast %67 : vector<1x144xf32> to vector<2x144xf32>
    %108 = arith.addf %106, %107 : vector<2x144xf32>
    %109 = vector.extract_strided_slice %51 {offsets = [2, 0], sizes = [2, 144], strides = [1, 1]} : vector<16x144xf32> to vector<2x144xf32>
    %110 = arith.addf %109, %104 : vector<2x144xf32>
    %111 = arith.negf %110 : vector<2x144xf32>
    %112 = math.exp %111 : vector<2x144xf32>
    %cst_74 = arith.constant 1.000000e+00 : f32
    %113 = vector.broadcast %cst_74 : f32 to vector<2x144xf32>
    %114 = arith.addf %113, %112 : vector<2x144xf32>
    %115 = arith.divf %113, %114 : vector<2x144xf32>
    %116 = vector.extract_strided_slice %58 {offsets = [2, 0], sizes = [2, 144], strides = [1, 1]} : vector<16x144xf32> to vector<2x144xf32>
    %117 = arith.addf %116, %105 : vector<2x144xf32>
    %118 = arith.negf %117 : vector<2x144xf32>
    %119 = math.exp %118 : vector<2x144xf32>
    %cst_75 = arith.constant 1.000000e+00 : f32
    %120 = vector.broadcast %cst_75 : f32 to vector<2x144xf32>
    %121 = arith.addf %120, %119 : vector<2x144xf32>
    %122 = arith.divf %120, %121 : vector<2x144xf32>
    %123 = vector.extract_strided_slice %65 {offsets = [2, 0], sizes = [2, 144], strides = [1, 1]} : vector<16x144xf32> to vector<2x144xf32>
    %124 = arith.mulf %115, %108 : vector<2x144xf32>
    %125 = arith.addf %123, %124 : vector<2x144xf32>
    %126 = math.tanh %125 : vector<2x144xf32>
    %cst_76 = arith.constant 1.000000e+00 : f32
    %127 = vector.broadcast %cst_76 : f32 to vector<2x144xf32>
    %128 = arith.subf %127, %122 : vector<2x144xf32>
    %129 = arith.mulf %128, %126 : vector<2x144xf32>
    %130 = arith.mulf %122, %102 : vector<2x144xf32>
    %131 = arith.addf %129, %130 : vector<2x144xf32>
    %c2_77 = arith.constant 2 : index
    %c0_78 = arith.constant 0 : index
    %132 = vector.load %arg20[%c2_77, %c0_78] : memref<16x144xf32, #tpu.memory_space<vmem>>, vector<2x144xf32>
    tpu.vector_store %arg20[%c2_77, %c0_78], %131 {strides = array<i32>} : memref<16x144xf32, #tpu.memory_space<vmem>>, vector<2x144xf32>,
    %cst_79 = arith.constant dense<0.000000e+00> : vector<2x144xf32>
    %133 = tpu.matmul %131, %69, %cst_79 {dimension_numbers = #tpu.dot_dimension_numbers<[1], [0], [0], [1], [0, 0, 1, 1], [], []>} : vector<2x144xf32>, vector<144x144xf32>, vector<2x144xf32> -> vector<2x144xf32>
    %cst_80 = arith.constant dense<0.000000e+00> : vector<2x144xf32>
    %134 = tpu.matmul %131, %71, %cst_80 {dimension_numbers = #tpu.dot_dimension_numbers<[1], [0], [0], [1], [0, 0, 1, 1], [], []>} : vector<2x144xf32>, vector<144x144xf32>, vector<2x144xf32> -> vector<2x144xf32>
    %cst_81 = arith.constant dense<0.000000e+00> : vector<2x144xf32>
    %135 = tpu.matmul %131, %73, %cst_81 {dimension_numbers = #tpu.dot_dimension_numbers<[1], [0], [0], [1], [0, 0, 1, 1], [], []>} : vector<2x144xf32>, vector<144x144xf32>, vector<2x144xf32> -> vector<2x144xf32>
    %136 = vector.broadcast %67 : vector<1x144xf32> to vector<2x144xf32>
    %137 = arith.addf %135, %136 : vector<2x144xf32>
    %138 = vector.extract_strided_slice %51 {offsets = [4, 0], sizes = [2, 144], strides = [1, 1]} : vector<16x144xf32> to vector<2x144xf32>
    %139 = arith.addf %138, %133 : vector<2x144xf32>
    %140 = arith.negf %139 : vector<2x144xf32>
    %141 = math.exp %140 : vector<2x144xf32>
    %cst_82 = arith.constant 1.000000e+00 : f32
    %142 = vector.broadcast %cst_82 : f32 to vector<2x144xf32>
    %143 = arith.addf %142, %141 : vector<2x144xf32>
    %144 = arith.divf %142, %143 : vector<2x144xf32>
    %145 = vector.extract_strided_slice %58 {offsets = [4, 0], sizes = [2, 144], strides = [1, 1]} : vector<16x144xf32> to vector<2x144xf32>
    %146 = arith.addf %145, %134 : vector<2x144xf32>
    %147 = arith.negf %146 : vector<2x144xf32>
    %148 = math.exp %147 : vector<2x144xf32>
    %cst_83 = arith.constant 1.000000e+00 : f32
    %149 = vector.broadcast %cst_83 : f32 to vector<2x144xf32>
    %150 = arith.addf %149, %148 : vector<2x144xf32>
    %151 = arith.divf %149, %150 : vector<2x144xf32>
    %152 = vector.extract_strided_slice %65 {offsets = [4, 0], sizes = [2, 144], strides = [1, 1]} : vector<16x144xf32> to vector<2x144xf32>
    %153 = arith.mulf %144, %137 : vector<2x144xf32>
    %154 = arith.addf %152, %153 : vector<2x144xf32>
    %155 = math.tanh %154 : vector<2x144xf32>
    %cst_84 = arith.constant 1.000000e+00 : f32
    %156 = vector.broadcast %cst_84 : f32 to vector<2x144xf32>
    %157 = arith.subf %156, %151 : vector<2x144xf32>
    %158 = arith.mulf %157, %155 : vector<2x144xf32>
    %159 = arith.mulf %151, %131 : vector<2x144xf32>
    %160 = arith.addf %158, %159 : vector<2x144xf32>
    %c4 = arith.constant 4 : index
    %c0_85 = arith.constant 0 : index
    %161 = vector.load %arg20[%c4, %c0_85] : memref<16x144xf32, #tpu.memory_space<vmem>>, vector<2x144xf32>
    tpu.vector_store %arg20[%c4, %c0_85], %160 {strides = array<i32>} : memref<16x144xf32, #tpu.memory_space<vmem>>, vector<2x144xf32>,
    %cst_86 = arith.constant dense<0.000000e+00> : vector<2x144xf32>
    %162 = tpu.matmul %160, %69, %cst_86 {dimension_numbers = #tpu.dot_dimension_numbers<[1], [0], [0], [1], [0, 0, 1, 1], [], []>} : vector<2x144xf32>, vector<144x144xf32>, vector<2x144xf32> -> vector<2x144xf32>
    %cst_87 = arith.constant dense<0.000000e+00> : vector<2x144xf32>
    %163 = tpu.matmul %160, %71, %cst_87 {dimension_numbers = #tpu.dot_dimension_numbers<[1], [0], [0], [1], [0, 0, 1, 1], [], []>} : vector<2x144xf32>, vector<144x144xf32>, vector<2x144xf32> -> vector<2x144xf32>
    %cst_88 = arith.constant dense<0.000000e+00> : vector<2x144xf32>
    %164 = tpu.matmul %160, %73, %cst_88 {dimension_numbers = #tpu.dot_dimension_numbers<[1], [0], [0], [1], [0, 0, 1, 1], [], []>} : vector<2x144xf32>, vector<144x144xf32>, vector<2x144xf32> -> vector<2x144xf32>
    %165 = vector.broadcast %67 : vector<1x144xf32> to vector<2x144xf32>
    %166 = arith.addf %164, %165 : vector<2x144xf32>
    %167 = vector.extract_strided_slice %51 {offsets = [6, 0], sizes = [2, 144], strides = [1, 1]} : vector<16x144xf32> to vector<2x144xf32>
    %168 = arith.addf %167, %162 : vector<2x144xf32>
    %169 = arith.negf %168 : vector<2x144xf32>
    %170 = math.exp %169 : vector<2x144xf32>
    %cst_89 = arith.constant 1.000000e+00 : f32
    %171 = vector.broadcast %cst_89 : f32 to vector<2x144xf32>
    %172 = arith.addf %171, %170 : vector<2x144xf32>
    %173 = arith.divf %171, %172 : vector<2x144xf32>
    %174 = vector.extract_strided_slice %58 {offsets = [6, 0], sizes = [2, 144], strides = [1, 1]} : vector<16x144xf32> to vector<2x144xf32>
    %175 = arith.addf %174, %163 : vector<2x144xf32>
    %176 = arith.negf %175 : vector<2x144xf32>
    %177 = math.exp %176 : vector<2x144xf32>
    %cst_90 = arith.constant 1.000000e+00 : f32
    %178 = vector.broadcast %cst_90 : f32 to vector<2x144xf32>
    %179 = arith.addf %178, %177 : vector<2x144xf32>
    %180 = arith.divf %178, %179 : vector<2x144xf32>
    %181 = vector.extract_strided_slice %65 {offsets = [6, 0], sizes = [2, 144], strides = [1, 1]} : vector<16x144xf32> to vector<2x144xf32>
    %182 = arith.mulf %173, %166 : vector<2x144xf32>
    %183 = arith.addf %181, %182 : vector<2x144xf32>
    %184 = math.tanh %183 : vector<2x144xf32>
    %cst_91 = arith.constant 1.000000e+00 : f32
    %185 = vector.broadcast %cst_91 : f32 to vector<2x144xf32>
    %186 = arith.subf %185, %180 : vector<2x144xf32>
    %187 = arith.mulf %186, %184 : vector<2x144xf32>
    %188 = arith.mulf %180, %160 : vector<2x144xf32>
    %189 = arith.addf %187, %188 : vector<2x144xf32>
    %c6 = arith.constant 6 : index
    %c0_92 = arith.constant 0 : index
    %190 = vector.load %arg20[%c6, %c0_92] : memref<16x144xf32, #tpu.memory_space<vmem>>, vector<2x144xf32>
    tpu.vector_store %arg20[%c6, %c0_92], %189 {strides = array<i32>} : memref<16x144xf32, #tpu.memory_space<vmem>>, vector<2x144xf32>,
    %cst_93 = arith.constant dense<0.000000e+00> : vector<2x144xf32>
    %191 = tpu.matmul %189, %69, %cst_93 {dimension_numbers = #tpu.dot_dimension_numbers<[1], [0], [0], [1], [0, 0, 1, 1], [], []>} : vector<2x144xf32>, vector<144x144xf32>, vector<2x144xf32> -> vector<2x144xf32>
    %cst_94 = arith.constant dense<0.000000e+00> : vector<2x144xf32>
    %192 = tpu.matmul %189, %71, %cst_94 {dimension_numbers = #tpu.dot_dimension_numbers<[1], [0], [0], [1], [0, 0, 1, 1], [], []>} : vector<2x144xf32>, vector<144x144xf32>, vector<2x144xf32> -> vector<2x144xf32>
    %cst_95 = arith.constant dense<0.000000e+00> : vector<2x144xf32>
    %193 = tpu.matmul %189, %73, %cst_95 {dimension_numbers = #tpu.dot_dimension_numbers<[1], [0], [0], [1], [0, 0, 1, 1], [], []>} : vector<2x144xf32>, vector<144x144xf32>, vector<2x144xf32> -> vector<2x144xf32>
    %194 = vector.broadcast %67 : vector<1x144xf32> to vector<2x144xf32>
    %195 = arith.addf %193, %194 : vector<2x144xf32>
    %196 = vector.extract_strided_slice %51 {offsets = [8, 0], sizes = [2, 144], strides = [1, 1]} : vector<16x144xf32> to vector<2x144xf32>
    %197 = arith.addf %196, %191 : vector<2x144xf32>
    %198 = arith.negf %197 : vector<2x144xf32>
    %199 = math.exp %198 : vector<2x144xf32>
    %cst_96 = arith.constant 1.000000e+00 : f32
    %200 = vector.broadcast %cst_96 : f32 to vector<2x144xf32>
    %201 = arith.addf %200, %199 : vector<2x144xf32>
    %202 = arith.divf %200, %201 : vector<2x144xf32>
    %203 = vector.extract_strided_slice %58 {offsets = [8, 0], sizes = [2, 144], strides = [1, 1]} : vector<16x144xf32> to vector<2x144xf32>
    %204 = arith.addf %203, %192 : vector<2x144xf32>
    %205 = arith.negf %204 : vector<2x144xf32>
    %206 = math.exp %205 : vector<2x144xf32>
    %cst_97 = arith.constant 1.000000e+00 : f32
    %207 = vector.broadcast %cst_97 : f32 to vector<2x144xf32>
    %208 = arith.addf %207, %206 : vector<2x144xf32>
    %209 = arith.divf %207, %208 : vector<2x144xf32>
    %210 = vector.extract_strided_slice %65 {offsets = [8, 0], sizes = [2, 144], strides = [1, 1]} : vector<16x144xf32> to vector<2x144xf32>
    %211 = arith.mulf %202, %195 : vector<2x144xf32>
    %212 = arith.addf %210, %211 : vector<2x144xf32>
    %213 = math.tanh %212 : vector<2x144xf32>
    %cst_98 = arith.constant 1.000000e+00 : f32
    %214 = vector.broadcast %cst_98 : f32 to vector<2x144xf32>
    %215 = arith.subf %214, %209 : vector<2x144xf32>
    %216 = arith.mulf %215, %213 : vector<2x144xf32>
    %217 = arith.mulf %209, %189 : vector<2x144xf32>
    %218 = arith.addf %216, %217 : vector<2x144xf32>
    %c8 = arith.constant 8 : index
    %c0_99 = arith.constant 0 : index
    %219 = vector.load %arg20[%c8, %c0_99] : memref<16x144xf32, #tpu.memory_space<vmem>>, vector<2x144xf32>
    tpu.vector_store %arg20[%c8, %c0_99], %218 {strides = array<i32>} : memref<16x144xf32, #tpu.memory_space<vmem>>, vector<2x144xf32>,
    %cst_100 = arith.constant dense<0.000000e+00> : vector<2x144xf32>
    %220 = tpu.matmul %218, %69, %cst_100 {dimension_numbers = #tpu.dot_dimension_numbers<[1], [0], [0], [1], [0, 0, 1, 1], [], []>} : vector<2x144xf32>, vector<144x144xf32>, vector<2x144xf32> -> vector<2x144xf32>
    %cst_101 = arith.constant dense<0.000000e+00> : vector<2x144xf32>
    %221 = tpu.matmul %218, %71, %cst_101 {dimension_numbers = #tpu.dot_dimension_numbers<[1], [0], [0], [1], [0, 0, 1, 1], [], []>} : vector<2x144xf32>, vector<144x144xf32>, vector<2x144xf32> -> vector<2x144xf32>
    %cst_102 = arith.constant dense<0.000000e+00> : vector<2x144xf32>
    %222 = tpu.matmul %218, %73, %cst_102 {dimension_numbers = #tpu.dot_dimension_numbers<[1], [0], [0], [1], [0, 0, 1, 1], [], []>} : vector<2x144xf32>, vector<144x144xf32>, vector<2x144xf32> -> vector<2x144xf32>
    %223 = vector.broadcast %67 : vector<1x144xf32> to vector<2x144xf32>
    %224 = arith.addf %222, %223 : vector<2x144xf32>
    %225 = vector.extract_strided_slice %51 {offsets = [10, 0], sizes = [2, 144], strides = [1, 1]} : vector<16x144xf32> to vector<2x144xf32>
    %226 = arith.addf %225, %220 : vector<2x144xf32>
    %227 = arith.negf %226 : vector<2x144xf32>
    %228 = math.exp %227 : vector<2x144xf32>
    %cst_103 = arith.constant 1.000000e+00 : f32
    %229 = vector.broadcast %cst_103 : f32 to vector<2x144xf32>
    %230 = arith.addf %229, %228 : vector<2x144xf32>
    %231 = arith.divf %229, %230 : vector<2x144xf32>
    %232 = vector.extract_strided_slice %58 {offsets = [10, 0], sizes = [2, 144], strides = [1, 1]} : vector<16x144xf32> to vector<2x144xf32>
    %233 = arith.addf %232, %221 : vector<2x144xf32>
    %234 = arith.negf %233 : vector<2x144xf32>
    %235 = math.exp %234 : vector<2x144xf32>
    %cst_104 = arith.constant 1.000000e+00 : f32
    %236 = vector.broadcast %cst_104 : f32 to vector<2x144xf32>
    %237 = arith.addf %236, %235 : vector<2x144xf32>
    %238 = arith.divf %236, %237 : vector<2x144xf32>
    %239 = vector.extract_strided_slice %65 {offsets = [10, 0], sizes = [2, 144], strides = [1, 1]} : vector<16x144xf32> to vector<2x144xf32>
    %240 = arith.mulf %231, %224 : vector<2x144xf32>
    %241 = arith.addf %239, %240 : vector<2x144xf32>
    %242 = math.tanh %241 : vector<2x144xf32>
    %cst_105 = arith.constant 1.000000e+00 : f32
    %243 = vector.broadcast %cst_105 : f32 to vector<2x144xf32>
    %244 = arith.subf %243, %238 : vector<2x144xf32>
    %245 = arith.mulf %244, %242 : vector<2x144xf32>
    %246 = arith.mulf %238, %218 : vector<2x144xf32>
    %247 = arith.addf %245, %246 : vector<2x144xf32>
    %c10 = arith.constant 10 : index
    %c0_106 = arith.constant 0 : index
    %248 = vector.load %arg20[%c10, %c0_106] : memref<16x144xf32, #tpu.memory_space<vmem>>, vector<2x144xf32>
    tpu.vector_store %arg20[%c10, %c0_106], %247 {strides = array<i32>} : memref<16x144xf32, #tpu.memory_space<vmem>>, vector<2x144xf32>,
    %cst_107 = arith.constant dense<0.000000e+00> : vector<2x144xf32>
    %249 = tpu.matmul %247, %69, %cst_107 {dimension_numbers = #tpu.dot_dimension_numbers<[1], [0], [0], [1], [0, 0, 1, 1], [], []>} : vector<2x144xf32>, vector<144x144xf32>, vector<2x144xf32> -> vector<2x144xf32>
    %cst_108 = arith.constant dense<0.000000e+00> : vector<2x144xf32>
    %250 = tpu.matmul %247, %71, %cst_108 {dimension_numbers = #tpu.dot_dimension_numbers<[1], [0], [0], [1], [0, 0, 1, 1], [], []>} : vector<2x144xf32>, vector<144x144xf32>, vector<2x144xf32> -> vector<2x144xf32>
    %cst_109 = arith.constant dense<0.000000e+00> : vector<2x144xf32>
    %251 = tpu.matmul %247, %73, %cst_109 {dimension_numbers = #tpu.dot_dimension_numbers<[1], [0], [0], [1], [0, 0, 1, 1], [], []>} : vector<2x144xf32>, vector<144x144xf32>, vector<2x144xf32> -> vector<2x144xf32>
    %252 = vector.broadcast %67 : vector<1x144xf32> to vector<2x144xf32>
    %253 = arith.addf %251, %252 : vector<2x144xf32>
    %254 = vector.extract_strided_slice %51 {offsets = [12, 0], sizes = [2, 144], strides = [1, 1]} : vector<16x144xf32> to vector<2x144xf32>
    %255 = arith.addf %254, %249 : vector<2x144xf32>
    %256 = arith.negf %255 : vector<2x144xf32>
    %257 = math.exp %256 : vector<2x144xf32>
    %cst_110 = arith.constant 1.000000e+00 : f32
    %258 = vector.broadcast %cst_110 : f32 to vector<2x144xf32>
    %259 = arith.addf %258, %257 : vector<2x144xf32>
    %260 = arith.divf %258, %259 : vector<2x144xf32>
    %261 = vector.extract_strided_slice %58 {offsets = [12, 0], sizes = [2, 144], strides = [1, 1]} : vector<16x144xf32> to vector<2x144xf32>
    %262 = arith.addf %261, %250 : vector<2x144xf32>
    %263 = arith.negf %262 : vector<2x144xf32>
    %264 = math.exp %263 : vector<2x144xf32>
    %cst_111 = arith.constant 1.000000e+00 : f32
    %265 = vector.broadcast %cst_111 : f32 to vector<2x144xf32>
    %266 = arith.addf %265, %264 : vector<2x144xf32>
    %267 = arith.divf %265, %266 : vector<2x144xf32>
    %268 = vector.extract_strided_slice %65 {offsets = [12, 0], sizes = [2, 144], strides = [1, 1]} : vector<16x144xf32> to vector<2x144xf32>
    %269 = arith.mulf %260, %253 : vector<2x144xf32>
    %270 = arith.addf %268, %269 : vector<2x144xf32>
    %271 = math.tanh %270 : vector<2x144xf32>
    %cst_112 = arith.constant 1.000000e+00 : f32
    %272 = vector.broadcast %cst_112 : f32 to vector<2x144xf32>
    %273 = arith.subf %272, %267 : vector<2x144xf32>
    %274 = arith.mulf %273, %271 : vector<2x144xf32>
    %275 = arith.mulf %267, %247 : vector<2x144xf32>
    %276 = arith.addf %274, %275 : vector<2x144xf32>
    %c12 = arith.constant 12 : index
    %c0_113 = arith.constant 0 : index
    %277 = vector.load %arg20[%c12, %c0_113] : memref<16x144xf32, #tpu.memory_space<vmem>>, vector<2x144xf32>
    tpu.vector_store %arg20[%c12, %c0_113], %276 {strides = array<i32>} : memref<16x144xf32, #tpu.memory_space<vmem>>, vector<2x144xf32>,
    %cst_114 = arith.constant dense<0.000000e+00> : vector<2x144xf32>
    %278 = tpu.matmul %276, %69, %cst_114 {dimension_numbers = #tpu.dot_dimension_numbers<[1], [0], [0], [1], [0, 0, 1, 1], [], []>} : vector<2x144xf32>, vector<144x144xf32>, vector<2x144xf32> -> vector<2x144xf32>
    %cst_115 = arith.constant dense<0.000000e+00> : vector<2x144xf32>
    %279 = tpu.matmul %276, %71, %cst_115 {dimension_numbers = #tpu.dot_dimension_numbers<[1], [0], [0], [1], [0, 0, 1, 1], [], []>} : vector<2x144xf32>, vector<144x144xf32>, vector<2x144xf32> -> vector<2x144xf32>
    %cst_116 = arith.constant dense<0.000000e+00> : vector<2x144xf32>
    %280 = tpu.matmul %276, %73, %cst_116 {dimension_numbers = #tpu.dot_dimension_numbers<[1], [0], [0], [1], [0, 0, 1, 1], [], []>} : vector<2x144xf32>, vector<144x144xf32>, vector<2x144xf32> -> vector<2x144xf32>
    %281 = vector.broadcast %67 : vector<1x144xf32> to vector<2x144xf32>
    %282 = arith.addf %280, %281 : vector<2x144xf32>
    %283 = vector.extract_strided_slice %51 {offsets = [14, 0], sizes = [2, 144], strides = [1, 1]} : vector<16x144xf32> to vector<2x144xf32>
    %284 = arith.addf %283, %278 : vector<2x144xf32>
    %285 = arith.negf %284 : vector<2x144xf32>
    %286 = math.exp %285 : vector<2x144xf32>
    %cst_117 = arith.constant 1.000000e+00 : f32
    %287 = vector.broadcast %cst_117 : f32 to vector<2x144xf32>
    %288 = arith.addf %287, %286 : vector<2x144xf32>
    %289 = arith.divf %287, %288 : vector<2x144xf32>
    %290 = vector.extract_strided_slice %58 {offsets = [14, 0], sizes = [2, 144], strides = [1, 1]} : vector<16x144xf32> to vector<2x144xf32>
    %291 = arith.addf %290, %279 : vector<2x144xf32>
    %292 = arith.negf %291 : vector<2x144xf32>
    %293 = math.exp %292 : vector<2x144xf32>
    %cst_118 = arith.constant 1.000000e+00 : f32
    %294 = vector.broadcast %cst_118 : f32 to vector<2x144xf32>
    %295 = arith.addf %294, %293 : vector<2x144xf32>
    %296 = arith.divf %294, %295 : vector<2x144xf32>
    %297 = vector.extract_strided_slice %65 {offsets = [14, 0], sizes = [2, 144], strides = [1, 1]} : vector<16x144xf32> to vector<2x144xf32>
    %298 = arith.mulf %289, %282 : vector<2x144xf32>
    %299 = arith.addf %297, %298 : vector<2x144xf32>
    %300 = math.tanh %299 : vector<2x144xf32>
    %cst_119 = arith.constant 1.000000e+00 : f32
    %301 = vector.broadcast %cst_119 : f32 to vector<2x144xf32>
    %302 = arith.subf %301, %296 : vector<2x144xf32>
    %303 = arith.mulf %302, %300 : vector<2x144xf32>
    %304 = arith.mulf %296, %276 : vector<2x144xf32>
    %305 = arith.addf %303, %304 : vector<2x144xf32>
    %c14 = arith.constant 14 : index
    %c0_120 = arith.constant 0 : index
    %306 = vector.load %arg20[%c14, %c0_120] : memref<16x144xf32, #tpu.memory_space<vmem>>, vector<2x144xf32>
    tpu.vector_store %arg20[%c14, %c0_120], %305 {strides = array<i32>} : memref<16x144xf32, #tpu.memory_space<vmem>>, vector<2x144xf32>,
    %c0_121 = arith.constant 0 : index
    %c0_122 = arith.constant 0 : index
    %307 = vector.load %arg19[%c0_121, %c0_122] : memref<2x144xf32, #tpu.memory_space<vmem>>, vector<2x144xf32>
    tpu.vector_store %arg19[%c0_121, %c0_122], %305 {strides = array<i32>} : memref<2x144xf32, #tpu.memory_space<vmem>>, vector<2x144xf32>,
    %c0_123 = arith.constant 0 : index
    %c0_124 = arith.constant 0 : index
    %308 = vector.load %arg20[%c0_123, %c0_124] : memref<16x144xf32, #tpu.memory_space<vmem>>, vector<16x144xf32>
    %c0_125 = arith.constant 0 : index
    %c0_126 = arith.constant 0 : index
    %c0_127 = arith.constant 0 : index
    %309 = vector.load %arg9[%c0_125, %c0_126, %c0_127] : memref<3x144x144xf32, #tpu.memory_space<vmem>>, vector<1x144x144xf32>
    %310 = vector.shape_cast %309 : vector<1x144x144xf32> to vector<144x144xf32>
    %cst_128 = arith.constant dense<0.000000e+00> : vector<16x144xf32>
    %311 = tpu.matmul %308, %310, %cst_128 {dimension_numbers = #tpu.dot_dimension_numbers<[1], [0], [0], [1], [0, 0, 1, 1], [], []>} : vector<16x144xf32>, vector<144x144xf32>, vector<16x144xf32> -> vector<16x144xf32>
    %c0_129 = arith.constant 0 : index
    %c0_130 = arith.constant 0 : index
    %c0_131 = arith.constant 0 : index
    %312 = vector.load %arg10[%c0_129, %c0_130, %c0_131] : memref<3x1x144xf32, #tpu.memory_space<vmem>>, vector<1x1x144xf32>
    %313 = vector.shape_cast %312 : vector<1x1x144xf32> to vector<1x144xf32>
    %314 = vector.broadcast %313 : vector<1x144xf32> to vector<16x144xf32>
    %315 = arith.addf %311, %314 : vector<16x144xf32>
    %c1_132 = arith.constant 1 : index
    %c0_133 = arith.constant 0 : index
    %c0_134 = arith.constant 0 : index
    %316 = vector.load %arg9[%c1_132, %c0_133, %c0_134] : memref<3x144x144xf32, #tpu.memory_space<vmem>>, vector<1x144x144xf32>
    %317 = vector.shape_cast %316 : vector<1x144x144xf32> to vector<144x144xf32>
    %cst_135 = arith.constant dense<0.000000e+00> : vector<16x144xf32>
    %318 = tpu.matmul %308, %317, %cst_135 {dimension_numbers = #tpu.dot_dimension_numbers<[1], [0], [0], [1], [0, 0, 1, 1], [], []>} : vector<16x144xf32>, vector<144x144xf32>, vector<16x144xf32> -> vector<16x144xf32>
    %c1_136 = arith.constant 1 : index
    %c0_137 = arith.constant 0 : index
    %c0_138 = arith.constant 0 : index
    %319 = vector.load %arg10[%c1_136, %c0_137, %c0_138] : memref<3x1x144xf32, #tpu.memory_space<vmem>>, vector<1x1x144xf32>
    %320 = vector.shape_cast %319 : vector<1x1x144xf32> to vector<1x144xf32>
    %321 = vector.broadcast %320 : vector<1x144xf32> to vector<16x144xf32>
    %322 = arith.addf %318, %321 : vector<16x144xf32>
    %c2_139 = arith.constant 2 : index
    %c0_140 = arith.constant 0 : index
    %c0_141 = arith.constant 0 : index
    %323 = vector.load %arg9[%c2_139, %c0_140, %c0_141] : memref<3x144x144xf32, #tpu.memory_space<vmem>>, vector<1x144x144xf32>
    %324 = vector.shape_cast %323 : vector<1x144x144xf32> to vector<144x144xf32>
    %cst_142 = arith.constant dense<0.000000e+00> : vector<16x144xf32>
    %325 = tpu.matmul %308, %324, %cst_142 {dimension_numbers = #tpu.dot_dimension_numbers<[1], [0], [0], [1], [0, 0, 1, 1], [], []>} : vector<16x144xf32>, vector<144x144xf32>, vector<16x144xf32> -> vector<16x144xf32>
    %c2_143 = arith.constant 2 : index
    %c0_144 = arith.constant 0 : index
    %c0_145 = arith.constant 0 : index
    %326 = vector.load %arg10[%c2_143, %c0_144, %c0_145] : memref<3x1x144xf32, #tpu.memory_space<vmem>>, vector<1x1x144xf32>
    %327 = vector.shape_cast %326 : vector<1x1x144xf32> to vector<1x144xf32>
    %328 = vector.broadcast %327 : vector<1x144xf32> to vector<16x144xf32>
    %329 = arith.addf %325, %328 : vector<16x144xf32>
    %c0_146 = arith.constant 0 : index
    %c0_147 = arith.constant 0 : index
    %330 = vector.load %arg13[%c0_146, %c0_147] : memref<16x2xf32, #tpu.memory_space<vmem>>, vector<16x2xf32>
    %331 = vector.extract_strided_slice %322 {offsets = [0, 0], sizes = [2, 144], strides = [1, 1]} : vector<16x144xf32> to vector<2x144xf32>
    %cst_148 = arith.constant dense<0.000000e+00> : vector<16x144xf32>
    %332 = tpu.matmul %330, %331, %cst_148 {dimension_numbers = #tpu.dot_dimension_numbers<[1], [0], [0], [1], [0, 0, 1, 1], [], []>} : vector<16x2xf32>, vector<2x144xf32>, vector<16x144xf32> -> vector<16x144xf32>
    %333 = arith.mulf %315, %332 : vector<16x144xf32>
    %cst_149 = arith.constant 1.000000e+00 : f32
    %334 = vector.broadcast %cst_149 : f32 to vector<16x144xf32>
    %335 = vector.extract_strided_slice %329 {offsets = [0, 0], sizes = [2, 144], strides = [1, 1]} : vector<16x144xf32> to vector<2x144xf32>
    %cst_150 = arith.constant dense<0.000000e+00> : vector<16x144xf32>
    %336 = tpu.matmul %330, %335, %cst_150 {dimension_numbers = #tpu.dot_dimension_numbers<[1], [0], [0], [1], [0, 0, 1, 1], [], []>} : vector<16x2xf32>, vector<2x144xf32>, vector<16x144xf32> -> vector<16x144xf32>
    %337 = vector.extract_strided_slice %322 {offsets = [2, 0], sizes = [2, 144], strides = [1, 1]} : vector<16x144xf32> to vector<2x144xf32>
    %cst_151 = arith.constant dense<0.000000e+00> : vector<16x144xf32>
    %338 = tpu.matmul %330, %337, %cst_151 {dimension_numbers = #tpu.dot_dimension_numbers<[1], [0], [0], [1], [0, 0, 1, 1], [], []>} : vector<16x2xf32>, vector<2x144xf32>, vector<16x144xf32> -> vector<16x144xf32>
    %339 = arith.mulf %315, %338 : vector<16x144xf32>
    %340 = arith.maximumf %333, %339 : vector<16x144xf32>
    %341 = arith.subf %333, %340 : vector<16x144xf32>
    %342 = math.exp %341 : vector<16x144xf32>
    %343 = arith.subf %339, %340 : vector<16x144xf32>
    %344 = math.exp %343 : vector<16x144xf32>
    %345 = arith.mulf %342, %334 : vector<16x144xf32>
    %346 = arith.addf %345, %344 : vector<16x144xf32>
    %347 = arith.mulf %342, %336 : vector<16x144xf32>
    %348 = vector.extract_strided_slice %329 {offsets = [2, 0], sizes = [2, 144], strides = [1, 1]} : vector<16x144xf32> to vector<2x144xf32>
    %cst_152 = arith.constant dense<0.000000e+00> : vector<16x144xf32>
    %349 = tpu.matmul %330, %348, %cst_152 {dimension_numbers = #tpu.dot_dimension_numbers<[1], [0], [0], [1], [0, 0, 1, 1], [], []>} : vector<16x2xf32>, vector<2x144xf32>, vector<16x144xf32> -> vector<16x144xf32>
    %350 = arith.mulf %344, %349 : vector<16x144xf32>
    %351 = arith.addf %347, %350 : vector<16x144xf32>
    %352 = vector.extract_strided_slice %322 {offsets = [4, 0], sizes = [2, 144], strides = [1, 1]} : vector<16x144xf32> to vector<2x144xf32>
    %cst_153 = arith.constant dense<0.000000e+00> : vector<16x144xf32>
    %353 = tpu.matmul %330, %352, %cst_153 {dimension_numbers = #tpu.dot_dimension_numbers<[1], [0], [0], [1], [0, 0, 1, 1], [], []>} : vector<16x2xf32>, vector<2x144xf32>, vector<16x144xf32> -> vector<16x144xf32>
    %354 = arith.mulf %315, %353 : vector<16x144xf32>
    %355 = arith.maximumf %340, %354 : vector<16x144xf32>
    %356 = arith.subf %340, %355 : vector<16x144xf32>
    %357 = math.exp %356 : vector<16x144xf32>
    %358 = arith.subf %354, %355 : vector<16x144xf32>
    %359 = math.exp %358 : vector<16x144xf32>
    %360 = arith.mulf %357, %346 : vector<16x144xf32>
    %361 = arith.addf %360, %359 : vector<16x144xf32>
    %362 = arith.mulf %357, %351 : vector<16x144xf32>
    %363 = vector.extract_strided_slice %329 {offsets = [4, 0], sizes = [2, 144], strides = [1, 1]} : vector<16x144xf32> to vector<2x144xf32>
    %cst_154 = arith.constant dense<0.000000e+00> : vector<16x144xf32>
    %364 = tpu.matmul %330, %363, %cst_154 {dimension_numbers = #tpu.dot_dimension_numbers<[1], [0], [0], [1], [0, 0, 1, 1], [], []>} : vector<16x2xf32>, vector<2x144xf32>, vector<16x144xf32> -> vector<16x144xf32>
    %365 = arith.mulf %359, %364 : vector<16x144xf32>
    %366 = arith.addf %362, %365 : vector<16x144xf32>
    %367 = vector.extract_strided_slice %322 {offsets = [6, 0], sizes = [2, 144], strides = [1, 1]} : vector<16x144xf32> to vector<2x144xf32>
    %cst_155 = arith.constant dense<0.000000e+00> : vector<16x144xf32>
    %368 = tpu.matmul %330, %367, %cst_155 {dimension_numbers = #tpu.dot_dimension_numbers<[1], [0], [0], [1], [0, 0, 1, 1], [], []>} : vector<16x2xf32>, vector<2x144xf32>, vector<16x144xf32> -> vector<16x144xf32>
    %369 = arith.mulf %315, %368 : vector<16x144xf32>
    %370 = arith.maximumf %355, %369 : vector<16x144xf32>
    %371 = arith.subf %355, %370 : vector<16x144xf32>
    %372 = math.exp %371 : vector<16x144xf32>
    %373 = arith.subf %369, %370 : vector<16x144xf32>
    %374 = math.exp %373 : vector<16x144xf32>
    %375 = arith.mulf %372, %361 : vector<16x144xf32>
    %376 = arith.addf %375, %374 : vector<16x144xf32>
    %377 = arith.mulf %372, %366 : vector<16x144xf32>
    %378 = vector.extract_strided_slice %329 {offsets = [6, 0], sizes = [2, 144], strides = [1, 1]} : vector<16x144xf32> to vector<2x144xf32>
    %cst_156 = arith.constant dense<0.000000e+00> : vector<16x144xf32>
    %379 = tpu.matmul %330, %378, %cst_156 {dimension_numbers = #tpu.dot_dimension_numbers<[1], [0], [0], [1], [0, 0, 1, 1], [], []>} : vector<16x2xf32>, vector<2x144xf32>, vector<16x144xf32> -> vector<16x144xf32>
    %380 = arith.mulf %374, %379 : vector<16x144xf32>
    %381 = arith.addf %377, %380 : vector<16x144xf32>
    %382 = vector.extract_strided_slice %322 {offsets = [8, 0], sizes = [2, 144], strides = [1, 1]} : vector<16x144xf32> to vector<2x144xf32>
    %cst_157 = arith.constant dense<0.000000e+00> : vector<16x144xf32>
    %383 = tpu.matmul %330, %382, %cst_157 {dimension_numbers = #tpu.dot_dimension_numbers<[1], [0], [0], [1], [0, 0, 1, 1], [], []>} : vector<16x2xf32>, vector<2x144xf32>, vector<16x144xf32> -> vector<16x144xf32>
    %384 = arith.mulf %315, %383 : vector<16x144xf32>
    %385 = arith.maximumf %370, %384 : vector<16x144xf32>
    %386 = arith.subf %370, %385 : vector<16x144xf32>
    %387 = math.exp %386 : vector<16x144xf32>
    %388 = arith.subf %384, %385 : vector<16x144xf32>
    %389 = math.exp %388 : vector<16x144xf32>
    %390 = arith.mulf %387, %376 : vector<16x144xf32>
    %391 = arith.addf %390, %389 : vector<16x144xf32>
    %392 = arith.mulf %387, %381 : vector<16x144xf32>
    %393 = vector.extract_strided_slice %329 {offsets = [8, 0], sizes = [2, 144], strides = [1, 1]} : vector<16x144xf32> to vector<2x144xf32>
    %cst_158 = arith.constant dense<0.000000e+00> : vector<16x144xf32>
    %394 = tpu.matmul %330, %393, %cst_158 {dimension_numbers = #tpu.dot_dimension_numbers<[1], [0], [0], [1], [0, 0, 1, 1], [], []>} : vector<16x2xf32>, vector<2x144xf32>, vector<16x144xf32> -> vector<16x144xf32>
    %395 = arith.mulf %389, %394 : vector<16x144xf32>
    %396 = arith.addf %392, %395 : vector<16x144xf32>
    %397 = vector.extract_strided_slice %322 {offsets = [10, 0], sizes = [2, 144], strides = [1, 1]} : vector<16x144xf32> to vector<2x144xf32>
    %cst_159 = arith.constant dense<0.000000e+00> : vector<16x144xf32>
    %398 = tpu.matmul %330, %397, %cst_159 {dimension_numbers = #tpu.dot_dimension_numbers<[1], [0], [0], [1], [0, 0, 1, 1], [], []>} : vector<16x2xf32>, vector<2x144xf32>, vector<16x144xf32> -> vector<16x144xf32>
    %399 = arith.mulf %315, %398 : vector<16x144xf32>
    %400 = arith.maximumf %385, %399 : vector<16x144xf32>
    %401 = arith.subf %385, %400 : vector<16x144xf32>
    %402 = math.exp %401 : vector<16x144xf32>
    %403 = arith.subf %399, %400 : vector<16x144xf32>
    %404 = math.exp %403 : vector<16x144xf32>
    %405 = arith.mulf %402, %391 : vector<16x144xf32>
    %406 = arith.addf %405, %404 : vector<16x144xf32>
    %407 = arith.mulf %402, %396 : vector<16x144xf32>
    %408 = vector.extract_strided_slice %329 {offsets = [10, 0], sizes = [2, 144], strides = [1, 1]} : vector<16x144xf32> to vector<2x144xf32>
    %cst_160 = arith.constant dense<0.000000e+00> : vector<16x144xf32>
    %409 = tpu.matmul %330, %408, %cst_160 {dimension_numbers = #tpu.dot_dimension_numbers<[1], [0], [0], [1], [0, 0, 1, 1], [], []>} : vector<16x2xf32>, vector<2x144xf32>, vector<16x144xf32> -> vector<16x144xf32>
    %410 = arith.mulf %404, %409 : vector<16x144xf32>
    %411 = arith.addf %407, %410 : vector<16x144xf32>
    %412 = vector.extract_strided_slice %322 {offsets = [12, 0], sizes = [2, 144], strides = [1, 1]} : vector<16x144xf32> to vector<2x144xf32>
    %cst_161 = arith.constant dense<0.000000e+00> : vector<16x144xf32>
    %413 = tpu.matmul %330, %412, %cst_161 {dimension_numbers = #tpu.dot_dimension_numbers<[1], [0], [0], [1], [0, 0, 1, 1], [], []>} : vector<16x2xf32>, vector<2x144xf32>, vector<16x144xf32> -> vector<16x144xf32>
    %414 = arith.mulf %315, %413 : vector<16x144xf32>
    %415 = arith.maximumf %400, %414 : vector<16x144xf32>
    %416 = arith.subf %400, %415 : vector<16x144xf32>
    %417 = math.exp %416 : vector<16x144xf32>
    %418 = arith.subf %414, %415 : vector<16x144xf32>
    %419 = math.exp %418 : vector<16x144xf32>
    %420 = arith.mulf %417, %406 : vector<16x144xf32>
    %421 = arith.addf %420, %419 : vector<16x144xf32>
    %422 = arith.mulf %417, %411 : vector<16x144xf32>
    %423 = vector.extract_strided_slice %329 {offsets = [12, 0], sizes = [2, 144], strides = [1, 1]} : vector<16x144xf32> to vector<2x144xf32>
    %cst_162 = arith.constant dense<0.000000e+00> : vector<16x144xf32>
    %424 = tpu.matmul %330, %423, %cst_162 {dimension_numbers = #tpu.dot_dimension_numbers<[1], [0], [0], [1], [0, 0, 1, 1], [], []>} : vector<16x2xf32>, vector<2x144xf32>, vector<16x144xf32> -> vector<16x144xf32>
    %425 = arith.mulf %419, %424 : vector<16x144xf32>
    %426 = arith.addf %422, %425 : vector<16x144xf32>
    %427 = vector.extract_strided_slice %322 {offsets = [14, 0], sizes = [2, 144], strides = [1, 1]} : vector<16x144xf32> to vector<2x144xf32>
    %cst_163 = arith.constant dense<0.000000e+00> : vector<16x144xf32>
    %428 = tpu.matmul %330, %427, %cst_163 {dimension_numbers = #tpu.dot_dimension_numbers<[1], [0], [0], [1], [0, 0, 1, 1], [], []>} : vector<16x2xf32>, vector<2x144xf32>, vector<16x144xf32> -> vector<16x144xf32>
    %429 = arith.mulf %315, %428 : vector<16x144xf32>
    %430 = arith.maximumf %415, %429 : vector<16x144xf32>
    %431 = arith.subf %415, %430 : vector<16x144xf32>
    %432 = math.exp %431 : vector<16x144xf32>
    %433 = arith.subf %429, %430 : vector<16x144xf32>
    %434 = math.exp %433 : vector<16x144xf32>
    %435 = arith.mulf %432, %421 : vector<16x144xf32>
    %436 = arith.addf %435, %434 : vector<16x144xf32>
    %437 = arith.mulf %432, %426 : vector<16x144xf32>
    %438 = vector.extract_strided_slice %329 {offsets = [14, 0], sizes = [2, 144], strides = [1, 1]} : vector<16x144xf32> to vector<2x144xf32>
    %cst_164 = arith.constant dense<0.000000e+00> : vector<16x144xf32>
    %439 = tpu.matmul %330, %438, %cst_164 {dimension_numbers = #tpu.dot_dimension_numbers<[1], [0], [0], [1], [0, 0, 1, 1], [], []>} : vector<16x2xf32>, vector<2x144xf32>, vector<16x144xf32> -> vector<16x144xf32>
    %440 = arith.mulf %434, %439 : vector<16x144xf32>
    %441 = arith.addf %437, %440 : vector<16x144xf32>
    %442 = arith.divf %441, %436 : vector<16x144xf32>
    %c0_165 = arith.constant 0 : index
    %c0_166 = arith.constant 0 : index
    %443 = vector.load %arg11[%c0_165, %c0_166] : memref<144x144xf32, #tpu.memory_space<vmem>>, vector<144x144xf32>
    %cst_167 = arith.constant dense<0.000000e+00> : vector<16x144xf32>
    %444 = tpu.matmul %442, %443, %cst_167 {dimension_numbers = #tpu.dot_dimension_numbers<[1], [0], [0], [1], [0, 0, 1, 1], [], []>} : vector<16x144xf32>, vector<144x144xf32>, vector<16x144xf32> -> vector<16x144xf32>
    %c0_168 = arith.constant 0 : index
    %c0_169 = arith.constant 0 : index
    %445 = vector.load %arg12[%c0_168, %c0_169] : memref<1x144xf32, #tpu.memory_space<vmem>>, vector<1x144xf32>
    %446 = vector.broadcast %445 : vector<1x144xf32> to vector<16x144xf32>
    %447 = arith.addf %444, %446 : vector<16x144xf32>
    %c0_170 = arith.constant 0 : index
    %c0_171 = arith.constant 0 : index
    %448 = vector.load %arg14[%c0_170, %c0_171] : memref<144x514xf32, #tpu.memory_space<vmem>>, vector<144x514xf32>
    %cst_172 = arith.constant dense<0.000000e+00> : vector<16x514xf32>
    %449 = tpu.matmul %447, %448, %cst_172 {dimension_numbers = #tpu.dot_dimension_numbers<[1], [0], [0], [1], [0, 0, 1, 1], [], []>} : vector<16x144xf32>, vector<144x514xf32>, vector<16x514xf32> -> vector<16x514xf32>
    %c0_173 = arith.constant 0 : index
    %c0_174 = arith.constant 0 : index
    %c0_175 = arith.constant 0 : index
    %450 = vector.load %arg15[%c0_173, %c0_174, %c0_175] : memref<3x1x514xf32, #tpu.memory_space<vmem>>, vector<1x1x514xf32>
    %451 = vector.shape_cast %450 : vector<1x1x514xf32> to vector<1x514xf32>
    %452 = vector.broadcast %451 : vector<1x514xf32> to vector<16x514xf32>
    %453 = arith.addf %449, %452 : vector<16x514xf32>
    %cst_176 = arith.constant dense<0.000000e+00> : vector<514xf32>
    %454 = vector.multi_reduction <add>, %453, %cst_176 [0] : vector<16x514xf32> to vector<514xf32>
    %455 = vector.shape_cast %454 : vector<514xf32> to vector<1x514xf32>
    %c0_177 = arith.constant 0 : index
    %c0_178 = arith.constant 0 : index
    %456 = vector.load %arg16[%c0_177, %c0_178] : memref<514x2xf32, #tpu.memory_space<vmem>>, vector<514x2xf32>
    %cst_179 = arith.constant dense<0.000000e+00> : vector<1x2xf32>
    %457 = tpu.matmul %455, %456, %cst_179 {dimension_numbers = #tpu.dot_dimension_numbers<[1], [0], [0], [1], [0, 0, 1, 1], [], []>} : vector<1x514xf32>, vector<514x2xf32>, vector<1x2xf32> -> vector<1x2xf32>
    %cst_180 = arith.constant 4.112000e+03 : f32
    %458 = vector.broadcast %cst_180 : f32 to vector<1x2xf32>
    %459 = arith.divf %457, %458 : vector<1x2xf32>
    %c0_181 = arith.constant 0 : index
    %c0_182 = arith.constant 0 : index
    %460 = vector.load %arg17[%c0_181, %c0_182] : memref<2x514xf32, #tpu.memory_space<vmem>>, vector<2x514xf32>
    %cst_183 = arith.constant dense<0.000000e+00> : vector<1x514xf32>
    %461 = tpu.matmul %459, %460, %cst_183 {dimension_numbers = #tpu.dot_dimension_numbers<[1], [0], [0], [1], [0, 0, 1, 1], [], []>} : vector<1x2xf32>, vector<2x514xf32>, vector<1x514xf32> -> vector<1x514xf32>
    %462 = vector.broadcast %461 : vector<1x514xf32> to vector<16x514xf32>
    %463 = arith.subf %453, %462 : vector<16x514xf32>
    %464 = arith.mulf %463, %463 : vector<16x514xf32>
    %cst_184 = arith.constant dense<0.000000e+00> : vector<514xf32>
    %465 = vector.multi_reduction <add>, %464, %cst_184 [0] : vector<16x514xf32> to vector<514xf32>
    %466 = vector.shape_cast %465 : vector<514xf32> to vector<1x514xf32>
    %c0_185 = arith.constant 0 : index
    %c0_186 = arith.constant 0 : index
    %467 = vector.load %arg16[%c0_185, %c0_186] : memref<514x2xf32, #tpu.memory_space<vmem>>, vector<514x2xf32>
    %cst_187 = arith.constant dense<0.000000e+00> : vector<1x2xf32>
    %468 = tpu.matmul %466, %467, %cst_187 {dimension_numbers = #tpu.dot_dimension_numbers<[1], [0], [0], [1], [0, 0, 1, 1], [], []>} : vector<1x514xf32>, vector<514x2xf32>, vector<1x2xf32> -> vector<1x2xf32>
    %cst_188 = arith.constant 4.112000e+03 : f32
    %469 = vector.broadcast %cst_188 : f32 to vector<1x2xf32>
    %470 = arith.divf %468, %469 : vector<1x2xf32>
    %c0_189 = arith.constant 0 : index
    %c0_190 = arith.constant 0 : index
    %471 = vector.load %arg17[%c0_189, %c0_190] : memref<2x514xf32, #tpu.memory_space<vmem>>, vector<2x514xf32>
    %cst_191 = arith.constant dense<0.000000e+00> : vector<1x514xf32>
    %472 = tpu.matmul %470, %471, %cst_191 {dimension_numbers = #tpu.dot_dimension_numbers<[1], [0], [0], [1], [0, 0, 1, 1], [], []>} : vector<1x2xf32>, vector<2x514xf32>, vector<1x514xf32> -> vector<1x514xf32>
    %cst_192 = arith.constant 9.99999974E-6 : f32
    %473 = vector.broadcast %cst_192 : f32 to vector<1x514xf32>
    %474 = arith.addf %472, %473 : vector<1x514xf32>
    %475 = math.rsqrt %474 : vector<1x514xf32>
    %476 = vector.broadcast %475 : vector<1x514xf32> to vector<16x514xf32>
    %477 = arith.mulf %463, %476 : vector<16x514xf32>
    %c1_193 = arith.constant 1 : index
    %c0_194 = arith.constant 0 : index
    %c0_195 = arith.constant 0 : index
    %478 = vector.load %arg15[%c1_193, %c0_194, %c0_195] : memref<3x1x514xf32, #tpu.memory_space<vmem>>, vector<1x1x514xf32>
    %479 = vector.shape_cast %478 : vector<1x1x514xf32> to vector<1x514xf32>
    %480 = vector.broadcast %479 : vector<1x514xf32> to vector<16x514xf32>
    %481 = arith.mulf %477, %480 : vector<16x514xf32>
    %c2_196 = arith.constant 2 : index
    %c0_197 = arith.constant 0 : index
    %c0_198 = arith.constant 0 : index
    %482 = vector.load %arg15[%c2_196, %c0_197, %c0_198] : memref<3x1x514xf32, #tpu.memory_space<vmem>>, vector<1x1x514xf32>
    %483 = vector.shape_cast %482 : vector<1x1x514xf32> to vector<1x514xf32>
    %484 = vector.broadcast %483 : vector<1x514xf32> to vector<16x514xf32>
    %485 = arith.addf %481, %484 : vector<16x514xf32>
    %486 = math.tanh %485 : vector<16x514xf32>
    %487 = arith.mulf %486, %0 : vector<16x514xf32>
    %c0_199 = arith.constant 0 : index
    %c0_200 = arith.constant 0 : index
    %488 = vector.load %arg18[%c0_199, %c0_200] : memref<16x514xf32, #tpu.memory_space<vmem>>, vector<16x514xf32>
    tpu.vector_store %arg18[%c0_199, %c0_200], %487 {strides = array<i32>} : memref<16x514xf32, #tpu.memory_space<vmem>>, vector<16x514xf32>,
    return
  }
}

</mosaic_0001>

<bundles_post_ra>
// kernel: _lambda_.1
= control target key start
LH: loop header
LB: loop body
LE: loop exit
PB: predicated region body
PF: predicated region fallthrough
CT: control target
= control target key end

     0   :  { %s12195_s0 = inlined_call_operand.vmem [shape: f32[16,514], index: 0, kind: input, shape index: {}]   ;;  %s12196_s1 = inlined_call_operand.hbm [shape: f32[514,144], index: 1, kind: input, shape index: {}]   ;;  %s12197_s2 = inlined_call_operand.vmem [shape: f32[3,1,144], index: 2, kind: input, shape index: {}]   ;;  %s12198_s3 = inlined_call_operand.<no memory space> [shape: f32[1,1], index: 3, kind: input, shape index: {}]   ;;  %s12199_s4 = inlined_call_operand.hbm [shape: f32[144,4], index: 4, kind: input, shape index: {}]   ;;  %s12200_s5 = inlined_call_operand.vmem [shape: f32[4,144], index: 5, kind: input, shape index: {}]   ;;  %s12201_s6 = inlined_call_operand.hbm [shape: f32[3,144,144], index: 6, kind: input, shape index: {}]   ;;  %s12202_s7 = inlined_call_operand.hbm [shape: f32[3,144,144], index: 7, kind: input, shape index: {}]   ;;  %s12203_s8 = inlined_call_operand.vmem [shape: f32[4,1,144], index: 8, kind: input, shape index: {}]   ;;  %s12204_s9 = inlined_call_operand.hbm [shape: f32[3,144,144], index: 9, kind: input, shape index: {}]   ;;  %s12205_s10 = inlined_call_operand.vmem [shape: f32[3,1,144], index: 10, kind: input, shape index: {}]   ;;  %s12206_s11 = inlined_call_operand.vmem [shape: f32[144,144], index: 11, kind: input, shape index: {}]   ;;  %s12207_s12 = inlined_call_operand.vmem [shape: f32[1,144], index: 12, kind: input, shape index: {}]   ;;  %s12208_s13 = inlined_call_operand.vmem [shape: f32[16,2], index: 13, kind: input, shape index: {}]   ;;  %s12209_s14 = inlined_call_operand.hbm [shape: f32[144,514], index: 14, kind: input, shape index: {}]   ;;  %s12210_s15 = inlined_call_operand.vmem [shape: f32[3,1,514], index: 15, kind: input, shape index: {}]   ;;  %s12211_s16 = inlined_call_operand.hbm [shape: f32[514,2], index: 16, kind: input, shape index: {}]   ;;  %s12212_s17 = inlined_call_operand.vmem [shape: f32[2,514], index: 17, kind: input, shape index: {}]   ;;  %s12213_s18 = inlined_call_operand.vmem [shape: f32[16,514], index: 18, kind: output, shape index: {0}]   ;;  %s12214_s19 = inlined_call_operand.hbm [shape: f32[2,144], index: 19, kind: output, shape index: {1}]  }
   0x1   :  { %12534 = sst [smem:[#allocation123_spill]] %s12195_s0 }
   0x2   :  { %12535 = sst [smem:[#allocation124_spill]] %s12196_s1 }
   0x3   :  { %12536 = sst [smem:[#allocation125_spill]] %s12197_s2 }
   0x4   :  { %12537 = sst [smem:[#allocation126_spill]] %s12198_s3 }
   0x5   :  { %s12538_s20 = sld [smem:[#allocation126_spill]] }
   0xb   :  { %v25_v0 = vstv %s12538_s20 }
   0xc   :  { %26 = vst [vmem:[#allocation3] sm:$0x1] %v25_v0 }
   0xd   :  { %27 = vsyncpa [#allocation5], 0 }
   0xe   :  { %28 = vsyncpa [#allocation8], 0 }
   0xf   :  { %29 = vsyncpa [#allocation11], 0 }
  0x10   :  { %30 = vsyncpa [#allocation14], 0  ;;  %s55_s22 = sshll.u32 %s12199_s4, 4  ;;  %s56_s22 = int_to_ptr.hbm [resolvable:$true] %s55_s22 }
  0x11   :  { %31 = vsyncpa [#allocation6], 0  ;;  %s8273_s2 = smov [#allocation7]   ;;  %s12217_s24 = smov 128  }
  0x12   :  { %s57_s23 = sshll.u32 %s8273_s2, 4  ;;  %s12218_s25 = smov 8   ;;  %s58_s23 = int_to_ptr.vmem [resolvable:$true] %s57_s23 }
  0x13   :  { %63 = dma.hbm_to_vmem [thread:$0]  %s56_s22, 2304, %s58_s23, [#allocation8], %s12217_s24, %s12217_s24, %s12218_s25  }
  0x14   :  { %s83_s27 = sshll.u32 %s12202_s7, 4  ;;  %s8276_s28 = smov [#allocation10]   ;;  %s84_s27 = int_to_ptr.hbm [resolvable:$true] %s83_s27 }
  0x15   :  { %s85_s29 = sshll.u32 %s8276_s28, 4  ;;  %s119_s30 = sshll.u32 %s12209_s14, 4  ;;  %s86_s29 = int_to_ptr.vmem [resolvable:$true] %s85_s29  ;;  %s120_s30 = int_to_ptr.hbm [resolvable:$true] %s119_s30 }
  0x16   :  { %s8277_s20 = smov 256   ;;  %s8278_s21 = smov 16  }
  0x17   :  { %91 = dma.hbm_to_vmem [thread:$0]  %s84_s27, 13824, %s86_s29, [#allocation11], %s8277_s20, %s8277_s20, %s8278_s21  }
  0x18   :  { %s8279_s1 = smov [#allocation13]   ;;  %s12539_s23 = sld [smem:[#allocation124_spill]] }
  0x19   :  { %s121_s22 = sshll.u32 %s8279_s1, 4  ;;  %s8280_s26 = smov 640   ;;  %s122_s22 = int_to_ptr.vmem [resolvable:$true] %s121_s22 }
  0x1a   :  { %s8281_s28 = smov 40   ;;  %s8282_s14 = smov [#allocation4]  }
  0x1b   :  { %127 = dma.hbm_to_vmem [thread:$0]  %s120_s30, 11520, %s122_s22, [#allocation14], %s8280_s26, %s8280_s26, %s8281_s28  }
  0x1c   :  { %s40_s0 = sshll.u32 %s8282_s14, 4  ;;  %s70_s25 = sshll.u32 %s12201_s6, 4  ;;  %s41_s0 = int_to_ptr.vmem [resolvable:$true] %s40_s0  ;;  %s71_s25 = int_to_ptr.hbm [resolvable:$true] %s70_s25 }
  0x1d   :  { %s98_s1 = sshll.u32 %s12204_s9, 4  ;;  %s8283_s2 = smov [#allocation9]   ;;  %s99_s1 = int_to_ptr.hbm [resolvable:$true] %s98_s1 }
  0x1e   :  { %s38_s3 = sshll.u32 %s12539_s23, 4  ;;  %s72_s7 = sshll.u32 %s8283_s2, 4  ;;  %s39_s3 = int_to_ptr.hbm [resolvable:$true] %s38_s3  ;;  %s73_s7 = int_to_ptr.vmem [resolvable:$true] %s72_s7 }
  0x1f   :  { %46 = dma.hbm_to_vmem [thread:$0]  %s39_s3, 16640, %s41_s0, [#allocation5], %s8277_s20, %s8277_s20, %s8278_s21  }
  0x20   :  { %78 = dma.hbm_to_vmem [thread:$0]  %s71_s25, 13824, %s73_s7, [#allocation8], %s8277_s20, %s8277_s20, %s8278_s21  }
  0x21   :  { %s8284_s24 = smov [#allocation12]   ;;  %s134_s23 = sshll.u32 %s12211_s16, 4  ;;  %s135_s23 = int_to_ptr.hbm [resolvable:$true] %s134_s23 }
  0x22   :  { %s100_s6 = sshll.u32 %s8284_s24, 4  ;;  %s8285_s9 = smov [#allocation15]   ;;  %s101_s6 = int_to_ptr.vmem [resolvable:$true] %s100_s6 }
  0x23   :  { %106 = dma.hbm_to_vmem [thread:$0]  %s99_s1, 13824, %s101_s6, [#allocation11], %s8277_s20, %s8277_s20, %s8278_s21  }
  0x24   :  { %s136_s3 = sshll.u32 %s8285_s9, 4  ;;  %s12540_s26 = smov 8   ;;  %s137_s3 = int_to_ptr.vmem [resolvable:$true] %s136_s3 }
  0x25   :  { %s12541_s28 = smov 128  }
  0x26   :  { %142 = dma.hbm_to_vmem [thread:$0]  %s135_s23, 8320, %s137_s3, [#allocation14], %s12541_s28, %s12541_s28, %s12540_s26  }
  0x27   :  { %8263 = dma.done.wait [#allocation5], 16640  }
  0x28   :  { %8264 = vsyncadd [#allocation5], 4294950656 }
  0x29   :  { %8265 = dma.done.wait [#allocation8], 16128  }
  0x2a   :  { %8266 = vsyncadd [#allocation8], 4294951168 }
  0x2b   :  { %8267 = dma.done.wait [#allocation11], 27648  }
  0x2c   :  { %8268 = vsyncadd [#allocation11], 4294939648 }
  0x2d   :  { %8269 = dma.done.wait [#allocation14], 19840  }
  0x2e   :  { %8270 = vsyncadd [#allocation14], 4294947456  ;;  %v213_v1 = vld [vmem:[#allocation4 + $0xf0] sm:$0xff]  ;;  %v211_v4 = vld [vmem:[#allocation4 + $0xe0] sm:$0xff]  ;;  %s12542_s20 = sld [smem:[#allocation123_spill]]  ;;  %vm326_vm0 = vcmask 1041408  }
  0x2f   :  { %v245_v2 = vld [vmem:[#allocation4 + $0x1f0] sm:$0xff]  ;;  %333 = vmatpush.msra.mxu0 %v213_v1  ;;  %v243_v5 = vld [vmem:[#allocation4 + $0x1e0] sm:$0xff]  ;;  %v214_v1 = vld [vmem:[#allocation4 + $0xf8] sm:$0xff]  ;;  %vm319_vm1 = vcmask 15360   ;;  %s12543_s21 = sld [smem:[#allocation125_spill]]  ;;  %vm570_vm2 = vcmask 130048  }
  0x30   :  { %v277_v3 = vld [vmem:[#allocation4 + $0x2f0] sm:$0xff]  ;;  %356 = vmatpush.msra.mxu1 %v245_v2  ;;  %v275_v6 = vld [vmem:[#allocation4 + $0x2e0] sm:$0xff]  ;;  %v246_v2 = vld [vmem:[#allocation4 + $0x1f8] sm:$0xff]  ;;  %vm658_vm3 = vcmask 1043456   ;;  %vm654_vm5 = vcmask 31744   ;;  %s7235_s24 = sshll.u32 %s12214_s19, 4  ;;  %s7236_s24 = int_to_ptr.hbm [resolvable:$true] %s7235_s24 }
  0x31   :  { %379 = vmatpush.msra.mxu2 %v277_v3  ;;  %v309_v7 = vld [vmem:[#allocation4 + $0x3f0] sm:$0xff]  ;;  %334 = vmatpush.msra.mxu0 %v211_v4  ;;  %v307_v11 = vld [vmem:[#allocation4 + $0x3e0] sm:$0xff]  ;;  %v212_v4 = vld [vmem:[#allocation4 + $0xe8] sm:$0xff] }
  0x32   :  { %v209_v8 = vld [vmem:[#allocation4 + $0xd0] sm:$0xff]  ;;  %357 = vmatpush.msra.mxu1 %v243_v5  ;;  %402 = vmatpush.msra.mxu3 %v309_v7  ;;  %v207_v12 = vld [vmem:[#allocation4 + $0xc0] sm:$0xff]  ;;  %v278_v5 = vld [vmem:[#allocation4 + $0x2f8] sm:$0xff] }
  0x33   :  { %v241_v9 = vld [vmem:[#allocation4 + $0x1d0] sm:$0xff]  ;;  %380 = vmatpush.msra.mxu2 %v275_v6  ;;  %v239_v13 = vld [vmem:[#allocation4 + $0x1c0] sm:$0xff]  ;;  %335 = vmatpush.msra.mxu0 %v209_v8  ;;  %v244_v6 = vld [vmem:[#allocation4 + $0x1e8] sm:$0xff] }
  0x34   :  { %v273_v10 = vld [vmem:[#allocation4 + $0x2d0] sm:$0xff]  ;;  %358 = vmatpush.msra.mxu1 %v241_v9  ;;  %v271_v14 = vld [vmem:[#allocation4 + $0x2c0] sm:$0xff]  ;;  %403 = vmatpush.msra.mxu3 %v307_v11  ;;  %v210_v8 = vld [vmem:[#allocation4 + $0xd8] sm:$0xff] }
  0x35   :  { %v305_v15 = vld [vmem:[#allocation4 + $0x3d0] sm:$0xff]  ;;  %381 = vmatpush.msra.mxu2 %v273_v10  ;;  %336 = vmatpush.msra.mxu0 %v207_v12  ;;  %v303_v19 = vld [vmem:[#allocation4 + $0x3c0] sm:$0xff]  ;;  %v276_v9 = vld [vmem:[#allocation4 + $0x2e8] sm:$0xff] }
  0x36   :  { %v205_v16 = vld [vmem:[#allocation4 + $0xb0] sm:$0xff]  ;;  %359 = vmatpush.msra.mxu1 %v239_v13  ;;  %404 = vmatpush.msra.mxu3 %v305_v15  ;;  %v203_v20 = vld [vmem:[#allocation4 + $0xa0] sm:$0xff]  ;;  %v242_v10 = vld [vmem:[#allocation4 + $0x1d8] sm:$0xff] }
  0x37   :  { %v237_v17 = vld [vmem:[#allocation4 + $0x1b0] sm:$0xff]  ;;  %382 = vmatpush.msra.mxu2 %v271_v14  ;;  %v235_v21 = vld [vmem:[#allocation4 + $0x1a0] sm:$0xff]  ;;  %337 = vmatpush.msra.mxu0 %v205_v16  ;;  %v208_v13 = vld [vmem:[#allocation4 + $0xc8] sm:$0xff] }
  0x38   :  { %v269_v18 = vld [vmem:[#allocation4 + $0x2b0] sm:$0xff]  ;;  %360 = vmatpush.msra.mxu1 %v237_v17  ;;  %v267_v22 = vld [vmem:[#allocation4 + $0x2a0] sm:$0xff]  ;;  %405 = vmatpush.msra.mxu3 %v303_v19  ;;  %v240_v14 = vld [vmem:[#allocation4 + $0x1c8] sm:$0xff] }
  0x39   :  { %v301_v23 = vld [vmem:[#allocation4 + $0x3b0] sm:$0xff]  ;;  %383 = vmatpush.msra.mxu2 %v269_v18  ;;  %338 = vmatpush.msra.mxu0 %v203_v20  ;;  %v299_v27 = vld [vmem:[#allocation4 + $0x3a0] sm:$0xff]  ;;  %v274_v15 = vld [vmem:[#allocation4 + $0x2d8] sm:$0xff] }
  0x3a   :  { %v201_v24 = vld [vmem:[#allocation4 + $0x90] sm:$0xff]  ;;  %361 = vmatpush.msra.mxu1 %v235_v21  ;;  %406 = vmatpush.msra.mxu3 %v301_v23  ;;  %v199_v28 = vld [vmem:[#allocation4 + $0x80] sm:$0xff]  ;;  %v206_v17 = vld [vmem:[#allocation4 + $0xb8] sm:$0xff] }
  0x3b   :  { %v233_v25 = vld [vmem:[#allocation4 + $0x190] sm:$0xff]  ;;  %384 = vmatpush.msra.mxu2 %v267_v22  ;;  %v231_v29 = vld [vmem:[#allocation4 + $0x180] sm:$0xff]  ;;  %339 = vmatpush.msra.mxu0 %v201_v24  ;;  %v238_v18 = vld [vmem:[#allocation4 + $0x1b8] sm:$0xff] }
  0x3c   :  { %v265_v26 = vld [vmem:[#allocation4 + $0x290] sm:$0xff]  ;;  %362 = vmatpush.msra.mxu1 %v233_v25  ;;  %v263_v30 = vld [vmem:[#allocation4 + $0x280] sm:$0xff]  ;;  %407 = vmatpush.msra.mxu3 %v299_v27  ;;  %v272_v19 = vld [vmem:[#allocation4 + $0x2c8] sm:$0xff] }
  0x3d   :  { %v297_v31 = vld [vmem:[#allocation4 + $0x390] sm:$0xff]  ;;  %385 = vmatpush.msra.mxu2 %v265_v26  ;;  %340 = vmatpush.msra.mxu0 %v199_v28  ;;  %v295_v35 = vld [vmem:[#allocation4 + $0x380] sm:$0xff]  ;;  %v310_v21 = vld [vmem:[#allocation4 + $0x3f8] sm:$0xff] }
  0x3e   :  { %v197_v32 = vld [vmem:[#allocation4 + $0x70] sm:$0xff]  ;;  %363 = vmatpush.msra.mxu1 %v231_v29  ;;  %408 = vmatpush.msra.mxu3 %v297_v31  ;;  %v195_v36 = vld [vmem:[#allocation4 + $0x60] sm:$0xff]  ;;  %v204_v22 = vld [vmem:[#allocation4 + $0xa8] sm:$0xff] }
  0x3f   :  { %v229_v33 = vld [vmem:[#allocation4 + $0x170] sm:$0xff]  ;;  %386 = vmatpush.msra.mxu2 %v263_v30  ;;  %v227_v37 = vld [vmem:[#allocation4 + $0x160] sm:$0xff]  ;;  %341 = vmatpush.msra.mxu0 %v197_v32  ;;  %v236_v23 = vld [vmem:[#allocation4 + $0x1a8] sm:$0xff] }
  0x40   :  { %v261_v34 = vld [vmem:[#allocation4 + $0x270] sm:$0xff]  ;;  %364 = vmatpush.msra.mxu1 %v229_v33  ;;  %v259_v38 = vld [vmem:[#allocation4 + $0x260] sm:$0xff]  ;;  %409 = vmatpush.msra.mxu3 %v295_v35  ;;  %v270_v24 = vld [vmem:[#allocation4 + $0x2b8] sm:$0xff] }
  0x41   :  { %v293_v39 = vld [vmem:[#allocation4 + $0x370] sm:$0xff]  ;;  %387 = vmatpush.msra.mxu2 %v261_v34  ;;  %342 = vmatpush.msra.mxu0 %v195_v36  ;;  %v291_v43 = vld [vmem:[#allocation4 + $0x360] sm:$0xff]  ;;  %v308_v25 = vld [vmem:[#allocation4 + $0x3e8] sm:$0xff] }
  0x42   :  { %v193_v40 = vld [vmem:[#allocation4 + $0x50] sm:$0xff]  ;;  %365 = vmatpush.msra.mxu1 %v227_v37  ;;  %410 = vmatpush.msra.mxu3 %v293_v39  ;;  %v191_v44 = vld [vmem:[#allocation4 + $0x40] sm:$0xff]  ;;  %v202_v26 = vld [vmem:[#allocation4 + $0x98] sm:$0xff] }
  0x43   :  { %v225_v41 = vld [vmem:[#allocation4 + $0x150] sm:$0xff]  ;;  %388 = vmatpush.msra.mxu2 %v259_v38  ;;  %v223_v45 = vld [vmem:[#allocation4 + $0x140] sm:$0xff]  ;;  %343 = vmatpush.msra.mxu0 %v193_v40  ;;  %v234_v27 = vld [vmem:[#allocation4 + $0x198] sm:$0xff] }
  0x44   :  { %v257_v42 = vld [vmem:[#allocation4 + $0x250] sm:$0xff]  ;;  %366 = vmatpush.msra.mxu1 %v225_v41  ;;  %v255_v46 = vld [vmem:[#allocation4 + $0x240] sm:$0xff]  ;;  %411 = vmatpush.msra.mxu3 %v291_v43  ;;  %v268_v28 = vld [vmem:[#allocation4 + $0x2a8] sm:$0xff] }
  0x45   :  { %v289_v47 = vld [vmem:[#allocation4 + $0x350] sm:$0xff]  ;;  %389 = vmatpush.msra.mxu2 %v257_v42  ;;  %344 = vmatpush.msra.mxu0 %v191_v44  ;;  %v287_v51 = vld [vmem:[#allocation4 + $0x340] sm:$0xff]  ;;  %v200_v30 = vld [vmem:[#allocation4 + $0x88] sm:$0xff] }
  0x46   :  { %v189_v48 = vld [vmem:[#allocation4 + $0x30] sm:$0xff]  ;;  %367 = vmatpush.msra.mxu1 %v223_v45  ;;  %412 = vmatpush.msra.mxu3 %v289_v47  ;;  %v187_v52 = vld [vmem:[#allocation4 + $0x20] sm:$0xff]  ;;  %v232_v31 = vld [vmem:[#allocation4 + $0x188] sm:$0xff] }
  0x47   :  { %v221_v49 = vld [vmem:[#allocation4 + $0x130] sm:$0xff]  ;;  %390 = vmatpush.msra.mxu2 %v255_v46  ;;  %v219_v53 = vld [vmem:[#allocation4 + $0x120] sm:$0xff]  ;;  %345 = vmatpush.msra.mxu0 %v189_v48  ;;  %v266_v32 = vld [vmem:[#allocation4 + $0x298] sm:$0xff] }
  0x48   :  { %v253_v50 = vld [vmem:[#allocation4 + $0x230] sm:$0xff]  ;;  %368 = vmatpush.msra.mxu1 %v221_v49  ;;  %v251_v54 = vld [vmem:[#allocation4 + $0x220] sm:$0xff]  ;;  %413 = vmatpush.msra.mxu3 %v287_v51  ;;  %v306_v33 = vld [vmem:[#allocation4 + $0x3d8] sm:$0xff] }
  0x49   :  { %v285_v55 = vld [vmem:[#allocation4 + $0x330] sm:$0xff]  ;;  %391 = vmatpush.msra.mxu2 %v253_v50  ;;  %346 = vmatpush.msra.mxu0 %v187_v52  ;;  %v283_v59 = vld [vmem:[#allocation4 + $0x320] sm:$0xff]  ;;  %v198_v36 = vld [vmem:[#allocation4 + $0x78] sm:$0xff] }
  0x4a   :  { %v185_v56 = vld [vmem:[#allocation4 + $0x10] sm:$0xff]  ;;  %369 = vmatpush.msra.mxu1 %v219_v53  ;;  %414 = vmatpush.msra.mxu3 %v285_v55  ;;  %v183_v60 = vld [vmem:[#allocation4] sm:$0xff]  ;;  %v230_v37 = vld [vmem:[#allocation4 + $0x178] sm:$0xff] }
  0x4b   :  { %v217_v57 = vld [vmem:[#allocation4 + $0x110] sm:$0xff]  ;;  %392 = vmatpush.msra.mxu2 %v251_v54  ;;  %v215_v61 = vld [vmem:[#allocation4 + $0x100] sm:$0xff]  ;;  %347 = vmatpush.msra.mxu0 %v185_v56  ;;  %v264_v38 = vld [vmem:[#allocation4 + $0x288] sm:$0xff] }
  0x4c   :  { %v249_v58 = vld [vmem:[#allocation4 + $0x210] sm:$0xff]  ;;  %370 = vmatpush.msra.mxu1 %v217_v57  ;;  %v247_v62 = vld [vmem:[#allocation4 + $0x200] sm:$0xff]  ;;  %415 = vmatpush.msra.mxu3 %v283_v59  ;;  %v304_v39 = vld [vmem:[#allocation4 + $0x3c8] sm:$0xff] }
  0x4d   :  { %v281_v63 = vld [vmem:[#allocation4 + $0x310] sm:$0xff]  ;;  %393 = vmatpush.msra.mxu2 %v249_v58  ;;  %348 = vmatpush.msra.mxu0 %v183_v60  ;;  %v279_v3 = vld [vmem:[#allocation4 + $0x300] sm:$0xff]  ;;  %v228_v41 = vld [vmem:[#allocation4 + $0x168] sm:$0xff] }
  0x4e   :  { %v8436_v0 = vld [vmem:[%s12542_s20] sm:$0xff]  ;;  %371 = vmatpush.msra.mxu1 %v215_v61  ;;  %416 = vmatpush.msra.mxu3 %v281_v63  ;;  %v8442_v7 = vld [vmem:[%s12542_s20 + $0x18] sm:$0xff]  ;;  %v311_v11 = vld [vmem:[#allocation4 + $0x400] sm:$0x3] }
  0x4f   :  { %394 = vmatpush.msra.mxu2 %v247_v62  ;;  %349 = vmatmul.f32.vlgmr.msra.gmra.mxu0 %v8436_v0  ;;  %v8447_v12 = vld [vmem:[%s12542_s20 + $0x10] sm:$0xff]  ;;  %v8453_v16 = vld [vmem:[%s12542_s20 + $0x28] sm:$0xff]  ;;  %v8467_v29 = vld [vmem:[%s12542_s20 + $0x38] sm:$0xff] }
  0x50   :  { %448 = vmatpush.msrb.mxu1 %v214_v1  ;;  %417 = vmatpush.msra.mxu3 %v279_v3  ;;  %v8460_v20 = vld [vmem:[%s12542_s20 + $0x8] sm:$0xff]  ;;  %v8473_v34 = vld [vmem:[%s12542_s20 + $0x40] sm:$0xff]  ;;  %v8486_v40 = vld [vmem:[%s12542_s20 + $0x30] sm:$0xff] }
  0x51   :  { %471 = vmatpush.msrb.mxu2 %v246_v2  ;;  %418 = vmatmul.f32.vlgmr.msra.gmra.mxu3 %v8442_v7  ;;  %v8478_v35 = vld [vmem:[%s12542_s20 + $0x20] sm:$0xff]  ;;  %v196_v42 = vld [vmem:[#allocation4 + $0x68] sm:$0xff]  ;;  %v182_v54 = vld [vmem:[%s12542_s20 + $0x48] sm:$0xff] }
  0x52   :  { %449 = vmatpush.msrb.mxu1 %v212_v4  ;;  %494 = vmatpush.msrb.mxu3 %v278_v5  ;;  %v262_v43 = vld [vmem:[#allocation4 + $0x278] sm:$0xff]  ;;  %v260_v47 = vld [vmem:[#allocation4 + $0x268] sm:$0xff] }
  0x53   :  { %472 = vmatpush.msrb.mxu2 %v244_v6  ;;  %7250 = vmatpush.msk.msrb.mxu0 %vm326_vm0, %v311_v11  ;;  %v302_v44 = vld [vmem:[#allocation4 + $0x3b8] sm:$0xff]  ;;  %v300_v48 = vld [vmem:[#allocation4 + $0x3a8] sm:$0xff] }
  0x54   :  { %450 = vmatpush.msrb.mxu1 %v210_v8  ;;  %495 = vmatpush.msrb.mxu3 %v276_v9  ;;  %v226_v45 = vld [vmem:[#allocation4 + $0x158] sm:$0xff]  ;;  %v224_v49 = vld [vmem:[#allocation4 + $0x148] sm:$0xff] }
  0x55   :  { %473 = vmatpush.msrb.mxu2 %v242_v10  ;;  %372 = vmatmul.f32.vlgmr.msra.gmra.mxu1 %v8460_v20  ;;  %v194_v46 = vld [vmem:[#allocation4 + $0x58] sm:$0xff]  ;;  %v192_v50 = vld [vmem:[#allocation4 + $0x48] sm:$0xff] }
  0x56   :  { %395 = vmatmul.f32.vlgmr.msra.gmra.mxu2 %v8447_v12  ;;  %451 = vmatpush.msrb.mxu1 %v208_v13  ;;  %v258_v51 = vld [vmem:[#allocation4 + $0x258] sm:$0xff]  ;;  %v256_v56 = vld [vmem:[#allocation4 + $0x248] sm:$0xff] }
  0x57   :  { %474 = vmatpush.msrb.mxu2 %v240_v14  ;;  %496 = vmatpush.msrb.mxu3 %v274_v15  ;;  %v298_v52 = vld [vmem:[#allocation4 + $0x398] sm:$0xff]  ;;  %v296_v57 = vld [vmem:[#allocation4 + $0x388] sm:$0xff] }
  0x58   :  { %352 = vmatmul.f32.gmra.mxu0 %v8453_v16  ;;  %452 = vmatpush.msrb.mxu1 %v206_v17  ;;  %v222_v53 = vld [vmem:[#allocation4 + $0x138] sm:$0xff]  ;;  %v188_v58 = vld [vmem:[#allocation4 + $0x28] sm:$0xff]  ;;  %v592_v17 = vld [vmem:[#allocation7 + $0x60] sm:$0xff] }
  0x59   :  { %475 = vmatpush.msrb.mxu2 %v238_v18  ;;  %497 = vmatpush.msrb.mxu3 %v272_v19  ;;  %v190_v55 = vld [vmem:[#allocation4 + $0x38] sm:$0xff]  ;;  %v220_v59 = vld [vmem:[#allocation4 + $0x128] sm:$0xff]  ;;  %v590_v18 = vld [vmem:[#allocation7 + $0x50] sm:$0xff] }
  0x5a   :  { %517 = vmatpush.msra.mxu0 %v310_v21  ;;  %453 = vmatpush.msrb.mxu1 %v204_v22  ;;  %v254_v60 = vld [vmem:[#allocation4 + $0x238] sm:$0xff]  ;;  %v252_v1 = vld [vmem:[#allocation4 + $0x228] sm:$0xff]  ;;  %v586_v22 = vld [vmem:[#allocation7 + $0x30] sm:$0xff] }
  0x5b   :  { %476 = vmatpush.msrb.mxu2 %v236_v23  ;;  %498 = vmatpush.msrb.mxu3 %v270_v24  ;;  %v294_v61 = vld [vmem:[#allocation4 + $0x378] sm:$0xff]  ;;  %v292_v2 = vld [vmem:[#allocation4 + $0x368] sm:$0xff] }
  0x5c   :  { %518 = vmatpush.msra.mxu0 %v308_v25  ;;  %454 = vmatpush.msrb.mxu1 %v202_v26  ;;  %v186_v62 = vld [vmem:[#allocation4 + $0x18] sm:$0xff]  ;;  %v184_v3 = vld [vmem:[#allocation4 + $0x8] sm:$0xff]  ;;  %v584_v25 = vld [vmem:[#allocation7 + $0x20] sm:$0xff] }
  0x5d   :  { %477 = vmatpush.msrb.mxu2 %v234_v27  ;;  %499 = vmatpush.msrb.mxu3 %v268_v28  ;;  %v218_v63 = vld [vmem:[#allocation4 + $0x118] sm:$0xff]  ;;  %v216_v4 = vld [vmem:[#allocation4 + $0x108] sm:$0xff]  ;;  %v582_v28 = vld [vmem:[#allocation7 + $0x10] sm:$0xff] }
  0x5e   :  { %398 = vmatmul.f32.gmra.mxu2 %v8467_v29  ;;  %455 = vmatpush.msrb.mxu1 %v200_v30  ;;  %v250_v5 = vld [vmem:[#allocation4 + $0x218] sm:$0xff]  ;;  %v248_v8 = vld [vmem:[#allocation4 + $0x208] sm:$0xff] }
  0x5f   :  { %478 = vmatpush.msrb.mxu2 %v232_v31  ;;  %500 = vmatpush.msrb.mxu3 %v266_v32  ;;  %v290_v6 = vld [vmem:[#allocation4 + $0x358] sm:$0xff]  ;;  %v288_v9 = vld [vmem:[#allocation4 + $0x348] sm:$0xff] }
  0x60   :  { %519 = vmatpush.msra.mxu0 %v306_v33  ;;  %421 = vmatmul.f32.gmra.mxu3 %v8473_v34  ;;  %v312_v10 = vld [vmem:[#allocation4 + $0x408] sm:$0x3]  ;;  %v286_v11 = vld [vmem:[#allocation4 + $0x338] sm:$0xff]  ;;  %v580_v33 = vld [vmem:[#allocation7] sm:$0xff] }
  0x61   :  { %7251 = vmatmul.msk.f32.vlgmr.msrb.gmra.mxu0 %vm319_vm1, %v8478_v35  ;;  %456 = vmatpush.msrb.mxu1 %v198_v36  ;;  %v284_v13 = vld [vmem:[#allocation4 + $0x328] sm:$0xff]  ;;  %v282_v14 = vld [vmem:[#allocation4 + $0x318] sm:$0xff] }
  0x62   :  { %479 = vmatpush.msrb.mxu2 %v230_v37  ;;  %501 = vmatpush.msrb.mxu3 %v264_v38  ;;  %v280_v15 = vld [vmem:[#allocation4 + $0x308] sm:$0xff]  ;;  %v589_v19 = vld [vmem:[#allocation7 + $0x48] sm:$0xff] }
  0x63   :  { %520 = vmatpush.msra.mxu0 %v304_v39  ;;  %375 = vmatmul.f32.gmra.mxu1 %v8486_v40  ;;  %v587_v21 = vld [vmem:[#allocation7 + $0x38] sm:$0xff]  ;;  %v585_v24 = vld [vmem:[#allocation7 + $0x28] sm:$0xff] }
  0x64   :  { %480 = vmatpush.msrb.mxu2 %v228_v41  ;;  %457 = vmatpush.msrb.mxu1 %v196_v42  ;;  %v313_v26 = vld [vmem:[%s12543_s21] sm:$0x3]  ;;  %v583_v27 = vld [vmem:[#allocation7 + $0x18] sm:$0xff] }
  0x65   :  { %502 = vmatpush.msrb.mxu3 %v262_v43  ;;  %521 = vmatpush.msra.mxu0 %v302_v44  ;;  %v581_v31 = vld [vmem:[#allocation7 + $0x8] sm:$0xff] }
  0x66   :  { %481 = vmatpush.msrb.mxu2 %v226_v45  ;;  %458 = vmatpush.msrb.mxu1 %v194_v46 }
  0x67   :  { %503 = vmatpush.msrb.mxu3 %v260_v47  ;;  %522 = vmatpush.msra.mxu0 %v300_v48 }
  0x68   :  { %482 = vmatpush.msrb.mxu2 %v224_v49  ;;  %459 = vmatpush.msrb.mxu1 %v192_v50 }
  0x69   :  { %504 = vmatpush.msrb.mxu3 %v258_v51  ;;  %523 = vmatpush.msra.mxu0 %v298_v52 }
  0x6a   :  { %483 = vmatpush.msrb.mxu2 %v222_v53  ;;  %7252 = vmatmul.msk.f32.gmra.mxu0 %vm319_vm1, %v182_v54 }
  0x6b   :  { %460 = vmatpush.msrb.mxu1 %v190_v55  ;;  %505 = vmatpush.msrb.mxu3 %v256_v56 }
  0x6c   :  { %524 = vmatpush.msra.mxu0 %v296_v57  ;;  %484 = vmatpush.msrb.mxu2 %v220_v59  ;;  %v597_v59 = vld [vmem:[#allocation7 + $0x88] sm:$0xff] }
  0x6d   :  { %461 = vmatpush.msrb.mxu1 %v188_v58  ;;  %506 = vmatpush.msrb.mxu3 %v254_v60  ;;  %v316_v60 = vperm.slane %v313_v26, 1 }
  0x6e   :  { %525 = vmatpush.msra.mxu0 %v294_v61  ;;  %485 = vmatpush.msrb.mxu2 %v218_v63 }
  0x6f   :  { %462 = vmatpush.msrb.mxu1 %v186_v62  ;;  %507 = vmatpush.msrb.mxu3 %v252_v1  ;;  %v596_v1 = vld [vmem:[#allocation7 + $0x80] sm:$0xff] }
  0x70   :  { %526 = vmatpush.msra.mxu0 %v292_v2  ;;  %486 = vmatpush.msrb.mxu2 %v216_v4 }
  0x71   :  { %463 = vmatpush.msrb.mxu1 %v184_v3  ;;  %508 = vmatpush.msrb.mxu3 %v250_v5 }
  0x72   :  { %527 = vmatpush.msra.mxu0 %v290_v6  ;;  %464 = vmatmul.f32.vlgmr.msrb.gmra.mxu1 %v8436_v0  ;;  %v595_v0 = vld [vmem:[#allocation7 + $0x78] sm:$0xff] }
  0x73   :  { %487 = vmatmul.f32.vlgmr.msrb.gmra.mxu2 %v8460_v20  ;;  %509 = vmatpush.msrb.mxu3 %v248_v8  ;;  %v588_v20 = vld [vmem:[#allocation7 + $0x40] sm:$0xff] }
  0x74   :  { %528 = vmatpush.msra.mxu0 %v288_v9  ;;  %510 = vmatmul.f32.vlgmr.msrb.gmra.mxu3 %v8447_v12  ;;  %v594_v12 = vld [vmem:[#allocation7 + $0x70] sm:$0xff] }
  0x75   :  { %7253 = vmatpush.msk.msra.mxu1 %vm326_vm0, %v312_v10  ;;  %601 = vmatpush.msra.mxu2 %v595_v0 }
  0x76   :  { %529 = vmatpush.msra.mxu0 %v286_v11  ;;  %635 = vmatpush.msra.mxu3 %v597_v59 }
  0x77   :  { %732 = vmatpush.msrb.mxu1 %v595_v0  ;;  %602 = vmatpush.msra.mxu2 %v594_v12 }
  0x78   :  { %530 = vmatpush.msra.mxu0 %v284_v13  ;;  %636 = vmatpush.msra.mxu3 %v596_v1 }
  0x79   :  { %733 = vmatpush.msrb.mxu1 %v594_v12 }
  0x7a   :  { %531 = vmatpush.msra.mxu0 %v282_v14  ;;  %467 = vmatmul.f32.gmra.mxu1 %v8453_v16  ;;  %v593_v16 = vld [vmem:[#allocation7 + $0x68] sm:$0xff] }
  0x7b   :  { %490 = vmatmul.f32.gmra.mxu2 %v8486_v40  ;;  %734 = vmatpush.msrb.mxu1 %v593_v16 }
  0x7c   :  { %532 = vmatpush.msra.mxu0 %v280_v15  ;;  %513 = vmatmul.f32.gmra.mxu3 %v8467_v29  ;;  %v315_v29 = vperm.slane %v313_v26, 0  ;;  %v649_v26 = vld [vmem:[%s12200_s5] sm:$0xff] }
  0x7d   :  { %533 = vmatmul.f32.vlgmr.msra.gmra.mxu0 %v8442_v7  ;;  %603 = vmatpush.msra.mxu2 %v593_v16  ;;  %v591_v7 = vld [vmem:[#allocation7 + $0x58] sm:$0xff]  ;;  %651 = vst [vmem:[#allocation1] ss:$2 sm:$0xff] %v649_v26 }
  0x7e   :  { %735 = vmatpush.msrb.mxu1 %v592_v17 }
  0x7f   :  { %604 = vmatpush.msra.mxu2 %v592_v17 }
  0x80   :  { %736 = vmatpush.msrb.mxu1 %v591_v7 }
  0x81   :  { %605 = vmatpush.msra.mxu2 %v591_v7 }
  0x82   :  { %7254 = vmatmul.msk.f32.vlgmr.msra.gmra.mxu1 %vm319_vm1, %v8478_v35 }
  0x83   :  { %606 = vmatpush.msra.mxu2 %v590_v18  ;;  %737 = vmatpush.msrb.mxu1 %v590_v18 }
  0x85   :  { %536 = vmatmul.f32.gmra.mxu0 %v8473_v34  ;;  %607 = vmatpush.msra.mxu2 %v589_v19 }
  0x86   :  { %738 = vmatpush.msrb.mxu1 %v589_v19 }
  0x87   :  { %608 = vmatpush.msra.mxu2 %v588_v20 }
  0x88   :  { %739 = vmatpush.msrb.mxu1 %v588_v20 }
  0x89   :  { %609 = vmatpush.msra.mxu2 %v587_v21 }
  0x8a   :  { %7255 = vmatmul.msk.f32.gmra.mxu1 %vm319_vm1, %v182_v54 }
  0x8b   :  { %740 = vmatpush.msrb.mxu1 %v587_v21  ;;  %610 = vmatpush.msra.mxu2 %v586_v22 }
  0x8d   :  { %741 = vmatpush.msrb.mxu1 %v586_v22  ;;  %611 = vmatpush.msra.mxu2 %v585_v24 }
  0x8f   :  { %742 = vmatpush.msrb.mxu1 %v585_v24  ;;  %612 = vmatpush.msra.mxu2 %v584_v25 }
  0x91   :  { %743 = vmatpush.msrb.mxu1 %v584_v25  ;;  %613 = vmatpush.msra.mxu2 %v583_v27 }
  0x93   :  { %744 = vmatpush.msrb.mxu1 %v583_v27  ;;  %614 = vmatpush.msra.mxu2 %v582_v28  ;;  %v652_v27 = vld.sshfl [vmem:[#allocation1] sm:$0xff pattern:$0x75316420] }
  0x94   :  { %7257 = vmatpush.msk.msrb.mxu3 %vm658_vm3, %v652_v27  ;;  %v896_v27 = vld [vmem:[#allocation9 + $0x30] sm:$0xff] }
  0x95   :  { %745 = vmatpush.msrb.mxu1 %v582_v28  ;;  %615 = vmatpush.msra.mxu2 %v581_v31  ;;  %v653_v28 = vld.sshfl [vmem:[#allocation1 + $0x8] sm:$0xff pattern:$0x75316420] }
  0x96   :  { %7259 = vmatpush.msk.msrb.mxu0 %vm658_vm3, %v653_v28  ;;  %773 = vst [vmem:[#allocation1] ss:$2 sm:$0xff] %v649_v26  ;;  %v898_v26 = vld [vmem:[#allocation9 + $0x40] sm:$0xff] }
  0x97   :  { %746 = vmatpush.msrb.mxu1 %v581_v31  ;;  %616 = vmatpush.msra.mxu2 %v580_v33  ;;  %v894_v28 = vld [vmem:[#allocation9 + $0x20] sm:$0xff] }
  0x99   :  { %747 = vmatpush.msrb.mxu1 %v580_v33 }
  0xcc   :  { %v350_v23 = vpop.f32.mrf.mxu0 }
  0xcd   :  { %v351_v34 = vadd.f32 %v350_v23, %v315_v29 }
  0xd2   :  { %v373_v32 = vpop.f32.mrf.mxu1 }
  0xd3   :  { %v374_v37 = vadd.f32 %v373_v32, %v351_v34 }
  0xd4   :  { %v419_v36 = vpop.f32.mrf.mxu3 }
  0xd5   :  { %v353_v30 = vpop.f32.mrf.mxu0 }
  0xd6   :  { %v354_v38 = vadd.f32 %v353_v30, %v315_v29  ;;  %v8286_v29 = vmov 576.0  }
  0xd7   :  { %7527 = vrcp.f32 %v8286_v29 }
  0xd9   :  { %v396_v35 = vpop.f32.mrf.mxu2 }
  0xda   :  { %v397_v40 = vadd.f32 %v396_v35, %v374_v37 }
  0xdc   :  { %v420_v46 = vadd.f32 %v419_v36, %v397_v40 }
  0xdd   :  { %v7528_v30 = vpop.eup %7527 }
  0xde   :  { %v442_v39 = vpop.f32.mrf.mxu0  ;;  %v642_v31 = vmul.f32 576.0, %v7528_v30  ;;  %vm646_vm4 = vweird.f32 %v7528_v30 }
  0xdf   :  { %v8508_v49 = vadd.f32 %v442_v39, %v420_v46 }
  0xe0   :  { %v376_v41 = vpop.f32.mrf.mxu1  ;;  %v643_v32 = vsub.f32 1.0, %v642_v31 }
  0xe1   :  { %v399_v42 = vpop.f32.mrf.mxu2  ;;  %v377_v43 = vadd.f32 %v376_v41, %v354_v38 }
  0xe2   :  { %v644_v33 = vmul.f32 %v7528_v30, %v643_v32 }
  0xe3   :  { %v400_v44 = vadd.f32 %v399_v42, %v377_v43  ;;  %v422_v45 = vpop.f32.mrf.mxu3 }
  0xe4   :  { %v645_v34 = vadd.f32 %v7528_v30, %v644_v33 }
  0xe5   :  { %v423_v47 = vadd.f32 %v422_v45, %v400_v44 }
  0xe6   :  { %v8522_v37 = vsel %vm646_vm4, %v7528_v30, %v645_v34  ;;  %v892_v30 = vld [vmem:[#allocation9 + $0x10] sm:$0xff]  ;;  %v890_v34 = vld [vmem:[#allocation9] sm:$0xff] }
  0xe7   :  { %v445_v48 = vpop.f32.mrf.mxu0 }
  0xe8   :  { %v8510_v50 = vadd.f32 %v445_v48, %v423_v47 }
  0xea   :  { %v563_v51 = vadd.f32 %v8510_v50, %v8508_v49 }
  0xec   :  { %v564_v52 = vrot.slane %v563_v51, 4 }
  0xee   :  { %v565_v53 = vadd.f32 %v564_v52, %v563_v51 }
  0xef   :  { %v465_v54 = vpop.f32.mrf.mxu1 }
  0xf0   :  { %v566_v55 = vrot.slane %v565_v53, 2  ;;  %v466_v3 = vadd.f32 %v465_v54, %v316_v60 }
  0xf2   :  { %v567_v56 = vadd.f32 %v566_v55, %v565_v53 }
  0xf4   :  { %v568_v57 = vrot.slane %v567_v56, 1 }
  0xf6   :  { %v488_v58 = vpop.f32.mrf.mxu2  ;;  %v569_v61 = vadd.f32 %v568_v57, %v567_v56 }
  0xf7   :  { %v468_v62 = vpop.f32.mrf.mxu1  ;;  %v511_v63 = vpop.f32.mrf.mxu3  ;;  %v489_v4 = vadd.f32 %v488_v58, %v466_v3 }
  0xf8   :  { %617 = vmatmul.f32.vlgmr.msra.gmra.mxu2 %v569_v61  ;;  %v469_v5 = vadd.f32 %v468_v62, %v316_v60 }
  0xf9   :  { %v512_v11 = vadd.f32 %v511_v63, %v489_v4 }
  0xfa   :  { %v534_v2 = vpop.f32.mrf.mxu0 }
  0xfb   :  { %v535_v15 = vadd.f32 %v534_v2, %v512_v11  ;;  %v8287_v11 = vmov 0  }
  0xfc   :  { %7525 = vset.pattern.permute.xlu0 %v8287_v11  ;;  %v1055_v11 = vld [vmem:[#allocation9 + $0x1e0] sm:$0xff] }
  0xfe   :  { %v491_v6 = vpop.f32.mrf.mxu2 }
  0xff   :  { %v492_v8 = vadd.f32 %v491_v6, %v469_v5  ;;  %v514_v9 = vpop.f32.mrf.mxu3  ;;  %v557_v10 = vpop.f32.mrf.mxu1  ;;  %v774_v5 = vld.sshfl [vmem:[#allocation1] sm:$0xff pattern:$0x75316420]  ;;  %v775_v6 = vld.sshfl [vmem:[#allocation1 + $0x8] sm:$0xff pattern:$0x75316420] }
 0x100   :  { %v558_v0 = vadd.f32 %v557_v10, %v535_v15  ;;  %7262 = vmatpush.msk.msra.mxu0 %vm658_vm3, %v774_v5  ;;  %7264 = vmatpush.msk.msrb.mxu2 %vm658_vm3, %v775_v6  ;;  %v918_v10 = vld [vmem:[#allocation9 + $0xe0] sm:$0xff]  ;;  %v1038_v5 = vld [vmem:[#allocation9 + $0x158] sm:$0xff]  ;;  %v1189_v6 = vld [vmem:[#allocation9 + $0x2f0] sm:$0xff] }
 0x101   :  { %v515_v13 = vadd.f32 %v514_v9, %v492_v8  ;;  %v7526_v8 = vld [vmem:[#allocation3] ss:$0 sm:$0xff]  ;;  %v920_v9 = vld [vmem:[#allocation9 + $0xf0] sm:$0xff]  ;;  %v914_v15 = vld [vmem:[#allocation9 + $0xc0] sm:$0xff] }
 0x102   :  { %v537_v14 = vpop.f32.mrf.mxu0  ;;  %v571_v7 = vsel %vm570_vm2, %v558_v0, 0.0  ;;  %879 = vperm.xlu0 %7525, %v7526_v8   ;;  %v1057_v8 = vld [vmem:[#allocation9 + $0x1f0] sm:$0xff] }
 0x103   :  { %v538_v12 = vadd.f32 %v537_v14, %v515_v13  ;;  %v916_v13 = vld [vmem:[#allocation9 + $0xd0] sm:$0xff]  ;;  %v921_v14 = vld [vmem:[#allocation9 + $0xf8] sm:$0xff] }
 0x104   :  { %984 = vmatpush.msra.mxu2 %v921_v14  ;;  %v1185_v14 = vld [vmem:[#allocation9 + $0x2d0] sm:$0xff] }
 0x107   :  { %v560_v16 = vpop.f32.mrf.mxu1 }
 0x108   :  { %v561_v17 = vadd.f32 %v560_v16, %v538_v12  ;;  %v917_v12 = vld [vmem:[#allocation9 + $0xd8] sm:$0xff]  ;;  %v912_v16 = vld [vmem:[#allocation9 + $0xb0] sm:$0xff] }
 0x10a   :  { %v572_v18 = vsel %vm570_vm2, %v561_v17, 0.0 }
 0x10b   :  { %v573_v19 = vadd.f32 %v572_v18, %v571_v7  ;;  %v910_v7 = vld [vmem:[#allocation9 + $0xa0] sm:$0xff]  ;;  %v913_v18 = vld [vmem:[#allocation9 + $0xb8] sm:$0xff] }
 0x10d   :  { %v574_v20 = vrot.slane %v573_v19, 4 }
 0x10f   :  { %v575_v21 = vadd.f32 %v574_v20, %v573_v19  ;;  %v908_v19 = vld [vmem:[#allocation9 + $0x90] sm:$0xff]  ;;  %v911_v20 = vld [vmem:[#allocation9 + $0xa8] sm:$0xff] }
 0x111   :  { %v576_v22 = vrot.slane %v575_v21, 2 }
 0x113   :  { %v577_v23 = vadd.f32 %v576_v22, %v575_v21  ;;  %v906_v21 = vld [vmem:[#allocation9 + $0x80] sm:$0xff]  ;;  %v909_v22 = vld [vmem:[#allocation9 + $0x98] sm:$0xff] }
 0x115   :  { %v578_v24 = vrot.slane %v577_v23, 1 }
 0x117   :  { %v579_v25 = vadd.f32 %v578_v24, %v577_v23  ;;  %v904_v23 = vld [vmem:[#allocation9 + $0x70] sm:$0xff]  ;;  %v902_v24 = vld [vmem:[#allocation9 + $0x60] sm:$0xff] }
 0x119   :  { %7256 = vmatmul.msk.f32.vlgmr.msra.gmra.mxu3 %vm570_vm2, %v579_v25  ;;  %v900_v25 = vld [vmem:[#allocation9 + $0x50] sm:$0xff] }
 0x11a   :  { %766 = vmatpush.msra.mxu3 %v597_v59 }
 0x11c   :  { %767 = vmatpush.msra.mxu3 %v596_v1 }
 0x17b   :  { %v618_v35 = vpop.f32.mrf.mxu2 }
 0x19c   :  { %v638_v36 = vpop.f32.mrf.mxu3 }
 0x19d   :  { %v639_v38 = vadd.f32 %v638_v36, %v618_v35  ;;  %v907_v35 = vld [vmem:[#allocation9 + $0x88] sm:$0xff]  ;;  %v1062_v36 = vld [vmem:[#allocation9 + $0x218] sm:$0xff] }
 0x19f   :  { %v648_v39 = vmul.f32 %v8522_v37, %v639_v38  ;;  %v905_v38 = vld [vmem:[#allocation9 + $0x78] sm:$0xff] }
 0x1a1   :  { %7258 = vmatmul.msk.f32.vlgmr.msrb.gmra.mxu3 %vm654_vm5, %v648_v39  ;;  %7260 = vmatmul.msk.f32.vlgmr.msrb.gmra.mxu0 %vm654_vm5, %v648_v39  ;;  %v1060_v39 = vld [vmem:[#allocation9 + $0x208] sm:$0xff] }
 0x1a2   :  { %938 = vmatpush.msrb.mxu3 %v920_v9  ;;  %v1036_v9 = vld [vmem:[#allocation9 + $0x148] sm:$0xff] }
 0x1a4   :  { %939 = vmatpush.msrb.mxu3 %v918_v10  ;;  %v1187_v10 = vld [vmem:[#allocation9 + $0x2e0] sm:$0xff] }
 0x1a6   :  { %940 = vmatpush.msrb.mxu3 %v916_v13  ;;  %v1034_v13 = vld [vmem:[#allocation9 + $0x138] sm:$0xff] }
 0x1a8   :  { %941 = vmatpush.msrb.mxu3 %v914_v15  ;;  %v1053_v15 = vld [vmem:[#allocation9 + $0x1d0] sm:$0xff] }
 0x1aa   :  { %942 = vmatpush.msrb.mxu3 %v912_v16 }
 0x1ac   :  { %943 = vmatpush.msrb.mxu3 %v910_v7  ;;  %v1051_v7 = vld [vmem:[#allocation9 + $0x1c0] sm:$0xff] }
 0x1ae   :  { %944 = vmatpush.msrb.mxu3 %v908_v19  ;;  %v925_v19 = vld [vmem:[#allocation9 + $0x118] sm:$0xff] }
 0x1af   :  { %1021 = vmatpush.msra.mxu1 %v925_v19  ;;  %v8578_v19 = vld [vmem:[#allocation10 + $0xd0] sm:$0xff] }
 0x1b0   :  { %945 = vmatpush.msrb.mxu3 %v906_v21  ;;  %v1179_v21 = vld [vmem:[#allocation9 + $0x2a0] sm:$0xff] }
 0x1b2   :  { %946 = vmatpush.msrb.mxu3 %v904_v23  ;;  %v923_v23 = vld [vmem:[#allocation9 + $0x108] sm:$0xff] }
 0x1b3   :  { %1022 = vmatpush.msra.mxu1 %v923_v23 }
 0x1b4   :  { %947 = vmatpush.msrb.mxu3 %v902_v24  ;;  %v1047_v24 = vld [vmem:[#allocation9 + $0x1a0] sm:$0xff] }
 0x1b6   :  { %948 = vmatpush.msrb.mxu3 %v900_v25  ;;  %v1177_v25 = vld [vmem:[#allocation9 + $0x290] sm:$0xff] }
 0x1b8   :  { %949 = vmatpush.msrb.mxu3 %v898_v26 }
 0x1ba   :  { %950 = vmatpush.msrb.mxu3 %v896_v27  ;;  %v1045_v27 = vld [vmem:[#allocation9 + $0x190] sm:$0xff] }
 0x1bc   :  { %951 = vmatpush.msrb.mxu3 %v894_v28  ;;  %v1175_v28 = vld [vmem:[#allocation9 + $0x280] sm:$0xff] }
 0x1be   :  { %952 = vmatpush.msrb.mxu3 %v892_v30 }
 0x1c0   :  { %953 = vmatpush.msrb.mxu3 %v890_v34  ;;  %v1041_v34 = vld [vmem:[#allocation9 + $0x170] sm:$0xff] }
 0x21e   :  { %v700_v40 = vpop.f32.mrf.mxu0 }
 0x21f   :  { %v704_v41 = vperm.slane %v700_v40, 0  ;;  %v903_v40 = vld [vmem:[#allocation9 + $0x68] sm:$0xff] }
 0x221   :  { %v8527_v42 = vsub.f32 %v558_v0, %v704_v41  ;;  %v8529_v43 = vsub.f32 %v561_v17, %v704_v41  ;;  %v919_v0 = vld [vmem:[#allocation9 + $0xe8] sm:$0xff]  ;;  %v1058_v41 = vld [vmem:[#allocation9 + $0x1f8] sm:$0xff] }
 0x222   :  { %985 = vmatpush.msra.mxu2 %v919_v0  ;;  %v915_v17 = vld [vmem:[#allocation9 + $0xc8] sm:$0xff] }
 0x223   :  { %v710_v44 = vmul.f32 %v8527_v42, %v8527_v42  ;;  %v712_v45 = vmul.f32 %v8529_v43, %v8529_v43  ;;  %v1032_v0 = vld [vmem:[#allocation9 + $0x128] sm:$0xff] }
 0x224   :  { %v680_v46 = vpop.f32.mrf.mxu3  ;;  %986 = vmatpush.msra.mxu2 %v917_v12  ;;  %v1183_v12 = vld [vmem:[#allocation9 + $0x2c0] sm:$0xff] }
 0x225   :  { %v720_v47 = vsel %vm570_vm2, %v710_v44, 0.0  ;;  %v721_v48 = vsel %vm570_vm2, %v712_v45, 0.0  ;;  %v703_v51 = vperm.slane %v680_v46, 0  ;;  %v901_v44 = vld [vmem:[#allocation9 + $0x58] sm:$0xff]  ;;  %v899_v45 = vld [vmem:[#allocation9 + $0x48] sm:$0xff] }
 0x226   :  { %v722_v52 = vadd.f32 %v721_v48, %v720_v47  ;;  %987 = vmatpush.msra.mxu2 %v915_v17  ;;  %v1054_v46 = vld [vmem:[#allocation9 + $0x1d8] sm:$0xff]  ;;  %v1052_v48 = vld [vmem:[#allocation9 + $0x1c8] sm:$0xff] }
 0x227   :  { %v8538_v53 = vsub.f32 %v8508_v49, %v703_v51  ;;  %v8541_v54 = vsub.f32 %v8510_v50, %v703_v51  ;;  %v897_v47 = vld [vmem:[#allocation9 + $0x38] sm:$0xff]  ;;  %v895_v51 = vld [vmem:[#allocation9 + $0x28] sm:$0xff] }
 0x228   :  { %v723_v55 = vrot.slane %v722_v52, 4  ;;  %988 = vmatpush.msra.mxu2 %v913_v18  ;;  %v1181_v18 = vld [vmem:[#allocation9 + $0x2b0] sm:$0xff] }
 0x229   :  { %v709_v56 = vmul.f32 %v8538_v53, %v8538_v53  ;;  %v711_v57 = vmul.f32 %v8541_v54, %v8541_v54 }
 0x22a   :  { %v724_v58 = vadd.f32 %v723_v55, %v722_v52  ;;  %989 = vmatpush.msra.mxu2 %v911_v20  ;;  %v1050_v52 = vld [vmem:[#allocation9 + $0x1b8] sm:$0xff]  ;;  %v1049_v20 = vld [vmem:[#allocation9 + $0x1b0] sm:$0xff] }
 0x22b   :  { %v713_v59 = vadd.f32 %v711_v57, %v709_v56  ;;  %v893_v55 = vld [vmem:[#allocation9 + $0x18] sm:$0xff]  ;;  %v1048_v56 = vld [vmem:[#allocation9 + $0x1a8] sm:$0xff] }
 0x22c   :  { %v725_v60 = vrot.slane %v724_v58, 2  ;;  %990 = vmatpush.msra.mxu2 %v909_v22  ;;  %v891_v57 = vld [vmem:[#allocation9 + $0x8] sm:$0xff] }
 0x22d   :  { %v714_v61 = vrot.slane %v713_v59, 4 }
 0x22e   :  { %v726_v62 = vadd.f32 %v725_v60, %v724_v58  ;;  %991 = vmatpush.msra.mxu2 %v907_v35  ;;  %v1046_v58 = vld [vmem:[#allocation9 + $0x198] sm:$0xff]  ;;  %v1044_v60 = vld [vmem:[#allocation9 + $0x188] sm:$0xff]  ;;  %v1171_v35 = vld [vmem:[#allocation9 + $0x260] sm:$0xff] }
 0x22f   :  { %v715_v63 = vadd.f32 %v714_v61, %v713_v59  ;;  %v1197_v59 = vld [vmem:[#allocation9 + $0x330] sm:$0xff]  ;;  %v1195_v61 = vld [vmem:[#allocation9 + $0x320] sm:$0xff] }
 0x230   :  { %v727_v1 = vrot.slane %v726_v62, 1  ;;  %992 = vmatpush.msra.mxu2 %v905_v38  ;;  %v1039_v38 = vld [vmem:[#allocation9 + $0x160] sm:$0xff] }
 0x231   :  { %v716_v2 = vrot.slane %v715_v63, 2 }
 0x232   :  { %v728_v49 = vadd.f32 %v727_v1, %v726_v62  ;;  %993 = vmatpush.msra.mxu2 %v903_v40  ;;  %v924_v62 = vld [vmem:[#allocation9 + $0x110] sm:$0xff] }
 0x233   :  { %v717_v3 = vadd.f32 %v716_v2, %v715_v63  ;;  %975 = vmatpush.msrb.mxu0 %v924_v62  ;;  %v1042_v63 = vld [vmem:[#allocation9 + $0x178] sm:$0xff]  ;;  %v1193_v1 = vld [vmem:[#allocation9 + $0x310] sm:$0xff]  ;;  %v922_v2 = vld [vmem:[#allocation9 + $0x100] sm:$0xff] }
 0x234   :  { %7261 = vmatmul.msk.f32.vlgmr.msra.gmra.mxu3 %vm570_vm2, %v728_v49  ;;  %994 = vmatpush.msra.mxu2 %v901_v44  ;;  %v1061_v49 = vld [vmem:[#allocation9 + $0x210] sm:$0xff] }
 0x235   :  { %v718_v50 = vrot.slane %v717_v3, 1  ;;  %1120 = vmatpush.msra.mxu3 %v1062_v36  ;;  %976 = vmatpush.msrb.mxu0 %v922_v2 }
 0x236   :  { %995 = vmatpush.msra.mxu2 %v899_v45  ;;  %v1167_v45 = vld [vmem:[#allocation9 + $0x240] sm:$0xff] }
 0x237   :  { %v719_v4 = vadd.f32 %v718_v50, %v717_v3  ;;  %1121 = vmatpush.msra.mxu3 %v1060_v39  ;;  %v1040_v3 = vld [vmem:[#allocation9 + $0x168] sm:$0xff]  ;;  %v1191_v50 = vld [vmem:[#allocation9 + $0x300] sm:$0xff]  ;;  %v1169_v39 = vld [vmem:[#allocation9 + $0x250] sm:$0xff] }
 0x238   :  { %996 = vmatpush.msra.mxu2 %v897_v47 }
 0x239   :  { %748 = vmatmul.f32.vlgmr.msrb.gmra.mxu1 %v719_v4  ;;  %1122 = vmatpush.msra.mxu3 %v1058_v41  ;;  %v1059_v4 = vld [vmem:[#allocation9 + $0x200] sm:$0xff] }
 0x23a   :  { %997 = vmatpush.msra.mxu2 %v895_v51  ;;  %v7266_v51 = vld [vmem:[%s12543_s21 + $0x2] sm:$0x3] }
 0x23c   :  { %998 = vmatpush.msra.mxu2 %v893_v55  ;;  %v1063_v55 = vld [vmem:[#allocation9 + $0x220] sm:$0xff] }
 0x23e   :  { %999 = vmatpush.msra.mxu2 %v891_v57 }
 0x2b6   :  { %v749_v29 = vpop.f32.mrf.mxu1 }
 0x2b7   :  { %v769_v31 = vpop.f32.mrf.mxu3 }
 0x2b8   :  { %v770_v32 = vadd.f32 %v769_v31, %v749_v29  ;;  %v1043_v31 = vld [vmem:[#allocation9 + $0x180] sm:$0xff] }
 0x2ba   :  { %v772_v33 = vmul.f32 %v770_v32, %v8522_v37  ;;  %v1056_v37 = vld [vmem:[#allocation9 + $0x1e8] sm:$0xff]  ;;  %v1173_v32 = vld [vmem:[#allocation9 + $0x270] sm:$0xff] }
 0x2bb   :  { %1123 = vmatpush.msra.mxu3 %v1056_v37  ;;  %v1037_v37 = vld [vmem:[#allocation9 + $0x150] sm:$0xff] }
 0x2bc   :  { %7263 = vmatmul.msk.f32.vlgmr.msra.gmra.mxu0 %vm654_vm5, %v772_v33  ;;  %7265 = vmatmul.msk.f32.vlgmr.msrb.gmra.mxu2 %vm654_vm5, %v772_v33 }
 0x2bd   :  { %1124 = vmatpush.msra.mxu3 %v1054_v46  ;;  %1210 = vmatpush.msrb.mxu2 %v1197_v59  ;;  %v1065_v46 = vld [vmem:[#allocation9 + $0x230] sm:$0xff] }
 0x2be   :  { %1074 = vmatpush.msra.mxu0 %v1061_v49  ;;  %1111 = vmatpush.msrb.mxu1 %v1065_v46  ;;  %v1033_v59 = vld [vmem:[#allocation9 + $0x130] sm:$0xff] }
 0x2bf   :  { %1125 = vmatpush.msra.mxu3 %v1052_v48  ;;  %1211 = vmatpush.msrb.mxu2 %v1195_v61  ;;  %v852_v61 = vperm.slane %v7266_v51, 0  ;;  %v8636_v46 = vld [vmem:[#allocation10 + $0x30] sm:$0xff] }
 0x2c0   :  { %1075 = vmatpush.msra.mxu0 %v1059_v4  ;;  %1112 = vmatpush.msrb.mxu1 %v1063_v55  ;;  %v8644_v55 = vld [vmem:[#allocation10 + $0x10] sm:$0xff] }
 0x2c1   :  { %1126 = vmatpush.msra.mxu3 %v1050_v52  ;;  %1212 = vmatpush.msrb.mxu2 %v1193_v1  ;;  %v1035_v52 = vld [vmem:[#allocation9 + $0x140] sm:$0xff] }
 0x2c2   :  { %1076 = vmatpush.msra.mxu0 %v1057_v8  ;;  %v853_v8 = vperm.slane %v7266_v51, 1  ;;  %v8641_v51 = vld [vmem:[#allocation10 + $0x20] sm:$0xff] }
 0x2c3   :  { %1127 = vmatpush.msra.mxu3 %v1048_v56  ;;  %1213 = vmatpush.msrb.mxu2 %v1191_v50 }
 0x2c4   :  { %1077 = vmatpush.msra.mxu0 %v1055_v11 }
 0x2c5   :  { %1128 = vmatpush.msra.mxu3 %v1046_v58  ;;  %1214 = vmatpush.msrb.mxu2 %v1189_v6  ;;  %v7267_v58 = vld [vmem:[%s12543_s21 + $0x4] sm:$0x3]  ;;  %v880_v6 = vpop.permute.xlu0 %879 }
 0x2c6   :  { %1078 = vmatpush.msra.mxu0 %v1053_v15  ;;  %v863_v2 = vperm.slane %v7267_v58, 0 }
 0x2c7   :  { %1129 = vmatpush.msra.mxu3 %v1044_v60  ;;  %1215 = vmatpush.msrb.mxu2 %v1187_v10 }
 0x2c8   :  { %1079 = vmatpush.msra.mxu0 %v1051_v7 }
 0x2c9   :  { %1130 = vmatpush.msra.mxu3 %v1042_v63  ;;  %1216 = vmatpush.msrb.mxu2 %v1185_v14  ;;  %v1031_v63 = vld [vmem:[#allocation9 + $0x120] sm:$0xff]  ;;  %v864_v14 = vperm.slane %v7267_v58, 1  ;;  %v8650_v58 = vld [vmem:[#allocation10 + $0x218] sm:$0xff] }
 0x2ca   :  { %1080 = vmatpush.msra.mxu0 %v1049_v20 }
 0x2cb   :  { %1131 = vmatpush.msra.mxu3 %v1040_v3  ;;  %1217 = vmatpush.msrb.mxu2 %v1183_v12 }
 0x2cc   :  { %1081 = vmatpush.msra.mxu0 %v1047_v24  ;;  %v8584_v24 = vld [vmem:[#allocation10 + $0xc0] sm:$0xff] }
 0x2cd   :  { %1132 = vmatpush.msra.mxu3 %v1038_v5  ;;  %1218 = vmatpush.msrb.mxu2 %v1181_v18 }
 0x2ce   :  { %1082 = vmatpush.msra.mxu0 %v1045_v27  ;;  %v1064_v27 = vld [vmem:[#allocation9 + $0x228] sm:$0xff] }
 0x2cf   :  { %1133 = vmatpush.msra.mxu3 %v1036_v9  ;;  %1219 = vmatpush.msrb.mxu2 %v1179_v21  ;;  %v1201_v21 = vld [vmem:[#allocation9 + $0x350] sm:$0xff] }
 0x2d0   :  { %1083 = vmatpush.msra.mxu0 %v1043_v31  ;;  %v8598_v31 = vld [vmem:[#allocation10 + $0xa0] sm:$0xff] }
 0x2d1   :  { %1134 = vmatpush.msra.mxu3 %v1034_v13  ;;  %1220 = vmatpush.msrb.mxu2 %v1177_v25  ;;  %v1066_v25 = vld [vmem:[#allocation9 + $0x238] sm:$0xff] }
 0x2d2   :  { %1084 = vmatpush.msra.mxu0 %v1041_v34  ;;  %v8606_v34 = vld [vmem:[#allocation10 + $0x80] sm:$0xff] }
 0x2d3   :  { %1135 = vmatpush.msra.mxu3 %v1032_v0  ;;  %1221 = vmatpush.msrb.mxu2 %v1175_v28  ;;  %v8564_v0 = vld [vmem:[#allocation10 + $0xf0] sm:$0xff] }
 0x2d4   :  { %1085 = vmatpush.msra.mxu0 %v1039_v38  ;;  %v8620_v38 = vld [vmem:[#allocation10 + $0x60] sm:$0xff] }
 0x2d5   :  { %1222 = vmatpush.msrb.mxu2 %v1173_v32  ;;  %v8601_v32 = vld [vmem:[#allocation10 + $0x90] sm:$0xff] }
 0x2d6   :  { %1086 = vmatpush.msra.mxu0 %v1037_v37  ;;  %v8630_v37 = vld [vmem:[#allocation10 + $0x40] sm:$0xff] }
 0x2d7   :  { %1223 = vmatpush.msrb.mxu2 %v1171_v35  ;;  %v8613_v35 = vld [vmem:[#allocation10 + $0x70] sm:$0xff] }
 0x2d8   :  { %1087 = vmatpush.msra.mxu0 %v1035_v52  ;;  %v1192_v52 = vld [vmem:[#allocation9 + $0x308] sm:$0xff] }
 0x2d9   :  { %1224 = vmatpush.msrb.mxu2 %v1169_v39  ;;  %v8622_v39 = vld [vmem:[#allocation10 + $0x108] sm:$0xff] }
 0x2da   :  { %1088 = vmatpush.msra.mxu0 %v1033_v59  ;;  %v1188_v59 = vld [vmem:[#allocation9 + $0x2e8] sm:$0xff] }
 0x2db   :  { %1225 = vmatpush.msrb.mxu2 %v1167_v45  ;;  %v1196_v45 = vld [vmem:[#allocation9 + $0x328] sm:$0xff] }
 0x2dc   :  { %1089 = vmatpush.msra.mxu0 %v1031_v63  ;;  %v1186_v63 = vld [vmem:[#allocation9 + $0x2d8] sm:$0xff] }
 0x339   :  { %v800_v16 = vpop.f32.mrf.mxu0 }
 0x33a   :  { %v801_v17 = vadd.f32 1e-05, %v800_v16 }
 0x33c   :  { %7529 = vrsqrt.f32 %v801_v17  ;;  %vm829_vm7 = vweird.f32 %v801_v17 }
 0x33f   :  { %v820_v22 = vpop.f32.mrf.mxu2 }
 0x340   :  { %v821_v26 = vadd.f32 1e-05, %v820_v22 }
 0x342   :  { %v7530_v29 = vpop.eup %7529  ;;  %7531 = vrsqrt.f32 %v821_v26  ;;  %vm839_vm10 = vweird.f32 %v821_v26 }
 0x343   :  { %v824_v30 = vmul.f32 %v7530_v29, %v801_v17  ;;  %vm830_vm6 = vweird.f32 %v7530_v29 }
 0x344   :  { %vm831_vm8 = vmor %vm829_vm7, %vm830_vm6 }
 0x345   :  { %v825_v33 = vmul.f32 %v7530_v29, %v824_v30 }
 0x347   :  { %v826_v36 = vmul.f32 0.5, %v825_v33 }
 0x348   :  { %v7532_v40 = vpop.eup %7531 }
 0x349   :  { %v827_v41 = vsub.f32 1.5, %v826_v36  ;;  %v834_v44 = vmul.f32 %v7532_v40, %v821_v26  ;;  %vm840_vm9 = vweird.f32 %v7532_v40  ;;  %v8591_v26 = vld [vmem:[#allocation10 + $0xb0] sm:$0xff]  ;;  %v8615_v36 = vld [vmem:[#allocation10 + $0x118] sm:$0xff] }
 0x34a   :  { %vm841_vm11 = vmor %vm839_vm10, %vm840_vm9 }
 0x34b   :  { %v828_v47 = vmul.f32 %v7530_v29, %v827_v41  ;;  %v835_v48 = vmul.f32 %v7532_v40, %v834_v44  ;;  %v1202_v41 = vld [vmem:[#allocation9 + $0x358] sm:$0xff] }
 0x34c   :  { %v1198_v44 = vld [vmem:[#allocation9 + $0x338] sm:$0xff] }
 0x34d   :  { %v832_v56 = vsel %vm831_vm8, %v7530_v29, %v828_v47  ;;  %v836_v57 = vmul.f32 0.5, %v835_v48  ;;  %v1199_v29 = vld [vmem:[#allocation9 + $0x340] sm:$0xff]  ;;  %v1200_v47 = vld [vmem:[#allocation9 + $0x348] sm:$0xff]  ;;  %v1194_v48 = vld [vmem:[#allocation9 + $0x318] sm:$0xff] }
 0x34e   :  { %v843_v60 = vperm.slane %v832_v56, 0  ;;  %v1190_v56 = vld [vmem:[#allocation9 + $0x2f8] sm:$0xff] }
 0x34f   :  { %v837_v62 = vsub.f32 1.5, %v836_v57  ;;  %v8647_v57 = vld [vmem:[#allocation10] sm:$0xff] }
 0x350   :  { %v845_v1 = vmul.f32 %v843_v60, %v8538_v53  ;;  %v847_v49 = vmul.f32 %v843_v60, %v8541_v54  ;;  %v8566_v54 = vld [vmem:[#allocation10 + $0x110] sm:$0xff]  ;;  %v8656_v60 = vld [vmem:[#allocation10 + $0x208] sm:$0xff] }
 0x351   :  { %v838_v3 = vmul.f32 %v7532_v40, %v837_v62  ;;  %v12225_v62 = vmov 0.0  }
 0x352   :  { %v856_v50 = vmul.f32 %v852_v61, %v845_v1  ;;  %v858_v10 = vmul.f32 %v852_v61, %v847_v49  ;;  %v8658_v61 = vld [vmem:[#allocation10 + $0x230] sm:$0xff]  ;;  %v8663_v1 = vld [vmem:[#allocation10 + $0x1f8] sm:$0xff]  ;;  %v1184_v49 = vld [vmem:[#allocation9 + $0x2c8] sm:$0xff] }
 0x353   :  { %v842_v4 = vsel %vm841_vm11, %v7532_v40, %v838_v3  ;;  %v8626_v40 = vld [vmem:[#allocation10 + $0x50] sm:$0xff]  ;;  %v8669_v3 = vld [vmem:[#allocation10 + $0x1e8] sm:$0xff] }
 0x354   :  { %v844_v5 = vperm.slane %v842_v4, 0  ;;  %v867_v9 = vadd.f32 %v863_v2, %v856_v50  ;;  %v869_v12 = vadd.f32 %v863_v2, %v858_v10  ;;  %v8665_v2 = vld [vmem:[#allocation10 + $0x220] sm:$0xff]  ;;  %v1182_v50 = vld [vmem:[#allocation9 + $0x2b8] sm:$0xff] }
 0x355   :  { %v8673_v4 = vld [vmem:[#allocation10 + $0xf8] sm:$0xff] }
 0x356   :  { %v846_v11 = vmul.f32 %v844_v5, %v8527_v42  ;;  %v848_v13 = vmul.f32 %v844_v5, %v8529_v43  ;;  %vm872_vm12 = vcmp.ge.f32.partialorder %v867_v9, 0.0  ;;  %v882_v53 = vmul.f32 %v880_v6, %v867_v9  ;;  %v8572_v42 = vld [vmem:[#allocation10 + $0xe0] sm:$0xff]  ;;  %12544 = vst [vmem:[#allocation22_spill] sm:$0xff] %v8673_v4  ;;  %v8675_v5 = vld [vmem:[#allocation10 + $0x1d8] sm:$0xff] }
 0x357   :  { %v8574_v43 = vld [vmem:[#allocation10 + $0x100] sm:$0xff]  ;;  %v884_v20 = vmul.f32 %v880_v6, %v869_v12  ;;  %vm874_vm14 = vcmp.ge.f32.partialorder %v869_v12, 0.0  ;;  %v1178_v10 = vld [vmem:[#allocation9 + $0x298] sm:$0xff] }
 0x358   :  { %v857_v15 = vmul.f32 %v853_v8, %v846_v11  ;;  %v8568_v16 = vsel %vm872_vm12, %v867_v9, %v882_v53  ;;  %v859_v17 = vmul.f32 %v853_v8, %v848_v13  ;;  %v8682_v8 = vld [vmem:[#allocation10 + $0xe8] sm:$0xff]  ;;  %v8688_v11 = vld [vmem:[#allocation10 + $0x238] sm:$0xff] }
 0x359   :  { %954 = vmatmul.f32.vlgmr.msrb.gmra.mxu3 %v8568_v16  ;;  %1000 = vmatmul.f32.vlgmr.msra.gmra.mxu2 %v8568_v16  ;;  %v8593_v28 = vsel %vm874_vm14, %v869_v12, %v884_v20  ;;  %12545 = vst [vmem:[#allocation23_spill] sm:$0xff] %v8682_v8  ;;  %v8684_v9 = vld [vmem:[#allocation10 + $0x1c8] sm:$0xff]  ;;  %v8690_v13 = vld [vmem:[#allocation10 + $0xd8] sm:$0xff] }
 0x35a   :  { %v868_v7 = vadd.f32 %v864_v14, %v857_v15  ;;  %1417 = vmatpush.msrb.mxu3 %v8564_v0  ;;  %1451 = vmatpush.msra.mxu2 %v8566_v54  ;;  %v870_v22 = vadd.f32 %v864_v14, %v859_v17  ;;  %12546 = vst [vmem:[#allocation24_spill] sm:$0xff] %v8690_v13  ;;  %v8692_v14 = vld [vmem:[#allocation10 + $0x1b8] sm:$0xff]  ;;  %v1176_v53 = vld [vmem:[#allocation9 + $0x288] sm:$0xff] }
 0x35b   :  { %v8697_v15 = vld [vmem:[#allocation10 + $0x228] sm:$0xff]  ;;  %v8711_v20 = vld [vmem:[#allocation10 + $0x198] sm:$0xff] }
 0x35c   :  { %vm873_vm13 = vcmp.ge.f32.partialorder %v868_v7, 0.0  ;;  %v883_v18 = vmul.f32 %v880_v6, %v868_v7  ;;  %1418 = vmatpush.msrb.mxu3 %v8572_v42  ;;  %1452 = vmatpush.msra.mxu2 %v8574_v43  ;;  %v885_v30 = vmul.f32 %v880_v6, %v870_v22  ;;  %vm875_vm15 = vcmp.ge.f32.partialorder %v870_v22, 0.0  ;;  %v1180_v6 = vld [vmem:[#allocation9 + $0x2a8] sm:$0xff] }
 0x35d   :  { %v8699_v12 = vld [vmem:[#allocation10 + $0xc8] sm:$0xff] }
 0x35e   :  { %v8582_v23 = vsel %vm873_vm13, %v868_v7, %v883_v18  ;;  %1419 = vmatpush.msrb.mxu3 %v8578_v19  ;;  %v8604_v33 = vsel %vm875_vm15, %v870_v22, %v885_v30  ;;  %12547 = vst [vmem:[#allocation25_spill] sm:$0xff] %v8699_v12  ;;  %v8701_v17 = vld [vmem:[#allocation10 + $0x1a8] sm:$0xff]  ;;  %v1174_v7 = vld [vmem:[#allocation9 + $0x278] sm:$0xff] }
 0x35f   :  { %7268 = vmatmul.msk.f32.vlgmr.msrb.gmra.mxu0 %vm570_vm2, %v8582_v23  ;;  %7270 = vmatmul.msk.f32.vlgmr.msra.gmra.mxu1 %vm570_vm2, %v8582_v23  ;;  %v8706_v18 = vld [vmem:[#allocation10 + $0xb8] sm:$0xff]  ;;  %v8717_v22 = vld [vmem:[#allocation10 + $0xa8] sm:$0xff] }
 0x360   :  { %1247 = vmatpush.msrb.mxu0 %v1201_v21  ;;  %1420 = vmatpush.msrb.mxu3 %v8584_v24  ;;  %12548 = vst [vmem:[#allocation26_spill] sm:$0xff] %v8706_v18  ;;  %v1172_v21 = vld [vmem:[#allocation9 + $0x268] sm:$0xff]  ;;  %v8727_v30 = vld [vmem:[#allocation10 + $0x178] sm:$0xff] }
 0x361   :  { %1157 = vmatpush.msra.mxu1 %v1066_v25  ;;  %957 = vmatmul.f32.gmra.mxu3 %v8593_v28  ;;  %12549 = vst [vmem:[#allocation27_spill] sm:$0xff] %v8717_v22  ;;  %v8720_v25 = vld [vmem:[#allocation10 + $0x188] sm:$0xff] }
 0x362   :  { %1003 = vmatmul.f32.gmra.mxu2 %v8593_v28  ;;  %1421 = vmatpush.msrb.mxu3 %v8591_v26  ;;  %12550 = vst [vmem:[#allocation28_spill] sm:$0xff] %v8720_v25 }
 0x363   :  { %1158 = vmatpush.msra.mxu1 %v1064_v27  ;;  %1248 = vmatpush.msrb.mxu0 %v1199_v29  ;;  %v1170_v27 = vld [vmem:[#allocation9 + $0x258] sm:$0xff]  ;;  %12552 = vst [vmem:[#allocation30_spill] sm:$0xff] %v8727_v30 }
 0x364   :  { %1422 = vmatpush.msrb.mxu3 %v8598_v31  ;;  %v8723_v29 = vld [vmem:[#allocation10 + $0x98] sm:$0xff] }
 0x365   :  { %12551 = vst [vmem:[#allocation29_spill] sm:$0xff] %v8723_v29 }
 0x366   :  { %1423 = vmatpush.msrb.mxu3 %v8601_v32 }
 0x367   :  { %7269 = vmatmul.msk.f32.gmra.mxu0 %vm570_vm2, %v8604_v33  ;;  %7271 = vmatmul.msk.f32.gmra.mxu1 %vm570_vm2, %v8604_v33 }
 0x368   :  { %1424 = vmatpush.msrb.mxu3 %v8606_v34 }
 0x369   :  { %1136 = vmatmul.f32.vlgmr.msra.gmra.mxu3 %v8568_v16 }
 0x36a   :  { %1226 = vmatmul.f32.vlgmr.msrb.gmra.mxu2 %v8568_v16  ;;  %1425 = vmatpush.msrb.mxu3 %v8613_v35 }
 0x36b   :  { %1491 = vmatpush.msrb.mxu2 %v8615_v36 }
 0x36c   :  { %1426 = vmatpush.msrb.mxu3 %v8620_v38 }
 0x36d   :  { %1492 = vmatpush.msrb.mxu2 %v8622_v39 }
 0x36e   :  { %1427 = vmatpush.msrb.mxu3 %v8626_v40 }
 0x36f   :  { %1090 = vmatmul.f32.vlgmr.msra.gmra.mxu0 %v8568_v16  ;;  %7273 = vmatmul.msk.f32.vlgmr.msrb.gmra.mxu1 %vm570_vm2, %v8582_v23 }
 0x370   :  { %1293 = vmatpush.msra.mxu0 %v1202_v41  ;;  %1256 = vmatpush.msrb.mxu1 %v1198_v44  ;;  %v1168_v41 = vld [vmem:[#allocation9 + $0x248] sm:$0xff] }
 0x371   :  { %1428 = vmatpush.msrb.mxu3 %v8630_v37  ;;  %v8730_v44 = vld [vmem:[#allocation10 + $0x88] sm:$0xff] }
 0x372   :  { %1139 = vmatmul.f32.gmra.mxu3 %v8593_v28  ;;  %1229 = vmatmul.f32.gmra.mxu2 %v8593_v28  ;;  %12553 = vst [vmem:[#allocation31_spill] sm:$0xff] %v8730_v44 }
 0x373   :  { %1257 = vmatpush.msrb.mxu1 %v1196_v45  ;;  %1429 = vmatpush.msrb.mxu3 %v8636_v46  ;;  %v8733_v45 = vld [vmem:[#allocation10 + $0x210] sm:$0xff] }
 0x374   :  { %1294 = vmatpush.msra.mxu0 %v1200_v47  ;;  %v8735_v47 = vld [vmem:[#allocation10 + $0x168] sm:$0xff] }
 0x375   :  { %1258 = vmatpush.msrb.mxu1 %v1194_v48  ;;  %1430 = vmatpush.msrb.mxu3 %v8641_v51  ;;  %12554 = vst [vmem:[#allocation32_spill] sm:$0xff] %v8735_v47  ;;  %v8739_v48 = vld [vmem:[#allocation10 + $0x78] sm:$0xff] }
 0x376   :  { %12555 = vst [vmem:[#allocation33_spill] sm:$0xff] %v8739_v48 }
 0x377   :  { %1259 = vmatpush.msrb.mxu1 %v1192_v52  ;;  %1431 = vmatpush.msrb.mxu3 %v8644_v55  ;;  %v8741_v52 = vld [vmem:[#allocation10 + $0x200] sm:$0xff] }
 0x378   :  { %1093 = vmatmul.f32.gmra.mxu0 %v8593_v28  ;;  %7274 = vmatmul.msk.f32.gmra.mxu1 %vm570_vm2, %v8604_v33 }
 0x379   :  { %1260 = vmatpush.msrb.mxu1 %v1190_v56  ;;  %1432 = vmatpush.msrb.mxu3 %v8647_v57  ;;  %v8745_v56 = vld [vmem:[#allocation10 + $0x158] sm:$0xff] }
 0x37a   :  { %1453 = vmatmul.f32.vlgmr.msra.gmra.mxu2 %v12225_v62  ;;  %1433 = vmatmul.f32.vlgmr.msrb.gmra.mxu3 %v12225_v62  ;;  %12556 = vst [vmem:[#allocation34_spill] sm:$0xff] %v8745_v56 }
 0x37b   :  { %1537 = vmatpush.msra.mxu3 %v8650_v58  ;;  %1261 = vmatpush.msrb.mxu1 %v1188_v59  ;;  %v8750_v59 = vld [vmem:[#allocation10 + $0x68] sm:$0xff] }
 0x37c   :  { %1531 = vmatpush.msra.mxu2 %v8658_v61  ;;  %12557 = vst [vmem:[#allocation35_spill] sm:$0xff] %v8750_v59 }
 0x37d   :  { %1538 = vmatpush.msra.mxu3 %v8656_v60  ;;  %1262 = vmatpush.msrb.mxu1 %v1186_v63  ;;  %v8752_v63 = vld [vmem:[#allocation10 + $0x1f0] sm:$0xff] }
 0x37e   :  { %1532 = vmatpush.msra.mxu2 %v8665_v2 }
 0x37f   :  { %1539 = vmatpush.msra.mxu3 %v8663_v1  ;;  %1263 = vmatpush.msrb.mxu1 %v1184_v49  ;;  %v8756_v49 = vld [vmem:[#allocation10 + $0x148] sm:$0xff] }
 0x380   :  { %7275 = vmatmul.msk.f32.vlgmr.msra.gmra.mxu1 %vm570_vm2, %v8582_v23  ;;  %7278 = vmatmul.msk.f32.vlgmr.msrb.gmra.mxu0 %vm570_vm2, %v8582_v23  ;;  %12558 = vst [vmem:[#allocation36_spill] sm:$0xff] %v8756_v49 }
 0x381   :  { %1540 = vmatpush.msra.mxu3 %v8669_v3  ;;  %1264 = vmatpush.msrb.mxu1 %v1182_v50  ;;  %v8759_v50 = vld [vmem:[#allocation10 + $0x58] sm:$0xff] }
 0x382   :  { %1457 = vmatpush.msrb.mxu0 %v8673_v4  ;;  %1493 = vmatmul.f32.vlgmr.msrb.gmra.mxu2 %v12225_v62  ;;  %12559 = vst [vmem:[#allocation37_spill] sm:$0xff] %v8759_v50 }
 0x383   :  { %1541 = vmatpush.msra.mxu3 %v8675_v5  ;;  %1265 = vmatpush.msrb.mxu1 %v1180_v6  ;;  %v8761_v6 = vld [vmem:[#allocation10 + $0x1e0] sm:$0xff] }
 0x384   :  { %1458 = vmatpush.msrb.mxu0 %v8682_v8  ;;  %1571 = vmatpush.msrb.mxu2 %v8688_v11 }
 0x385   :  { %1542 = vmatpush.msra.mxu3 %v8684_v9  ;;  %1266 = vmatpush.msrb.mxu1 %v1178_v10  ;;  %v8771_v10 = vld [vmem:[#allocation10 + $0x1d0] sm:$0xff] }
 0x386   :  { %1459 = vmatpush.msrb.mxu0 %v8690_v13  ;;  %1572 = vmatpush.msrb.mxu2 %v8697_v15 }
 0x387   :  { %1543 = vmatpush.msra.mxu3 %v8692_v14  ;;  %1267 = vmatpush.msrb.mxu1 %v1176_v53  ;;  %v8775_v53 = vld [vmem:[#allocation10 + $0x128] sm:$0xff] }
 0x388   :  { %1460 = vmatpush.msrb.mxu0 %v8699_v12  ;;  %7276 = vmatmul.msk.f32.gmra.mxu1 %vm570_vm2, %v8604_v33  ;;  %12562 = vst [vmem:[#allocation40_spill] sm:$0xff] %v8775_v53 }
 0x389   :  { %1544 = vmatpush.msra.mxu3 %v8701_v17  ;;  %7279 = vmatmul.msk.f32.gmra.mxu0 %vm570_vm2, %v8604_v33 }
 0x38a   :  { %1268 = vmatpush.msrb.mxu1 %v1174_v7  ;;  %1461 = vmatpush.msrb.mxu0 %v8706_v18  ;;  %v8780_v7 = vld [vmem:[#allocation10 + $0x38] sm:$0xff] }
 0x38b   :  { %1545 = vmatpush.msra.mxu3 %v8711_v20  ;;  %1533 = vmatmul.f32.vlgmr.msra.gmra.mxu2 %v12225_v62  ;;  %12563 = vst [vmem:[#allocation41_spill] sm:$0xff] %v8780_v7 }
 0x38c   :  { %1269 = vmatpush.msrb.mxu1 %v1172_v21  ;;  %1462 = vmatpush.msrb.mxu0 %v8717_v22  ;;  %v8782_v21 = vld [vmem:[#allocation10 + $0x1c0] sm:$0xff] }
 0x38d   :  { %1546 = vmatpush.msra.mxu3 %v8720_v25  ;;  %v8850_v25 = vld [vmem:[#allocation10 + $0x358] sm:$0xff] }
 0x38e   :  { %1270 = vmatpush.msrb.mxu1 %v1170_v27  ;;  %1463 = vmatpush.msrb.mxu0 %v8723_v29  ;;  %v8786_v27 = vld [vmem:[#allocation10 + $0x350] sm:$0xff]  ;;  %12580 = vst [vmem:[#allocation57_spill] sm:$0xff] %v8850_v25 }
 0x38f   :  { %1547 = vmatpush.msra.mxu3 %v8727_v30  ;;  %12564 = vst [vmem:[#allocation42_spill] sm:$0xff] %v8786_v27  ;;  %1616 = vmatpush.msra.mxu2 %v8786_v27  ;;  %v8817_v27 = vld [vmem:[#allocation10 + $0x180] sm:$0xff] }
 0x390   :  { %1271 = vmatpush.msrb.mxu1 %v1168_v41  ;;  %1464 = vmatpush.msrb.mxu0 %v8730_v44  ;;  %v8791_v41 = vld [vmem:[#allocation10 + $0x28] sm:$0xff]  ;;  %12571 = vst [vmem:[#allocation49_spill] sm:$0xff] %v8817_v27  ;;  %v8838_v30 = vld [vmem:[#allocation10 + $0x300] sm:$0xff] }
 0x391   :  { %1548 = vmatpush.msra.mxu3 %v8735_v47  ;;  %1272 = vmatmul.f32.vlgmr.msrb.gmra.mxu1 %v8568_v16  ;;  %v8766_v16 = vld [vmem:[#allocation10 + $0x138] sm:$0xff]  ;;  %12565 = vst [vmem:[#allocation43_spill] sm:$0xff] %v8791_v41  ;;  %v8823_v47 = vld [vmem:[#allocation10 + $0x320] sm:$0xff] }
 0x392   :  { %1497 = vmatpush.msra.mxu1 %v8733_v45  ;;  %7280 = vmatmul.msk.f32.vlgmr.msra.gmra.mxu0 %vm570_vm2, %v8582_v23  ;;  %12560 = vst [vmem:[#allocation38_spill] sm:$0xff] %v8766_v16  ;;  %v8769_v23 = vld [vmem:[#allocation10 + $0x48] sm:$0xff] }
 0x393   :  { %1465 = vmatpush.msrb.mxu0 %v8739_v48  ;;  %1549 = vmatpush.msra.mxu3 %v8745_v56  ;;  %12561 = vst [vmem:[#allocation39_spill] sm:$0xff] %v8769_v23  ;;  %v8815_v56 = vld [vmem:[#allocation10 + $0x330] sm:$0xff] }
 0x394   :  { %1498 = vmatpush.msra.mxu1 %v8741_v52  ;;  %1573 = vmatmul.f32.vlgmr.msrb.gmra.mxu2 %v12225_v62  ;;  %12570 = vst [vmem:[#allocation48_spill] sm:$0xff] %v8815_v56 }
 0x395   :  { %1466 = vmatpush.msrb.mxu0 %v8750_v59  ;;  %1550 = vmatpush.msra.mxu3 %v8756_v49  ;;  %v8797_v49 = vld [vmem:[#allocation10 + $0x340] sm:$0xff]  ;;  %12573 = vst [vmem:[#allocation50_spill] sm:$0xff] %v8823_v47 }
 0x396   :  { %1499 = vmatpush.msra.mxu1 %v8752_v63  ;;  %12566 = vst [vmem:[#allocation44_spill] sm:$0xff] %v8797_v49  ;;  %1617 = vmatpush.msra.mxu2 %v8797_v49  ;;  %v8831_v49 = vld [vmem:[#allocation10 + $0x310] sm:$0xff] }
 0x397   :  { %1467 = vmatpush.msrb.mxu0 %v8759_v50  ;;  %1551 = vmatpush.msra.mxu3 %v8766_v16  ;;  %v8793_v16 = vld [vmem:[#allocation10 + $0x1b0] sm:$0xff]  ;;  %12575 = vst [vmem:[#allocation52_spill] sm:$0xff] %v8831_v49 }
 0x398   :  { %1500 = vmatpush.msra.mxu1 %v8761_v6  ;;  %12577 = vst [vmem:[#allocation54_spill] sm:$0xff] %v8838_v30  ;;  %1656 = vmatpush.msrb.mxu2 %v8850_v25  ;;  %v8872_v25 = vld [vmem:[#allocation10 + $0x2c0] sm:$0xff] }
 0x399   :  { %1468 = vmatpush.msrb.mxu0 %v8769_v23  ;;  %1552 = vmatpush.msra.mxu3 %v8775_v53  ;;  %v8799_v53 = vld [vmem:[#allocation10 + $0x18] sm:$0xff]  ;;  %12585 = vst [vmem:[#allocation62_spill] sm:$0xff] %v8872_v25 }
 0x39a   :  { %1501 = vmatpush.msra.mxu1 %v8771_v10  ;;  %7281 = vmatmul.msk.f32.gmra.mxu0 %vm570_vm2, %v8604_v33  ;;  %12567 = vst [vmem:[#allocation45_spill] sm:$0xff] %v8799_v53  ;;  %v8807_v33 = vld [vmem:[#allocation10 + $0x8] sm:$0xff] }
 0x39b   :  { %1275 = vmatmul.f32.gmra.mxu1 %v8593_v28  ;;  %1553 = vmatmul.f32.vlgmr.msra.gmra.mxu3 %v12225_v62  ;;  %v8801_v28 = vld [vmem:[#allocation10 + $0x1a0] sm:$0xff]  ;;  %12568 = vst [vmem:[#allocation46_spill] sm:$0xff] %v8807_v33  ;;  %v8809_v62 = vld [vmem:[#allocation10 + $0x190] sm:$0xff] }
 0x39c   :  { %1469 = vmatpush.msrb.mxu0 %v8780_v7  ;;  %1502 = vmatpush.msra.mxu1 %v8782_v21  ;;  %12569 = vst [vmem:[#allocation47_spill] sm:$0xff] %v8809_v62 }
 0x39d   :  { %1796 = vmatpush.msrb.mxu3 %v8566_v54  ;;  %v12572_v54 = vmov 0.0  }
 0x39e   :  { %1470 = vmatpush.msrb.mxu0 %v8791_v41  ;;  %1503 = vmatpush.msra.mxu1 %v8793_v16 }
 0x39f   :  { %1797 = vmatpush.msrb.mxu3 %v8574_v43  ;;  %1618 = vmatmul.f32.vlgmr.msra.gmra.mxu2 %v12572_v54  ;;  %v8826_v43 = vld [vmem:[#allocation10 + $0x170] sm:$0xff] }
 0x3a0   :  { %1471 = vmatpush.msrb.mxu0 %v8799_v53  ;;  %1504 = vmatpush.msra.mxu1 %v8801_v28  ;;  %12574 = vst [vmem:[#allocation51_spill] sm:$0xff] %v8826_v43 }
 0x3a1   :  { %1802 = vmatpush.msra.mxu3 %v8673_v4  ;;  %v8834_v4 = vld [vmem:[#allocation10 + $0x160] sm:$0xff] }
 0x3a2   :  { %1472 = vmatpush.msrb.mxu0 %v8807_v33  ;;  %1505 = vmatpush.msra.mxu1 %v8809_v62  ;;  %12576 = vst [vmem:[#allocation53_spill] sm:$0xff] %v8834_v4 }
 0x3a3   :  { %1803 = vmatpush.msra.mxu3 %v8682_v8  ;;  %1473 = vmatmul.f32.vlgmr.msrb.gmra.mxu0 %v12572_v54  ;;  %v8845_v8 = vld [vmem:[#allocation10 + $0x2f0] sm:$0xff] }
 0x3a4   :  { %1582 = vmatpush.msra.mxu0 %v8815_v56  ;;  %1506 = vmatpush.msra.mxu1 %v8817_v27  ;;  %v8841_v56 = vld [vmem:[#allocation10 + $0x150] sm:$0xff] }
 0x3a5   :  { %1804 = vmatpush.msra.mxu3 %v8690_v13  ;;  %12578 = vst [vmem:[#allocation55_spill] sm:$0xff] %v8841_v56  ;;  %v8854_v13 = vld [vmem:[#allocation10 + $0x2e0] sm:$0xff] }
 0x3a6   :  { %1583 = vmatpush.msra.mxu0 %v8823_v47  ;;  %1507 = vmatpush.msra.mxu1 %v8826_v43  ;;  %v8848_v47 = vld [vmem:[#allocation10 + $0x140] sm:$0xff]  ;;  %12581 = vst [vmem:[#allocation58_spill] sm:$0xff] %v8854_v13 }
 0x3a7   :  { %1805 = vmatpush.msra.mxu3 %v8699_v12  ;;  %12579 = vst [vmem:[#allocation56_spill] sm:$0xff] %v8848_v47  ;;  %v8858_v12 = vld [vmem:[#allocation10 + $0x130] sm:$0xff] }
 0x3a8   :  { %1584 = vmatpush.msra.mxu0 %v8831_v49  ;;  %1508 = vmatpush.msra.mxu1 %v8834_v4  ;;  %12582 = vst [vmem:[#allocation59_spill] sm:$0xff] %v8858_v12  ;;  %v8860_v49 = vld [vmem:[#allocation10 + $0x348] sm:$0xff] }
 0x3a9   :  { %1806 = vmatpush.msra.mxu3 %v8706_v18  ;;  %12583 = vst [vmem:[#allocation60_spill] sm:$0xff] %v8860_v49  ;;  %1657 = vmatpush.msrb.mxu2 %v8860_v49  ;;  %v8868_v18 = vld [vmem:[#allocation10 + $0x120] sm:$0xff]  ;;  %v8880_v49 = vld [vmem:[#allocation10 + $0x2b0] sm:$0xff] }
 0x3aa   :  { %1585 = vmatpush.msra.mxu0 %v8838_v30  ;;  %1509 = vmatpush.msra.mxu1 %v8841_v56  ;;  %v8864_v30 = vld [vmem:[#allocation10 + $0x2d0] sm:$0xff]  ;;  %12584 = vst [vmem:[#allocation61_spill] sm:$0xff] %v8868_v18 }
 0x3ab   :  { %1807 = vmatpush.msra.mxu3 %v8717_v22  ;;  %1658 = vmatmul.f32.vlgmr.msrb.gmra.mxu2 %v12572_v54  ;;  %v8876_v22 = vld [vmem:[#allocation10 + $0x338] sm:$0xff] }
 0x3ac   :  { %1586 = vmatpush.msra.mxu0 %v8845_v8  ;;  %1510 = vmatpush.msra.mxu1 %v8848_v47 }
 0x3ad   :  { %1762 = vmatpush.msra.mxu2 %v8564_v0  ;;  %1808 = vmatpush.msra.mxu3 %v8723_v29  ;;  %v8888_v0 = vld [vmem:[#allocation10 + $0x2a0] sm:$0xff]  ;;  %v8892_v29 = vld [vmem:[#allocation10 + $0x318] sm:$0xff] }
 0x3ae   :  { %1587 = vmatpush.msra.mxu0 %v8854_v13  ;;  %1511 = vmatpush.msra.mxu1 %v8858_v12  ;;  %v8885_v13 = vld [vmem:[#allocation10 + $0x328] sm:$0xff] }
 0x3af   :  { %1763 = vmatpush.msra.mxu2 %v8572_v42  ;;  %1809 = vmatpush.msra.mxu3 %v8730_v44  ;;  %v8896_v42 = vld [vmem:[#allocation10 + $0x290] sm:$0xff]  ;;  %v8908_v44 = vld [vmem:[#allocation10 + $0x2f8] sm:$0xff] }
 0x3b0   :  { %1588 = vmatpush.msra.mxu0 %v8864_v30  ;;  %1512 = vmatpush.msra.mxu1 %v8868_v18 }
 0x3b1   :  { %1513 = vmatmul.f32.vlgmr.msra.gmra.mxu1 %v12572_v54  ;;  %1764 = vmatpush.msra.mxu2 %v8578_v19  ;;  %v8904_v19 = vld [vmem:[#allocation10 + $0x280] sm:$0xff] }
 0x3b2   :  { %1589 = vmatpush.msra.mxu0 %v8872_v25  ;;  %1622 = vmatpush.msrb.mxu1 %v8876_v22  ;;  %v8900_v25 = vld [vmem:[#allocation10 + $0x308] sm:$0xff] }
 0x3b3   :  { %1765 = vmatpush.msra.mxu2 %v8584_v24  ;;  %1810 = vmatpush.msra.mxu3 %v8739_v48  ;;  %v8912_v24 = vld [vmem:[#allocation10 + $0x270] sm:$0xff]  ;;  %v8916_v48 = vld [vmem:[#allocation10 + $0x2e8] sm:$0xff] }
 0x3b4   :  { %1590 = vmatpush.msra.mxu0 %v8880_v49  ;;  %1623 = vmatpush.msrb.mxu1 %v8885_v13 }
 0x3b5   :  { %1766 = vmatpush.msra.mxu2 %v8591_v26  ;;  %1811 = vmatpush.msra.mxu3 %v8750_v59  ;;  %v8920_v26 = vld [vmem:[#allocation10 + $0x260] sm:$0xff]  ;;  %v8924_v59 = vld [vmem:[#allocation10 + $0x2d8] sm:$0xff] }
 0x3b6   :  { %1591 = vmatpush.msra.mxu0 %v8888_v0  ;;  %1624 = vmatpush.msrb.mxu1 %v8892_v29 }
 0x3b7   :  { %1767 = vmatpush.msra.mxu2 %v8598_v31  ;;  %1812 = vmatpush.msra.mxu3 %v8759_v50  ;;  %v8928_v31 = vld [vmem:[#allocation10 + $0x250] sm:$0xff]  ;;  %v8932_v50 = vld [vmem:[#allocation10 + $0x2c8] sm:$0xff] }
 0x3b8   :  { %1592 = vmatpush.msra.mxu0 %v8896_v42  ;;  %1625 = vmatpush.msrb.mxu1 %v8900_v25 }
 0x3b9   :  { %1768 = vmatpush.msra.mxu2 %v8601_v32  ;;  %1813 = vmatpush.msra.mxu3 %v8769_v23  ;;  %v8936_v32 = vld [vmem:[#allocation10 + $0x240] sm:$0xff]  ;;  %v8940_v23 = vld [vmem:[#allocation10 + $0x2b8] sm:$0xff] }
 0x3ba   :  { %1593 = vmatpush.msra.mxu0 %v8904_v19  ;;  %1626 = vmatpush.msrb.mxu1 %v8908_v44 }
 0x3bb   :  { %1769 = vmatpush.msra.mxu2 %v8606_v34  ;;  %1814 = vmatpush.msra.mxu3 %v8780_v7  ;;  %v8946_v34 = vld [vmem:[#allocation10 + $0x2a8] sm:$0xff] }
 0x3bc   :  { %1594 = vmatpush.msra.mxu0 %v8912_v24  ;;  %1627 = vmatpush.msrb.mxu1 %v8916_v48 }
 0x3bd   :  { %1770 = vmatpush.msra.mxu2 %v8613_v35  ;;  %1815 = vmatpush.msra.mxu3 %v8791_v41  ;;  %v8951_v35 = vld [vmem:[#allocation10 + $0x298] sm:$0xff] }
 0x3be   :  { %1595 = vmatpush.msra.mxu0 %v8920_v26  ;;  %1628 = vmatpush.msrb.mxu1 %v8924_v59 }
 0x3bf   :  { %1771 = vmatpush.msra.mxu2 %v8620_v38  ;;  %1816 = vmatpush.msra.mxu3 %v8799_v53  ;;  %v8957_v38 = vld [vmem:[#allocation10 + $0x288] sm:$0xff]  ;;  %v8963_v53 = vld [vmem:[#allocation10 + $0x278] sm:$0xff] }
 0x3c0   :  { %1596 = vmatpush.msra.mxu0 %v8928_v31  ;;  %1629 = vmatpush.msrb.mxu1 %v8932_v50 }
 0x3c1   :  { %1772 = vmatpush.msra.mxu2 %v8626_v40  ;;  %1817 = vmatpush.msra.mxu3 %v8807_v33  ;;  %v8978_v40 = vld [vmem:[#allocation10 + $0x248] sm:$0xff] }
 0x3c2   :  { %1597 = vmatpush.msra.mxu0 %v8936_v32  ;;  %1630 = vmatpush.msrb.mxu1 %v8940_v23  ;;  %12586 = vst [vmem:[#allocation63_spill] sm:$0xff] %v8978_v40 }
 0x3c3   :  { %1598 = vmatmul.f32.vlgmr.msra.gmra.mxu0 %v12572_v54  ;;  %1773 = vmatpush.msra.mxu2 %v8630_v37 }
 0x3c4   :  { %1836 = vmatpush.msrb.mxu0 %v8615_v36  ;;  %1631 = vmatpush.msrb.mxu1 %v8946_v34  ;;  %v8968_v36 = vld [vmem:[#allocation10 + $0x268] sm:$0xff] }
 0x3c5   :  { %1774 = vmatpush.msra.mxu2 %v8636_v46 }
 0x3c6   :  { %1837 = vmatpush.msrb.mxu0 %v8622_v39  ;;  %1632 = vmatpush.msrb.mxu1 %v8951_v35  ;;  %v8973_v39 = vld [vmem:[#allocation10 + $0x258] sm:$0xff] }
 0x3c7   :  { %1775 = vmatpush.msra.mxu2 %v8641_v51 }
 0x3c8   :  { %1842 = vmatpush.msra.mxu0 %v8733_v45  ;;  %1633 = vmatpush.msrb.mxu1 %v8957_v38 }
 0x3c9   :  { %1776 = vmatpush.msra.mxu2 %v8644_v55 }
 0x3ca   :  { %1843 = vmatpush.msra.mxu0 %v8741_v52  ;;  %1634 = vmatpush.msrb.mxu1 %v8963_v53 }
 0x3cb   :  { %1777 = vmatpush.msra.mxu2 %v8647_v57 }
 0x3cc   :  { %1844 = vmatpush.msra.mxu0 %v8752_v63  ;;  %1635 = vmatpush.msrb.mxu1 %v8968_v36 }
 0x3cd   :  { %1916 = vmatpush.msrb.mxu2 %v8688_v11  ;;  %v12595_v11 = vld [vmem:[#allocation36_spill] sm:$0xff] }
 0x3ce   :  { %1845 = vmatpush.msra.mxu0 %v8761_v6  ;;  %1636 = vmatpush.msrb.mxu1 %v8973_v39 }
 0x3cf   :  { %1917 = vmatpush.msrb.mxu2 %v8697_v15  ;;  %v12596_v15 = vld [vmem:[#allocation38_spill] sm:$0xff] }
 0x3d0   :  { %1846 = vmatpush.msra.mxu0 %v8771_v10  ;;  %1637 = vmatpush.msrb.mxu1 %v8978_v40 }
 0x3d1   :  { %1638 = vmatmul.f32.vlgmr.msrb.gmra.mxu1 %v12572_v54 }
 0x3d2   :  { %1847 = vmatpush.msra.mxu0 %v8782_v21  ;;  %1876 = vmatpush.msra.mxu1 %v8658_v61  ;;  %v12590_v61 = vld [vmem:[#allocation30_spill] sm:$0xff] }
 0x3d4   :  { %1848 = vmatpush.msra.mxu0 %v8793_v16  ;;  %1877 = vmatpush.msra.mxu1 %v8665_v2  ;;  %v12592_v2 = vld [vmem:[#allocation32_spill] sm:$0xff] }
 0x3d6   :  { %1849 = vmatpush.msra.mxu0 %v8801_v28  ;;  %1882 = vmatpush.msrb.mxu1 %v8650_v58 }
 0x3d8   :  { %1850 = vmatpush.msra.mxu0 %v8809_v62  ;;  %1883 = vmatpush.msrb.mxu1 %v8656_v60  ;;  %v12589_v60 = vld [vmem:[#allocation28_spill] sm:$0xff] }
 0x3da   :  { %1851 = vmatpush.msra.mxu0 %v8817_v27  ;;  %1884 = vmatpush.msrb.mxu1 %v8663_v1 }
 0x3dc   :  { %1852 = vmatpush.msra.mxu0 %v8826_v43  ;;  %1885 = vmatpush.msrb.mxu1 %v8669_v3  ;;  %v978_v37 = vpop.f32.mrf.mxu0  ;;  %v1001_v46 = vpop.f32.mrf.mxu2 }
 0x3dd   :  { %v1024_v51 = vpop.f32.mrf.mxu1  ;;  %v955_v55 = vpop.f32.mrf.mxu3 }
 0x3de   :  { %1853 = vmatpush.msra.mxu0 %v8834_v4  ;;  %1886 = vmatpush.msrb.mxu1 %v8675_v5 }
 0x3e0   :  { %1854 = vmatpush.msra.mxu0 %v8841_v56  ;;  %1887 = vmatpush.msrb.mxu1 %v8684_v9  ;;  %v12594_v9 = vld [vmem:[#allocation34_spill] sm:$0xff] }
 0x3e2   :  { %1855 = vmatpush.msra.mxu0 %v8848_v47  ;;  %1888 = vmatpush.msrb.mxu1 %v8692_v14 }
 0x3e4   :  { %1856 = vmatpush.msra.mxu0 %v8858_v12  ;;  %1889 = vmatpush.msrb.mxu1 %v8701_v17  ;;  %v9007_v57 = vpop.f32.mrf.mxu0  ;;  %v12597_v17 = vld [vmem:[#allocation40_spill] sm:$0xff] }
 0x3e5   :  { %12587 = vst [vmem:[#allocation64_spill] sm:$0xff] %v9007_v57  ;;  %v9011_v58 = vpop.f32.mrf.mxu2  ;;  %v9015_v1 = vpop.f32.mrf.mxu1 }
 0x3e6   :  { %1857 = vmatpush.msra.mxu0 %v8868_v18  ;;  %1890 = vmatpush.msrb.mxu1 %v8711_v20  ;;  %12588 = vst [vmem:[#allocation65_spill] sm:$0xff] %v9011_v58  ;;  %v9018_v5 = vpop.f32.mrf.mxu3 }
 0x3e7   :  { %12591 = vst [vmem:[#allocation66_spill] sm:$0xff] %v9015_v1 }
 0x3e8   :  { %1891 = vmatpush.msrb.mxu1 %v12589_v60  ;;  %12593 = vst [vmem:[#allocation67_spill] sm:$0xff] %v9018_v5 }
 0x3ea   :  { %1892 = vmatpush.msrb.mxu1 %v12590_v61 }
 0x3ec   :  { %1893 = vmatpush.msrb.mxu1 %v12592_v2  ;;  %v1091_v3 = vpop.f32.mrf.mxu0 }
 0x3ed   :  { %v9022_v14 = vpop.f32.mrf.mxu2  ;;  %v1114_v20 = vpop.f32.mrf.mxu1 }
 0x3ee   :  { %1894 = vmatpush.msrb.mxu1 %v12594_v9  ;;  %v1137_v58 = vpop.f32.mrf.mxu3 }
 0x3f0   :  { %1895 = vmatpush.msrb.mxu1 %v12595_v11  ;;  %v9039_v11 = vld [vmem:[%s12203_s8] sm:$0x3] }
 0x3f1   :  { %12602 = vst [vmem:[#allocation72_spill] sm:$0xff] %v9039_v11  ;;  %v12272_v33 = vperm.slane %v9039_v11, 1 }
 0x3f2   :  { %1896 = vmatpush.msrb.mxu1 %v12596_v15 }
 0x3f4   :  { %1897 = vmatpush.msrb.mxu1 %v12597_v17  ;;  %v12265_v17 = vperm.slane %v9039_v11, 0 }
 0x3f5   :  { %v9026_v54 = vpop.f32.mrf.mxu0  ;;  %v9028_v1 = vpop.f32.mrf.mxu2 }
 0x3f6   :  { %12598 = vst [vmem:[#allocation68_spill] sm:$0xff] %v9026_v54  ;;  %v9030_v57 = vpop.f32.mrf.mxu1  ;;  %v9034_v5 = vpop.f32.mrf.mxu3 }
 0x3f7   :  { %12599 = vst [vmem:[#allocation69_spill] sm:$0xff] %v9028_v1  ;;  %v956_v1 = vadd.f32 %v955_v55, %v12265_v17  ;;  %v9061_v55 = vld [vmem:[%s12203_s8 + $0x2] sm:$0x3] }
 0x3f8   :  { %12600 = vst [vmem:[#allocation70_spill] sm:$0xff] %v9030_v57 }
 0x3f9   :  { %12601 = vst [vmem:[#allocation71_spill] sm:$0xff] %v9034_v5  ;;  %v9048_v5 = vadd.f32 %v978_v37, %v956_v1  ;;  %v1002_v37 = vadd.f32 %v1001_v46, %v12272_v33  ;;  %v12275_v33 = vperm.slane %v9061_v55, 0 }
 0x3fa   :  { %12607 = vst [vmem:[#allocation77_spill] sm:$0xff] %v9061_v55 }
 0x3fb   :  { %12604 = vst [vmem:[#allocation74_spill] sm:$0xff] %v9048_v5  ;;  %v9066_v17 = vadd.f32 %v1024_v51, %v1002_v37  ;;  %v1092_v51 = vadd.f32 %v1091_v3, %v12275_v33 }
 0x3fd   :  { %v9032_v2 = vpop.f32.mrf.mxu0  ;;  %v1454_v9 = vpop.f32.mrf.mxu2  ;;  %12608 = vst [vmem:[#allocation78_spill] sm:$0xff] %v9066_v17 }
 0x3fe   :  { %v1160_v54 = vpop.f32.mrf.mxu1  ;;  %v1434_v61 = vpop.f32.mrf.mxu3 }
 0x3ff   :  { %v1455_v60 = vadd.f32 %v1454_v9, %v1434_v61  ;;  %v12274_v61 = vperm.slane %v9061_v55, 1 }
 0x401   :  { %v1662_v12 = vadd.f32 %v1455_v60, %v9048_v5 }
 0x403   :  { %v7283_v56 = vmul.f32 -1.442695, %v1662_v12 }
 0x405   :  { %v1494_v57 = vpop.f32.mrf.mxu2  ;;  %7533 = vpow2.f32 %v7283_v56 }
 0x406   :  { %v9041_v15 = vpop.f32.mrf.mxu0  ;;  %v9051_v47 = vpop.f32.mrf.mxu1 }
 0x407   :  { %12603 = vst [vmem:[#allocation73_spill] sm:$0xff] %v9041_v15 }
 0x408   :  { %12605 = vst [vmem:[#allocation75_spill] sm:$0xff] %v9051_v47  ;;  %v1138_v47 = vadd.f32 %v1137_v58, %v12274_v61 }
 0x40a   :  { %v9071_v41 = vadd.f32 %v1160_v54, %v1138_v47 }
 0x40b   :  { %v7534_v60 = vpop.eup %7533 }
 0x40c   :  { %v1670_v56 = vadd.f32 1.0, %v7534_v60  ;;  %12609 = vst [vmem:[#allocation79_spill] sm:$0xff] %v9071_v41 }
 0x40e   :  { %v1534_v4 = vpop.f32.mrf.mxu2  ;;  %v9056_v43 = vpop.f32.mrf.mxu1  ;;  %7535 = vrcp.f32 %v1670_v56  ;;  %vm1677_vm4 = vweird.f32 %v1670_v56 }
 0x40f   :  { %v9046_v18 = vpop.f32.mrf.mxu0 }
 0x414   :  { %v7536_v37 = vpop.eup %7535 }
 0x415   :  { %vm1678_vm3 = vweird.f32 %v7536_v37 }
 0x416   :  { %vm1679_vm5 = vmor %vm1677_vm4, %vm1678_vm3 }
 0x417   :  { %v9053_v15 = vpop.f32.mrf.mxu0  ;;  %v1574_v12 = vpop.f32.mrf.mxu2 }
 0x418   :  { %12606 = vst [vmem:[#allocation76_spill] sm:$0xff] %v9053_v15  ;;  %v9073_v11 = vpop.f32.mrf.mxu1 }
 0x419   :  { %12610 = vst [vmem:[#allocation80_spill] sm:$0xff] %v9073_v11 }
 0x41e   :  { %v1554_v1 = vpop.f32.mrf.mxu3 }
 0x41f   :  { %v1575_v5 = vadd.f32 %v1574_v12, %v1554_v1  ;;  %v9079_v12 = vadd.f32 %v1114_v20, %v1092_v51  ;;  %v7282_v20 = vld [vmem:[%s12203_s8 + $0x6] sm:$0x3] }
 0x420   :  { %v1474_v9 = vpop.f32.mrf.mxu0 }
 0x421   :  { %v1495_v15 = vadd.f32 %v1494_v57, %v1474_v9  ;;  %v1703_v62 = vadd.f32 %v1575_v5, %v9071_v41  ;;  %12611 = vst [vmem:[#allocation81_spill] sm:$0xff] %v9079_v12 }
 0x423   :  { %v1663_v27 = vadd.f32 %v1495_v15, %v9066_v17  ;;  %v7286_v57 = vmul.f32 -1.442695, %v1703_v62  ;;  %v1673_v15 = vmul.f32 %v7536_v37, %v1670_v56 }
 0x425   :  { %v7284_v46 = vmul.f32 -1.442695, %v1663_v27  ;;  %v1674_v9 = vsub.f32 1.0, %v1673_v15 }
 0x427   :  { %7537 = vpow2.f32 %v7284_v46  ;;  %v1675_v3 = vmul.f32 %v7536_v37, %v1674_v9  ;;  %v9093_v46 = vld [vmem:[%s12203_s8 + $0x4] sm:$0x3]  ;;  %v1619_v9 = vpop.f32.mrf.mxu2 }
 0x428   :  { %7539 = vpow2.f32 %v7286_v57  ;;  %12612 = vst [vmem:[#allocation82_spill] sm:$0xff] %v9093_v46  ;;  %v12287_v15 = vperm.slane %v9093_v46, 0 }
 0x42d   :  { %v7538_v60 = vpop.eup %7537 }
 0x42e   :  { %v1514_v58 = vpop.f32.mrf.mxu1  ;;  %v9082_v54 = vadd.f32 1.0, %v7538_v60  ;;  %v7540_v5 = vpop.eup %7539  ;;  %v1676_v60 = vadd.f32 %v7536_v37, %v1675_v3  ;;  %v1228_v3 = vadd.f32 %v9022_v14, %v12287_v15 }
 0x42f   :  { %v1535_v47 = vadd.f32 %v1534_v4, %v1514_v58  ;;  %v9085_v62 = vadd.f32 1.0, %v7540_v5  ;;  %v9097_v58 = vperm.slane %v7282_v20, 0 }
 0x430   :  { %v1680_v61 = vsel %vm1679_vm5, %v7536_v37, %v1676_v60  ;;  %vm1692_vm12 = vweird.f32 %v9082_v54 }
 0x431   :  { %v1702_v27 = vadd.f32 %v1535_v47, %v9079_v12  ;;  %12613 = vst [vmem:[#allocation83_spill] sm:$0xff] %v9097_v58  ;;  %v1683_v47 = vand.u32 2147483648, %v1670_v56  ;;  %v9110_v12 = vadd.f32 %v9032_v2, %v1228_v3  ;;  %v9117_v2 = vperm.slane %v7282_v20, 1 }
 0x432   :  { %vm1732_vm3 = vweird.f32 %v9085_v62 }
 0x433   :  { %v7285_v1 = vmul.f32 -1.442695, %v1702_v27  ;;  %v1681_v27 = vand.u32 2147483647, %v1670_v56  ;;  %v1684_v33 = vor.u32 1.1754944e-38, %v1683_v47  ;;  %12614 = vst [vmem:[#allocation84_spill] sm:$0xff] %v9110_v12 }
 0x434   :  { %12615 = vst [vmem:[#allocation85_spill] sm:$0xff] %v9117_v2 }
 0x435   :  { %7541 = vpow2.f32 %v7285_v1  ;;  %vm1682_vm6 = vcmp.eq.f32.partialorder %v1681_v27, 8.507059e+37 }
 0x436   :  { %7543 = vrcp.f32 %v9082_v54  ;;  %v1685_v17 = vsel %vm1682_vm6, %v1684_v33, %v1680_v61  ;;  %v12286_v33 = vperm.slane %v9093_v46, 1  ;;  %vm1757_vm6 = vcmask 123904  }
 0x437   :  { %7545 = vrcp.f32 %v9085_v62 }
 0x43b   :  { %v7542_v4 = vpop.eup %7541 }
 0x43c   :  { %v9095_v51 = vpop.eup %7543  ;;  %v1710_v57 = vadd.f32 1.0, %v7542_v4 }
 0x43d   :  { %v1688_v5 = vmul.f32 %v9095_v51, %v9082_v54  ;;  %v9107_v55 = vpop.eup %7545  ;;  %vm1693_vm9 = vweird.f32 %v9095_v51 }
 0x43e   :  { %7547 = vrcp.f32 %v1710_v57  ;;  %v1728_v37 = vmul.f32 %v9107_v55, %v9085_v62  ;;  %vm1717_vm8 = vweird.f32 %v1710_v57  ;;  %vm1694_vm13 = vmor %vm1692_vm12, %vm1693_vm9  ;;  %vm1733_vm15 = vweird.f32 %v9107_v55 }
 0x43f   :  { %v1689_v56 = vsub.f32 1.0, %v1688_v5  ;;  %vm1734_vm4 = vmor %vm1732_vm3, %vm1733_vm15 }
 0x440   :  { %v1599_v1 = vpop.f32.mrf.mxu0  ;;  %v1729_v61 = vsub.f32 1.0, %v1728_v37  ;;  %v1274_v37 = vadd.f32 %v9056_v43, %v12286_v33  ;;  %v1738_v43 = vand.u32 2147483648, %v9085_v62 }
 0x441   :  { %v1600_v4 = vadd.f32 %v1599_v1, %v9097_v58  ;;  %v1690_v14 = vmul.f32 %v9095_v51, %v1689_v56  ;;  %v1723_v1 = vand.u32 2147483648, %v1710_v57 }
 0x442   :  { %v1730_v3 = vmul.f32 %v9107_v55, %v1729_v61 }
 0x443   :  { %v1620_v11 = vadd.f32 %v1619_v9, %v1600_v4  ;;  %v1721_v9 = vand.u32 2147483647, %v1710_v57  ;;  %v1696_v4 = vand.u32 2147483647, %v9082_v54 }
 0x444   :  { %v7548_v41 = vpop.eup %7547 }
 0x445   :  { %v1742_v7 = vmul.f32 %v1685_v17, %v1620_v11  ;;  %v1713_v40 = vmul.f32 %v7548_v41, %v1710_v57  ;;  %vm1718_vm7 = vweird.f32 %v7548_v41  ;;  %v1691_v17 = vadd.f32 %v9095_v51, %v1690_v14  ;;  %v1659_v57 = vpop.f32.mrf.mxu2 }
 0x446   :  { %vm1719_vm10 = vmor %vm1717_vm8, %vm1718_vm7  ;;  %vm1722_vm11 = vcmp.eq.f32.partialorder %v1721_v9, 8.507059e+37  ;;  %vm1697_vm14 = vcmp.eq.f32.partialorder %v1696_v4, 8.507059e+37  ;;  %v1739_v4 = vor.u32 1.1754944e-38, %v1738_v43  ;;  %v12626_v43 = vld [vmem:[#allocation22_spill] sm:$0xff] }
 0x447   :  { %v1744_v60 = vadd.f32 %v1742_v7, %v9110_v12  ;;  %v1714_v47 = vsub.f32 1.0, %v1713_v40  ;;  %v1724_v7 = vor.u32 1.1754944e-38, %v1723_v1  ;;  %v1698_v40 = vand.u32 2147483648, %v9082_v54 }
 0x449   :  { %v1715_v27 = vmul.f32 %v7548_v41, %v1714_v47  ;;  %7549 = vtanh.f32 %v1744_v60  ;;  %v1699_v1 = vor.u32 1.1754944e-38, %v1698_v40 }
 0x44b   :  { %v1716_v11 = vadd.f32 %v7548_v41, %v1715_v27 }
 0x44d   :  { %v1720_v5 = vsel %vm1719_vm10, %v7548_v41, %v1716_v11  ;;  %v1695_v41 = vsel %vm1694_vm13, %v9095_v51, %v1691_v17  ;;  %v1731_v11 = vadd.f32 %v9107_v55, %v1730_v3  ;;  %v1736_v51 = vand.u32 2147483647, %v9085_v62  ;;  %v12617_v3 = vld [vmem:[#allocation50_spill] sm:$0xff] }
 0x44e   :  { %v1725_v20 = vsel %vm1722_vm11, %v1724_v7, %v1720_v5  ;;  %v1639_v56 = vpop.f32.mrf.mxu1  ;;  %v1700_v61 = vsel %vm1697_vm14, %v1699_v1, %v1695_v41  ;;  %v9133_v7 = vadd.f32 %v9046_v18, %v1274_v37  ;;  %v12616_v18 = vld [vmem:[#allocation48_spill] sm:$0xff]  ;;  %v12619_v37 = vld [vmem:[#allocation54_spill] sm:$0xff]  ;;  %v12622_v1 = vld [vmem:[#allocation57_spill] sm:$0xff] }
 0x44f   :  { %v1748_v60 = vsub.f32 1.0, %v1725_v20  ;;  %v1640_v47 = vadd.f32 %v1639_v56, %v9117_v2  ;;  %v7550_v14 = vpop.eup %7549  ;;  %v1752_v9 = vmul.f32 0.0, %v1725_v20  ;;  %v1735_v40 = vsel %vm1734_vm4, %v9107_v55, %v1731_v11  ;;  %v9171_v11 = vld [vmem:[#allocation10 + $0x100] sm:$0xff] }
 0x450   :  { %vm1737_vm5 = vcmp.eq.f32.partialorder %v1736_v51, 8.507059e+37  ;;  %v9283_v51 = vld [vmem:[#allocation10] sm:$0xff] }
 0x451   :  { %v1750_v27 = vmul.f32 %v7550_v14, %v1748_v60  ;;  %v1660_v54 = vadd.f32 %v1659_v57, %v1640_v47  ;;  %v1740_v20 = vsel %vm1737_vm5, %v1739_v4, %v1735_v40  ;;  %v12618_v57 = vld [vmem:[#allocation52_spill] sm:$0xff]  ;;  %v12620_v14 = vld [vmem:[#allocation58_spill] sm:$0xff]  ;;  %v12659_v4 = vld [vmem:[#allocation49_spill] sm:$0xff] }
 0x452   :  { %v1749_v62 = vsub.f32 1.0, %v1740_v20  ;;  %v1753_v41 = vmul.f32 0.0, %v1740_v20  ;;  %v9290_v40 = vld [vmem:[#allocation10 + $0x238] sm:$0xff] }
 0x453   :  { %v9136_v5 = vadd.f32 %v1752_v9, %v1750_v27  ;;  %v1743_v56 = vmul.f32 %v1700_v61, %v1660_v54  ;;  %v9165_v27 = vld [vmem:[#allocation10 + $0x110] sm:$0xff]  ;;  %v12623_v9 = vld [vmem:[#allocation62_spill] sm:$0xff] }
 0x454   :  { %v12624_v54 = vld [vmem:[#allocation44_spill] sm:$0xff]  ;;  %v12661_v20 = vld [vmem:[#allocation45_spill] sm:$0xff] }
 0x455   :  { %1756 = vst [vmem:[#allocation2] sm:$0x3] %v9136_v5  ;;  %v1745_v17 = vadd.f32 %v1743_v56, %v9133_v7  ;;  %1778 = vmatmul.f32.vlgmr.msra.gmra.mxu2 %v9136_v5  ;;  %v12625_v61 = vld [vmem:[#allocation60_spill] sm:$0xff] }
 0x456   :  { %1922 = vmatpush.msra.mxu2 %v12616_v18  ;;  %v9276_v56 = vld [vmem:[#allocation10 + $0x10] sm:$0xff]  ;;  %v9293_v18 = vld [vmem:[#allocation10 + $0x218] sm:$0xff] }
 0x457   :  { %7551 = vtanh.f32 %v1745_v17  ;;  %v9287_v17 = vld [vmem:[#allocation10 + $0x220] sm:$0xff] }
 0x458   :  { %1923 = vmatpush.msra.mxu2 %v12617_v3  ;;  %v9297_v3 = vld [vmem:[#allocation10 + $0x228] sm:$0xff] }
 0x45a   :  { %1924 = vmatpush.msra.mxu2 %v12618_v57  ;;  %v9301_v57 = vld [vmem:[#allocation10 + $0x208] sm:$0xff] }
 0x45c   :  { %1925 = vmatpush.msra.mxu2 %v12619_v37  ;;  %v12664_v37 = vld [vmem:[#allocation46_spill] sm:$0xff] }
 0x45d   :  { %v7552_v60 = vpop.eup %7551 }
 0x45e   :  { %v1751_v47 = vmul.f32 %v7552_v60, %v1749_v62  ;;  %1926 = vmatpush.msra.mxu2 %v8845_v8  ;;  %v12621_v8 = vld [vmem:[#allocation42_spill] sm:$0xff]  ;;  %v12663_v62 = vld [vmem:[#allocation51_spill] sm:$0xff] }
 0x45f   :  { %v9306_v60 = vld [vmem:[#allocation10 + $0x1f8] sm:$0xff] }
 0x460   :  { %v9149_v55 = vadd.f32 %v1753_v41, %v1751_v47  ;;  %1927 = vmatpush.msra.mxu2 %v12620_v14  ;;  %v12666_v47 = vld [vmem:[#allocation53_spill] sm:$0xff]  ;;  %v9310_v41 = vld [vmem:[#allocation10 + $0x1e8] sm:$0xff] }
 0x461   :  { %v12668_v14 = vld [vmem:[#allocation55_spill] sm:$0xff] }
 0x462   :  { %7287 = vmatmul.msk.f32.vlgmr.msrb.gmra.mxu3 %vm570_vm2, %v9149_v55  ;;  %7288 = vmatmul.msk.f32.vlgmr.msrb.gmra.mxu0 %vm570_vm2, %v9149_v55  ;;  %1758 = vst.msk [vmem:[#allocation2 + $0x8] sm:$0x3] %vm1757_vm6, %v9149_v55 }
 0x463   :  { %7289 = vmatmul.msk.f32.vlgmr.msra.gmra.mxu1 %vm570_vm2, %v9149_v55  ;;  %7290 = vmatmul.msk.f32.vlgmr.msrb.gmra.mxu2 %vm570_vm2, %v9149_v55 }
 0x464   :  { %1928 = vmatpush.msra.mxu2 %v8864_v30  ;;  %1956 = vmatpush.msrb.mxu3 %v12621_v8  ;;  %v9181_v30 = vld [vmem:[#allocation10 + $0xf0] sm:$0xff]  ;;  %v9314_v8 = vld [vmem:[#allocation10 + $0x1d8] sm:$0xff] }
 0x465   :  { %1996 = vmatpush.msrb.mxu0 %v12622_v1  ;;  %2163 = vmatpush.msra.mxu1 %v9165_v27  ;;  %v12670_v1 = vld [vmem:[#allocation56_spill] sm:$0xff] }
 0x466   :  { %1929 = vmatpush.msra.mxu2 %v12623_v9  ;;  %1957 = vmatpush.msrb.mxu3 %v12624_v54  ;;  %v9318_v9 = vld [vmem:[#allocation10 + $0x1c8] sm:$0xff] }
 0x467   :  { %1997 = vmatpush.msrb.mxu0 %v12625_v61  ;;  %2164 = vmatpush.msra.mxu1 %v9171_v11  ;;  %v12672_v54 = vld [vmem:[#allocation59_spill] sm:$0xff]  ;;  %v9322_v61 = vld [vmem:[#allocation10 + $0x1b8] sm:$0xff] }
 0x468   :  { %1930 = vmatpush.msra.mxu2 %v8880_v49  ;;  %v9187_v49 = vld [vmem:[#allocation10 + $0xe0] sm:$0xff] }
 0x46a   :  { %1931 = vmatpush.msra.mxu2 %v8888_v0  ;;  %1818 = vmatmul.f32.vlgmr.msra.gmra.mxu3 %v9136_v5  ;;  %v12627_v0 = vld [vmem:[#allocation23_spill] sm:$0xff] }
 0x46b   :  { %1858 = vmatmul.f32.vlgmr.msra.gmra.mxu0 %v9136_v5  ;;  %1898 = vmatmul.f32.vlgmr.msrb.gmra.mxu1 %v9136_v5  ;;  %12651 = vst [vmem:[#allocation23_spill] sm:$0xff] %v9276_v56 }
 0x46c   :  { %1932 = vmatpush.msra.mxu2 %v8896_v42  ;;  %1962 = vmatpush.msra.mxu3 %v8876_v22  ;;  %v9193_v22 = vld [vmem:[#allocation10 + $0xd0] sm:$0xff] }
 0x46d   :  { %2129 = vmatpush.msra.mxu0 %v9181_v30  ;;  %2169 = vmatpush.msrb.mxu1 %v12626_v43  ;;  %v12628_v42 = vld [vmem:[#allocation24_spill] sm:$0xff]  ;;  %v12674_v43 = vld [vmem:[#allocation61_spill] sm:$0xff] }
 0x46e   :  { %1933 = vmatpush.msra.mxu2 %v8904_v19  ;;  %1963 = vmatpush.msra.mxu3 %v8885_v13  ;;  %v9205_v13 = vld [vmem:[#allocation10 + $0xc0] sm:$0xff]  ;;  %v9216_v19 = vld [vmem:[#allocation10 + $0x118] sm:$0xff] }
 0x46f   :  { %2130 = vmatpush.msra.mxu0 %v9187_v49  ;;  %2170 = vmatpush.msrb.mxu1 %v12627_v0  ;;  %12630 = vst [vmem:[#allocation48_spill] sm:$0xff] %v9216_v19  ;;  %v9326_v0 = vld [vmem:[#allocation10 + $0x1a8] sm:$0xff] }
 0x470   :  { %1934 = vmatpush.msra.mxu2 %v8912_v24  ;;  %1964 = vmatpush.msra.mxu3 %v8892_v29  ;;  %v12629_v29 = vld [vmem:[#allocation25_spill] sm:$0xff]  ;;  %v12632_v24 = vld [vmem:[#allocation26_spill] sm:$0xff] }
 0x471   :  { %2131 = vmatpush.msra.mxu0 %v9193_v22  ;;  %2171 = vmatpush.msrb.mxu1 %v12628_v42  ;;  %12654 = vst [vmem:[#allocation25_spill] sm:$0xff] %v9283_v51  ;;  %v9329_v42 = vld [vmem:[#allocation10 + $0x198] sm:$0xff] }
 0x472   :  { %1935 = vmatpush.msra.mxu2 %v8920_v26  ;;  %1965 = vmatpush.msra.mxu3 %v8900_v25  ;;  %v9212_v25 = vld [vmem:[#allocation10 + $0xb0] sm:$0xff]  ;;  %12656 = vst [vmem:[#allocation26_spill] sm:$0xff] %v9287_v17 }
 0x473   :  { %7291 = vmatmul.msk.f32.vlgmr.msrb.gmra.mxu3 %vm570_vm2, %v9149_v55  ;;  %7292 = vmatmul.msk.f32.vlgmr.msrb.gmra.mxu0 %vm570_vm2, %v9149_v55  ;;  %v9227_v26 = vld [vmem:[#allocation10 + $0x90] sm:$0xff] }
 0x474   :  { %1936 = vmatpush.msra.mxu2 %v8928_v31  ;;  %1966 = vmatpush.msra.mxu3 %v8908_v44  ;;  %v9219_v44 = vld [vmem:[#allocation10 + $0xa0] sm:$0xff]  ;;  %12634 = vst [vmem:[#allocation54_spill] sm:$0xff] %v9227_v26 }
 0x475   :  { %2132 = vmatpush.msra.mxu0 %v9205_v13  ;;  %2172 = vmatpush.msrb.mxu1 %v12629_v29  ;;  %12631 = vst [vmem:[#allocation50_spill] sm:$0xff] %v9219_v44  ;;  %v9233_v31 = vld [vmem:[#allocation10 + $0x80] sm:$0xff]  ;;  %v12677_v29 = vld [vmem:[#allocation28_spill] sm:$0xff] }
 0x476   :  { %1937 = vmatpush.msra.mxu2 %v8936_v32  ;;  %1967 = vmatpush.msra.mxu3 %v8916_v48  ;;  %v9224_v48 = vld [vmem:[#allocation10 + $0x108] sm:$0xff]  ;;  %12636 = vst [vmem:[#allocation58_spill] sm:$0xff] %v9233_v31  ;;  %v9239_v32 = vld [vmem:[#allocation10 + $0x70] sm:$0xff] }
 0x477   :  { %1938 = vmatmul.f32.vlgmr.msra.gmra.mxu2 %v9136_v5  ;;  %2133 = vmatpush.msra.mxu0 %v9212_v25  ;;  %12633 = vst [vmem:[#allocation52_spill] sm:$0xff] %v9224_v48 }
 0x478   :  { %1968 = vmatpush.msra.mxu3 %v8924_v59  ;;  %2203 = vmatpush.msrb.mxu2 %v9216_v19  ;;  %v12635_v59 = vld [vmem:[#allocation27_spill] sm:$0xff]  ;;  %12638 = vst [vmem:[#allocation42_spill] sm:$0xff] %v9239_v32 }
 0x479   :  { %2134 = vmatpush.msra.mxu0 %v9219_v44  ;;  %2173 = vmatpush.msrb.mxu1 %v12632_v24  ;;  %12657 = vst [vmem:[#allocation27_spill] sm:$0xff] %v9290_v40  ;;  %v12678_v24 = vld [vmem:[#allocation30_spill] sm:$0xff] }
 0x47a   :  { %1969 = vmatpush.msra.mxu3 %v8932_v50  ;;  %2204 = vmatpush.msrb.mxu2 %v9224_v48  ;;  %v12637_v50 = vld [vmem:[#allocation29_spill] sm:$0xff] }
 0x47b   :  { %2135 = vmatpush.msra.mxu0 %v9227_v26  ;;  %2174 = vmatpush.msrb.mxu1 %v12635_v59  ;;  %12658 = vst [vmem:[#allocation29_spill] sm:$0xff] %v9293_v18  ;;  %v12679_v59 = vld [vmem:[#allocation32_spill] sm:$0xff] }
 0x47c   :  { %2209 = vmatpush.msra.mxu2 %v8733_v45  ;;  %1970 = vmatpush.msra.mxu3 %v8940_v23  ;;  %v12639_v45 = vld [vmem:[#allocation31_spill] sm:$0xff] }
 0x47d   :  { %2136 = vmatpush.msra.mxu0 %v9233_v31  ;;  %2175 = vmatpush.msrb.mxu1 %v12637_v50  ;;  %v9245_v23 = vld [vmem:[#allocation10 + $0x60] sm:$0xff]  ;;  %12660 = vst [vmem:[#allocation31_spill] sm:$0xff] %v9297_v3 }
 0x47e   :  { %2210 = vmatpush.msra.mxu2 %v8741_v52  ;;  %1971 = vmatpush.msra.mxu3 %v8946_v34  ;;  %12640 = vst [vmem:[#allocation57_spill] sm:$0xff] %v9245_v23  ;;  %v12641_v52 = vld [vmem:[#allocation33_spill] sm:$0xff]  ;;  %v12680_v50 = vld [vmem:[#allocation34_spill] sm:$0xff] }
 0x47f   :  { %2137 = vmatpush.msra.mxu0 %v9239_v32  ;;  %2176 = vmatpush.msrb.mxu1 %v12639_v45  ;;  %v9251_v34 = vld [vmem:[#allocation10 + $0x50] sm:$0xff]  ;;  %12662 = vst [vmem:[#allocation33_spill] sm:$0xff] %v9301_v57 }
 0x480   :  { %2211 = vmatpush.msra.mxu2 %v8752_v63  ;;  %1972 = vmatpush.msra.mxu3 %v8951_v35  ;;  %12642 = vst [vmem:[#allocation62_spill] sm:$0xff] %v9251_v34  ;;  %v12643_v63 = vld [vmem:[#allocation35_spill] sm:$0xff]  ;;  %v12681_v45 = vld [vmem:[#allocation36_spill] sm:$0xff] }
 0x481   :  { %2138 = vmatpush.msra.mxu0 %v9245_v23  ;;  %2177 = vmatpush.msrb.mxu1 %v12641_v52  ;;  %v9257_v35 = vld [vmem:[#allocation10 + $0x40] sm:$0xff]  ;;  %12665 = vst [vmem:[#allocation35_spill] sm:$0xff] %v9306_v60 }
 0x482   :  { %2212 = vmatpush.msra.mxu2 %v8761_v6  ;;  %1973 = vmatpush.msra.mxu3 %v8957_v38  ;;  %12644 = vst [vmem:[#allocation44_spill] sm:$0xff] %v9257_v35  ;;  %v12645_v6 = vld [vmem:[#allocation37_spill] sm:$0xff]  ;;  %v12682_v52 = vld [vmem:[#allocation38_spill] sm:$0xff] }
 0x483   :  { %2139 = vmatpush.msra.mxu0 %v9251_v34  ;;  %2178 = vmatpush.msrb.mxu1 %v12643_v63  ;;  %v9263_v38 = vld [vmem:[#allocation10 + $0x30] sm:$0xff]  ;;  %12667 = vst [vmem:[#allocation37_spill] sm:$0xff] %v9310_v41 }
 0x484   :  { %2213 = vmatpush.msra.mxu2 %v8771_v10  ;;  %1974 = vmatpush.msra.mxu3 %v8963_v53  ;;  %12646 = vst [vmem:[#allocation60_spill] sm:$0xff] %v9263_v38  ;;  %v12647_v10 = vld [vmem:[#allocation39_spill] sm:$0xff]  ;;  %v12683_v63 = vld [vmem:[#allocation40_spill] sm:$0xff] }
 0x485   :  { %2140 = vmatpush.msra.mxu0 %v9257_v35  ;;  %2179 = vmatpush.msrb.mxu1 %v12645_v6  ;;  %v9269_v53 = vld [vmem:[#allocation10 + $0x20] sm:$0xff]  ;;  %12669 = vst [vmem:[#allocation39_spill] sm:$0xff] %v9314_v8 }
 0x486   :  { %2214 = vmatpush.msra.mxu2 %v8782_v21  ;;  %1975 = vmatpush.msra.mxu3 %v8968_v36  ;;  %12648 = vst [vmem:[#allocation22_spill] sm:$0xff] %v9269_v53  ;;  %v12649_v21 = vld [vmem:[#allocation63_spill] sm:$0xff]  ;;  %v12650_v36 = vld [vmem:[#allocation41_spill] sm:$0xff] }
 0x487   :  { %2141 = vmatpush.msra.mxu0 %v9263_v38  ;;  %2180 = vmatpush.msrb.mxu1 %v12647_v10  ;;  %12671 = vst [vmem:[#allocation63_spill] sm:$0xff] %v9318_v9 }
 0x488   :  { %2215 = vmatpush.msra.mxu2 %v8793_v16  ;;  %1976 = vmatpush.msra.mxu3 %v8973_v39  ;;  %v9279_v16 = vld [vmem:[#allocation10 + $0x230] sm:$0xff]  ;;  %v12653_v39 = vld [vmem:[#allocation47_spill] sm:$0xff]  ;;  %12673 = vst [vmem:[#allocation41_spill] sm:$0xff] %v9322_v61 }
 0x489   :  { %2142 = vmatpush.msra.mxu0 %v9269_v53  ;;  %2181 = vmatpush.msrb.mxu1 %v12650_v36  ;;  %12652 = vst [vmem:[#allocation24_spill] sm:$0xff] %v9279_v16 }
 0x48a   :  { %2216 = vmatpush.msra.mxu2 %v8801_v28  ;;  %1977 = vmatpush.msra.mxu3 %v12649_v21  ;;  %v12655_v28 = vld [vmem:[#allocation43_spill] sm:$0xff]  ;;  %12675 = vst [vmem:[#allocation47_spill] sm:$0xff] %v9326_v0 }
 0x48b   :  { %1978 = vmatmul.f32.vlgmr.msra.gmra.mxu3 %v9136_v5  ;;  %2143 = vmatpush.msra.mxu0 %v9276_v56  ;;  %12676 = vst [vmem:[#allocation43_spill] sm:$0xff] %v9329_v42 }
 0x48c   :  { %2243 = vmatpush.msrb.mxu3 %v9279_v16  ;;  %2217 = vmatpush.msra.mxu2 %v12653_v39 }
 0x48d   :  { %2144 = vmatpush.msra.mxu0 %v9283_v51  ;;  %2182 = vmatpush.msrb.mxu1 %v12655_v28 }
 0x48e   :  { %2244 = vmatpush.msrb.mxu3 %v9287_v17  ;;  %2218 = vmatpush.msra.mxu2 %v12659_v4 }
 0x48f   :  { %2283 = vmatpush.msrb.mxu0 %v9290_v40  ;;  %2183 = vmatpush.msrb.mxu1 %v12661_v20 }
 0x490   :  { %2249 = vmatpush.msra.mxu3 %v9293_v18  ;;  %2219 = vmatpush.msra.mxu2 %v12663_v62 }
 0x491   :  { %2284 = vmatpush.msrb.mxu0 %v9297_v3  ;;  %2184 = vmatpush.msrb.mxu1 %v12664_v37 }
 0x492   :  { %2250 = vmatpush.msra.mxu3 %v9301_v57  ;;  %2220 = vmatpush.msra.mxu2 %v12666_v47 }
 0x494   :  { %2251 = vmatpush.msra.mxu3 %v9306_v60  ;;  %2221 = vmatpush.msra.mxu2 %v12668_v14  ;;  %v12684_v14 = vld [vmem:[#allocation74_spill] sm:$0xff] }
 0x496   :  { %2252 = vmatpush.msra.mxu3 %v9310_v41  ;;  %2222 = vmatpush.msra.mxu2 %v12670_v1 }
 0x498   :  { %2253 = vmatpush.msra.mxu3 %v9314_v8  ;;  %2223 = vmatpush.msra.mxu2 %v12672_v54 }
 0x49a   :  { %2254 = vmatpush.msra.mxu3 %v9318_v9  ;;  %2224 = vmatpush.msra.mxu2 %v12674_v43 }
 0x49c   :  { %2255 = vmatpush.msra.mxu3 %v9322_v61 }
 0x49e   :  { %2256 = vmatpush.msra.mxu3 %v9326_v0 }
 0x4a0   :  { %2257 = vmatpush.msra.mxu3 %v9329_v42 }
 0x4a2   :  { %2258 = vmatpush.msra.mxu3 %v12677_v29 }
 0x4a4   :  { %2259 = vmatpush.msra.mxu3 %v12678_v24  ;;  %v12685_v24 = vld [vmem:[#allocation81_spill] sm:$0xff] }
 0x4a6   :  { %2260 = vmatpush.msra.mxu3 %v12679_v59 }
 0x4a8   :  { %2261 = vmatpush.msra.mxu3 %v12680_v50  ;;  %v12686_v50 = vld [vmem:[#allocation79_spill] sm:$0xff] }
 0x4aa   :  { %2262 = vmatpush.msra.mxu3 %v12681_v45 }
 0x4ac   :  { %2263 = vmatpush.msra.mxu3 %v12682_v52 }
 0x4ae   :  { %2264 = vmatpush.msra.mxu3 %v12683_v63 }
 0x4d8   :  { %v1779_v6 = vpop.f32.mrf.mxu2 }
 0x4df   :  { %v1839_v10 = vpop.f32.mrf.mxu0 }
 0x4e0   :  { %v1879_v21 = vpop.f32.mrf.mxu1 }
 0x4e5   :  { %v1799_v36 = vpop.f32.mrf.mxu3 }
 0x4e6   :  { %v1800_v39 = vadd.f32 %v1799_v36, %v1779_v6  ;;  %v1919_v28 = vpop.f32.mrf.mxu2 }
 0x4e8   :  { %v2004_v4 = vrot.slane %v1800_v39, 6  ;;  %v1859_v20 = vpop.f32.mrf.mxu0  ;;  %v1899_v62 = vpop.f32.mrf.mxu1  ;;  %v12687_v39 = vld [vmem:[#allocation78_spill] sm:$0xff] }
 0x4e9   :  { %v1880_v37 = vadd.f32 %v1879_v21, %v1859_v20  ;;  %v1920_v47 = vadd.f32 %v1919_v28, %v1899_v62 }
 0x4ea   :  { %v2008_v1 = vadd.f32 %v2004_v4, %v12684_v14 }
 0x4eb   :  { %v2050_v54 = vrot.slane %v1880_v37, 6  ;;  %v2051_v43 = vrot.slane %v1920_v47, 6 }
 0x4ec   :  { %v7293_v29 = vmul.f32 -1.442695, %v2008_v1 }
 0x4ed   :  { %v2054_v59 = vadd.f32 %v2050_v54, %v12685_v24  ;;  %v2055_v45 = vadd.f32 %v2051_v43, %v12686_v50  ;;  %v1819_v52 = vpop.f32.mrf.mxu3 }
 0x4ee   :  { %7553 = vpow2.f32 %v7293_v29  ;;  %v1840_v63 = vadd.f32 %v1839_v10, %v1819_v52 }
 0x4ef   :  { %v7295_v33 = vmul.f32 -1.442695, %v2054_v59  ;;  %v7296_v6 = vmul.f32 -1.442695, %v2055_v45 }
 0x4f0   :  { %v2005_v36 = vrot.slane %v1840_v63, 6 }
 0x4f1   :  { %7555 = vpow2.f32 %v7295_v33 }
 0x4f2   :  { %7557 = vpow2.f32 %v7296_v6  ;;  %v2009_v21 = vadd.f32 %v2005_v36, %v12687_v39 }
 0x4f4   :  { %v7554_v28 = vpop.eup %7553  ;;  %v7294_v20 = vmul.f32 -1.442695, %v2009_v21 }
 0x4f5   :  { %v2016_v4 = vadd.f32 1.0, %v7554_v28 }
 0x4f6   :  { %7559 = vpow2.f32 %v7294_v20  ;;  %v1959_v6 = vpop.f32.mrf.mxu3 }
 0x4f7   :  { %v7556_v62 = vpop.eup %7555  ;;  %7561 = vrcp.f32 %v2016_v4  ;;  %v2029_v36 = vand.u32 2147483648, %v2016_v4  ;;  %v2027_v20 = vand.u32 2147483647, %v2016_v4  ;;  %vm2023_vm8 = vweird.f32 %v2016_v4 }
 0x4f8   :  { %v7558_v37 = vpop.eup %7557  ;;  %v2062_v47 = vadd.f32 1.0, %v7556_v62 }
 0x4f9   :  { %v9343_v1 = vadd.f32 1.0, %v7558_v37  ;;  %vm2028_vm10 = vcmp.eq.f32.partialorder %v2027_v20, 8.507059e+37 }
 0x4fa   :  { %7563 = vrcp.f32 %v2062_v47  ;;  %v1939_v54 = vpop.f32.mrf.mxu2  ;;  %vm2069_vm12 = vweird.f32 %v2062_v47 }
 0x4fb   :  { %7565 = vrcp.f32 %v9343_v1  ;;  %v1940_v33 = vadd.f32 %v1939_v54, %v9097_v58  ;;  %v2030_v54 = vor.u32 1.1754944e-38, %v2029_v36 }
 0x4fc   :  { %v7560_v10 = vpop.eup %7559 }
 0x4fd   :  { %v7562_v43 = vpop.eup %7561  ;;  %v2017_v29 = vadd.f32 1.0, %v7560_v10  ;;  %v1960_v21 = vadd.f32 %v1959_v6, %v1940_v33  ;;  %v2075_v33 = vand.u32 2147483648, %v2062_v47 }
 0x4fe   :  { %v2019_v59 = vmul.f32 %v7562_v43, %v2016_v4  ;;  %vm2024_vm7 = vweird.f32 %v7562_v43 }
 0x4ff   :  { %7567 = vrcp.f32 %v2017_v29  ;;  %vm2025_vm9 = vmor %vm2023_vm8, %vm2024_vm7  ;;  %v2096_v50 = vrot.slane %v1960_v21, 6  ;;  %v2044_v20 = vand.u32 2147483648, %v2017_v29  ;;  %vm2038_vm3 = vweird.f32 %v2017_v29 }
 0x500   :  { %v7564_v45 = vpop.eup %7563  ;;  %v2020_v52 = vsub.f32 1.0, %v2019_v59  ;;  %vm2084_vm8 = vweird.f32 %v9343_v1 }
 0x501   :  { %v2065_v63 = vmul.f32 %v7564_v45, %v2062_v47  ;;  %v9347_v37 = vpop.eup %7565  ;;  %vm2070_vm11 = vweird.f32 %v7564_v45 }
 0x502   :  { %v2021_v28 = vmul.f32 %v7562_v43, %v2020_v52  ;;  %v2080_v52 = vmul.f32 %v9347_v37, %v9343_v1  ;;  %vm2071_vm13 = vmor %vm2069_vm12, %vm2070_vm11  ;;  %vm2085_vm7 = vweird.f32 %v9347_v37  ;;  %vm2120_vm11 = vcmask 125954  }
 0x503   :  { %v2066_v62 = vsub.f32 1.0, %v2065_v63 }
 0x504   :  { %v2022_v15 = vadd.f32 %v7562_v43, %v2021_v28  ;;  %v2073_v28 = vand.u32 2147483647, %v2062_v47  ;;  %v1999_v47 = vpop.f32.mrf.mxu0 }
 0x505   :  { %v7568_v10 = vpop.eup %7567  ;;  %v2067_v46 = vmul.f32 %v7564_v45, %v2066_v62 }
 0x506   :  { %v2026_v58 = vsel %vm2025_vm9, %v7562_v43, %v2022_v15  ;;  %v2034_v59 = vmul.f32 %v7568_v10, %v2017_v29  ;;  %v2076_v15 = vor.u32 1.1754944e-38, %v2075_v33  ;;  %v2081_v43 = vsub.f32 1.0, %v2080_v52  ;;  %vm2086_vm9 = vmor %vm2084_vm8, %vm2085_vm7 }
 0x507   :  { %v2068_v24 = vadd.f32 %v7564_v45, %v2067_v46  ;;  %v2031_v39 = vsel %vm2028_vm10, %v2030_v54, %v2026_v58  ;;  %vm2074_vm14 = vcmp.eq.f32.partialorder %v2073_v28, 8.507059e+37  ;;  %vm2039_vm15 = vweird.f32 %v7568_v10 }
 0x508   :  { %v2100_v63 = vmul.f32 %v2096_v50, %v2031_v39  ;;  %v2035_v6 = vsub.f32 1.0, %v2034_v59  ;;  %v2042_v50 = vand.u32 2147483647, %v2017_v29  ;;  %v2082_v39 = vmul.f32 %v9347_v37, %v2081_v43  ;;  %vm2040_vm4 = vmor %vm2038_vm3, %vm2039_vm15 }
 0x509   :  { %v2072_v36 = vsel %vm2071_vm13, %v7564_v45, %v2068_v24  ;;  %v2111_v24 = vrot.slane %v9136_v5, 6  ;;  %v2088_v5 = vand.u32 2147483647, %v9343_v1 }
 0x50a   :  { %v2102_v4 = vadd.f32 %v2100_v63, %v9110_v12  ;;  %v2036_v62 = vmul.f32 %v7568_v10, %v2035_v6  ;;  %v2077_v58 = vsel %vm2074_vm14, %v2076_v15, %v2072_v36  ;;  %v2045_v63 = vor.u32 1.1754944e-38, %v2044_v20  ;;  %v9369_v20 = vld [vmem:[#allocation10 + $0x330] sm:$0xff] }
 0x50b   :  { %v2106_v59 = vsub.f32 1.0, %v2077_v58  ;;  %v2115_v28 = vmul.f32 %v2111_v24, %v2077_v58  ;;  %vm2043_vm5 = vcmp.eq.f32.partialorder %v2042_v50, 8.507059e+37  ;;  %v2090_v36 = vand.u32 2147483648, %v9343_v1 }
 0x50c   :  { %7569 = vtanh.f32 %v2102_v4  ;;  %v2037_v46 = vadd.f32 %v7568_v10, %v2036_v62  ;;  %v2083_v62 = vadd.f32 %v9347_v37, %v2082_v39  ;;  %vm2089_vm10 = vcmp.eq.f32.partialorder %v2088_v5, 8.507059e+37  ;;  %v9420_v5 = vld [vmem:[#allocation10 + $0x2a0] sm:$0xff] }
 0x50d   :  { %v2112_v39 = vrot.slane %v9149_v55, 6  ;;  %v9389_v55 = vld [vmem:[#allocation10 + $0x2e0] sm:$0xff] }
 0x50e   :  { %v1979_v21 = vpop.f32.mrf.mxu3  ;;  %v2041_v33 = vsel %vm2040_vm4, %v7568_v10, %v2037_v46  ;;  %v2087_v58 = vsel %vm2086_vm9, %v9347_v37, %v2083_v62  ;;  %v9407_v62 = vld [vmem:[#allocation10 + $0x2c0] sm:$0xff] }
 0x50f   :  { %v1980_v54 = vadd.f32 %v1979_v21, %v9117_v2  ;;  %v2046_v29 = vsel %vm2043_vm5, %v2045_v63, %v2041_v33  ;;  %v2091_v21 = vor.u32 1.1754944e-38, %v2090_v36  ;;  %v9413_v36 = vld [vmem:[#allocation10 + $0x348] sm:$0xff] }
 0x511   :  { %v2000_v45 = vadd.f32 %v1999_v47, %v1980_v54  ;;  %v2092_v1 = vsel %vm2089_vm10, %v2091_v21, %v2087_v58  ;;  %v9372_v54 = vld [vmem:[#allocation10 + $0x320] sm:$0xff]  ;;  %v9376_v47 = vld [vmem:[#allocation10 + $0x310] sm:$0xff]  ;;  %v9433_v21 = vld [vmem:[#allocation10 + $0xf8] sm:$0xff] }
 0x512   :  { %v7570_v52 = vpop.eup %7569  ;;  %v2107_v50 = vsub.f32 1.0, %v2092_v1  ;;  %v2116_v24 = vmul.f32 %v2112_v39, %v2092_v1  ;;  %v9429_v58 = vld [vmem:[#allocation10 + $0x290] sm:$0xff]  ;;  %v9436_v1 = vld [vmem:[#allocation10 + $0x328] sm:$0xff] }
 0x513   :  { %v2108_v6 = vmul.f32 %v7570_v52, %v2106_v59  ;;  %v2097_v4 = vrot.slane %v2000_v45, 6  ;;  %v9379_v45 = vld [vmem:[#allocation10 + $0x300] sm:$0xff]  ;;  %v9384_v52 = vld [vmem:[#allocation10 + $0x2f0] sm:$0xff]  ;;  %12688 = vst [vmem:[#allocation49_spill] sm:$0xff] %v9429_v58  ;;  %v9443_v39 = vld [vmem:[#allocation10 + $0xe8] sm:$0xff] }
 0x515   :  { %v9358_v15 = vadd.f32 %v2115_v28, %v2108_v6  ;;  %v2101_v43 = vmul.f32 %v2097_v4, %v2046_v29  ;;  %v9397_v6 = vld [vmem:[#allocation10 + $0x2d0] sm:$0xff]  ;;  %v9403_v4 = vld [vmem:[#allocation10 + $0x358] sm:$0xff]  ;;  %v9410_v29 = vld [vmem:[#allocation10 + $0x340] sm:$0xff] }
 0x516   :  { %v9400_v28 = vld [vmem:[#allocation10 + $0x350] sm:$0xff] }
 0x517   :  { %2119 = vst [vmem:[#allocation2] sm:$0xc] %v9358_v15  ;;  %v2103_v10 = vadd.f32 %v2101_v43, %v9133_v7  ;;  %v9365_v46 = vrot.slane %v9358_v15, 2  ;;  %v9417_v43 = vld [vmem:[#allocation10 + $0x2b0] sm:$0xff] }
 0x519   :  { %7571 = vtanh.f32 %v2103_v10  ;;  %2145 = vmatmul.f32.vlgmr.msra.gmra.mxu0 %v9365_v46  ;;  %v9426_v10 = vld [vmem:[#allocation10 + $0x338] sm:$0xff] }
 0x51a   :  { %2289 = vmatpush.msra.mxu0 %v9369_v20 }
 0x51c   :  { %2290 = vmatpush.msra.mxu0 %v9372_v54 }
 0x51e   :  { %2291 = vmatpush.msra.mxu0 %v9376_v47 }
 0x51f   :  { %v7572_v37 = vpop.eup %7571 }
 0x520   :  { %v2109_v59 = vmul.f32 %v7572_v37, %v2107_v50  ;;  %2292 = vmatpush.msra.mxu0 %v9379_v45  ;;  %v9439_v50 = vld [vmem:[#allocation10 + $0x280] sm:$0xff]  ;;  %v9446_v37 = vld [vmem:[#allocation10 + $0x318] sm:$0xff] }
 0x521   :  { %12689 = vst [vmem:[#allocation45_spill] sm:$0xff] %v9439_v50 }
 0x522   :  { %v9382_v33 = vadd.f32 %v2116_v24, %v2109_v59  ;;  %2293 = vmatpush.msra.mxu0 %v9384_v52  ;;  %12690 = vst [vmem:[#allocation51_spill] sm:$0xff] %v9446_v37  ;;  %v9449_v59 = vld [vmem:[#allocation10 + $0x270] sm:$0xff]  ;;  %v9453_v24 = vld [vmem:[#allocation10 + $0xd8] sm:$0xff] }
 0x523   :  { %12691 = vst [vmem:[#allocation46_spill] sm:$0xff] %v9449_v59 }
 0x524   :  { %2121 = vst.msk [vmem:[#allocation2 + $0x8] sm:$0xc] %vm2120_vm11, %v9382_v33  ;;  %2294 = vmatpush.msra.mxu0 %v9389_v55  ;;  %v2125_v63 = vrot.slane %v9382_v33, 2 }
 0x525   :  { %12692 = vst [vmem:[#allocation53_spill] sm:$0xff] %v9453_v24 }
 0x526   :  { %7297 = vmatmul.msk.f32.vlgmr.msra.gmra.mxu1 %vm570_vm2, %v2125_v63  ;;  %7298 = vmatmul.msk.f32.vlgmr.msrb.gmra.mxu2 %vm570_vm2, %v2125_v63 }
 0x527   :  { %7299 = vmatmul.msk.f32.vlgmr.msrb.gmra.mxu3 %vm570_vm2, %v2125_v63  ;;  %7300 = vmatmul.msk.f32.vlgmr.msrb.gmra.mxu0 %vm570_vm2, %v2125_v63 }
 0x528   :  { %2295 = vmatpush.msra.mxu0 %v9397_v6  ;;  %2323 = vmatpush.msra.mxu1 %v9400_v28 }
 0x529   :  { %2363 = vmatpush.msrb.mxu2 %v9403_v4  ;;  %2529 = vmatpush.msrb.mxu3 %v9165_v27 }
 0x52a   :  { %2296 = vmatpush.msra.mxu0 %v9407_v62  ;;  %2324 = vmatpush.msra.mxu1 %v9410_v29 }
 0x52b   :  { %2364 = vmatpush.msrb.mxu2 %v9413_v36  ;;  %2530 = vmatpush.msrb.mxu3 %v9171_v11 }
 0x52c   :  { %2297 = vmatpush.msra.mxu0 %v9417_v43 }
 0x52e   :  { %2298 = vmatpush.msra.mxu0 %v9420_v5  ;;  %2185 = vmatmul.f32.vlgmr.msrb.gmra.mxu1 %v9365_v46 }
 0x52f   :  { %2225 = vmatmul.f32.vlgmr.msra.gmra.mxu2 %v9365_v46  ;;  %2265 = vmatmul.f32.vlgmr.msra.gmra.mxu3 %v9365_v46 }
 0x530   :  { %2329 = vmatpush.msrb.mxu1 %v9426_v10  ;;  %2299 = vmatpush.msra.mxu0 %v9429_v58  ;;  %v9459_v58 = vld [vmem:[#allocation10 + $0x260] sm:$0xff] }
 0x531   :  { %2495 = vmatpush.msra.mxu2 %v9181_v30  ;;  %2535 = vmatpush.msra.mxu3 %v9433_v21  ;;  %12694 = vst [vmem:[#allocation56_spill] sm:$0xff] %v9459_v58 }
 0x532   :  { %2330 = vmatpush.msrb.mxu1 %v9436_v1  ;;  %2300 = vmatpush.msra.mxu0 %v9439_v50  ;;  %v9456_v50 = vld [vmem:[#allocation10 + $0x308] sm:$0xff] }
 0x533   :  { %2496 = vmatpush.msra.mxu2 %v9187_v49  ;;  %2536 = vmatpush.msra.mxu3 %v9443_v39  ;;  %12693 = vst [vmem:[#allocation55_spill] sm:$0xff] %v9456_v50 }
 0x534   :  { %2331 = vmatpush.msrb.mxu1 %v9446_v37  ;;  %2301 = vmatpush.msra.mxu0 %v9449_v59  ;;  %v9464_v37 = vld [vmem:[#allocation10 + $0x2f8] sm:$0xff]  ;;  %v9467_v59 = vld [vmem:[#allocation10 + $0x250] sm:$0xff] }
 0x535   :  { %2497 = vmatpush.msra.mxu2 %v9193_v22  ;;  %2537 = vmatpush.msra.mxu3 %v9453_v24  ;;  %12695 = vst [vmem:[#allocation59_spill] sm:$0xff] %v9467_v59  ;;  %v9471_v24 = vld [vmem:[#allocation10 + $0xc8] sm:$0xff] }
 0x536   :  { %2332 = vmatpush.msrb.mxu1 %v9456_v50  ;;  %2302 = vmatpush.msra.mxu0 %v9459_v58  ;;  %v9474_v50 = vld [vmem:[#allocation10 + $0x2e8] sm:$0xff]  ;;  %v9477_v58 = vld [vmem:[#allocation10 + $0x240] sm:$0xff] }
 0x537   :  { %7301 = vmatmul.msk.f32.vlgmr.msra.gmra.mxu1 %vm570_vm2, %v2125_v63  ;;  %7302 = vmatmul.msk.f32.vlgmr.msrb.gmra.mxu2 %vm570_vm2, %v2125_v63  ;;  %12696 = vst [vmem:[#allocation61_spill] sm:$0xff] %v9474_v50  ;;  %v9482_v63 = vld [vmem:[#allocation10 + $0x2d8] sm:$0xff] }
 0x538   :  { %2333 = vmatpush.msrb.mxu1 %v9464_v37  ;;  %2303 = vmatpush.msra.mxu0 %v9467_v59  ;;  %12697 = vst [vmem:[#allocation28_spill] sm:$0xff] %v9477_v58  ;;  %v9487_v59 = vld [vmem:[#allocation10 + $0xb8] sm:$0xff] }
 0x539   :  { %2498 = vmatpush.msra.mxu2 %v9205_v13  ;;  %2538 = vmatpush.msra.mxu3 %v9471_v24  ;;  %12698 = vst [vmem:[#allocation30_spill] sm:$0xff] %v9482_v63 }
 0x53a   :  { %2334 = vmatpush.msrb.mxu1 %v9474_v50  ;;  %2304 = vmatpush.msra.mxu0 %v9477_v58  ;;  %v9490_v50 = vld [vmem:[#allocation10 + $0x2c8] sm:$0xff]  ;;  %v9495_v58 = vld [vmem:[#allocation10 + $0x210] sm:$0xff] }
 0x53b   :  { %2305 = vmatmul.f32.vlgmr.msra.gmra.mxu0 %v9365_v46  ;;  %2499 = vmatpush.msra.mxu2 %v9212_v25  ;;  %12699 = vst [vmem:[#allocation32_spill] sm:$0xff] %v9495_v58 }
 0x53c   :  { %2335 = vmatpush.msrb.mxu1 %v9482_v63  ;;  %2569 = vmatpush.msrb.mxu0 %v9216_v19  ;;  %v9498_v63 = vld [vmem:[#allocation10 + $0x2b8] sm:$0xff]  ;;  %v9501_v19 = vld [vmem:[#allocation10 + $0xa8] sm:$0xff] }
 0x53d   :  { %2500 = vmatpush.msra.mxu2 %v9219_v44  ;;  %2539 = vmatpush.msra.mxu3 %v9487_v59  ;;  %12700 = vst [vmem:[#allocation34_spill] sm:$0xff] %v9498_v63  ;;  %v9505_v44 = vld [vmem:[#allocation10 + $0x200] sm:$0xff] }
 0x53e   :  { %2336 = vmatpush.msrb.mxu1 %v9490_v50  ;;  %2570 = vmatpush.msrb.mxu0 %v9224_v48  ;;  %12701 = vst [vmem:[#allocation36_spill] sm:$0xff] %v9501_v19  ;;  %v9508_v48 = vld [vmem:[#allocation10 + $0x2a8] sm:$0xff] }
 0x53f   :  { %2501 = vmatpush.msra.mxu2 %v9227_v26  ;;  %2540 = vmatpush.msra.mxu3 %v9501_v19  ;;  %12702 = vst [vmem:[#allocation38_spill] sm:$0xff] %v9505_v44  ;;  %v9511_v26 = vld [vmem:[#allocation10 + $0x98] sm:$0xff] }
 0x540   :  { %2575 = vmatpush.msra.mxu0 %v9495_v58  ;;  %2337 = vmatpush.msrb.mxu1 %v9498_v63  ;;  %12703 = vst [vmem:[#allocation40_spill] sm:$0xff] %v9508_v48  ;;  %v9515_v58 = vld [vmem:[#allocation10 + $0x1f0] sm:$0xff]  ;;  %v9518_v63 = vld [vmem:[#allocation10 + $0x298] sm:$0xff] }
 0x541   :  { %2502 = vmatpush.msra.mxu2 %v9233_v31  ;;  %12704 = vst [vmem:[#allocation86_spill] sm:$0xff] %v9511_v26  ;;  %2541 = vmatpush.msra.mxu3 %v9511_v26  ;;  %v9521_v31 = vld [vmem:[#allocation10 + $0x88] sm:$0xff] }
 0x542   :  { %2576 = vmatpush.msra.mxu0 %v9505_v44  ;;  %2338 = vmatpush.msrb.mxu1 %v9508_v48  ;;  %12705 = vst [vmem:[#allocation87_spill] sm:$0xff] %v9515_v58  ;;  %v9525_v44 = vld [vmem:[#allocation10 + $0x1e0] sm:$0xff]  ;;  %v9528_v48 = vld [vmem:[#allocation10 + $0x288] sm:$0xff] }
 0x543   :  { %2503 = vmatpush.msra.mxu2 %v9239_v32  ;;  %12706 = vst [vmem:[#allocation88_spill] sm:$0xff] %v9518_v63  ;;  %2542 = vmatpush.msra.mxu3 %v9521_v31  ;;  %v9531_v32 = vld [vmem:[#allocation10 + $0x78] sm:$0xff] }
 0x544   :  { %2577 = vmatpush.msra.mxu0 %v9515_v58  ;;  %2339 = vmatpush.msrb.mxu1 %v9518_v63  ;;  %12707 = vst [vmem:[#allocation89_spill] sm:$0xff] %v9521_v31  ;;  %v9535_v58 = vld [vmem:[#allocation10 + $0x1d0] sm:$0xff]  ;;  %v9538_v63 = vld [vmem:[#allocation10 + $0x278] sm:$0xff] }
 0x545   :  { %2504 = vmatpush.msra.mxu2 %v9245_v23  ;;  %12708 = vst [vmem:[#allocation90_spill] sm:$0xff] %v9525_v44  ;;  %2543 = vmatpush.msra.mxu3 %v9531_v32  ;;  %v9541_v23 = vld [vmem:[#allocation10 + $0x68] sm:$0xff] }
 0x546   :  { %2578 = vmatpush.msra.mxu0 %v9525_v44  ;;  %12709 = vst [vmem:[#allocation91_spill] sm:$0xff] %v9528_v48  ;;  %2340 = vmatpush.msrb.mxu1 %v9528_v48  ;;  %v9545_v44 = vld [vmem:[#allocation10 + $0x1c0] sm:$0xff]  ;;  %v9548_v48 = vld [vmem:[#allocation10 + $0x268] sm:$0xff] }
 0x547   :  { %12710 = vst [vmem:[#allocation92_spill] sm:$0xff] %v9531_v32  ;;  %2505 = vmatpush.msra.mxu2 %v9251_v34  ;;  %2544 = vmatpush.msra.mxu3 %v9541_v23  ;;  %v9551_v34 = vld [vmem:[#allocation10 + $0x58] sm:$0xff] }
 0x548   :  { %12711 = vst [vmem:[#allocation93_spill] sm:$0xff] %v9535_v58  ;;  %2579 = vmatpush.msra.mxu0 %v9535_v58  ;;  %2341 = vmatpush.msrb.mxu1 %v9538_v63  ;;  %v9555_v58 = vld [vmem:[#allocation10 + $0x1b0] sm:$0xff] }
 0x549   :  { %12712 = vst [vmem:[#allocation94_spill] sm:$0xff] %v9538_v63  ;;  %2506 = vmatpush.msra.mxu2 %v9257_v35  ;;  %2545 = vmatpush.msra.mxu3 %v9551_v34  ;;  %v9558_v63 = vld [vmem:[#allocation10 + $0x258] sm:$0xff]  ;;  %v9561_v35 = vld [vmem:[#allocation10 + $0x48] sm:$0xff] }
 0x54a   :  { %12713 = vst [vmem:[#allocation95_spill] sm:$0xff] %v9541_v23  ;;  %2580 = vmatpush.msra.mxu0 %v9545_v44  ;;  %2342 = vmatpush.msrb.mxu1 %v9548_v48 }
 0x54b   :  { %12714 = vst [vmem:[#allocation96_spill] sm:$0xff] %v9545_v44  ;;  %2507 = vmatpush.msra.mxu2 %v9263_v38  ;;  %2546 = vmatpush.msra.mxu3 %v9561_v35  ;;  %v9565_v44 = vld [vmem:[#allocation10 + $0x1a0] sm:$0xff]  ;;  %v9571_v38 = vld [vmem:[#allocation10 + $0x38] sm:$0xff] }
 0x54c   :  { %12715 = vst [vmem:[#allocation97_spill] sm:$0xff] %v9548_v48  ;;  %2581 = vmatpush.msra.mxu0 %v9555_v58  ;;  %2343 = vmatpush.msrb.mxu1 %v9558_v63  ;;  %v9568_v48 = vld [vmem:[#allocation10 + $0x248] sm:$0xff] }
 0x54d   :  { %12716 = vst [vmem:[#allocation98_spill] sm:$0xff] %v9551_v34  ;;  %2508 = vmatpush.msra.mxu2 %v9269_v53  ;;  %2547 = vmatpush.msra.mxu3 %v9571_v38 }
 0x54e   :  { %12717 = vst [vmem:[#allocation99_spill] sm:$0xff] %v9555_v58  ;;  %2582 = vmatpush.msra.mxu0 %v9565_v44  ;;  %2344 = vmatpush.msrb.mxu1 %v9568_v48  ;;  %v9577_v58 = vld [vmem:[#allocation10 + $0x190] sm:$0xff] }
 0x54f   :  { %12718 = vst [vmem:[#allocation100_spill] sm:$0xff] %v9558_v63  ;;  %2345 = vmatmul.f32.vlgmr.msrb.gmra.mxu1 %v9365_v46  ;;  %2509 = vmatpush.msra.mxu2 %v9276_v56  ;;  %v9587_v46 = vld [vmem:[#allocation10 + $0x180] sm:$0xff] }
 0x550   :  { %12719 = vst [vmem:[#allocation101_spill] sm:$0xff] %v9561_v35  ;;  %2609 = vmatpush.msra.mxu1 %v9279_v16  ;;  %2583 = vmatpush.msra.mxu0 %v9577_v58  ;;  %v9591_v16 = vld [vmem:[#allocation10 + $0x18] sm:$0xff] }
 0x551   :  { %12720 = vst [vmem:[#allocation102_spill] sm:$0xff] %v9565_v44  ;;  %2510 = vmatpush.msra.mxu2 %v9283_v51  ;;  %v9581_v44 = vld [vmem:[#allocation10 + $0x28] sm:$0xff] }
 0x552   :  { %12721 = vst [vmem:[#allocation103_spill] sm:$0xff] %v9568_v48  ;;  %2548 = vmatpush.msra.mxu3 %v9581_v44  ;;  %2610 = vmatpush.msra.mxu1 %v9287_v17  ;;  %v9598_v17 = vld [vmem:[#allocation10 + $0x8] sm:$0xff] }
 0x553   :  { %12722 = vst [vmem:[#allocation104_spill] sm:$0xff] %v9571_v38  ;;  %2649 = vmatpush.msrb.mxu2 %v9290_v40  ;;  %2584 = vmatpush.msra.mxu0 %v9587_v46 }
 0x554   :  { %12723 = vst [vmem:[#allocation105_spill] sm:$0xff] %v9577_v58  ;;  %2615 = vmatpush.msrb.mxu1 %v9293_v18  ;;  %2549 = vmatpush.msra.mxu3 %v9591_v16  ;;  %v9595_v58 = vld [vmem:[#allocation10 + $0x170] sm:$0xff]  ;;  %v9602_v18 = vld [vmem:[#allocation10 + $0x160] sm:$0xff] }
 0x555   :  { %12724 = vst [vmem:[#allocation106_spill] sm:$0xff] %v9581_v44  ;;  %2650 = vmatpush.msrb.mxu2 %v9297_v3  ;;  %2585 = vmatpush.msra.mxu0 %v9595_v58  ;;  %v12741_v3 = vld [vmem:[#allocation78_spill] sm:$0xff] }
 0x556   :  { %12725 = vst [vmem:[#allocation107_spill] sm:$0xff] %v9587_v46  ;;  %2616 = vmatpush.msrb.mxu1 %v9301_v57  ;;  %2550 = vmatpush.msra.mxu3 %v9598_v17  ;;  %v9606_v46 = vld [vmem:[#allocation10 + $0x150] sm:$0xff]  ;;  %v9610_v57 = vld [vmem:[#allocation10 + $0x140] sm:$0xff] }
 0x557   :  { %12726 = vst [vmem:[#allocation108_spill] sm:$0xff] %v9591_v16  ;;  %2586 = vmatpush.msra.mxu0 %v9602_v18 }
 0x558   :  { %12727 = vst [vmem:[#allocation109_spill] sm:$0xff] %v9595_v58  ;;  %2617 = vmatpush.msrb.mxu1 %v9306_v60  ;;  %v9614_v58 = vld [vmem:[#allocation10 + $0x130] sm:$0xff] }
 0x559   :  { %12728 = vst [vmem:[#allocation110_spill] sm:$0xff] %v9598_v17  ;;  %2587 = vmatpush.msra.mxu0 %v9606_v46 }
 0x55a   :  { %12729 = vst [vmem:[#allocation111_spill] sm:$0xff] %v9602_v18  ;;  %2618 = vmatpush.msrb.mxu1 %v9310_v41  ;;  %v9618_v18 = vld [vmem:[#allocation10 + $0x120] sm:$0xff] }
 0x55b   :  { %12730 = vst [vmem:[#allocation112_spill] sm:$0xff] %v9606_v46  ;;  %2588 = vmatpush.msra.mxu0 %v9610_v57  ;;  %v9623_v46 = vld [vmem:[#allocation10 + $0x188] sm:$0xff] }
 0x55c   :  { %2619 = vmatpush.msrb.mxu1 %v9314_v8  ;;  %12731 = vst [vmem:[#allocation113_spill] sm:$0xff] %v9610_v57  ;;  %v9626_v57 = vld [vmem:[#allocation10 + $0x178] sm:$0xff] }
 0x55d   :  { %12732 = vst [vmem:[#allocation114_spill] sm:$0xff] %v9614_v58  ;;  %2589 = vmatpush.msra.mxu0 %v9614_v58  ;;  %v9632_v58 = vld [vmem:[#allocation10 + $0x158] sm:$0xff] }
 0x55e   :  { %2620 = vmatpush.msrb.mxu1 %v9318_v9  ;;  %12733 = vst [vmem:[#allocation115_spill] sm:$0xff] %v9618_v18  ;;  %v9629_v9 = vld [vmem:[#allocation10 + $0x168] sm:$0xff] }
 0x55f   :  { %2590 = vmatpush.msra.mxu0 %v9618_v18  ;;  %12734 = vst [vmem:[#allocation116_spill] sm:$0xff] %v9623_v46  ;;  %v9635_v18 = vld [vmem:[#allocation10 + $0x148] sm:$0xff] }
 0x560   :  { %2621 = vmatpush.msrb.mxu1 %v9322_v61  ;;  %12735 = vst [vmem:[#allocation117_spill] sm:$0xff] %v9626_v57 }
 0x561   :  { %12736 = vst [vmem:[#allocation118_spill] sm:$0xff] %v9629_v9 }
 0x562   :  { %2622 = vmatpush.msrb.mxu1 %v9326_v0  ;;  %12737 = vst [vmem:[#allocation119_spill] sm:$0xff] %v9632_v58 }
 0x563   :  { %12738 = vst [vmem:[#allocation120_spill] sm:$0xff] %v9635_v18 }
 0x564   :  { %2623 = vmatpush.msrb.mxu1 %v9329_v42  ;;  %v9638_v42 = vld [vmem:[#allocation10 + $0x138] sm:$0xff] }
 0x565   :  { %12739 = vst [vmem:[#allocation121_spill] sm:$0xff] %v9638_v42 }
 0x566   :  { %2624 = vmatpush.msrb.mxu1 %v9623_v46  ;;  %v9641_v46 = vld [vmem:[#allocation10 + $0x128] sm:$0xff] }
 0x567   :  { %12740 = vst [vmem:[#allocation122_spill] sm:$0xff] %v9641_v46 }
 0x568   :  { %2625 = vmatpush.msrb.mxu1 %v9626_v57 }
 0x56a   :  { %2626 = vmatpush.msrb.mxu1 %v9629_v9 }
 0x56c   :  { %2627 = vmatpush.msrb.mxu1 %v9632_v58 }
 0x56e   :  { %2628 = vmatpush.msrb.mxu1 %v9635_v18 }
 0x570   :  { %2629 = vmatpush.msrb.mxu1 %v9638_v42 }
 0x572   :  { %2630 = vmatpush.msrb.mxu1 %v9641_v46 }
 0x596   :  { %v2146_v57 = vpop.f32.mrf.mxu0 }
 0x5a3   :  { %v2166_v0 = vpop.f32.mrf.mxu1 }
 0x5a4   :  { %v2167_v61 = vadd.f32 %v2166_v0, %v2146_v57  ;;  %v2286_v42 = vpop.f32.mrf.mxu0 }
 0x5a6   :  { %v2371_v9 = vrot.slane %v2167_v61, 4 }
 0x5a8   :  { %v2375_v8 = vadd.f32 %v2371_v9, %v12684_v14  ;;  %v12743_v14 = vld [vmem:[#allocation79_spill] sm:$0xff] }
 0x5a9   :  { %v2206_v41 = vpop.f32.mrf.mxu2 }
 0x5aa   :  { %v7303_v58 = vmul.f32 -1.442695, %v2375_v8  ;;  %v2246_v60 = vpop.f32.mrf.mxu3  ;;  %v12742_v8 = vld [vmem:[#allocation81_spill] sm:$0xff] }
 0x5ab   :  { %v2186_v17 = vpop.f32.mrf.mxu1 }
 0x5ac   :  { %7573 = vpow2.f32 %v7303_v58  ;;  %v2207_v18 = vadd.f32 %v2206_v41, %v2186_v17 }
 0x5ae   :  { %v2372_v16 = vrot.slane %v2207_v18, 4 }
 0x5b0   :  { %v2376_v40 = vadd.f32 %v2372_v16, %v12741_v3 }
 0x5b2   :  { %v7574_v44 = vpop.eup %7573  ;;  %v7304_v51 = vmul.f32 -1.442695, %v2376_v40  ;;  %v2226_v56 = vpop.f32.mrf.mxu2 }
 0x5b3   :  { %v2266_v46 = vpop.f32.mrf.mxu3  ;;  %v2383_v48 = vadd.f32 1.0, %v7574_v44  ;;  %v2247_v38 = vadd.f32 %v2246_v60, %v2226_v56  ;;  %v12744_v44 = vld [vmem:[#allocation83_spill] sm:$0xff] }
 0x5b4   :  { %v2287_v57 = vadd.f32 %v2286_v42, %v2266_v46  ;;  %7575 = vpow2.f32 %v7304_v51  ;;  %v2326_v42 = vpop.f32.mrf.mxu1 }
 0x5b5   :  { %7577 = vrcp.f32 %v2383_v48  ;;  %v2417_v9 = vrot.slane %v2247_v38, 4  ;;  %v2394_v46 = vand.u32 2147483647, %v2383_v48  ;;  %vm2390_vm13 = vweird.f32 %v2383_v48 }
 0x5b6   :  { %v2418_v61 = vrot.slane %v2287_v57, 4  ;;  %v2396_v57 = vand.u32 2147483648, %v2383_v48 }
 0x5b7   :  { %v2421_v0 = vadd.f32 %v2417_v9, %v12742_v8  ;;  %vm2395_vm15 = vcmp.eq.f32.partialorder %v2394_v46, 8.507059e+37 }
 0x5b8   :  { %v2422_v58 = vadd.f32 %v2418_v61, %v12743_v14  ;;  %v2306_v40 = vpop.f32.mrf.mxu0 }
 0x5b9   :  { %v7305_v17 = vmul.f32 -1.442695, %v2421_v0  ;;  %v2307_v56 = vadd.f32 %v2306_v40, %v12744_v44 }
 0x5ba   :  { %v7306_v18 = vmul.f32 -1.442695, %v2422_v58  ;;  %v7576_v41 = vpop.eup %7575 }
 0x5bb   :  { %v7578_v16 = vpop.eup %7577  ;;  %v2384_v3 = vadd.f32 1.0, %v7576_v41  ;;  %7579 = vpow2.f32 %v7305_v17  ;;  %v2327_v0 = vadd.f32 %v2326_v42, %v2307_v56  ;;  %v2397_v17 = vor.u32 1.1754944e-38, %v2396_v57 }
 0x5bc   :  { %7581 = vpow2.f32 %v7306_v18  ;;  %v2386_v53 = vmul.f32 %v7578_v16, %v2383_v48  ;;  %vm2391_vm12 = vweird.f32 %v7578_v16 }
 0x5bd   :  { %7583 = vrcp.f32 %v2384_v3  ;;  %vm2392_vm14 = vmor %vm2390_vm13, %vm2391_vm12  ;;  %v2463_v18 = vrot.slane %v2327_v0, 4  ;;  %v2411_v34 = vand.u32 2147483648, %v2384_v3  ;;  %vm2405_vm4 = vweird.f32 %v2384_v3 }
 0x5be   :  { %v2387_v51 = vsub.f32 1.0, %v2386_v53  ;;  %v2409_v46 = vand.u32 2147483647, %v2384_v3 }
 0x5c0   :  { %v2388_v60 = vmul.f32 %v7578_v16, %v2387_v51  ;;  %vm2410_vm9 = vcmp.eq.f32.partialorder %v2409_v46, 8.507059e+37 }
 0x5c1   :  { %v7580_v38 = vpop.eup %7579 }
 0x5c2   :  { %v7582_v9 = vpop.eup %7581  ;;  %v2429_v61 = vadd.f32 1.0, %v7580_v38  ;;  %v2389_v58 = vadd.f32 %v7578_v16, %v2388_v60 }
 0x5c3   :  { %v7584_v14 = vpop.eup %7583  ;;  %v9649_v41 = vadd.f32 1.0, %v7582_v9 }
 0x5c4   :  { %7585 = vrcp.f32 %v2429_v61  ;;  %v2393_v53 = vsel %vm2392_vm14, %v7578_v16, %v2389_v58  ;;  %v2401_v40 = vmul.f32 %v7584_v14, %v2384_v3  ;;  %vm2406_vm3 = vweird.f32 %v7584_v14 }
 0x5c5   :  { %7587 = vrcp.f32 %v9649_v41  ;;  %v2398_v51 = vsel %vm2395_vm15, %v2397_v17, %v2393_v53  ;;  %v2440_v0 = vand.u32 2147483647, %v2429_v61  ;;  %v2442_v58 = vand.u32 2147483648, %v2429_v61  ;;  %v2366_v53 = vpop.f32.mrf.mxu2  ;;  %vm9655_vm5 = vmor %vm2405_vm4, %vm2406_vm3 }
 0x5c6   :  { %v2467_v44 = vmul.f32 %v2463_v18, %v2398_v51  ;;  %v2402_v8 = vsub.f32 1.0, %v2401_v40  ;;  %vm2436_vm8 = vweird.f32 %v2429_v61  ;;  %vm2451_vm14 = vweird.f32 %v9649_v41 }
 0x5c7   :  { %vm2441_vm13 = vcmp.eq.f32.partialorder %v2440_v0, 8.507059e+37  ;;  %vm2486_vm4 = vcmask 128004  }
 0x5c8   :  { %v2403_v56 = vmul.f32 %v7584_v14, %v2402_v8  ;;  %v2469_v48 = vadd.f32 %v2467_v44, %v9110_v12 }
 0x5ca   :  { %v7586_v38 = vpop.eup %7585  ;;  %v2404_v35 = vadd.f32 %v7584_v14, %v2403_v56  ;;  %7589 = vtanh.f32 %v2469_v48  ;;  %v2412_v56 = vor.u32 1.1754944e-38, %v2411_v34 }
 0x5cb   :  { %v7588_v60 = vpop.eup %7587  ;;  %v2432_v42 = vmul.f32 %v7586_v38, %v2429_v61  ;;  %vm2437_vm7 = vweird.f32 %v7586_v38  ;;  %v2477_v61 = vrot.slane %v9358_v15, 6  ;;  %v2478_v15 = vrot.slane %v9382_v33, 6  ;;  %v12749_v33 = vld [vmem:[#allocation53_spill] sm:$0xff] }
 0x5cc   :  { %v2447_v9 = vmul.f32 %v7588_v60, %v9649_v41  ;;  %v2346_v63 = vpop.f32.mrf.mxu1  ;;  %v2408_v44 = vsel %vm9655_vm5, %v7584_v14, %v2404_v35  ;;  %vm2438_vm10 = vmor %vm2436_vm8, %vm2437_vm7  ;;  %vm2452_vm12 = vweird.f32 %v7588_v60  ;;  %v2455_v35 = vand.u32 2147483647, %v9649_v41 }
 0x5cd   :  { %v2433_v57 = vsub.f32 1.0, %v2432_v42  ;;  %v2347_v16 = vadd.f32 %v2346_v63, %v9117_v2  ;;  %v2443_v42 = vor.u32 1.1754944e-38, %v2442_v58  ;;  %v2413_v2 = vsel %vm2410_vm9, %v2412_v56, %v2408_v44  ;;  %vm2453_vm15 = vmor %vm2451_vm14, %vm2452_vm12  ;;  %v12754_v56 = vld [vmem:[#allocation56_spill] sm:$0xff] }
 0x5ce   :  { %v2448_v17 = vsub.f32 1.0, %v2447_v9  ;;  %vm2456_vm3 = vcmp.eq.f32.partialorder %v2455_v35, 8.507059e+37  ;;  %v12763_v35 = vld [vmem:[#allocation40_spill] sm:$0xff] }
 0x5cf   :  { %v2434_v18 = vmul.f32 %v7586_v38, %v2433_v57  ;;  %v2367_v40 = vadd.f32 %v2366_v53, %v2347_v16  ;;  %v2457_v57 = vand.u32 2147483648, %v9649_v41 }
 0x5d0   :  { %v2449_v51 = vmul.f32 %v7588_v60, %v2448_v17  ;;  %v7590_v46 = vpop.eup %7589 }
 0x5d1   :  { %v2435_v63 = vadd.f32 %v7586_v38, %v2434_v18  ;;  %v2464_v3 = vrot.slane %v2367_v40, 4  ;;  %v2458_v17 = vor.u32 1.1754944e-38, %v2457_v57  ;;  %v12761_v57 = vld [vmem:[#allocation58_spill] sm:$0xff] }
 0x5d2   :  { %v2450_v9 = vadd.f32 %v7588_v60, %v2449_v51  ;;  %v12751_v51 = vld [vmem:[#allocation45_spill] sm:$0xff] }
 0x5d3   :  { %v2439_v12 = vsel %vm2438_vm10, %v7586_v38, %v2435_v63  ;;  %v2468_v16 = vmul.f32 %v2464_v3, %v2413_v2  ;;  %v12755_v63 = vld [vmem:[#allocation30_spill] sm:$0xff] }
 0x5d4   :  { %v2444_v14 = vsel %vm2441_vm13, %v2443_v42, %v2439_v12  ;;  %v2454_v58 = vsel %vm2453_vm15, %v7588_v60, %v2450_v9  ;;  %v12756_v3 = vld [vmem:[#allocation50_spill] sm:$0xff]  ;;  %v12757_v42 = vld [vmem:[#allocation59_spill] sm:$0xff]  ;;  %v12759_v9 = vld [vmem:[#allocation28_spill] sm:$0xff] }
 0x5d5   :  { %v2473_v34 = vsub.f32 1.0, %v2444_v14  ;;  %v2470_v48 = vadd.f32 %v2468_v16, %v9133_v7  ;;  %v2481_v0 = vmul.f32 %v2477_v61, %v2444_v14  ;;  %v2459_v2 = vsel %vm2456_vm3, %v2458_v17, %v2454_v58  ;;  %v12762_v16 = vld [vmem:[#allocation48_spill] sm:$0xff]  ;;  %v12764_v14 = vld [vmem:[#allocation42_spill] sm:$0xff]  ;;  %v12769_v58 = vld [vmem:[#allocation91_spill] sm:$0xff] }
 0x5d6   :  { %v2474_v41 = vsub.f32 1.0, %v2459_v2  ;;  %v2482_v18 = vmul.f32 %v2478_v15, %v2459_v2  ;;  %v12766_v61 = vld [vmem:[#allocation88_spill] sm:$0xff]  ;;  %v12770_v17 = vld [vmem:[#allocation38_spill] sm:$0xff]  ;;  %v12773_v2 = vld [vmem:[#allocation87_spill] sm:$0xff] }
 0x5d7   :  { %v2475_v53 = vmul.f32 %v7590_v46, %v2473_v34  ;;  %7591 = vtanh.f32 %v2470_v48  ;;  %v12765_v34 = vld [vmem:[#allocation52_spill] sm:$0xff]  ;;  %v12768_v46 = vld [vmem:[#allocation57_spill] sm:$0xff]  ;;  %v12775_v15 = vld [vmem:[#allocation98_spill] sm:$0xff] }
 0x5d8   :  { %v12767_v48 = vld [vmem:[#allocation32_spill] sm:$0xff] }
 0x5d9   :  { %v9666_v38 = vadd.f32 %v2481_v0, %v2475_v53  ;;  %v12771_v53 = vld [vmem:[#allocation62_spill] sm:$0xff] }
 0x5da   :  { %v12772_v0 = vld [vmem:[#allocation94_spill] sm:$0xff] }
 0x5db   :  { %2485 = vst [vmem:[#allocation2] sm:$0x30] %v9666_v38  ;;  %v9670_v12 = vrot.slane %v9666_v38, 4 }
 0x5dd   :  { %v7592_v8 = vpop.eup %7591  ;;  %2511 = vmatmul.f32.vlgmr.msra.gmra.mxu2 %v9670_v12 }
 0x5de   :  { %v2476_v60 = vmul.f32 %v7592_v8, %v2474_v41  ;;  %2655 = vmatpush.msra.mxu2 %v9369_v20  ;;  %v12774_v41 = vld [vmem:[#allocation44_spill] sm:$0xff]  ;;  %v12776_v8 = vld [vmem:[#allocation97_spill] sm:$0xff] }
 0x5e0   :  { %v9675_v40 = vadd.f32 %v2482_v18, %v2476_v60  ;;  %2656 = vmatpush.msra.mxu2 %v9372_v54  ;;  %v12777_v60 = vld [vmem:[#allocation90_spill] sm:$0xff]  ;;  %v12778_v18 = vld [vmem:[#allocation60_spill] sm:$0xff] }
 0x5e2   :  { %2487 = vst.msk [vmem:[#allocation2 + $0x8] sm:$0x30] %vm2486_vm4, %v9675_v40  ;;  %2657 = vmatpush.msra.mxu2 %v9376_v47  ;;  %v2491_v44 = vrot.slane %v9675_v40, 4 }
 0x5e4   :  { %7307 = vmatmul.msk.f32.vlgmr.msrb.gmra.mxu3 %vm570_vm2, %v2491_v44  ;;  %7308 = vmatmul.msk.f32.vlgmr.msrb.gmra.mxu0 %vm570_vm2, %v2491_v44 }
 0x5e5   :  { %7309 = vmatmul.msk.f32.vlgmr.msra.gmra.mxu1 %vm570_vm2, %v2491_v44  ;;  %2658 = vmatpush.msra.mxu2 %v9379_v45 }
 0x5e6   :  { %7310 = vmatmul.msk.f32.vlgmr.msrb.gmra.mxu2 %vm570_vm2, %v2491_v44  ;;  %2689 = vmatpush.msrb.mxu3 %v9400_v28 }
 0x5e7   :  { %2659 = vmatpush.msra.mxu2 %v9384_v52  ;;  %2729 = vmatpush.msrb.mxu0 %v9403_v4 }
 0x5e8   :  { %2690 = vmatpush.msrb.mxu3 %v9410_v29  ;;  %2895 = vmatpush.msra.mxu1 %v9165_v27  ;;  %v12747_v27 = vld [vmem:[#allocation51_spill] sm:$0xff] }
 0x5e9   :  { %2660 = vmatpush.msra.mxu2 %v9389_v55  ;;  %2730 = vmatpush.msrb.mxu0 %v9413_v36 }
 0x5ea   :  { %2896 = vmatpush.msra.mxu1 %v9171_v11  ;;  %v12748_v11 = vld [vmem:[#allocation49_spill] sm:$0xff] }
 0x5eb   :  { %2661 = vmatpush.msra.mxu2 %v9397_v6 }
 0x5ec   :  { %2551 = vmatmul.f32.vlgmr.msra.gmra.mxu3 %v9670_v12  ;;  %2591 = vmatmul.f32.vlgmr.msra.gmra.mxu0 %v9670_v12 }
 0x5ed   :  { %2631 = vmatmul.f32.vlgmr.msrb.gmra.mxu1 %v9670_v12  ;;  %2662 = vmatpush.msra.mxu2 %v9407_v62 }
 0x5ee   :  { %2695 = vmatpush.msra.mxu3 %v9426_v10  ;;  %2861 = vmatpush.msra.mxu0 %v9181_v30  ;;  %v12750_v30 = vld [vmem:[#allocation55_spill] sm:$0xff] }
 0x5ef   :  { %2663 = vmatpush.msra.mxu2 %v9417_v43  ;;  %2901 = vmatpush.msrb.mxu1 %v9433_v21 }
 0x5f0   :  { %2696 = vmatpush.msra.mxu3 %v9436_v1  ;;  %2862 = vmatpush.msra.mxu0 %v9187_v49  ;;  %v12752_v49 = vld [vmem:[#allocation46_spill] sm:$0xff] }
 0x5f1   :  { %2664 = vmatpush.msra.mxu2 %v9420_v5  ;;  %2902 = vmatpush.msrb.mxu1 %v9443_v39 }
 0x5f2   :  { %2697 = vmatpush.msra.mxu3 %v12747_v27  ;;  %2863 = vmatpush.msra.mxu0 %v9193_v22  ;;  %v12753_v22 = vld [vmem:[#allocation61_spill] sm:$0xff] }
 0x5f3   :  { %2665 = vmatpush.msra.mxu2 %v12748_v11  ;;  %2903 = vmatpush.msrb.mxu1 %v12749_v33 }
 0x5f4   :  { %2698 = vmatpush.msra.mxu3 %v12750_v30  ;;  %7312 = vmatmul.msk.f32.vlgmr.msrb.gmra.mxu0 %vm570_vm2, %v2491_v44 }
 0x5f5   :  { %2666 = vmatpush.msra.mxu2 %v12751_v51  ;;  %7311 = vmatmul.msk.f32.vlgmr.msrb.gmra.mxu3 %vm570_vm2, %v2491_v44  ;;  %v12779_v44 = vld [vmem:[#allocation101_spill] sm:$0xff] }
 0x5f6   :  { %2699 = vmatpush.msra.mxu3 %v9464_v37  ;;  %2864 = vmatpush.msra.mxu0 %v9205_v13  ;;  %v12758_v13 = vld [vmem:[#allocation54_spill] sm:$0xff] }
 0x5f7   :  { %2667 = vmatpush.msra.mxu2 %v12752_v49  ;;  %2904 = vmatpush.msrb.mxu1 %v9471_v24 }
 0x5f8   :  { %2700 = vmatpush.msra.mxu3 %v12753_v22  ;;  %2865 = vmatpush.msra.mxu0 %v9212_v25  ;;  %v12760_v25 = vld [vmem:[#allocation34_spill] sm:$0xff] }
 0x5f9   :  { %2668 = vmatpush.msra.mxu2 %v12754_v56  ;;  %2905 = vmatpush.msrb.mxu1 %v9487_v59 }
 0x5fa   :  { %2701 = vmatpush.msra.mxu3 %v12755_v63  ;;  %2866 = vmatpush.msra.mxu0 %v12756_v3  ;;  %v12780_v3 = vld [vmem:[#allocation100_spill] sm:$0xff] }
 0x5fb   :  { %2669 = vmatpush.msra.mxu2 %v12757_v42  ;;  %2906 = vmatpush.msrb.mxu1 %v9501_v19  ;;  %v12827_v19 = vld [vmem:[#allocation85_spill] sm:$0xff] }
 0x5fc   :  { %2702 = vmatpush.msra.mxu3 %v9490_v50  ;;  %2867 = vmatpush.msra.mxu0 %v12758_v13  ;;  %v12781_v13 = vld [vmem:[#allocation93_spill] sm:$0xff] }
 0x5fd   :  { %2670 = vmatpush.msra.mxu2 %v12759_v9  ;;  %2907 = vmatpush.msrb.mxu1 %v9511_v26 }
 0x5fe   :  { %2703 = vmatpush.msra.mxu3 %v12760_v25  ;;  %2671 = vmatmul.f32.vlgmr.msra.gmra.mxu2 %v9670_v12 }
 0x5ff   :  { %2868 = vmatpush.msra.mxu0 %v12761_v57  ;;  %2935 = vmatpush.msrb.mxu2 %v12762_v16  ;;  %v12782_v57 = vld [vmem:[#allocation22_spill] sm:$0xff]  ;;  %v12783_v16 = vld [vmem:[#allocation104_spill] sm:$0xff] }
 0x600   :  { %2704 = vmatpush.msra.mxu3 %v12763_v35  ;;  %2908 = vmatpush.msrb.mxu1 %v9521_v31  ;;  %v12823_v31 = vld [vmem:[#allocation79_spill] sm:$0xff] }
 0x601   :  { %2869 = vmatpush.msra.mxu0 %v12764_v14  ;;  %2936 = vmatpush.msrb.mxu2 %v12765_v34  ;;  %v12784_v14 = vld [vmem:[#allocation103_spill] sm:$0xff]  ;;  %v12785_v34 = vld [vmem:[#allocation96_spill] sm:$0xff] }
 0x602   :  { %2705 = vmatpush.msra.mxu3 %v12766_v61  ;;  %2909 = vmatpush.msrb.mxu1 %v9531_v32 }
 0x603   :  { %2941 = vmatpush.msra.mxu2 %v12767_v48  ;;  %2870 = vmatpush.msra.mxu0 %v12768_v46  ;;  %v12786_v46 = vld [vmem:[#allocation23_spill] sm:$0xff] }
 0x604   :  { %2706 = vmatpush.msra.mxu3 %v12769_v58  ;;  %2910 = vmatpush.msrb.mxu1 %v9541_v23 }
 0x605   :  { %2942 = vmatpush.msra.mxu2 %v12770_v17  ;;  %2871 = vmatpush.msra.mxu0 %v12771_v53  ;;  %v12787_v53 = vld [vmem:[#allocation24_spill] sm:$0xff] }
 0x606   :  { %2707 = vmatpush.msra.mxu3 %v12772_v0  ;;  %2911 = vmatpush.msrb.mxu1 %v12775_v15  ;;  %v12795_v15 = vld [vmem:[#allocation31_spill] sm:$0xff] }
 0x607   :  { %2943 = vmatpush.msra.mxu2 %v12773_v2  ;;  %2872 = vmatpush.msra.mxu0 %v12774_v41  ;;  %v12788_v41 = vld [vmem:[#allocation99_spill] sm:$0xff] }
 0x608   :  { %2708 = vmatpush.msra.mxu3 %v12776_v8  ;;  %2912 = vmatpush.msrb.mxu1 %v12779_v44  ;;  %v12790_v44 = vld [vmem:[#allocation106_spill] sm:$0xff] }
 0x609   :  { %2944 = vmatpush.msra.mxu2 %v12777_v60  ;;  %2873 = vmatpush.msra.mxu0 %v12778_v18  ;;  %v12789_v18 = vld [vmem:[#allocation25_spill] sm:$0xff] }
 0x60a   :  { %2709 = vmatpush.msra.mxu3 %v12780_v3  ;;  %2913 = vmatpush.msrb.mxu1 %v12783_v16  ;;  %v12791_v3 = vld [vmem:[#allocation26_spill] sm:$0xff]  ;;  %v12793_v16 = vld [vmem:[#allocation29_spill] sm:$0xff] }
 0x60b   :  { %2945 = vmatpush.msra.mxu2 %v12781_v13  ;;  %2874 = vmatpush.msra.mxu0 %v12782_v57  ;;  %v12792_v57 = vld [vmem:[#allocation27_spill] sm:$0xff]  ;;  %v12822_v60 = vld [vmem:[#allocation81_spill] sm:$0xff] }
 0x60c   :  { %2710 = vmatpush.msra.mxu3 %v12784_v14  ;;  %2914 = vmatpush.msrb.mxu1 %v12790_v44  ;;  %v12794_v14 = vld [vmem:[#allocation102_spill] sm:$0xff]  ;;  %v12801_v44 = vld [vmem:[#allocation107_spill] sm:$0xff] }
 0x60d   :  { %2946 = vmatpush.msra.mxu2 %v12785_v34  ;;  %2711 = vmatmul.f32.vlgmr.msra.gmra.mxu3 %v9670_v12  ;;  %v12796_v12 = vld [vmem:[#allocation108_spill] sm:$0xff] }
 0x60e   :  { %2875 = vmatpush.msra.mxu0 %v12786_v46  ;;  %2975 = vmatpush.msrb.mxu3 %v12787_v53  ;;  %v12797_v46 = vld [vmem:[#allocation33_spill] sm:$0xff] }
 0x60f   :  { %2947 = vmatpush.msra.mxu2 %v12788_v41  ;;  %2915 = vmatpush.msrb.mxu1 %v12796_v12  ;;  %v12798_v53 = vld [vmem:[#allocation105_spill] sm:$0xff]  ;;  %v12799_v41 = vld [vmem:[#allocation110_spill] sm:$0xff]  ;;  %v12807_v12 = vld [vmem:[#allocation112_spill] sm:$0xff] }
 0x610   :  { %2876 = vmatpush.msra.mxu0 %v12789_v18  ;;  %2976 = vmatpush.msrb.mxu3 %v12791_v3  ;;  %v12800_v18 = vld [vmem:[#allocation35_spill] sm:$0xff]  ;;  %v12802_v3 = vld [vmem:[#allocation37_spill] sm:$0xff] }
 0x611   :  { %2948 = vmatpush.msra.mxu2 %v12794_v14  ;;  %2916 = vmatpush.msrb.mxu1 %v12799_v41  ;;  %v12805_v14 = vld [vmem:[#allocation111_spill] sm:$0xff] }
 0x612   :  { %3015 = vmatpush.msrb.mxu0 %v12792_v57  ;;  %2981 = vmatpush.msra.mxu3 %v12793_v16  ;;  %v12803_v57 = vld [vmem:[#allocation109_spill] sm:$0xff]  ;;  %v12804_v16 = vld [vmem:[#allocation39_spill] sm:$0xff] }
 0x613   :  { %2949 = vmatpush.msra.mxu2 %v12798_v53  ;;  %v12809_v53 = vld [vmem:[#allocation113_spill] sm:$0xff]  ;;  %v12810_v41 = vld [vmem:[#allocation47_spill] sm:$0xff] }
 0x614   :  { %3016 = vmatpush.msrb.mxu0 %v12795_v15  ;;  %2982 = vmatpush.msra.mxu3 %v12797_v46  ;;  %v12806_v15 = vld [vmem:[#allocation63_spill] sm:$0xff]  ;;  %v12808_v46 = vld [vmem:[#allocation41_spill] sm:$0xff] }
 0x615   :  { %2950 = vmatpush.msra.mxu2 %v12801_v44  ;;  %v12812_v44 = vld [vmem:[#allocation43_spill] sm:$0xff] }
 0x616   :  { %2983 = vmatpush.msra.mxu3 %v12800_v18  ;;  %v12811_v18 = vld [vmem:[#allocation114_spill] sm:$0xff] }
 0x617   :  { %2951 = vmatpush.msra.mxu2 %v12803_v57  ;;  %v12814_v57 = vld [vmem:[#allocation116_spill] sm:$0xff] }
 0x618   :  { %2984 = vmatpush.msra.mxu3 %v12802_v3  ;;  %v12813_v3 = vld [vmem:[#allocation115_spill] sm:$0xff] }
 0x619   :  { %2952 = vmatpush.msra.mxu2 %v12805_v14  ;;  %v12816_v14 = vld [vmem:[#allocation118_spill] sm:$0xff] }
 0x61a   :  { %2985 = vmatpush.msra.mxu3 %v12804_v16  ;;  %v12815_v16 = vld [vmem:[#allocation117_spill] sm:$0xff] }
 0x61b   :  { %2953 = vmatpush.msra.mxu2 %v12807_v12  ;;  %v12818_v12 = vld [vmem:[#allocation120_spill] sm:$0xff] }
 0x61c   :  { %2986 = vmatpush.msra.mxu3 %v12806_v15  ;;  %v12817_v15 = vld [vmem:[#allocation119_spill] sm:$0xff] }
 0x61d   :  { %2954 = vmatpush.msra.mxu2 %v12809_v53  ;;  %v12820_v53 = vld [vmem:[#allocation122_spill] sm:$0xff] }
 0x61e   :  { %2987 = vmatpush.msra.mxu3 %v12808_v46  ;;  %v12819_v46 = vld [vmem:[#allocation121_spill] sm:$0xff] }
 0x61f   :  { %2955 = vmatpush.msra.mxu2 %v12811_v18 }
 0x620   :  { %2988 = vmatpush.msra.mxu3 %v12810_v41 }
 0x621   :  { %2956 = vmatpush.msra.mxu2 %v12813_v3 }
 0x622   :  { %2989 = vmatpush.msra.mxu3 %v12812_v44 }
 0x624   :  { %2990 = vmatpush.msra.mxu3 %v12814_v57 }
 0x626   :  { %2991 = vmatpush.msra.mxu3 %v12815_v16 }
 0x628   :  { %2992 = vmatpush.msra.mxu3 %v12816_v14  ;;  %v12821_v14 = vld [vmem:[#allocation74_spill] sm:$0xff] }
 0x62a   :  { %2993 = vmatpush.msra.mxu3 %v12817_v15 }
 0x62c   :  { %2994 = vmatpush.msra.mxu3 %v12818_v12 }
 0x62e   :  { %2995 = vmatpush.msra.mxu3 %v12819_v46 }
 0x630   :  { %2996 = vmatpush.msra.mxu3 %v12820_v53 }
 0x660   :  { %v2512_v41 = vpop.f32.mrf.mxu2 }
 0x661   :  { %v2572_v18 = vpop.f32.mrf.mxu0 }
 0x662   :  { %v2612_v8 = vpop.f32.mrf.mxu1 }
 0x667   :  { %v2532_v44 = vpop.f32.mrf.mxu3 }
 0x668   :  { %v2533_v34 = vadd.f32 %v2532_v44, %v2512_v41 }
 0x669   :  { %v2592_v3 = vpop.f32.mrf.mxu0  ;;  %v2652_v23 = vpop.f32.mrf.mxu2 }
 0x66a   :  { %v2737_v57 = vrot.slane %v2533_v34, 2  ;;  %v2613_v0 = vadd.f32 %v2612_v8, %v2592_v3  ;;  %v2632_v16 = vpop.f32.mrf.mxu1  ;;  %v12824_v8 = vld [vmem:[#allocation78_spill] sm:$0xff] }
 0x66b   :  { %v2653_v13 = vadd.f32 %v2652_v23, %v2632_v16 }
 0x66c   :  { %v2741_v32 = vadd.f32 %v2737_v57, %v12821_v14  ;;  %v2783_v15 = vrot.slane %v2613_v0, 2  ;;  %v12825_v57 = vld [vmem:[#allocation83_spill] sm:$0xff] }
 0x66d   :  { %v2784_v58 = vrot.slane %v2653_v13, 2 }
 0x66e   :  { %v7313_v12 = vmul.f32 -1.442695, %v2741_v32  ;;  %v2787_v46 = vadd.f32 %v2783_v15, %v12822_v60 }
 0x66f   :  { %v2788_v53 = vadd.f32 %v2784_v58, %v12823_v31  ;;  %v2552_v61 = vpop.f32.mrf.mxu3 }
 0x670   :  { %7593 = vpow2.f32 %v7313_v12  ;;  %v7315_v2 = vmul.f32 -1.442695, %v2787_v46  ;;  %v2573_v26 = vadd.f32 %v2572_v18, %v2552_v61 }
 0x671   :  { %v7316_v41 = vmul.f32 -1.442695, %v2788_v53 }
 0x672   :  { %7595 = vpow2.f32 %v7315_v2  ;;  %v2738_v44 = vrot.slane %v2573_v26, 2 }
 0x673   :  { %7597 = vpow2.f32 %v7316_v41 }
 0x674   :  { %v2742_v34 = vadd.f32 %v2738_v44, %v12824_v8 }
 0x676   :  { %v7594_v23 = vpop.eup %7593  ;;  %v7314_v3 = vmul.f32 -1.442695, %v2742_v34 }
 0x677   :  { %v2749_v14 = vadd.f32 1.0, %v7594_v23 }
 0x678   :  { %v7596_v0 = vpop.eup %7595  ;;  %7599 = vpow2.f32 %v7314_v3  ;;  %v2692_v15 = vpop.f32.mrf.mxu3 }
 0x679   :  { %v7598_v32 = vpop.eup %7597  ;;  %7601 = vrcp.f32 %v2749_v14  ;;  %v2795_v60 = vadd.f32 1.0, %v7596_v0  ;;  %v2760_v46 = vand.u32 2147483647, %v2749_v14  ;;  %v2762_v41 = vand.u32 2147483648, %v2749_v14 }
 0x67a   :  { %v9802_v31 = vadd.f32 1.0, %v7598_v32  ;;  %vm2756_vm7 = vweird.f32 %v2749_v14 }
 0x67b   :  { %7603 = vrcp.f32 %v2795_v60  ;;  %vm2761_vm9 = vcmp.eq.f32.partialorder %v2760_v46, 8.507059e+37  ;;  %vm2802_vm12 = vweird.f32 %v2795_v60 }
 0x67c   :  { %7605 = vrcp.f32 %v9802_v31 }
 0x67e   :  { %v7600_v58 = vpop.eup %7599 }
 0x67f   :  { %v7602_v13 = vpop.eup %7601  ;;  %v9804_v61 = vadd.f32 1.0, %v7600_v58  ;;  %v2763_v58 = vor.u32 1.1754944e-38, %v2762_v41 }
 0x680   :  { %v2752_v26 = vmul.f32 %v7602_v13, %v2749_v14  ;;  %vm2757_vm5 = vweird.f32 %v7602_v13  ;;  %v12826_v14 = vld [vmem:[#allocation84_spill] sm:$0xff] }
 0x681   :  { %v7604_v2 = vpop.eup %7603  ;;  %7607 = vrcp.f32 %v9804_v61  ;;  %v2672_v12 = vpop.f32.mrf.mxu2  ;;  %vm2758_vm8 = vmor %vm2756_vm7, %vm2757_vm5  ;;  %vm2771_vm3 = vweird.f32 %v9804_v61 }
 0x682   :  { %v2798_v53 = vmul.f32 %v7604_v2, %v2795_v60  ;;  %v2673_v18 = vadd.f32 %v2672_v12, %v12825_v57  ;;  %v2753_v16 = vsub.f32 1.0, %v2752_v26  ;;  %v9809_v23 = vpop.eup %7605  ;;  %vm2803_vm10 = vweird.f32 %v7604_v2 }
 0x683   :  { %vm2804_vm13 = vmor %vm2802_vm12, %vm2803_vm10 }
 0x684   :  { %v2799_v44 = vsub.f32 1.0, %v2798_v53  ;;  %v2693_v8 = vadd.f32 %v2692_v15, %v2673_v18  ;;  %v2754_v34 = vmul.f32 %v7602_v13, %v2753_v16  ;;  %v2808_v53 = vand.u32 2147483648, %v2795_v60 }
 0x685   :  { %v2813_v18 = vmul.f32 %v9809_v23, %v9802_v31 }
 0x686   :  { %v2800_v3 = vmul.f32 %v7604_v2, %v2799_v44  ;;  %v2755_v0 = vadd.f32 %v7602_v13, %v2754_v34  ;;  %v2829_v17 = vrot.slane %v2693_v8, 2  ;;  %v2806_v44 = vand.u32 2147483647, %v2795_v60 }
 0x687   :  { %v7608_v32 = vpop.eup %7607  ;;  %v2809_v46 = vor.u32 1.1754944e-38, %v2808_v53  ;;  %v2814_v8 = vsub.f32 1.0, %v2813_v18  ;;  %v2775_v60 = vand.u32 2147483647, %v9804_v61 }
 0x688   :  { %v2759_v35 = vsel %vm2758_vm8, %v7602_v13, %v2755_v0  ;;  %v2767_v26 = vmul.f32 %v7608_v32, %v9804_v61  ;;  %v2801_v12 = vadd.f32 %v7604_v2, %v2800_v3  ;;  %vm2807_vm14 = vcmp.eq.f32.partialorder %v2806_v44, 8.507059e+37 }
 0x689   :  { %v2764_v57 = vsel %vm2761_vm9, %v2763_v58, %v2759_v35  ;;  %vm2772_vm15 = vweird.f32 %v7608_v32  ;;  %v2777_v58 = vand.u32 2147483648, %v9804_v61  ;;  %vm2776_vm7 = vcmp.eq.f32.partialorder %v2775_v60, 8.507059e+37 }
 0x68a   :  { %v2833_v16 = vmul.f32 %v2829_v17, %v2764_v57  ;;  %v2768_v15 = vsub.f32 1.0, %v2767_v26  ;;  %v2805_v13 = vsel %vm2804_vm13, %v7604_v2, %v2801_v12  ;;  %v2815_v57 = vmul.f32 %v9809_v23, %v2814_v8  ;;  %v2732_v26 = vpop.f32.mrf.mxu0  ;;  %vm2773_vm5 = vmor %vm2771_vm3, %vm2772_vm15 }
 0x68b   :  { %v2810_v35 = vsel %vm2807_vm14, %v2809_v46, %v2805_v13  ;;  %v2843_v12 = vrot.slane %v9666_v38, 6  ;;  %vm2818_vm8 = vweird.f32 %v9809_v23  ;;  %v2823_v13 = vand.u32 2147483648, %v9802_v31 }
 0x68c   :  { %v2835_v34 = vadd.f32 %v2833_v16, %v12826_v14  ;;  %v2769_v41 = vmul.f32 %v7608_v32, %v2768_v15  ;;  %v2839_v2 = vsub.f32 1.0, %v2810_v35  ;;  %v2778_v15 = vor.u32 1.1754944e-38, %v2777_v58 }
 0x68d   :  { %v2847_v14 = vmul.f32 %v2843_v12, %v2810_v35  ;;  %vm2817_vm9 = vweird.f32 %v9802_v31  ;;  %v2821_v38 = vand.u32 2147483647, %v9802_v31  ;;  %v2844_v31 = vrot.slane %v9675_v40, 6  ;;  %v12842_v40 = vld [vmem:[#allocation90_spill] sm:$0xff] }
 0x68e   :  { %7609 = vtanh.f32 %v2835_v34  ;;  %v2770_v3 = vadd.f32 %v7608_v32, %v2769_v41  ;;  %v2816_v41 = vadd.f32 %v9809_v23, %v2815_v57  ;;  %vm2819_vm10 = vmor %vm2817_vm9, %vm2818_vm8  ;;  %vm2852_vm13 = vcmask 130054   ;;  %v12858_v12 = vld [vmem:[#allocation102_spill] sm:$0xff] }
 0x68f   :  { %vm2822_vm12 = vcmp.eq.f32.partialorder %v2821_v38, 8.507059e+37  ;;  %v12871_v38 = vld [vmem:[#allocation108_spill] sm:$0xff] }
 0x690   :  { %v2712_v0 = vpop.f32.mrf.mxu3  ;;  %v2774_v18 = vsel %vm2773_vm5, %v7608_v32, %v2770_v3  ;;  %v2820_v35 = vsel %vm2819_vm10, %v9809_v23, %v2816_v41  ;;  %v9974_v41 = vld [vmem:[#allocation10 + $0x220] sm:$0xff] }
 0x691   :  { %v2713_v17 = vadd.f32 %v2712_v0, %v12827_v19  ;;  %v2779_v61 = vsel %vm2776_vm7, %v2778_v15, %v2774_v18  ;;  %v2824_v0 = vor.u32 1.1754944e-38, %v2823_v13  ;;  %v12860_v18 = vld [vmem:[#allocation104_spill] sm:$0xff]  ;;  %12866 = vst [vmem:[#allocation58_spill] sm:$0xff] %v9974_v41  ;;  %v9980_v13 = vld [vmem:[#allocation10 + $0x218] sm:$0xff] }
 0x692   :  { %v9966_v15 = vld [vmem:[#allocation10 + $0x230] sm:$0xff]  ;;  %12868 = vst [vmem:[#allocation42_spill] sm:$0xff] %v9980_v13 }
 0x693   :  { %v2733_v53 = vadd.f32 %v2732_v26, %v2713_v17  ;;  %v2825_v58 = vsel %vm2822_vm12, %v2824_v0, %v2820_v35  ;;  %v12856_v26 = vld [vmem:[#allocation101_spill] sm:$0xff]  ;;  %12862 = vst [vmem:[#allocation28_spill] sm:$0xff] %v9966_v15  ;;  %v12874_v0 = vld [vmem:[#allocation110_spill] sm:$0xff] }
 0x694   :  { %v7610_v16 = vpop.eup %7609  ;;  %v2840_v17 = vsub.f32 1.0, %v2825_v58  ;;  %v12873_v35 = vld [vmem:[#allocation109_spill] sm:$0xff] }
 0x695   :  { %v2841_v44 = vmul.f32 %v7610_v16, %v2839_v2  ;;  %v2830_v34 = vrot.slane %v2733_v53, 2  ;;  %v9956_v2 = vld [vmem:[#allocation10 + $0x20] sm:$0xff]  ;;  %v9963_v16 = vld [vmem:[#allocation10 + $0x10] sm:$0xff] }
 0x696   :  { %12857 = vst [vmem:[#allocation59_spill] sm:$0xff] %v9956_v2  ;;  %v12859_v53 = vld [vmem:[#allocation103_spill] sm:$0xff] }
 0x697   :  { %v2849_v46 = vadd.f32 %v2847_v14, %v2841_v44  ;;  %v2834_v8 = vmul.f32 %v2830_v34, %v2779_v61  ;;  %12861 = vst [vmem:[#allocation54_spill] sm:$0xff] %v9963_v16  ;;  %v12863_v44 = vld [vmem:[#allocation105_spill] sm:$0xff]  ;;  %v9970_v14 = vld [vmem:[#allocation10] sm:$0xff] }
 0x698   :  { %12864 = vst [vmem:[#allocation34_spill] sm:$0xff] %v9970_v14  ;;  %v12865_v34 = vld [vmem:[#allocation106_spill] sm:$0xff] }
 0x699   :  { %2851 = vst [vmem:[#allocation2] sm:$0xc0] %v2849_v46  ;;  %v9826_v32 = vrot.slane %v2849_v46, 6  ;;  %v2836_v3 = vadd.f32 %v2834_v8, %v9133_v7  ;;  %v2848_v7 = vmul.f32 %v2844_v31, %v2825_v58  ;;  %v9977_v61 = vld [vmem:[#allocation10 + $0x238] sm:$0xff]  ;;  %v12869_v46 = vld [vmem:[#allocation107_spill] sm:$0xff] }
 0x69a   :  { %12867 = vst [vmem:[#allocation48_spill] sm:$0xff] %v9977_v61  ;;  %v9984_v8 = vld [vmem:[#allocation10 + $0x228] sm:$0xff]  ;;  %v9993_v58 = vld [vmem:[#allocation10 + $0x1f8] sm:$0xff] }
 0x69b   :  { %7611 = vtanh.f32 %v2836_v3  ;;  %2877 = vmatmul.f32.vlgmr.msra.gmra.mxu0 %v9826_v32  ;;  %12870 = vst [vmem:[#allocation52_spill] sm:$0xff] %v9984_v8  ;;  %v9988_v3 = vld [vmem:[#allocation10 + $0x208] sm:$0xff] }
 0x69c   :  { %3021 = vmatpush.msra.mxu0 %v9369_v20  ;;  %12872 = vst [vmem:[#allocation32_spill] sm:$0xff] %v9988_v3  ;;  %v9997_v31 = vld [vmem:[#allocation10 + $0x1e8] sm:$0xff] }
 0x69d   :  { %12875 = vst [vmem:[#allocation57_spill] sm:$0xff] %v9993_v58 }
 0x69e   :  { %3022 = vmatpush.msra.mxu0 %v9372_v54  ;;  %v9852_v54 = vld [vmem:[#allocation10 + $0x110] sm:$0xff]  ;;  %12877 = vst [vmem:[#allocation62_spill] sm:$0xff] %v9997_v31 }
 0x6a0   :  { %3023 = vmatpush.msra.mxu0 %v9376_v47  ;;  %v9858_v47 = vld [vmem:[#allocation10 + $0x100] sm:$0xff] }
 0x6a1   :  { %v7612_v60 = vpop.eup %7611 }
 0x6a2   :  { %v2842_v57 = vmul.f32 %v7612_v60, %v2840_v17  ;;  %3024 = vmatpush.msra.mxu0 %v9379_v45  ;;  %v9868_v45 = vld [vmem:[#allocation10 + $0xf0] sm:$0xff]  ;;  %v12876_v17 = vld [vmem:[#allocation111_spill] sm:$0xff] }
 0x6a3   :  { %v12878_v60 = vld [vmem:[#allocation112_spill] sm:$0xff] }
 0x6a4   :  { %v2850_v23 = vadd.f32 %v2848_v7, %v2842_v57  ;;  %3025 = vmatpush.msra.mxu0 %v9384_v52  ;;  %v9874_v52 = vld [vmem:[#allocation10 + $0xe0] sm:$0xff]  ;;  %v10001_v57 = vld [vmem:[#allocation10 + $0x1d8] sm:$0xff] }
 0x6a5   :  { %12879 = vst [vmem:[#allocation44_spill] sm:$0xff] %v10001_v57  ;;  %v12880_v7 = vld [vmem:[#allocation113_spill] sm:$0xff] }
 0x6a6   :  { %2853 = vst.msk [vmem:[#allocation2 + $0x8] sm:$0xc0] %vm2852_vm13, %v2850_v23  ;;  %v9838_v20 = vrot.slane %v2850_v23, 6  ;;  %3026 = vmatpush.msra.mxu0 %v9389_v55  ;;  %v9880_v55 = vld [vmem:[#allocation10 + $0xd0] sm:$0xff]  ;;  %v10005_v23 = vld [vmem:[#allocation10 + $0x1c8] sm:$0xff] }
 0x6a7   :  { %12881 = vst [vmem:[#allocation60_spill] sm:$0xff] %v10005_v23 }
 0x6a8   :  { %7317 = vmatmul.msk.f32.vlgmr.msra.gmra.mxu1 %vm570_vm2, %v9838_v20  ;;  %7318 = vmatmul.msk.f32.vlgmr.msrb.gmra.mxu2 %vm570_vm2, %v9838_v20 }
 0x6a9   :  { %7319 = vmatmul.msk.f32.vlgmr.msrb.gmra.mxu3 %vm570_vm2, %v9838_v20  ;;  %7320 = vmatmul.msk.f32.vlgmr.msrb.gmra.mxu0 %vm570_vm2, %v9838_v20 }
 0x6aa   :  { %3027 = vmatpush.msra.mxu0 %v9397_v6  ;;  %3055 = vmatpush.msra.mxu1 %v9400_v28  ;;  %v9892_v6 = vld [vmem:[#allocation10 + $0xc0] sm:$0xff]  ;;  %v9899_v28 = vld [vmem:[#allocation10 + $0xb0] sm:$0xff] }
 0x6ab   :  { %3095 = vmatpush.msrb.mxu2 %v9403_v4  ;;  %3235 = vmatpush.msrb.mxu3 %v9852_v54  ;;  %12828 = vst [vmem:[#allocation51_spill] sm:$0xff] %v9892_v6  ;;  %v9903_v4 = vld [vmem:[#allocation10 + $0x118] sm:$0xff] }
 0x6ac   :  { %3028 = vmatpush.msra.mxu0 %v9407_v62  ;;  %3056 = vmatpush.msra.mxu1 %v9410_v29  ;;  %12829 = vst [vmem:[#allocation49_spill] sm:$0xff] %v9899_v28  ;;  %v9906_v62 = vld [vmem:[#allocation10 + $0xa0] sm:$0xff]  ;;  %v9911_v29 = vld [vmem:[#allocation10 + $0x108] sm:$0xff] }
 0x6ad   :  { %3096 = vmatpush.msrb.mxu2 %v9413_v36  ;;  %3236 = vmatpush.msrb.mxu3 %v9858_v47  ;;  %12830 = vst [vmem:[#allocation53_spill] sm:$0xff] %v9906_v62  ;;  %v9914_v36 = vld [vmem:[#allocation10 + $0x90] sm:$0xff] }
 0x6ae   :  { %3029 = vmatpush.msra.mxu0 %v9417_v43  ;;  %12831 = vst [vmem:[#allocation55_spill] sm:$0xff] %v9914_v36  ;;  %v12832_v43 = vld [vmem:[#allocation36_spill] sm:$0xff] }
 0x6b0   :  { %3030 = vmatpush.msra.mxu0 %v9420_v5  ;;  %2917 = vmatmul.f32.vlgmr.msrb.gmra.mxu1 %v9826_v32  ;;  %v9920_v5 = vld [vmem:[#allocation10 + $0x80] sm:$0xff] }
 0x6b1   :  { %2957 = vmatmul.f32.vlgmr.msra.gmra.mxu2 %v9826_v32  ;;  %2997 = vmatmul.f32.vlgmr.msra.gmra.mxu3 %v9826_v32  ;;  %12833 = vst [vmem:[#allocation45_spill] sm:$0xff] %v9920_v5 }
 0x6b2   :  { %3061 = vmatpush.msrb.mxu1 %v9426_v10  ;;  %3031 = vmatpush.msra.mxu0 %v12748_v11  ;;  %v12834_v10 = vld [vmem:[#allocation38_spill] sm:$0xff]  ;;  %v12844_v11 = vld [vmem:[#allocation92_spill] sm:$0xff] }
 0x6b3   :  { %3201 = vmatpush.msra.mxu2 %v9868_v45  ;;  %3241 = vmatpush.msra.mxu3 %v9433_v21  ;;  %v12835_v21 = vld [vmem:[#allocation40_spill] sm:$0xff] }
 0x6b4   :  { %3062 = vmatpush.msrb.mxu1 %v9436_v1  ;;  %3032 = vmatpush.msra.mxu0 %v12751_v51  ;;  %v12836_v1 = vld [vmem:[#allocation86_spill] sm:$0xff] }
 0x6b5   :  { %3202 = vmatpush.msra.mxu2 %v9874_v52  ;;  %3242 = vmatpush.msra.mxu3 %v9443_v39  ;;  %v12838_v39 = vld [vmem:[#allocation87_spill] sm:$0xff]  ;;  %v12847_v51 = vld [vmem:[#allocation94_spill] sm:$0xff] }
 0x6b6   :  { %3063 = vmatpush.msrb.mxu1 %v12747_v27  ;;  %3033 = vmatpush.msra.mxu0 %v12752_v49  ;;  %v12843_v27 = vld [vmem:[#allocation91_spill] sm:$0xff] }
 0x6b7   :  { %3203 = vmatpush.msra.mxu2 %v9880_v55  ;;  %3243 = vmatpush.msra.mxu3 %v12749_v33  ;;  %v9938_v33 = vld [vmem:[#allocation10 + $0x50] sm:$0xff]  ;;  %v12848_v49 = vld [vmem:[#allocation95_spill] sm:$0xff] }
 0x6b8   :  { %3064 = vmatpush.msrb.mxu1 %v12750_v30  ;;  %3034 = vmatpush.msra.mxu0 %v12754_v56  ;;  %12845 = vst [vmem:[#allocation56_spill] sm:$0xff] %v9938_v33  ;;  %v12846_v30 = vld [vmem:[#allocation93_spill] sm:$0xff]  ;;  %v12850_v56 = vld [vmem:[#allocation96_spill] sm:$0xff] }
 0x6b9   :  { %7321 = vmatmul.msk.f32.vlgmr.msra.gmra.mxu1 %vm570_vm2, %v9838_v20  ;;  %7322 = vmatmul.msk.f32.vlgmr.msrb.gmra.mxu2 %vm570_vm2, %v9838_v20 }
 0x6ba   :  { %3065 = vmatpush.msrb.mxu1 %v9464_v37  ;;  %3035 = vmatpush.msra.mxu0 %v12757_v42  ;;  %v12839_v37 = vld [vmem:[#allocation88_spill] sm:$0xff]  ;;  %v12852_v42 = vld [vmem:[#allocation98_spill] sm:$0xff] }
 0x6bb   :  { %3204 = vmatpush.msra.mxu2 %v9892_v6  ;;  %3244 = vmatpush.msra.mxu3 %v9471_v24  ;;  %v9932_v24 = vld [vmem:[#allocation10 + $0x60] sm:$0xff] }
 0x6bc   :  { %3066 = vmatpush.msrb.mxu1 %v12753_v22  ;;  %3036 = vmatpush.msra.mxu0 %v12759_v9  ;;  %12841 = vst [vmem:[#allocation61_spill] sm:$0xff] %v9932_v24  ;;  %v9944_v22 = vld [vmem:[#allocation10 + $0x40] sm:$0xff]  ;;  %v9950_v9 = vld [vmem:[#allocation10 + $0x30] sm:$0xff] }
 0x6bd   :  { %3037 = vmatmul.f32.vlgmr.msra.gmra.mxu0 %v9826_v32  ;;  %3205 = vmatpush.msra.mxu2 %v9899_v28  ;;  %12849 = vst [vmem:[#allocation30_spill] sm:$0xff] %v9944_v22 }
 0x6be   :  { %3067 = vmatpush.msrb.mxu1 %v12755_v63  ;;  %3275 = vmatpush.msrb.mxu0 %v9903_v4  ;;  %v12851_v63 = vld [vmem:[#allocation97_spill] sm:$0xff]  ;;  %12853 = vst [vmem:[#allocation50_spill] sm:$0xff] %v9950_v9 }
 0x6bf   :  { %3206 = vmatpush.msra.mxu2 %v9906_v62  ;;  %3245 = vmatpush.msra.mxu3 %v9487_v59  ;;  %v12840_v59 = vld [vmem:[#allocation89_spill] sm:$0xff] }
 0x6c0   :  { %3068 = vmatpush.msrb.mxu1 %v9490_v50  ;;  %3276 = vmatpush.msrb.mxu0 %v9911_v29  ;;  %v9926_v50 = vld [vmem:[#allocation10 + $0x70] sm:$0xff] }
 0x6c1   :  { %3207 = vmatpush.msra.mxu2 %v9914_v36  ;;  %3246 = vmatpush.msra.mxu3 %v12832_v43  ;;  %12837 = vst [vmem:[#allocation46_spill] sm:$0xff] %v9926_v50  ;;  %v12882_v43 = vld [vmem:[#allocation114_spill] sm:$0xff] }
 0x6c2   :  { %3281 = vmatpush.msra.mxu0 %v12767_v48  ;;  %3069 = vmatpush.msrb.mxu1 %v12760_v25  ;;  %v12854_v25 = vld [vmem:[#allocation99_spill] sm:$0xff]  ;;  %v12855_v48 = vld [vmem:[#allocation100_spill] sm:$0xff] }
 0x6c3   :  { %3208 = vmatpush.msra.mxu2 %v9920_v5  ;;  %3247 = vmatpush.msra.mxu3 %v12836_v1  ;;  %v10013_v1 = vld [vmem:[#allocation10 + $0x1a8] sm:$0xff] }
 0x6c4   :  { %3282 = vmatpush.msra.mxu0 %v12834_v10  ;;  %3070 = vmatpush.msrb.mxu1 %v12835_v21  ;;  %v10009_v10 = vld [vmem:[#allocation10 + $0x1b8] sm:$0xff]  ;;  %v12884_v21 = vld [vmem:[#allocation115_spill] sm:$0xff]  ;;  %12885 = vst [vmem:[#allocation23_spill] sm:$0xff] %v10013_v1 }
 0x6c5   :  { %3209 = vmatpush.msra.mxu2 %v9926_v50  ;;  %3248 = vmatpush.msra.mxu3 %v12840_v59  ;;  %12883 = vst [vmem:[#allocation22_spill] sm:$0xff] %v10009_v10  ;;  %v12888_v59 = vld [vmem:[#allocation117_spill] sm:$0xff] }
 0x6c6   :  { %3283 = vmatpush.msra.mxu0 %v12838_v39  ;;  %3071 = vmatpush.msrb.mxu1 %v12839_v37  ;;  %v10016_v39 = vld [vmem:[#allocation10 + $0x198] sm:$0xff]  ;;  %v12887_v37 = vld [vmem:[#allocation116_spill] sm:$0xff] }
 0x6c7   :  { %3210 = vmatpush.msra.mxu2 %v9932_v24  ;;  %3249 = vmatpush.msra.mxu3 %v12844_v11  ;;  %12886 = vst [vmem:[#allocation24_spill] sm:$0xff] %v10016_v39  ;;  %v12891_v11 = vld [vmem:[#allocation120_spill] sm:$0xff] }
 0x6c8   :  { %3284 = vmatpush.msra.mxu0 %v12842_v40  ;;  %3072 = vmatpush.msrb.mxu1 %v12843_v27  ;;  %v12889_v40 = vld [vmem:[#allocation118_spill] sm:$0xff]  ;;  %v12890_v27 = vld [vmem:[#allocation119_spill] sm:$0xff] }
 0x6c9   :  { %3211 = vmatpush.msra.mxu2 %v9938_v33  ;;  %3250 = vmatpush.msra.mxu3 %v12848_v49  ;;  %v12894_v49 = vld [vmem:[#allocation72_spill] sm:$0xff] }
 0x6ca   :  { %3285 = vmatpush.msra.mxu0 %v12846_v30  ;;  %3073 = vmatpush.msrb.mxu1 %v12847_v51  ;;  %v12892_v30 = vld [vmem:[#allocation121_spill] sm:$0xff]  ;;  %v12893_v51 = vld [vmem:[#allocation122_spill] sm:$0xff] }
 0x6cb   :  { %3212 = vmatpush.msra.mxu2 %v9944_v22  ;;  %3251 = vmatpush.msra.mxu3 %v12852_v42 }
 0x6cc   :  { %3286 = vmatpush.msra.mxu0 %v12850_v56  ;;  %3074 = vmatpush.msrb.mxu1 %v12851_v63  ;;  %v12895_v56 = vperm.slane %v12894_v49, 0  ;;  %v12896_v63 = vld [vmem:[#allocation67_spill] sm:$0xff] }
 0x6cd   :  { %3213 = vmatpush.msra.mxu2 %v9950_v9  ;;  %3252 = vmatpush.msra.mxu3 %v12856_v26  ;;  %v12897_v26 = vld [vmem:[#allocation64_spill] sm:$0xff] }
 0x6ce   :  { %3287 = vmatpush.msra.mxu0 %v12854_v25  ;;  %3075 = vmatpush.msrb.mxu1 %v12855_v48  ;;  %v959_v42 = vadd.f32 %v12896_v63, %v12895_v56 }
 0x6cf   :  { %3214 = vmatpush.msra.mxu2 %v9956_v2  ;;  %3253 = vmatpush.msra.mxu3 %v12860_v18 }
 0x6d0   :  { %3288 = vmatpush.msra.mxu0 %v12858_v12  ;;  %3076 = vmatpush.msrb.mxu1 %v12859_v53  ;;  %v10030_v12 = vadd.f32 %v12897_v26, %v959_v42 }
 0x6d1   :  { %3077 = vmatmul.f32.vlgmr.msrb.gmra.mxu1 %v9826_v32  ;;  %3215 = vmatpush.msra.mxu2 %v9963_v16 }
 0x6d2   :  { %3315 = vmatpush.msra.mxu1 %v9966_v15  ;;  %3289 = vmatpush.msra.mxu0 %v12863_v44  ;;  %12898 = vst [vmem:[#allocation25_spill] sm:$0xff] %v10030_v12  ;;  %v12899_v44 = vperm.slane %v12894_v49, 1  ;;  %v12907_v49 = vld [vmem:[#allocation71_spill] sm:$0xff] }
 0x6d3   :  { %3216 = vmatpush.msra.mxu2 %v9970_v14  ;;  %3254 = vmatpush.msra.mxu3 %v12865_v34  ;;  %v12900_v34 = vld [vmem:[#allocation65_spill] sm:$0xff] }
 0x6d4   :  { %3316 = vmatpush.msra.mxu1 %v9974_v41  ;;  %3290 = vmatpush.msra.mxu0 %v12869_v46  ;;  %v1005_v46 = vadd.f32 %v12900_v34, %v12899_v44 }
 0x6d5   :  { %3355 = vmatpush.msrb.mxu2 %v9977_v61  ;;  %3255 = vmatpush.msra.mxu3 %v12871_v38 }
 0x6d6   :  { %3321 = vmatpush.msrb.mxu1 %v9980_v13  ;;  %3291 = vmatpush.msra.mxu0 %v12873_v35 }
 0x6d7   :  { %3356 = vmatpush.msrb.mxu2 %v9984_v8  ;;  %3256 = vmatpush.msra.mxu3 %v12874_v0 }
 0x6d8   :  { %3322 = vmatpush.msrb.mxu1 %v9988_v3  ;;  %3292 = vmatpush.msra.mxu0 %v12876_v17 }
 0x6da   :  { %3323 = vmatpush.msrb.mxu1 %v9993_v58  ;;  %3293 = vmatpush.msra.mxu0 %v12878_v60  ;;  %v12901_v60 = vld [vmem:[#allocation66_spill] sm:$0xff] }
 0x6dc   :  { %3324 = vmatpush.msrb.mxu1 %v9997_v31  ;;  %3294 = vmatpush.msra.mxu0 %v12880_v7  ;;  %v10037_v7 = vadd.f32 %v12901_v60, %v1005_v46 }
 0x6de   :  { %3325 = vmatpush.msrb.mxu1 %v10001_v57  ;;  %3295 = vmatpush.msra.mxu0 %v12882_v43  ;;  %12902 = vst [vmem:[#allocation26_spill] sm:$0xff] %v10037_v7 }
 0x6e0   :  { %3326 = vmatpush.msrb.mxu1 %v10005_v23  ;;  %3296 = vmatpush.msra.mxu0 %v12884_v21  ;;  %v12903_v21 = vld [vmem:[#allocation77_spill] sm:$0xff] }
 0x6e2   :  { %3327 = vmatpush.msrb.mxu1 %v10009_v10 }
 0x6e4   :  { %3328 = vmatpush.msrb.mxu1 %v10013_v1 }
 0x6e6   :  { %3329 = vmatpush.msrb.mxu1 %v10016_v39 }
 0x6e8   :  { %3330 = vmatpush.msrb.mxu1 %v12887_v37  ;;  %v12904_v37 = vperm.slane %v12903_v21, 0 }
 0x6ea   :  { %3331 = vmatpush.msrb.mxu1 %v12888_v59  ;;  %v12905_v59 = vld [vmem:[#allocation68_spill] sm:$0xff] }
 0x6ec   :  { %3332 = vmatpush.msrb.mxu1 %v12889_v40  ;;  %v1095_v40 = vadd.f32 %v12905_v59, %v12904_v37 }
 0x6ee   :  { %3333 = vmatpush.msrb.mxu1 %v12890_v27 }
 0x6f0   :  { %3334 = vmatpush.msrb.mxu1 %v12891_v11 }
 0x6f2   :  { %3335 = vmatpush.msrb.mxu1 %v12892_v30 }
 0x6f4   :  { %3336 = vmatpush.msrb.mxu1 %v12893_v51  ;;  %v12906_v51 = vperm.slane %v12903_v21, 1 }
 0x6f6   :  { %v1141_v56 = vadd.f32 %v12907_v49, %v12906_v51 }
 0x718   :  { %v2878_v25 = vpop.f32.mrf.mxu0 }
 0x725   :  { %v2898_v48 = vpop.f32.mrf.mxu1 }
 0x726   :  { %v2899_v53 = vadd.f32 %v2898_v48, %v2878_v25  ;;  %v3018_v42 = vpop.f32.mrf.mxu0  ;;  %v12908_v25 = vld [vmem:[#allocation70_spill] sm:$0xff] }
 0x727   :  { %v10047_v48 = vadd.f32 %v12908_v25, %v1095_v40 }
 0x728   :  { %v3101_v18 = vadd.f32 %v2899_v53, %v10030_v12 }
 0x729   :  { %12909 = vst [vmem:[#allocation27_spill] sm:$0xff] %v10047_v48 }
 0x72a   :  { %v7323_v38 = vmul.f32 -1.442695, %v3101_v18  ;;  %v12910_v18 = vld [vmem:[#allocation75_spill] sm:$0xff] }
 0x72b   :  { %v2938_v35 = vpop.f32.mrf.mxu2  ;;  %v10050_v44 = vadd.f32 %v12910_v18, %v1141_v56 }
 0x72c   :  { %7613 = vpow2.f32 %v7323_v38  ;;  %v2978_v0 = vpop.f32.mrf.mxu3 }
 0x72d   :  { %v2918_v17 = vpop.f32.mrf.mxu1  ;;  %12911 = vst [vmem:[#allocation29_spill] sm:$0xff] %v10050_v44 }
 0x72e   :  { %v2939_v43 = vadd.f32 %v2938_v35, %v2918_v17 }
 0x730   :  { %v3102_v27 = vadd.f32 %v2939_v43, %v10037_v7 }
 0x732   :  { %v7614_v11 = vpop.eup %7613  ;;  %v7324_v30 = vmul.f32 -1.442695, %v3102_v27 }
 0x733   :  { %v3109_v63 = vadd.f32 1.0, %v7614_v11 }
 0x734   :  { %7615 = vpow2.f32 %v7324_v30  ;;  %v2958_v26 = vpop.f32.mrf.mxu2  ;;  %v2998_v53 = vpop.f32.mrf.mxu3 }
 0x735   :  { %7617 = vrcp.f32 %v3109_v63  ;;  %v2979_v34 = vadd.f32 %v2978_v0, %v2958_v26  ;;  %v3019_v46 = vadd.f32 %v3018_v42, %v2998_v53  ;;  %v3120_v30 = vand.u32 2147483647, %v3109_v63  ;;  %v12912_v42 = vld [vmem:[#allocation83_spill] sm:$0xff] }
 0x736   :  { %v3122_v51 = vand.u32 2147483648, %v3109_v63  ;;  %vm3116_vm15 = vweird.f32 %v3109_v63 }
 0x737   :  { %v3141_v38 = vadd.f32 %v2979_v34, %v10047_v48  ;;  %v3142_v35 = vadd.f32 %v3019_v46, %v10050_v44  ;;  %v3058_v34 = vpop.f32.mrf.mxu1  ;;  %vm3121_vm5 = vcmp.eq.f32.partialorder %v3120_v30, 8.507059e+37 }
 0x738   :  { %v3123_v46 = vor.u32 1.1754944e-38, %v3122_v51 }
 0x739   :  { %v7325_v17 = vmul.f32 -1.442695, %v3141_v38  ;;  %v7326_v60 = vmul.f32 -1.442695, %v3142_v35 }
 0x73a   :  { %v7616_v43 = vpop.eup %7615  ;;  %v3038_v27 = vpop.f32.mrf.mxu0 }
 0x73b   :  { %v7618_v21 = vpop.eup %7617  ;;  %v10054_v37 = vadd.f32 1.0, %v7616_v43  ;;  %7619 = vpow2.f32 %v7325_v17  ;;  %v3039_v25 = vadd.f32 %v3038_v27, %v12912_v42  ;;  %v12913_v43 = vld [vmem:[#allocation82_spill] sm:$0xff]  ;;  %v12916_v42 = vld [vmem:[#allocation73_spill] sm:$0xff] }
 0x73c   :  { %7621 = vpow2.f32 %v7326_v60  ;;  %v3112_v59 = vmul.f32 %v7618_v21, %v3109_v63  ;;  %vm3117_vm14 = vweird.f32 %v7618_v21  ;;  %v12918_v51 = vperm.slane %v12913_v43, 1 }
 0x73d   :  { %7623 = vrcp.f32 %v10054_v37  ;;  %vm3118_vm3 = vmor %vm3116_vm15, %vm3117_vm14  ;;  %v3059_v38 = vadd.f32 %v3058_v34, %v3039_v25  ;;  %v12919_v25 = vld [vmem:[#allocation80_spill] sm:$0xff]  ;;  %vm3131_vm8 = vweird.f32 %v10054_v37 }
 0x73e   :  { %v3113_v40 = vsub.f32 1.0, %v3112_v59  ;;  %v12914_v59 = vperm.slane %v12913_v43, 0 }
 0x740   :  { %v3114_v11 = vmul.f32 %v7618_v21, %v3113_v40  ;;  %v12915_v40 = vld [vmem:[#allocation69_spill] sm:$0xff] }
 0x741   :  { %v7620_v0 = vpop.eup %7619  ;;  %v1231_v27 = vadd.f32 %v12915_v40, %v12914_v59 }
 0x742   :  { %v7622_v49 = vpop.eup %7621  ;;  %v3149_v56 = vadd.f32 1.0, %v7620_v0  ;;  %v3115_v26 = vadd.f32 %v7618_v21, %v3114_v11 }
 0x743   :  { %v7624_v53 = vpop.eup %7623  ;;  %v10058_v18 = vadd.f32 1.0, %v7622_v49  ;;  %v10066_v63 = vadd.f32 %v12916_v42, %v1231_v27  ;;  %v3135_v42 = vand.u32 2147483647, %v10054_v37 }
 0x744   :  { %7625 = vrcp.f32 %v3149_v56  ;;  %v3119_v35 = vsel %vm3118_vm3, %v7618_v21, %v3115_v26  ;;  %v3127_v17 = vmul.f32 %v7624_v53, %v10054_v37  ;;  %v1277_v21 = vadd.f32 %v12919_v25, %v12918_v51 }
 0x745   :  { %7627 = vrcp.f32 %v10058_v18  ;;  %v3124_v60 = vsel %vm3121_vm5, %v3123_v46, %v3119_v35  ;;  %12917 = vst [vmem:[#allocation31_spill] sm:$0xff] %v10066_v63  ;;  %vm3132_vm7 = vweird.f32 %v7624_v53  ;;  %vm3156_vm12 = vweird.f32 %v3149_v56 }
 0x746   :  { %v3181_v11 = vmul.f32 %v3124_v60, %v3059_v38  ;;  %v3128_v0 = vsub.f32 1.0, %v3127_v17  ;;  %v3137_v38 = vand.u32 2147483648, %v10054_v37  ;;  %v3160_v17 = vand.u32 2147483647, %v3149_v56  ;;  %vm10076_vm9 = vmor %vm3131_vm8, %vm3132_vm7  ;;  %v3098_v37 = vpop.f32.mrf.mxu2 }
 0x747   :  { %v3162_v60 = vand.u32 2147483648, %v3149_v56  ;;  %vm3136_vm14 = vcmp.eq.f32.partialorder %v3135_v42, 8.507059e+37  ;;  %vm3171_vm7 = vweird.f32 %v10058_v18 }
 0x748   :  { %v3129_v7 = vmul.f32 %v7624_v53, %v3128_v0  ;;  %v3183_v34 = vadd.f32 %v3181_v11, %v10066_v63  ;;  %v12922_v0 = vld [vmem:[#allocation76_spill] sm:$0xff]  ;;  %vm3161_vm5 = vcmp.eq.f32.partialorder %v3160_v17, 8.507059e+37 }
 0x749   :  { %v10084_v51 = vadd.f32 %v12922_v0, %v1277_v21  ;;  %v3163_v48 = vor.u32 1.1754944e-38, %v3162_v60  ;;  %v3175_v21 = vand.u32 2147483647, %v10058_v18  ;;  %v10120_v0 = vld [vmem:[#allocation10 + $0x350] sm:$0xff] }
 0x74a   :  { %v7626_v49 = vpop.eup %7625  ;;  %v3130_v46 = vadd.f32 %v7624_v53, %v3129_v7  ;;  %7629 = vtanh.f32 %v3183_v34 }
 0x74b   :  { %v7628_v44 = vpop.eup %7627  ;;  %v3152_v30 = vmul.f32 %v7626_v49, %v3149_v56  ;;  %vm3157_vm10 = vweird.f32 %v7626_v49 }
 0x74c   :  { %v3167_v26 = vmul.f32 %v7628_v44, %v10058_v18  ;;  %v3134_v7 = vsel %vm10076_vm9, %v7624_v53, %v3130_v46  ;;  %vm3158_vm15 = vmor %vm3156_vm12, %vm3157_vm10  ;;  %vm3172_vm3 = vweird.f32 %v7628_v44  ;;  %vm3176_vm9 = vcmp.eq.f32.partialorder %v3175_v21, 8.507059e+37  ;;  %v10153_v21 = vld [vmem:[#allocation10 + $0x2b0] sm:$0xff] }
 0x74d   :  { %v3153_v35 = vsub.f32 1.0, %v3152_v30  ;;  %v3138_v30 = vor.u32 1.1754944e-38, %v3137_v38  ;;  %vm3173_vm8 = vmor %vm3171_vm7, %vm3172_vm3 }
 0x74e   :  { %v3168_v59 = vsub.f32 1.0, %v3167_v26  ;;  %v3078_v43 = vpop.f32.mrf.mxu1 }
 0x74f   :  { %v3154_v27 = vmul.f32 %v7626_v49, %v3153_v35  ;;  %v3079_v11 = vadd.f32 %v3078_v43, %v12827_v19  ;;  %v3139_v12 = vsel %vm3136_vm14, %v3138_v30, %v3134_v7  ;;  %v3177_v43 = vand.u32 2147483648, %v10058_v18  ;;  %v10095_v18 = vld [vmem:[#allocation10 + $0x330] sm:$0xff]  ;;  %v10129_v30 = vld [vmem:[#allocation10 + $0x340] sm:$0xff] }
 0x750   :  { %v3169_v25 = vmul.f32 %v7628_v44, %v3168_v59  ;;  %v7630_v42 = vpop.eup %7629  ;;  %v10104_v7 = vld [vmem:[#allocation10 + $0x310] sm:$0xff] }
 0x751   :  { %v3155_v26 = vadd.f32 %v7626_v49, %v3154_v27  ;;  %v3099_v63 = vadd.f32 %v3098_v37, %v3079_v11  ;;  %v3178_v60 = vor.u32 1.1754944e-38, %v3177_v43  ;;  %v10099_v11 = vld [vmem:[#allocation10 + $0x320] sm:$0xff]  ;;  %v10126_v37 = vld [vmem:[#allocation10 + $0x358] sm:$0xff]  ;;  %v10140_v43 = vld [vmem:[#allocation10 + $0x2d0] sm:$0xff] }
 0x752   :  { %v3170_v35 = vadd.f32 %v7628_v44, %v3169_v25  ;;  %v10123_v25 = vld [vmem:[#allocation10 + $0x2f0] sm:$0xff] }
 0x753   :  { %v3159_v53 = vsel %vm3158_vm15, %v7626_v49, %v3155_v26  ;;  %v3182_v46 = vmul.f32 %v3139_v12, %v3099_v63  ;;  %v10133_v26 = vld [vmem:[#allocation10 + $0x2e0] sm:$0xff] }
 0x754   :  { %v3164_v34 = vsel %vm3161_vm5, %v3163_v48, %v3159_v53  ;;  %v3174_v59 = vsel %vm3173_vm8, %v7628_v44, %v3170_v35  ;;  %v10136_v35 = vld [vmem:[#allocation10 + $0x348] sm:$0xff]  ;;  %v10146_v53 = vld [vmem:[#allocation10 + $0x2c0] sm:$0xff] }
 0x755   :  { %v3187_v38 = vsub.f32 1.0, %v3164_v34  ;;  %v3184_v56 = vadd.f32 %v3182_v46, %v10084_v51  ;;  %v3192_v27 = vmul.f32 %v3164_v34, %v9826_v32  ;;  %v3179_v12 = vsel %vm3176_vm9, %v3178_v60, %v3174_v59  ;;  %v10149_v46 = vld [vmem:[#allocation10 + $0x338] sm:$0xff]  ;;  %v10173_v60 = vld [vmem:[#allocation10 + $0x290] sm:$0xff] }
 0x756   :  { %v3188_v48 = vsub.f32 1.0, %v3179_v12  ;;  %v3193_v63 = vmul.f32 %v3179_v12, %v9838_v20  ;;  %v10115_v20 = vld [vmem:[#allocation10 + $0x300] sm:$0xff]  ;;  %v10156_v34 = vld [vmem:[#allocation10 + $0xf8] sm:$0xff] }
 0x757   :  { %v3189_v40 = vmul.f32 %v7630_v42, %v3187_v38  ;;  %7631 = vtanh.f32 %v3184_v56  ;;  %v10159_v38 = vld [vmem:[#allocation10 + $0x328] sm:$0xff]  ;;  %v10163_v56 = vld [vmem:[#allocation10 + $0x2a0] sm:$0xff]  ;;  %v10169_v59 = vld [vmem:[#allocation10 + $0x318] sm:$0xff] }
 0x758   :  { %v10166_v42 = vld [vmem:[#allocation10 + $0xe8] sm:$0xff]  ;;  %v10184_v12 = vld [vmem:[#allocation10 + $0x280] sm:$0xff] }
 0x759   :  { %v10091_v17 = vadd.f32 %v3192_v27, %v3189_v40  ;;  %v10176_v40 = vld [vmem:[#allocation10 + $0xd8] sm:$0xff]  ;;  %v10179_v27 = vld [vmem:[#allocation10 + $0x308] sm:$0xff] }
 0x75a   :  { %12923 = vst [vmem:[#allocation33_spill] sm:$0xff] %v10179_v27 }
 0x75b   :  { %3196 = vst [vmem:[#allocation2 + $0x10] sm:$0x3] %v10091_v17  ;;  %3217 = vmatmul.f32.vlgmr.msra.gmra.mxu2 %v10091_v17 }
 0x75c   :  { %3361 = vmatpush.msra.mxu2 %v10095_v18 }
 0x75d   :  { %v7632_v49 = vpop.eup %7631 }
 0x75e   :  { %v3190_v44 = vmul.f32 %v7632_v49, %v3188_v48  ;;  %3362 = vmatpush.msra.mxu2 %v10099_v11  ;;  %v10189_v48 = vld [vmem:[#allocation10 + $0x2f8] sm:$0xff]  ;;  %v10193_v49 = vld [vmem:[#allocation10 + $0x270] sm:$0xff] }
 0x75f   :  { %12924 = vst [vmem:[#allocation35_spill] sm:$0xff] %v10189_v48 }
 0x760   :  { %v10102_v32 = vadd.f32 %v3193_v63, %v3190_v44  ;;  %3363 = vmatpush.msra.mxu2 %v10104_v7  ;;  %v10196_v44 = vld [vmem:[#allocation10 + $0xc8] sm:$0xff] }
 0x761   :  { %12925 = vst [vmem:[#allocation37_spill] sm:$0xff] %v10196_v44  ;;  %v10199_v63 = vld [vmem:[#allocation10 + $0x2e8] sm:$0xff] }
 0x762   :  { %7327 = vmatmul.msk.f32.vlgmr.msrb.gmra.mxu3 %vm570_vm2, %v10102_v32  ;;  %7328 = vmatmul.msk.f32.vlgmr.msrb.gmra.mxu0 %vm570_vm2, %v10102_v32  ;;  %3197 = vst.msk [vmem:[#allocation2 + $0x18] sm:$0x3] %vm1757_vm6, %v10102_v32 }
 0x763   :  { %7329 = vmatmul.msk.f32.vlgmr.msra.gmra.mxu1 %vm570_vm2, %v10102_v32  ;;  %3364 = vmatpush.msra.mxu2 %v10115_v20  ;;  %12926 = vst [vmem:[#allocation39_spill] sm:$0xff] %v10199_v63 }
 0x764   :  { %7330 = vmatmul.msk.f32.vlgmr.msrb.gmra.mxu2 %vm570_vm2, %v10102_v32  ;;  %3395 = vmatpush.msrb.mxu3 %v10120_v0 }
 0x765   :  { %3365 = vmatpush.msra.mxu2 %v10123_v25  ;;  %3435 = vmatpush.msrb.mxu0 %v10126_v37 }
 0x766   :  { %3396 = vmatpush.msrb.mxu3 %v10129_v30  ;;  %3601 = vmatpush.msra.mxu1 %v9852_v54 }
 0x767   :  { %3366 = vmatpush.msra.mxu2 %v10133_v26  ;;  %3436 = vmatpush.msrb.mxu0 %v10136_v35 }
 0x768   :  { %3602 = vmatpush.msra.mxu1 %v9858_v47 }
 0x769   :  { %3367 = vmatpush.msra.mxu2 %v10140_v43 }
 0x76a   :  { %3257 = vmatmul.f32.vlgmr.msra.gmra.mxu3 %v10091_v17  ;;  %3297 = vmatmul.f32.vlgmr.msra.gmra.mxu0 %v10091_v17 }
 0x76b   :  { %3337 = vmatmul.f32.vlgmr.msrb.gmra.mxu1 %v10091_v17  ;;  %3368 = vmatpush.msra.mxu2 %v10146_v53 }
 0x76c   :  { %3401 = vmatpush.msra.mxu3 %v10149_v46  ;;  %3567 = vmatpush.msra.mxu0 %v9868_v45 }
 0x76d   :  { %3369 = vmatpush.msra.mxu2 %v10153_v21  ;;  %3607 = vmatpush.msrb.mxu1 %v10156_v34 }
 0x76e   :  { %3402 = vmatpush.msra.mxu3 %v10159_v38  ;;  %3568 = vmatpush.msra.mxu0 %v9874_v52 }
 0x76f   :  { %3370 = vmatpush.msra.mxu2 %v10163_v56  ;;  %3608 = vmatpush.msrb.mxu1 %v10166_v42 }
 0x770   :  { %3403 = vmatpush.msra.mxu3 %v10169_v59  ;;  %3569 = vmatpush.msra.mxu0 %v9880_v55 }
 0x771   :  { %3371 = vmatpush.msra.mxu2 %v10173_v60  ;;  %3609 = vmatpush.msrb.mxu1 %v10176_v40 }
 0x772   :  { %3404 = vmatpush.msra.mxu3 %v10179_v27  ;;  %7332 = vmatmul.msk.f32.vlgmr.msrb.gmra.mxu0 %vm570_vm2, %v10102_v32  ;;  %v10203_v27 = vld [vmem:[#allocation10 + $0x260] sm:$0xff] }
 0x773   :  { %3372 = vmatpush.msra.mxu2 %v10184_v12  ;;  %7331 = vmatmul.msk.f32.vlgmr.msrb.gmra.mxu3 %vm570_vm2, %v10102_v32 }
 0x774   :  { %3405 = vmatpush.msra.mxu3 %v10189_v48  ;;  %3570 = vmatpush.msra.mxu0 %v9892_v6  ;;  %v10206_v48 = vld [vmem:[#allocation10 + $0xb8] sm:$0xff] }
 0x775   :  { %3373 = vmatpush.msra.mxu2 %v10193_v49  ;;  %3610 = vmatpush.msrb.mxu1 %v10196_v44  ;;  %12927 = vst [vmem:[#allocation63_spill] sm:$0xff] %v10206_v48  ;;  %v10209_v6 = vld [vmem:[#allocation10 + $0x2d8] sm:$0xff]  ;;  %v10213_v44 = vld [vmem:[#allocation10 + $0x250] sm:$0xff] }
 0x776   :  { %3406 = vmatpush.msra.mxu3 %v10199_v63  ;;  %3571 = vmatpush.msra.mxu0 %v9899_v28  ;;  %12928 = vst [vmem:[#allocation41_spill] sm:$0xff] %v10209_v6  ;;  %v10216_v63 = vld [vmem:[#allocation10 + $0xa8] sm:$0xff] }
 0x777   :  { %3374 = vmatpush.msra.mxu2 %v10203_v27  ;;  %3611 = vmatpush.msrb.mxu1 %v10206_v48  ;;  %12929 = vst [vmem:[#allocation47_spill] sm:$0xff] %v10216_v63  ;;  %v10219_v28 = vld [vmem:[#allocation10 + $0x2c8] sm:$0xff]  ;;  %v10223_v48 = vld [vmem:[#allocation10 + $0x240] sm:$0xff] }
 0x778   :  { %3407 = vmatpush.msra.mxu3 %v10209_v6  ;;  %3572 = vmatpush.msra.mxu0 %v9906_v62  ;;  %v10226_v6 = vld [vmem:[#allocation10 + $0x98] sm:$0xff] }
 0x779   :  { %3375 = vmatpush.msra.mxu2 %v10213_v44  ;;  %3612 = vmatpush.msrb.mxu1 %v10216_v63  ;;  %12930 = vst [vmem:[#allocation43_spill] sm:$0xff] %v10226_v6  ;;  %v10229_v62 = vld [vmem:[#allocation10 + $0x2b8] sm:$0xff]  ;;  %v10235_v63 = vld [vmem:[#allocation10 + $0x2a8] sm:$0xff] }
 0x77a   :  { %3408 = vmatpush.msra.mxu3 %v10219_v28  ;;  %3573 = vmatpush.msra.mxu0 %v9914_v36  ;;  %12931 = vst [vmem:[#allocation74_spill] sm:$0xff] %v10229_v62  ;;  %v10238_v36 = vld [vmem:[#allocation10 + $0x88] sm:$0xff] }
 0x77b   :  { %3376 = vmatpush.msra.mxu2 %v10223_v48  ;;  %3613 = vmatpush.msrb.mxu1 %v10226_v6  ;;  %12932 = vst [vmem:[#allocation81_spill] sm:$0xff] %v10235_v63  ;;  %v10243_v6 = vld [vmem:[#allocation10 + $0x298] sm:$0xff] }
 0x77c   :  { %3409 = vmatpush.msra.mxu3 %v10229_v62  ;;  %3377 = vmatmul.f32.vlgmr.msra.gmra.mxu2 %v10091_v17  ;;  %12933 = vst [vmem:[#allocation79_spill] sm:$0xff] %v10238_v36  ;;  %v10246_v62 = vld [vmem:[#allocation10 + $0x210] sm:$0xff] }
 0x77d   :  { %3574 = vmatpush.msra.mxu0 %v9920_v5  ;;  %3641 = vmatpush.msrb.mxu2 %v9903_v4  ;;  %12934 = vst [vmem:[#allocation78_spill] sm:$0xff] %v10243_v6  ;;  %v10250_v5 = vld [vmem:[#allocation10 + $0x78] sm:$0xff] }
 0x77e   :  { %3410 = vmatpush.msra.mxu3 %v10235_v63  ;;  %3614 = vmatpush.msrb.mxu1 %v10238_v36  ;;  %12935 = vst [vmem:[#allocation84_spill] sm:$0xff] %v10250_v5  ;;  %v10253_v63 = vld [vmem:[#allocation10 + $0x288] sm:$0xff]  ;;  %v10256_v36 = vld [vmem:[#allocation10 + $0x200] sm:$0xff] }
 0x77f   :  { %3575 = vmatpush.msra.mxu0 %v9926_v50  ;;  %3642 = vmatpush.msrb.mxu2 %v9911_v29  ;;  %12936 = vst [vmem:[#allocation36_spill] sm:$0xff] %v10253_v63  ;;  %v10263_v50 = vld [vmem:[#allocation10 + $0x278] sm:$0xff] }
 0x780   :  { %3411 = vmatpush.msra.mxu3 %v10243_v6  ;;  %3615 = vmatpush.msrb.mxu1 %v10250_v5  ;;  %12937 = vst [vmem:[#allocation38_spill] sm:$0xff] %v10256_v36  ;;  %v10260_v6 = vld [vmem:[#allocation10 + $0x68] sm:$0xff]  ;;  %v10270_v5 = vld [vmem:[#allocation10 + $0x58] sm:$0xff] }
 0x781   :  { %3647 = vmatpush.msra.mxu2 %v10246_v62  ;;  %3576 = vmatpush.msra.mxu0 %v9932_v24  ;;  %12938 = vst [vmem:[#allocation40_spill] sm:$0xff] %v10260_v6  ;;  %v10266_v24 = vld [vmem:[#allocation10 + $0x1f0] sm:$0xff] }
 0x782   :  { %3412 = vmatpush.msra.mxu3 %v10253_v63  ;;  %3616 = vmatpush.msrb.mxu1 %v10260_v6  ;;  %12939 = vst [vmem:[#allocation86_spill] sm:$0xff] %v10263_v50  ;;  %v10273_v63 = vld [vmem:[#allocation10 + $0x268] sm:$0xff] }
 0x783   :  { %3648 = vmatpush.msra.mxu2 %v10256_v36  ;;  %3577 = vmatpush.msra.mxu0 %v9938_v33  ;;  %12940 = vst [vmem:[#allocation87_spill] sm:$0xff] %v10266_v24  ;;  %v10276_v33 = vld [vmem:[#allocation10 + $0x1e0] sm:$0xff]  ;;  %v10280_v6 = vld [vmem:[#allocation10 + $0x48] sm:$0xff] }
 0x784   :  { %3413 = vmatpush.msra.mxu3 %v10263_v50  ;;  %12941 = vst [vmem:[#allocation88_spill] sm:$0xff] %v10270_v5  ;;  %3617 = vmatpush.msrb.mxu1 %v10270_v5  ;;  %v10283_v50 = vld [vmem:[#allocation10 + $0x258] sm:$0xff] }
 0x785   :  { %3649 = vmatpush.msra.mxu2 %v10266_v24  ;;  %3578 = vmatpush.msra.mxu0 %v9944_v22  ;;  %12942 = vst [vmem:[#allocation89_spill] sm:$0xff] %v10273_v63  ;;  %v10286_v22 = vld [vmem:[#allocation10 + $0x1d0] sm:$0xff]  ;;  %v10290_v5 = vld [vmem:[#allocation10 + $0x38] sm:$0xff] }
 0x786   :  { %3414 = vmatpush.msra.mxu3 %v10273_v63  ;;  %12943 = vst [vmem:[#allocation90_spill] sm:$0xff] %v10276_v33  ;;  %3618 = vmatpush.msrb.mxu1 %v10280_v6  ;;  %v10293_v63 = vld [vmem:[#allocation10 + $0x248] sm:$0xff] }
 0x787   :  { %3650 = vmatpush.msra.mxu2 %v10276_v33  ;;  %3579 = vmatpush.msra.mxu0 %v9950_v9  ;;  %12944 = vst [vmem:[#allocation91_spill] sm:$0xff] %v10280_v6  ;;  %v10296_v9 = vld [vmem:[#allocation10 + $0x1c0] sm:$0xff]  ;;  %v10302_v6 = vld [vmem:[#allocation10 + $0x1b0] sm:$0xff] }
 0x788   :  { %12945 = vst [vmem:[#allocation92_spill] sm:$0xff] %v10283_v50  ;;  %3415 = vmatpush.msra.mxu3 %v10283_v50  ;;  %3619 = vmatpush.msrb.mxu1 %v10290_v5 }
 0x789   :  { %12946 = vst [vmem:[#allocation93_spill] sm:$0xff] %v10286_v22  ;;  %3651 = vmatpush.msra.mxu2 %v10286_v22  ;;  %3580 = vmatpush.msra.mxu0 %v9956_v2  ;;  %v12971_v2 = vld [vmem:[#allocation27_spill] sm:$0xff] }
 0x78a   :  { %12947 = vst [vmem:[#allocation94_spill] sm:$0xff] %v10290_v5  ;;  %3416 = vmatpush.msra.mxu3 %v10293_v63  ;;  %v10306_v5 = vld [vmem:[#allocation10 + $0x28] sm:$0xff] }
 0x78b   :  { %12948 = vst [vmem:[#allocation95_spill] sm:$0xff] %v10293_v63  ;;  %3652 = vmatpush.msra.mxu2 %v10296_v9  ;;  %3417 = vmatmul.f32.vlgmr.msra.gmra.mxu3 %v10091_v17  ;;  %v10312_v63 = vld [vmem:[#allocation10 + $0x1a0] sm:$0xff] }
 0x78c   :  { %12949 = vst [vmem:[#allocation96_spill] sm:$0xff] %v10296_v9  ;;  %3581 = vmatpush.msra.mxu0 %v9963_v16  ;;  %3681 = vmatpush.msrb.mxu3 %v9966_v15  ;;  %v10316_v15 = vld [vmem:[#allocation10 + $0x18] sm:$0xff] }
 0x78d   :  { %12950 = vst [vmem:[#allocation97_spill] sm:$0xff] %v10302_v6  ;;  %3653 = vmatpush.msra.mxu2 %v10302_v6  ;;  %3620 = vmatpush.msrb.mxu1 %v10306_v5  ;;  %v12972_v6 = vld [vmem:[#allocation29_spill] sm:$0xff] }
 0x78e   :  { %3582 = vmatpush.msra.mxu0 %v9970_v14  ;;  %12951 = vst [vmem:[#allocation98_spill] sm:$0xff] %v10306_v5  ;;  %3682 = vmatpush.msrb.mxu3 %v9974_v41  ;;  %v10320_v14 = vld [vmem:[#allocation10 + $0x190] sm:$0xff]  ;;  %v10323_v41 = vld [vmem:[#allocation10 + $0x8] sm:$0xff] }
 0x78f   :  { %12952 = vst [vmem:[#allocation99_spill] sm:$0xff] %v10312_v63  ;;  %3654 = vmatpush.msra.mxu2 %v10312_v63  ;;  %3621 = vmatpush.msrb.mxu1 %v10316_v15 }
 0x790   :  { %3721 = vmatpush.msrb.mxu0 %v9977_v61  ;;  %3687 = vmatpush.msra.mxu3 %v9980_v13  ;;  %12953 = vst [vmem:[#allocation100_spill] sm:$0xff] %v10316_v15  ;;  %v10327_v13 = vld [vmem:[#allocation10 + $0x180] sm:$0xff] }
 0x791   :  { %12954 = vst [vmem:[#allocation101_spill] sm:$0xff] %v10320_v14  ;;  %3655 = vmatpush.msra.mxu2 %v10320_v14  ;;  %3622 = vmatpush.msrb.mxu1 %v10323_v41 }
 0x792   :  { %3722 = vmatpush.msrb.mxu0 %v9984_v8  ;;  %3688 = vmatpush.msra.mxu3 %v9988_v3  ;;  %12955 = vst [vmem:[#allocation102_spill] sm:$0xff] %v10323_v41  ;;  %v10331_v8 = vld [vmem:[#allocation10 + $0x170] sm:$0xff]  ;;  %v10335_v3 = vld [vmem:[#allocation10 + $0x160] sm:$0xff] }
 0x793   :  { %12956 = vst [vmem:[#allocation103_spill] sm:$0xff] %v10327_v13  ;;  %3656 = vmatpush.msra.mxu2 %v10327_v13  ;;  %v10339_v41 = vld [vmem:[#allocation10 + $0x150] sm:$0xff] }
 0x794   :  { %3689 = vmatpush.msra.mxu3 %v9993_v58  ;;  %12957 = vst [vmem:[#allocation104_spill] sm:$0xff] %v10331_v8  ;;  %v10343_v58 = vld [vmem:[#allocation10 + $0x140] sm:$0xff] }
 0x795   :  { %3657 = vmatpush.msra.mxu2 %v10331_v8  ;;  %12958 = vst [vmem:[#allocation105_spill] sm:$0xff] %v10335_v3 }
 0x796   :  { %3690 = vmatpush.msra.mxu3 %v9997_v31  ;;  %12959 = vst [vmem:[#allocation106_spill] sm:$0xff] %v10339_v41  ;;  %v10347_v31 = vld [vmem:[#allocation10 + $0x130] sm:$0xff] }
 0x797   :  { %3658 = vmatpush.msra.mxu2 %v10335_v3  ;;  %12960 = vst [vmem:[#allocation107_spill] sm:$0xff] %v10343_v58 }
 0x798   :  { %3691 = vmatpush.msra.mxu3 %v10001_v57  ;;  %12961 = vst [vmem:[#allocation108_spill] sm:$0xff] %v10347_v31  ;;  %v10351_v57 = vld [vmem:[#allocation10 + $0x120] sm:$0xff] }
 0x799   :  { %3659 = vmatpush.msra.mxu2 %v10339_v41  ;;  %12962 = vst [vmem:[#allocation109_spill] sm:$0xff] %v10351_v57 }
 0x79a   :  { %3692 = vmatpush.msra.mxu3 %v10005_v23  ;;  %v10354_v23 = vld [vmem:[#allocation10 + $0x188] sm:$0xff] }
 0x79b   :  { %3660 = vmatpush.msra.mxu2 %v10343_v58  ;;  %12963 = vst [vmem:[#allocation110_spill] sm:$0xff] %v10354_v23  ;;  %v10360_v58 = vld [vmem:[#allocation10 + $0x168] sm:$0xff] }
 0x79c   :  { %3693 = vmatpush.msra.mxu3 %v10009_v10  ;;  %v10357_v10 = vld [vmem:[#allocation10 + $0x178] sm:$0xff]  ;;  %12965 = vst [vmem:[#allocation112_spill] sm:$0xff] %v10360_v58 }
 0x79d   :  { %3661 = vmatpush.msra.mxu2 %v10347_v31  ;;  %12964 = vst [vmem:[#allocation111_spill] sm:$0xff] %v10357_v10 }
 0x79e   :  { %3694 = vmatpush.msra.mxu3 %v10013_v1  ;;  %v10363_v1 = vld [vmem:[#allocation10 + $0x158] sm:$0xff] }
 0x79f   :  { %3662 = vmatpush.msra.mxu2 %v10351_v57  ;;  %12966 = vst [vmem:[#allocation113_spill] sm:$0xff] %v10363_v1  ;;  %v10369_v57 = vld [vmem:[#allocation10 + $0x138] sm:$0xff] }
 0x7a0   :  { %3695 = vmatpush.msra.mxu3 %v10016_v39  ;;  %v10366_v39 = vld [vmem:[#allocation10 + $0x148] sm:$0xff]  ;;  %12968 = vst [vmem:[#allocation115_spill] sm:$0xff] %v10369_v57 }
 0x7a1   :  { %12967 = vst [vmem:[#allocation114_spill] sm:$0xff] %v10366_v39 }
 0x7a2   :  { %3696 = vmatpush.msra.mxu3 %v10354_v23  ;;  %v10372_v23 = vld [vmem:[#allocation10 + $0x128] sm:$0xff] }
 0x7a3   :  { %12969 = vst [vmem:[#allocation116_spill] sm:$0xff] %v10372_v23 }
 0x7a4   :  { %3697 = vmatpush.msra.mxu3 %v10357_v10 }
 0x7a6   :  { %3698 = vmatpush.msra.mxu3 %v10360_v58 }
 0x7a8   :  { %3699 = vmatpush.msra.mxu3 %v10363_v1 }
 0x7aa   :  { %3700 = vmatpush.msra.mxu3 %v10366_v39  ;;  %v12970_v39 = vld [vmem:[#allocation25_spill] sm:$0xff] }
 0x7ac   :  { %3701 = vmatpush.msra.mxu3 %v10369_v57 }
 0x7ae   :  { %3702 = vmatpush.msra.mxu3 %v10372_v23 }
 0x7de   :  { %v3218_v10 = vpop.f32.mrf.mxu2 }
 0x7df   :  { %v3278_v31 = vpop.f32.mrf.mxu0 }
 0x7e0   :  { %v3318_v41 = vpop.f32.mrf.mxu1 }
 0x7e5   :  { %v3238_v58 = vpop.f32.mrf.mxu3 }
 0x7e6   :  { %v3239_v3 = vadd.f32 %v3238_v58, %v3218_v10 }
 0x7e7   :  { %v3298_v8 = vpop.f32.mrf.mxu0  ;;  %v3358_v15 = vpop.f32.mrf.mxu2 }
 0x7e8   :  { %v3443_v1 = vrot.slane %v3239_v3, 6  ;;  %v3319_v13 = vadd.f32 %v3318_v41, %v3298_v8  ;;  %v3338_v61 = vpop.f32.mrf.mxu1  ;;  %v12973_v41 = vld [vmem:[#allocation26_spill] sm:$0xff] }
 0x7e9   :  { %v3359_v5 = vadd.f32 %v3358_v15, %v3338_v61 }
 0x7ea   :  { %v3447_v14 = vadd.f32 %v3443_v1, %v12970_v39  ;;  %v3489_v16 = vrot.slane %v3319_v13, 6  ;;  %v12974_v1 = vld [vmem:[#allocation83_spill] sm:$0xff] }
 0x7eb   :  { %v3490_v63 = vrot.slane %v3359_v5, 6 }
 0x7ec   :  { %v7333_v57 = vmul.f32 -1.442695, %v3447_v14  ;;  %v3493_v50 = vadd.f32 %v3489_v16, %v12971_v2 }
 0x7ed   :  { %v3494_v23 = vadd.f32 %v3490_v63, %v12972_v6  ;;  %v3258_v9 = vpop.f32.mrf.mxu3 }
 0x7ee   :  { %7633 = vpow2.f32 %v7333_v57  ;;  %v7335_v22 = vmul.f32 -1.442695, %v3493_v50  ;;  %v3279_v33 = vadd.f32 %v3278_v31, %v3258_v9 }
 0x7ef   :  { %v7336_v58 = vmul.f32 -1.442695, %v3494_v23 }
 0x7f0   :  { %7635 = vpow2.f32 %v7335_v22  ;;  %v3444_v10 = vrot.slane %v3279_v33, 6 }
 0x7f1   :  { %7637 = vpow2.f32 %v7336_v58 }
 0x7f2   :  { %v3448_v8 = vadd.f32 %v3444_v10, %v12973_v41 }
 0x7f4   :  { %v7634_v15 = vpop.eup %7633  ;;  %v7334_v61 = vmul.f32 -1.442695, %v3448_v8 }
 0x7f5   :  { %v3455_v3 = vadd.f32 1.0, %v7634_v15 }
 0x7f6   :  { %v7636_v13 = vpop.eup %7635  ;;  %7639 = vpow2.f32 %v7334_v61  ;;  %v3398_v10 = vpop.f32.mrf.mxu3 }
 0x7f7   :  { %v7638_v5 = vpop.eup %7637  ;;  %7641 = vrcp.f32 %v3455_v3  ;;  %v3501_v16 = vadd.f32 1.0, %v7636_v13  ;;  %v3466_v8 = vand.u32 2147483647, %v3455_v3  ;;  %v3468_v15 = vand.u32 2147483648, %v3455_v3 }
 0x7f8   :  { %v10379_v14 = vadd.f32 1.0, %v7638_v5  ;;  %vm3462_vm10 = vweird.f32 %v3455_v3 }
 0x7f9   :  { %7643 = vrcp.f32 %v3501_v16  ;;  %v3469_v39 = vor.u32 1.1754944e-38, %v3468_v15  ;;  %vm3467_vm14 = vcmp.eq.f32.partialorder %v3466_v8, 8.507059e+37  ;;  %vm3508_vm3 = vweird.f32 %v3501_v16 }
 0x7fa   :  { %7645 = vrcp.f32 %v10379_v14 }
 0x7fc   :  { %v7640_v57 = vpop.eup %7639 }
 0x7fd   :  { %v7642_v50 = vpop.eup %7641  ;;  %v10381_v9 = vadd.f32 1.0, %v7640_v57 }
 0x7fe   :  { %v3458_v33 = vmul.f32 %v7642_v50, %v3455_v3  ;;  %vm3463_vm6 = vweird.f32 %v7642_v50  ;;  %v12975_v3 = vld [vmem:[#allocation31_spill] sm:$0xff] }
 0x7ff   :  { %v7644_v22 = vpop.eup %7643  ;;  %7647 = vrcp.f32 %v10381_v9  ;;  %v3378_v31 = vpop.f32.mrf.mxu2  ;;  %vm3464_vm12 = vmor %vm3462_vm10, %vm3463_vm6  ;;  %vm3477_vm9 = vweird.f32 %v10381_v9 }
 0x800   :  { %v3504_v23 = vmul.f32 %v7644_v22, %v3501_v16  ;;  %v3379_v63 = vadd.f32 %v3378_v31, %v12974_v1  ;;  %v3459_v58 = vsub.f32 1.0, %v3458_v33  ;;  %v10386_v57 = vpop.eup %7645  ;;  %vm3509_vm15 = vweird.f32 %v7644_v22 }
 0x801   :  { %vm3510_vm5 = vmor %vm3508_vm3, %vm3509_vm15 }
 0x802   :  { %v3505_v61 = vsub.f32 1.0, %v3504_v23  ;;  %v3399_v13 = vadd.f32 %v3398_v10, %v3379_v63  ;;  %v3460_v5 = vmul.f32 %v7642_v50, %v3459_v58  ;;  %v3514_v23 = vand.u32 2147483648, %v3501_v16 }
 0x803   :  { %v3519_v63 = vmul.f32 %v10386_v57, %v10379_v14 }
 0x804   :  { %v3506_v6 = vmul.f32 %v7644_v22, %v3505_v61  ;;  %v3461_v2 = vadd.f32 %v7642_v50, %v3460_v5  ;;  %v3535_v36 = vrot.slane %v3399_v13, 6  ;;  %v3512_v61 = vand.u32 2147483647, %v3501_v16 }
 0x805   :  { %v7648_v41 = vpop.eup %7647  ;;  %v3520_v8 = vsub.f32 1.0, %v3519_v63  ;;  %v3483_v13 = vand.u32 2147483648, %v10381_v9  ;;  %v3481_v16 = vand.u32 2147483647, %v10381_v9 }
 0x806   :  { %v3465_v24 = vsel %vm3464_vm12, %v7642_v50, %v3461_v2  ;;  %v3473_v33 = vmul.f32 %v7648_v41, %v10381_v9  ;;  %v3507_v31 = vadd.f32 %v7644_v22, %v3506_v6  ;;  %v3515_v50 = vor.u32 1.1754944e-38, %v3514_v23 }
 0x807   :  { %v3470_v1 = vsel %vm3467_vm14, %v3469_v39, %v3465_v24  ;;  %vm3513_vm7 = vcmp.eq.f32.partialorder %v3512_v61, 8.507059e+37  ;;  %vm3478_vm8 = vweird.f32 %v7648_v41  ;;  %vm3482_vm10 = vcmp.eq.f32.partialorder %v3481_v16, 8.507059e+37 }
 0x808   :  { %v3539_v58 = vmul.f32 %v3535_v36, %v3470_v1  ;;  %v3474_v10 = vsub.f32 1.0, %v3473_v33  ;;  %v3511_v2 = vsel %vm3510_vm5, %v7644_v22, %v3507_v31  ;;  %v3521_v1 = vmul.f32 %v10386_v57, %v3520_v8  ;;  %v3438_v33 = vpop.f32.mrf.mxu0  ;;  %vm3479_vm6 = vmor %vm3477_vm9, %vm3478_vm8 }
 0x809   :  { %v3516_v24 = vsel %vm3513_vm7, %v3515_v50, %v3511_v2  ;;  %v3550_v31 = vrot.slane %v10091_v17, 6  ;;  %vm3524_vm12 = vweird.f32 %v10386_v57  ;;  %v3529_v50 = vand.u32 2147483648, %v10379_v14 }
 0x80a   :  { %v3541_v5 = vadd.f32 %v3539_v58, %v12975_v3  ;;  %v3475_v15 = vmul.f32 %v7648_v41, %v3474_v10  ;;  %v3545_v22 = vsub.f32 1.0, %v3516_v24  ;;  %v3484_v10 = vor.u32 1.1754944e-38, %v3483_v13 }
 0x80b   :  { %v3522_v2 = vadd.f32 %v10386_v57, %v3521_v1  ;;  %vm3523_vm14 = vweird.f32 %v10379_v14  ;;  %v3527_v17 = vand.u32 2147483647, %v10379_v14  ;;  %v3530_v13 = vor.u32 1.1754944e-38, %v3529_v50  ;;  %v12997_v50 = vld [vmem:[#allocation90_spill] sm:$0xff] }
 0x80c   :  { %7649 = vtanh.f32 %v3541_v5  ;;  %v3476_v6 = vadd.f32 %v7648_v41, %v3475_v15  ;;  %v3554_v5 = vmul.f32 %v3550_v31, %v3516_v24  ;;  %vm3525_vm15 = vmor %vm3523_vm14, %vm3524_vm12  ;;  %v3551_v16 = vrot.slane %v10102_v32, 6  ;;  %v12980_v32 = vld [vmem:[#allocation39_spill] sm:$0xff] }
 0x80d   :  { %v3526_v24 = vsel %vm3525_vm15, %v10386_v57, %v3522_v2  ;;  %vm3528_vm3 = vcmp.eq.f32.partialorder %v3527_v17, 8.507059e+37  ;;  %v12993_v2 = vld [vmem:[#allocation87_spill] sm:$0xff]  ;;  %v12999_v17 = vld [vmem:[#allocation84_spill] sm:$0xff] }
 0x80e   :  { %v3418_v39 = vpop.f32.mrf.mxu3  ;;  %v3480_v63 = vsel %vm3479_vm6, %v7648_v41, %v3476_v6 }
 0x80f   :  { %v3419_v36 = vadd.f32 %v3418_v39, %v12827_v19  ;;  %v3485_v9 = vsel %vm3482_vm10, %v3484_v10, %v3480_v63  ;;  %v12986_v63 = vld [vmem:[#allocation74_spill] sm:$0xff]  ;;  %v12988_v10 = vld [vmem:[#allocation45_spill] sm:$0xff] }
 0x811   :  { %v3439_v23 = vadd.f32 %v3438_v33, %v3419_v36  ;;  %v3531_v36 = vsel %vm3528_vm3, %v3530_v13, %v3526_v24  ;;  %v13001_v24 = vld [vmem:[#allocation93_spill] sm:$0xff]  ;;  %v13002_v13 = vld [vmem:[#allocation86_spill] sm:$0xff] }
 0x812   :  { %v7650_v58 = vpop.eup %7649  ;;  %v3546_v14 = vsub.f32 1.0, %v3531_v36 }
 0x813   :  { %v3547_v61 = vmul.f32 %v7650_v58, %v3545_v22  ;;  %v3536_v15 = vrot.slane %v3439_v23, 6  ;;  %v3555_v22 = vmul.f32 %v3551_v16, %v3531_v36  ;;  %v12985_v23 = vld [vmem:[#allocation55_spill] sm:$0xff]  ;;  %v13003_v36 = vld [vmem:[#allocation40_spill] sm:$0xff] }
 0x814   :  { %v12987_v58 = vld [vmem:[#allocation47_spill] sm:$0xff]  ;;  %v13005_v16 = vld [vmem:[#allocation96_spill] sm:$0xff] }
 0x815   :  { %v10401_v8 = vadd.f32 %v3554_v5, %v3547_v61  ;;  %v3540_v39 = vmul.f32 %v3536_v15, %v3485_v9  ;;  %v12989_v61 = vld [vmem:[#allocation38_spill] sm:$0xff]  ;;  %v12991_v5 = vld [vmem:[#allocation43_spill] sm:$0xff] }
 0x816   :  { %v12992_v15 = vld [vmem:[#allocation46_spill] sm:$0xff]  ;;  %v12995_v9 = vld [vmem:[#allocation79_spill] sm:$0xff] }
 0x817   :  { %3558 = vst [vmem:[#allocation2 + $0x10] sm:$0xc] %v10401_v8  ;;  %v3542_v41 = vadd.f32 %v3540_v39, %v10084_v51  ;;  %v10408_v6 = vrot.slane %v10401_v8, 2  ;;  %v12998_v39 = vld [vmem:[#allocation36_spill] sm:$0xff] }
 0x819   :  { %7651 = vtanh.f32 %v3542_v41  ;;  %3583 = vmatmul.f32.vlgmr.msra.gmra.mxu0 %v10408_v6  ;;  %v13000_v41 = vld [vmem:[#allocation56_spill] sm:$0xff] }
 0x81a   :  { %3727 = vmatpush.msra.mxu0 %v10095_v18 }
 0x81c   :  { %3728 = vmatpush.msra.mxu0 %v10099_v11 }
 0x81e   :  { %3729 = vmatpush.msra.mxu0 %v10104_v7 }
 0x81f   :  { %v7652_v1 = vpop.eup %7651 }
 0x820   :  { %v3548_v33 = vmul.f32 %v7652_v1, %v3546_v14  ;;  %3730 = vmatpush.msra.mxu0 %v10115_v20  ;;  %v13004_v14 = vld [vmem:[#allocation30_spill] sm:$0xff]  ;;  %v13006_v1 = vld [vmem:[#allocation89_spill] sm:$0xff] }
 0x822   :  { %v10417_v57 = vadd.f32 %v3555_v22, %v3548_v33  ;;  %3731 = vmatpush.msra.mxu0 %v10123_v25  ;;  %v13007_v33 = vld [vmem:[#allocation88_spill] sm:$0xff]  ;;  %v13008_v22 = vld [vmem:[#allocation50_spill] sm:$0xff] }
 0x824   :  { %3559 = vst.msk [vmem:[#allocation2 + $0x18] sm:$0xc] %vm2120_vm11, %v10417_v57  ;;  %3732 = vmatpush.msra.mxu0 %v10133_v26  ;;  %v3563_v31 = vrot.slane %v10417_v57, 2 }
 0x826   :  { %7337 = vmatmul.msk.f32.vlgmr.msra.gmra.mxu1 %vm570_vm2, %v3563_v31  ;;  %7338 = vmatmul.msk.f32.vlgmr.msrb.gmra.mxu2 %vm570_vm2, %v3563_v31 }
 0x827   :  { %7339 = vmatmul.msk.f32.vlgmr.msrb.gmra.mxu3 %vm570_vm2, %v3563_v31  ;;  %7340 = vmatmul.msk.f32.vlgmr.msrb.gmra.mxu0 %vm570_vm2, %v3563_v31 }
 0x828   :  { %3733 = vmatpush.msra.mxu0 %v10140_v43  ;;  %3761 = vmatpush.msra.mxu1 %v10120_v0 }
 0x829   :  { %3801 = vmatpush.msrb.mxu2 %v10126_v37  ;;  %3966 = vmatpush.msrb.mxu3 %v9852_v54  ;;  %v12976_v54 = vld [vmem:[#allocation33_spill] sm:$0xff] }
 0x82a   :  { %3734 = vmatpush.msra.mxu0 %v10146_v53  ;;  %3762 = vmatpush.msra.mxu1 %v10129_v30 }
 0x82b   :  { %3802 = vmatpush.msrb.mxu2 %v10136_v35  ;;  %3967 = vmatpush.msrb.mxu3 %v9858_v47  ;;  %v12977_v47 = vld [vmem:[#allocation35_spill] sm:$0xff] }
 0x82c   :  { %3735 = vmatpush.msra.mxu0 %v10153_v21 }
 0x82e   :  { %3736 = vmatpush.msra.mxu0 %v10163_v56  ;;  %3623 = vmatmul.f32.vlgmr.msrb.gmra.mxu1 %v10408_v6 }
 0x82f   :  { %3663 = vmatmul.f32.vlgmr.msra.gmra.mxu2 %v10408_v6  ;;  %3703 = vmatmul.f32.vlgmr.msra.gmra.mxu3 %v10408_v6 }
 0x830   :  { %3767 = vmatpush.msrb.mxu1 %v10149_v46  ;;  %3737 = vmatpush.msra.mxu0 %v10173_v60 }
 0x831   :  { %3932 = vmatpush.msra.mxu2 %v9868_v45  ;;  %3972 = vmatpush.msra.mxu3 %v10156_v34  ;;  %v12978_v45 = vld [vmem:[#allocation51_spill] sm:$0xff]  ;;  %v12982_v34 = vld [vmem:[#allocation41_spill] sm:$0xff] }
 0x832   :  { %3768 = vmatpush.msrb.mxu1 %v10159_v38  ;;  %3738 = vmatpush.msra.mxu0 %v10184_v12 }
 0x833   :  { %3933 = vmatpush.msra.mxu2 %v9874_v52  ;;  %3973 = vmatpush.msra.mxu3 %v10166_v42  ;;  %v12979_v52 = vld [vmem:[#allocation37_spill] sm:$0xff] }
 0x834   :  { %3769 = vmatpush.msrb.mxu1 %v10169_v59  ;;  %3739 = vmatpush.msra.mxu0 %v10193_v49  ;;  %v12983_v42 = vld [vmem:[#allocation53_spill] sm:$0xff] }
 0x835   :  { %3934 = vmatpush.msra.mxu2 %v9880_v55  ;;  %3974 = vmatpush.msra.mxu3 %v10176_v40  ;;  %v12981_v55 = vld [vmem:[#allocation49_spill] sm:$0xff]  ;;  %v12984_v40 = vld [vmem:[#allocation63_spill] sm:$0xff] }
 0x836   :  { %3770 = vmatpush.msrb.mxu1 %v12976_v54  ;;  %3740 = vmatpush.msra.mxu0 %v10203_v27 }
 0x837   :  { %7341 = vmatmul.msk.f32.vlgmr.msra.gmra.mxu1 %vm570_vm2, %v3563_v31  ;;  %7342 = vmatmul.msk.f32.vlgmr.msrb.gmra.mxu2 %vm570_vm2, %v3563_v31  ;;  %v13009_v31 = vld [vmem:[#allocation97_spill] sm:$0xff] }
 0x838   :  { %3771 = vmatpush.msrb.mxu1 %v12977_v47  ;;  %3741 = vmatpush.msra.mxu0 %v10213_v44 }
 0x839   :  { %3935 = vmatpush.msra.mxu2 %v12978_v45  ;;  %3975 = vmatpush.msra.mxu3 %v12979_v52  ;;  %v13010_v45 = vld [vmem:[#allocation92_spill] sm:$0xff]  ;;  %v13011_v52 = vld [vmem:[#allocation91_spill] sm:$0xff] }
 0x83a   :  { %3772 = vmatpush.msrb.mxu1 %v12980_v32  ;;  %3742 = vmatpush.msra.mxu0 %v10223_v48 }
 0x83b   :  { %3743 = vmatmul.f32.vlgmr.msra.gmra.mxu0 %v10408_v6  ;;  %3936 = vmatpush.msra.mxu2 %v12981_v55  ;;  %v13012_v55 = vld [vmem:[#allocation59_spill] sm:$0xff] }
 0x83c   :  { %3773 = vmatpush.msrb.mxu1 %v12982_v34  ;;  %4006 = vmatpush.msrb.mxu0 %v9903_v4  ;;  %v12990_v4 = vld [vmem:[#allocation81_spill] sm:$0xff] }
 0x83d   :  { %3937 = vmatpush.msra.mxu2 %v12983_v42  ;;  %3976 = vmatpush.msra.mxu3 %v12984_v40  ;;  %v13013_v42 = vld [vmem:[#allocation99_spill] sm:$0xff] }
 0x83e   :  { %3774 = vmatpush.msrb.mxu1 %v10219_v28  ;;  %4007 = vmatpush.msrb.mxu0 %v9911_v29  ;;  %v12994_v29 = vld [vmem:[#allocation78_spill] sm:$0xff]  ;;  %v13014_v40 = vld [vmem:[#allocation95_spill] sm:$0xff] }
 0x83f   :  { %3938 = vmatpush.msra.mxu2 %v12985_v23  ;;  %3977 = vmatpush.msra.mxu3 %v12987_v58  ;;  %v13015_v23 = vld [vmem:[#allocation94_spill] sm:$0xff] }
 0x840   :  { %4012 = vmatpush.msra.mxu0 %v10246_v62  ;;  %3775 = vmatpush.msrb.mxu1 %v12986_v63  ;;  %v12996_v62 = vld [vmem:[#allocation61_spill] sm:$0xff]  ;;  %v13016_v58 = vld [vmem:[#allocation54_spill] sm:$0xff] }
 0x841   :  { %3939 = vmatpush.msra.mxu2 %v12988_v10  ;;  %3978 = vmatpush.msra.mxu3 %v12991_v5  ;;  %v13017_v10 = vld [vmem:[#allocation28_spill] sm:$0xff]  ;;  %v13019_v5 = vld [vmem:[#allocation34_spill] sm:$0xff] }
 0x842   :  { %4013 = vmatpush.msra.mxu0 %v12989_v61  ;;  %3776 = vmatpush.msrb.mxu1 %v12990_v4  ;;  %v13018_v61 = vld [vmem:[#allocation101_spill] sm:$0xff] }
 0x843   :  { %3940 = vmatpush.msra.mxu2 %v12992_v15  ;;  %3979 = vmatpush.msra.mxu3 %v12995_v9  ;;  %v13020_v15 = vld [vmem:[#allocation98_spill] sm:$0xff]  ;;  %v13022_v9 = vld [vmem:[#allocation48_spill] sm:$0xff] }
 0x844   :  { %4014 = vmatpush.msra.mxu0 %v12993_v2  ;;  %3777 = vmatpush.msrb.mxu1 %v12994_v29  ;;  %v13021_v2 = vld [vmem:[#allocation58_spill] sm:$0xff] }
 0x845   :  { %3941 = vmatpush.msra.mxu2 %v12996_v62  ;;  %3980 = vmatpush.msra.mxu3 %v12999_v17  ;;  %v13023_v62 = vld [vmem:[#allocation42_spill] sm:$0xff]  ;;  %v13025_v17 = vld [vmem:[#allocation52_spill] sm:$0xff] }
 0x846   :  { %4015 = vmatpush.msra.mxu0 %v12997_v50  ;;  %3778 = vmatpush.msrb.mxu1 %v12998_v39  ;;  %v13024_v50 = vld [vmem:[#allocation103_spill] sm:$0xff] }
 0x847   :  { %3942 = vmatpush.msra.mxu2 %v13000_v41  ;;  %3981 = vmatpush.msra.mxu3 %v13003_v36  ;;  %v13027_v41 = vld [vmem:[#allocation32_spill] sm:$0xff]  ;;  %v13029_v36 = vld [vmem:[#allocation102_spill] sm:$0xff] }
 0x848   :  { %4016 = vmatpush.msra.mxu0 %v13001_v24  ;;  %3779 = vmatpush.msrb.mxu1 %v13002_v13  ;;  %v13028_v24 = vld [vmem:[#allocation104_spill] sm:$0xff] }
 0x849   :  { %3943 = vmatpush.msra.mxu2 %v13004_v14  ;;  %3982 = vmatpush.msra.mxu3 %v13007_v33  ;;  %v13030_v14 = vld [vmem:[#allocation57_spill] sm:$0xff]  ;;  %v13032_v33 = vld [vmem:[#allocation62_spill] sm:$0xff] }
 0x84a   :  { %4017 = vmatpush.msra.mxu0 %v13005_v16  ;;  %3780 = vmatpush.msrb.mxu1 %v13006_v1  ;;  %v13031_v16 = vld [vmem:[#allocation105_spill] sm:$0xff] }
 0x84b   :  { %3944 = vmatpush.msra.mxu2 %v13008_v22  ;;  %3983 = vmatpush.msra.mxu3 %v13011_v52  ;;  %v13033_v22 = vld [vmem:[#allocation106_spill] sm:$0xff]  ;;  %v13035_v52 = vld [vmem:[#allocation107_spill] sm:$0xff] }
 0x84c   :  { %4018 = vmatpush.msra.mxu0 %v13009_v31  ;;  %3781 = vmatpush.msrb.mxu1 %v13010_v45  ;;  %v13034_v31 = vld [vmem:[#allocation44_spill] sm:$0xff] }
 0x84d   :  { %3945 = vmatpush.msra.mxu2 %v13012_v55  ;;  %3984 = vmatpush.msra.mxu3 %v13015_v23  ;;  %v13036_v55 = vld [vmem:[#allocation60_spill] sm:$0xff]  ;;  %v13038_v23 = vld [vmem:[#allocation22_spill] sm:$0xff] }
 0x84e   :  { %4019 = vmatpush.msra.mxu0 %v13013_v42  ;;  %3782 = vmatpush.msrb.mxu1 %v13014_v40  ;;  %v13037_v42 = vld [vmem:[#allocation108_spill] sm:$0xff] }
 0x84f   :  { %3783 = vmatmul.f32.vlgmr.msrb.gmra.mxu1 %v10408_v6  ;;  %3946 = vmatpush.msra.mxu2 %v13016_v58  ;;  %v13026_v6 = vld [vmem:[#allocation100_spill] sm:$0xff]  ;;  %v13039_v58 = vld [vmem:[#allocation109_spill] sm:$0xff] }
 0x850   :  { %4046 = vmatpush.msra.mxu1 %v13017_v10  ;;  %4020 = vmatpush.msra.mxu0 %v13018_v61  ;;  %v13040_v10 = vld [vmem:[#allocation23_spill] sm:$0xff]  ;;  %v13041_v61 = vld [vmem:[#allocation24_spill] sm:$0xff] }
 0x851   :  { %3947 = vmatpush.msra.mxu2 %v13019_v5  ;;  %3985 = vmatpush.msra.mxu3 %v13020_v15  ;;  %v13042_v5 = vld [vmem:[#allocation110_spill] sm:$0xff]  ;;  %v13043_v15 = vld [vmem:[#allocation111_spill] sm:$0xff] }
 0x852   :  { %4047 = vmatpush.msra.mxu1 %v13021_v2  ;;  %4021 = vmatpush.msra.mxu0 %v13024_v50  ;;  %v13044_v2 = vld [vmem:[#allocation112_spill] sm:$0xff]  ;;  %v13047_v50 = vld [vmem:[#allocation115_spill] sm:$0xff] }
 0x853   :  { %4086 = vmatpush.msrb.mxu2 %v13022_v9  ;;  %3986 = vmatpush.msra.mxu3 %v13026_v6  ;;  %v13045_v9 = vld [vmem:[#allocation113_spill] sm:$0xff] }
 0x854   :  { %4052 = vmatpush.msrb.mxu1 %v13023_v62  ;;  %4022 = vmatpush.msra.mxu0 %v13028_v24  ;;  %v13046_v62 = vld [vmem:[#allocation114_spill] sm:$0xff] }
 0x855   :  { %4087 = vmatpush.msrb.mxu2 %v13025_v17  ;;  %3987 = vmatpush.msra.mxu3 %v13029_v36  ;;  %v13048_v17 = vld [vmem:[#allocation116_spill] sm:$0xff] }
 0x856   :  { %4053 = vmatpush.msrb.mxu1 %v13027_v41  ;;  %4023 = vmatpush.msra.mxu0 %v13031_v16 }
 0x858   :  { %4054 = vmatpush.msrb.mxu1 %v13030_v14  ;;  %4024 = vmatpush.msra.mxu0 %v13033_v22  ;;  %v13049_v14 = vld [vmem:[#allocation25_spill] sm:$0xff] }
 0x85a   :  { %4055 = vmatpush.msrb.mxu1 %v13032_v33  ;;  %4025 = vmatpush.msra.mxu0 %v13035_v52 }
 0x85c   :  { %4056 = vmatpush.msrb.mxu1 %v13034_v31  ;;  %4026 = vmatpush.msra.mxu0 %v13037_v42 }
 0x85e   :  { %4057 = vmatpush.msrb.mxu1 %v13036_v55  ;;  %4027 = vmatpush.msra.mxu0 %v13039_v58 }
 0x860   :  { %4058 = vmatpush.msrb.mxu1 %v13038_v23  ;;  %v13050_v23 = vld [vmem:[#allocation26_spill] sm:$0xff] }
 0x862   :  { %4059 = vmatpush.msrb.mxu1 %v13040_v10 }
 0x864   :  { %4060 = vmatpush.msrb.mxu1 %v13041_v61 }
 0x866   :  { %4061 = vmatpush.msrb.mxu1 %v13042_v5 }
 0x868   :  { %4062 = vmatpush.msrb.mxu1 %v13043_v15 }
 0x86a   :  { %4063 = vmatpush.msrb.mxu1 %v13044_v2 }
 0x86c   :  { %4064 = vmatpush.msrb.mxu1 %v13045_v9 }
 0x86e   :  { %4065 = vmatpush.msrb.mxu1 %v13046_v62 }
 0x870   :  { %4066 = vmatpush.msrb.mxu1 %v13047_v50 }
 0x872   :  { %4067 = vmatpush.msrb.mxu1 %v13048_v17 }
 0x896   :  { %v3584_v6 = vpop.f32.mrf.mxu0 }
 0x8a3   :  { %v3604_v41 = vpop.f32.mrf.mxu1 }
 0x8a4   :  { %v3605_v24 = vadd.f32 %v3604_v41, %v3584_v6  ;;  %v3724_v10 = vpop.f32.mrf.mxu0  ;;  %v13051_v41 = vld [vmem:[#allocation27_spill] sm:$0xff] }
 0x8a6   :  { %v3809_v36 = vrot.slane %v3605_v24, 4 }
 0x8a8   :  { %v3813_v16 = vadd.f32 %v3809_v36, %v13049_v14  ;;  %v13052_v36 = vld [vmem:[#allocation29_spill] sm:$0xff] }
 0x8a9   :  { %v3644_v33 = vpop.f32.mrf.mxu2 }
 0x8aa   :  { %v7343_v22 = vmul.f32 -1.442695, %v3813_v16  ;;  %v3684_v31 = vpop.f32.mrf.mxu3 }
 0x8ab   :  { %v3624_v52 = vpop.f32.mrf.mxu1 }
 0x8ac   :  { %7653 = vpow2.f32 %v7343_v22  ;;  %v3645_v55 = vadd.f32 %v3644_v33, %v3624_v52 }
 0x8ae   :  { %v3810_v42 = vrot.slane %v3645_v55, 4 }
 0x8b0   :  { %v3814_v58 = vadd.f32 %v3810_v42, %v13050_v23 }
 0x8b2   :  { %v7654_v61 = vpop.eup %7653  ;;  %v7344_v5 = vmul.f32 -1.442695, %v3814_v58  ;;  %v3664_v15 = vpop.f32.mrf.mxu2 }
 0x8b3   :  { %v3704_v2 = vpop.f32.mrf.mxu3  ;;  %v3821_v9 = vadd.f32 1.0, %v7654_v61  ;;  %v3685_v62 = vadd.f32 %v3684_v31, %v3664_v15  ;;  %v13053_v31 = vld [vmem:[#allocation83_spill] sm:$0xff] }
 0x8b4   :  { %v3725_v50 = vadd.f32 %v3724_v10, %v3704_v2  ;;  %7655 = vpow2.f32 %v7344_v5  ;;  %v3764_v2 = vpop.f32.mrf.mxu1 }
 0x8b5   :  { %7657 = vrcp.f32 %v3821_v9  ;;  %v3855_v17 = vrot.slane %v3685_v62, 4  ;;  %v3832_v62 = vand.u32 2147483647, %v3821_v9  ;;  %vm3828_vm7 = vweird.f32 %v3821_v9 }
 0x8b6   :  { %v3856_v6 = vrot.slane %v3725_v50, 4  ;;  %v3834_v50 = vand.u32 2147483648, %v3821_v9 }
 0x8b7   :  { %v3859_v24 = vadd.f32 %v3855_v17, %v13051_v41  ;;  %vm3833_vm9 = vcmp.eq.f32.partialorder %v3832_v62, 8.507059e+37 }
 0x8b8   :  { %v3860_v16 = vadd.f32 %v3856_v6, %v13052_v36  ;;  %v3744_v58 = vpop.f32.mrf.mxu0 }
 0x8b9   :  { %v7345_v33 = vmul.f32 -1.442695, %v3859_v24  ;;  %v3745_v10 = vadd.f32 %v3744_v58, %v13053_v31 }
 0x8ba   :  { %v7346_v22 = vmul.f32 -1.442695, %v3860_v16  ;;  %v7656_v52 = vpop.eup %7655 }
 0x8bb   :  { %v7658_v55 = vpop.eup %7657  ;;  %v3822_v42 = vadd.f32 1.0, %v7656_v52  ;;  %7659 = vpow2.f32 %v7345_v33  ;;  %v3765_v24 = vadd.f32 %v3764_v2, %v3745_v10  ;;  %v3835_v33 = vor.u32 1.1754944e-38, %v3834_v50 }
 0x8bc   :  { %7661 = vpow2.f32 %v7346_v22  ;;  %v3824_v23 = vmul.f32 %v7658_v55, %v3821_v9  ;;  %vm3829_vm5 = vweird.f32 %v7658_v55 }
 0x8bd   :  { %7663 = vrcp.f32 %v3822_v42  ;;  %vm3830_vm8 = vmor %vm3828_vm7, %vm3829_vm5  ;;  %v3901_v22 = vrot.slane %v3765_v24, 4  ;;  %v3849_v45 = vand.u32 2147483648, %v3822_v42  ;;  %vm3843_vm10 = vweird.f32 %v3822_v42 }
 0x8be   :  { %v3825_v61 = vsub.f32 1.0, %v3824_v23  ;;  %v3847_v62 = vand.u32 2147483647, %v3822_v42 }
 0x8c0   :  { %v3826_v5 = vmul.f32 %v7658_v55, %v3825_v61  ;;  %vm3848_vm3 = vcmp.eq.f32.partialorder %v3847_v62, 8.507059e+37 }
 0x8c1   :  { %v7660_v15 = vpop.eup %7659 }
 0x8c2   :  { %v7662_v17 = vpop.eup %7661  ;;  %v3867_v6 = vadd.f32 1.0, %v7660_v15  ;;  %v3827_v16 = vadd.f32 %v7658_v55, %v3826_v5 }
 0x8c3   :  { %v7664_v36 = vpop.eup %7663  ;;  %v10542_v52 = vadd.f32 1.0, %v7662_v17 }
 0x8c4   :  { %7665 = vrcp.f32 %v3867_v6  ;;  %v3831_v23 = vsel %vm3830_vm8, %v7658_v55, %v3827_v16  ;;  %v3839_v58 = vmul.f32 %v7664_v36, %v3822_v42  ;;  %vm3844_vm6 = vweird.f32 %v7664_v36 }
 0x8c5   :  { %7667 = vrcp.f32 %v10542_v52  ;;  %v3836_v61 = vsel %vm3833_vm9, %v3835_v33, %v3831_v23  ;;  %v3878_v24 = vand.u32 2147483647, %v3867_v6  ;;  %v3880_v16 = vand.u32 2147483648, %v3867_v6  ;;  %v3804_v23 = vpop.f32.mrf.mxu2  ;;  %vm10548_vm12 = vmor %vm3843_vm10, %vm3844_vm6 }
 0x8c6   :  { %v3905_v31 = vmul.f32 %v3901_v22, %v3836_v61  ;;  %v3840_v41 = vsub.f32 1.0, %v3839_v58  ;;  %vm3874_vm15 = vweird.f32 %v3867_v6  ;;  %vm3889_vm9 = vweird.f32 %v10542_v52 }
 0x8c7   :  { %vm3879_vm8 = vcmp.eq.f32.partialorder %v3878_v24, 8.507059e+37 }
 0x8c8   :  { %v3841_v10 = vmul.f32 %v7664_v36, %v3840_v41  ;;  %v3907_v9 = vadd.f32 %v3905_v31, %v12975_v3 }
 0x8ca   :  { %v7666_v15 = vpop.eup %7665  ;;  %v3842_v40 = vadd.f32 %v7664_v36, %v3841_v10  ;;  %7669 = vtanh.f32 %v3907_v9  ;;  %v3850_v10 = vor.u32 1.1754944e-38, %v3849_v45 }
 0x8cb   :  { %v7668_v5 = vpop.eup %7667  ;;  %v3870_v2 = vmul.f32 %v7666_v15, %v3867_v6  ;;  %vm3875_vm14 = vweird.f32 %v7666_v15  ;;  %v3915_v6 = vrot.slane %v10401_v8, 6  ;;  %v3916_v8 = vrot.slane %v10417_v57, 6  ;;  %v10625_v57 = vld [vmem:[#allocation2] sm:$0xff] }
 0x8cc   :  { %v3885_v17 = vmul.f32 %v7668_v5, %v10542_v52  ;;  %v3784_v14 = vpop.f32.mrf.mxu1  ;;  %v3846_v31 = vsel %vm10548_vm12, %v7664_v36, %v3842_v40  ;;  %vm3876_vm5 = vmor %vm3874_vm15, %vm3875_vm14  ;;  %vm3890_vm7 = vweird.f32 %v7668_v5  ;;  %v3893_v40 = vand.u32 2147483647, %v10542_v52 }
 0x8cd   :  { %v3871_v50 = vsub.f32 1.0, %v3870_v2  ;;  %v3785_v55 = vadd.f32 %v3784_v14, %v12827_v19  ;;  %v3881_v2 = vor.u32 1.1754944e-38, %v3880_v16  ;;  %v3851_v19 = vsel %vm3848_vm3, %v3850_v10, %v3846_v31  ;;  %vm3891_vm6 = vmor %vm3889_vm9, %vm3890_vm7 }
 0x8ce   :  { %v3886_v33 = vsub.f32 1.0, %v3885_v17  ;;  %vm3894_vm10 = vcmp.eq.f32.partialorder %v3893_v40, 8.507059e+37 }
 0x8cf   :  { %v3872_v22 = vmul.f32 %v7666_v15, %v3871_v50  ;;  %v3805_v58 = vadd.f32 %v3804_v23, %v3785_v55  ;;  %v3895_v50 = vand.u32 2147483648, %v10542_v52 }
 0x8d0   :  { %v3887_v61 = vmul.f32 %v7668_v5, %v3886_v33  ;;  %v7670_v62 = vpop.eup %7669 }
 0x8d1   :  { %v3873_v14 = vadd.f32 %v7666_v15, %v3872_v22  ;;  %v3902_v42 = vrot.slane %v3805_v58, 4  ;;  %v3896_v33 = vor.u32 1.1754944e-38, %v3895_v50  ;;  %v13058_v50 = vld [vmem:[#allocation25_spill] sm:$0xff] }
 0x8d2   :  { %v3888_v17 = vadd.f32 %v7668_v5, %v3887_v61 }
 0x8d3   :  { %v3877_v3 = vsel %vm3876_vm5, %v7666_v15, %v3873_v14  ;;  %v3906_v55 = vmul.f32 %v3902_v42, %v3851_v19  ;;  %v4332_v42 = vld [vmem:[#allocation12 + $0xe8] sm:$0xff] }
 0x8d4   :  { %v3882_v36 = vsel %vm3879_vm8, %v3881_v2, %v3877_v3  ;;  %v3892_v16 = vsel %vm3891_vm6, %v7668_v5, %v3888_v17  ;;  %v4472_v2 = vld [vmem:[#allocation12 + $0x200] sm:$0xff] }
 0x8d5   :  { %v3911_v45 = vsub.f32 1.0, %v3882_v36  ;;  %v3908_v9 = vadd.f32 %v3906_v55, %v10084_v51  ;;  %v3919_v24 = vmul.f32 %v3915_v6, %v3882_v36  ;;  %v3897_v19 = vsel %vm3894_vm10, %v3896_v33, %v3892_v16  ;;  %v4330_v36 = vld [vmem:[#allocation12 + $0xd8] sm:$0xff]  ;;  %v4328_v33 = vld [vmem:[#allocation12 + $0xc8] sm:$0xff] }
 0x8d6   :  { %v3912_v52 = vsub.f32 1.0, %v3897_v19  ;;  %v3920_v22 = vmul.f32 %v3916_v8, %v3897_v19 }
 0x8d7   :  { %v3913_v23 = vmul.f32 %v7670_v62, %v3911_v45  ;;  %7671 = vtanh.f32 %v3908_v9  ;;  %v4470_v45 = vld [vmem:[#allocation12 + $0x1f0] sm:$0xff]  ;;  %v13059_v62 = vld [vmem:[#allocation27_spill] sm:$0xff] }
 0x8d9   :  { %v10559_v15 = vadd.f32 %v3919_v24, %v3913_v23  ;;  %v4468_v23 = vld [vmem:[#allocation12 + $0x1e0] sm:$0xff]  ;;  %v13060_v24 = vld [vmem:[#allocation29_spill] sm:$0xff] }
 0x8db   :  { %3923 = vst [vmem:[#allocation2 + $0x10] sm:$0x30] %v10559_v15  ;;  %v10563_v3 = vrot.slane %v10559_v15, 4 }
 0x8dd   :  { %v7672_v41 = vpop.eup %7671  ;;  %3948 = vmatmul.f32.vlgmr.msra.gmra.mxu2 %v10563_v3 }
 0x8de   :  { %v3914_v5 = vmul.f32 %v7672_v41, %v3912_v52  ;;  %4092 = vmatpush.msra.mxu2 %v10095_v18  ;;  %v4337_v18 = vld [vmem:[#allocation12 + $0x110] sm:$0xff]  ;;  %v4326_v41 = vld [vmem:[#allocation12 + $0xb8] sm:$0xff] }
 0x8e0   :  { %v10568_v58 = vadd.f32 %v3920_v22, %v3914_v5  ;;  %4093 = vmatpush.msra.mxu2 %v10099_v11  ;;  %v4335_v11 = vld [vmem:[#allocation12 + $0x100] sm:$0xff]  ;;  %v4466_v5 = vld [vmem:[#allocation12 + $0x1d0] sm:$0xff] }
 0x8e2   :  { %3924 = vst.msk [vmem:[#allocation2 + $0x18] sm:$0x30] %vm2486_vm4, %v10568_v58  ;;  %4094 = vmatpush.msra.mxu2 %v10104_v7  ;;  %v3928_v31 = vrot.slane %v10568_v58, 4  ;;  %v4333_v7 = vld [vmem:[#allocation12 + $0xf0] sm:$0xff] }
 0x8e4   :  { %7347 = vmatmul.msk.f32.vlgmr.msrb.gmra.mxu3 %vm570_vm2, %v3928_v31  ;;  %7348 = vmatmul.msk.f32.vlgmr.msrb.gmra.mxu0 %vm570_vm2, %v3928_v31 }
 0x8e5   :  { %7349 = vmatmul.msk.f32.vlgmr.msra.gmra.mxu1 %vm570_vm2, %v3928_v31  ;;  %4095 = vmatpush.msra.mxu2 %v10115_v20  ;;  %v4331_v20 = vld [vmem:[#allocation12 + $0xe0] sm:$0xff] }
 0x8e6   :  { %7350 = vmatmul.msk.f32.vlgmr.msrb.gmra.mxu2 %vm570_vm2, %v3928_v31  ;;  %4126 = vmatpush.msrb.mxu3 %v10120_v0  ;;  %v4329_v0 = vld [vmem:[#allocation12 + $0xd0] sm:$0xff] }
 0x8e7   :  { %4096 = vmatpush.msra.mxu2 %v10123_v25  ;;  %4166 = vmatpush.msrb.mxu0 %v10126_v37  ;;  %v4327_v25 = vld [vmem:[#allocation12 + $0xc0] sm:$0xff]  ;;  %v4325_v37 = vld [vmem:[#allocation12 + $0xb0] sm:$0xff] }
 0x8e8   :  { %4127 = vmatpush.msrb.mxu3 %v10129_v30  ;;  %4388 = vmatpush.msra.mxu1 %v4337_v18  ;;  %v10602_v30 = vld [vmem:[#allocation2 + $0x8] sm:$0xff] }
 0x8e9   :  { %4097 = vmatpush.msra.mxu2 %v10133_v26  ;;  %4167 = vmatpush.msrb.mxu0 %v10136_v35  ;;  %v4323_v26 = vld [vmem:[#allocation12 + $0xa0] sm:$0xff]  ;;  %v4321_v35 = vld [vmem:[#allocation12 + $0x90] sm:$0xff]  ;;  %v4324_v18 = vld [vmem:[#allocation12 + $0xa8] sm:$0xff] }
 0x8ea   :  { %4389 = vmatpush.msra.mxu1 %v4335_v11  ;;  %v4464_v11 = vld [vmem:[#allocation12 + $0x1c0] sm:$0xff] }
 0x8eb   :  { %4098 = vmatpush.msra.mxu2 %v10140_v43  ;;  %v4319_v43 = vld [vmem:[#allocation12 + $0x80] sm:$0xff] }
 0x8ec   :  { %3988 = vmatmul.f32.vlgmr.msra.gmra.mxu3 %v10563_v3  ;;  %4028 = vmatmul.f32.vlgmr.msra.gmra.mxu0 %v10563_v3 }
 0x8ed   :  { %4068 = vmatmul.f32.vlgmr.msrb.gmra.mxu1 %v10563_v3  ;;  %4099 = vmatpush.msra.mxu2 %v10146_v53  ;;  %v4317_v53 = vld [vmem:[#allocation12 + $0x70] sm:$0xff] }
 0x8ee   :  { %4132 = vmatpush.msra.mxu3 %v10149_v46  ;;  %4351 = vmatpush.msra.mxu0 %v4333_v7  ;;  %v4338_v46 = vld [vmem:[#allocation12 + $0x118] sm:$0xff] }
 0x8ef   :  { %4100 = vmatpush.msra.mxu2 %v10153_v21  ;;  %v4315_v21 = vld [vmem:[#allocation12 + $0x60] sm:$0xff] }
 0x8f0   :  { %4133 = vmatpush.msra.mxu3 %v10159_v38  ;;  %4352 = vmatpush.msra.mxu0 %v4331_v20  ;;  %v4336_v38 = vld [vmem:[#allocation12 + $0x108] sm:$0xff]  ;;  %v13061_v7 = vld [vmem:[#allocation26_spill] sm:$0xff] }
 0x8f1   :  { %4101 = vmatpush.msra.mxu2 %v10163_v56  ;;  %v4313_v56 = vld [vmem:[#allocation12 + $0x50] sm:$0xff] }
 0x8f2   :  { %4134 = vmatpush.msra.mxu3 %v10169_v59  ;;  %4353 = vmatpush.msra.mxu0 %v4329_v0  ;;  %v4309_v59 = vld [vmem:[#allocation12 + $0x30] sm:$0xff]  ;;  %v4322_v0 = vld [vmem:[#allocation12 + $0x98] sm:$0xff] }
 0x8f3   :  { %4102 = vmatpush.msra.mxu2 %v10173_v60  ;;  %v4307_v60 = vld [vmem:[#allocation12 + $0x20] sm:$0xff] }
 0x8f4   :  { %4135 = vmatpush.msra.mxu3 %v12976_v54  ;;  %4354 = vmatpush.msra.mxu0 %v4327_v25  ;;  %v4476_v54 = vld [vmem:[#allocation12 + $0x220] sm:$0xff]  ;;  %v4462_v25 = vld [vmem:[#allocation12 + $0x1b0] sm:$0xff] }
 0x8f5   :  { %4103 = vmatpush.msra.mxu2 %v10184_v12  ;;  %7351 = vmatmul.msk.f32.vlgmr.msrb.gmra.mxu3 %vm570_vm2, %v3928_v31  ;;  %v13056_v12 = vld [vmem:[#allocation92_spill] sm:$0xff] }
 0x8f6   :  { %4136 = vmatpush.msra.mxu3 %v12977_v47  ;;  %7352 = vmatmul.msk.f32.vlgmr.msrb.gmra.mxu0 %vm570_vm2, %v3928_v31 }
 0x8f7   :  { %4355 = vmatpush.msra.mxu0 %v4325_v37  ;;  %7357 = vmatmul.msk.f32.vlgmr.msra.gmra.mxu1 %vm570_vm2, %v10602_v30 }
 0x8f8   :  { %4104 = vmatpush.msra.mxu2 %v10193_v49  ;;  %4137 = vmatpush.msra.mxu3 %v12980_v32  ;;  %v4478_v49 = vld [vmem:[#allocation12 + $0x230] sm:$0xff] }
 0x8f9   :  { %4356 = vmatpush.msra.mxu0 %v4323_v26 }
 0x8fa   :  { %4105 = vmatpush.msra.mxu2 %v10203_v27  ;;  %4138 = vmatpush.msra.mxu3 %v12982_v34  ;;  %v4305_v27 = vld [vmem:[#allocation12 + $0x10] sm:$0xff] }
 0x8fb   :  { %4357 = vmatpush.msra.mxu0 %v4321_v35  ;;  %v4320_v35 = vld [vmem:[#allocation12 + $0x88] sm:$0xff] }
 0x8fc   :  { %4106 = vmatpush.msra.mxu2 %v10213_v44  ;;  %4139 = vmatpush.msra.mxu3 %v10219_v28  ;;  %v4311_v28 = vld [vmem:[#allocation12 + $0x40] sm:$0xff] }
 0x8fd   :  { %4358 = vmatpush.msra.mxu0 %v4319_v43  ;;  %v13057_v44 = vld [vmem:[#allocation95_spill] sm:$0xff] }
 0x8fe   :  { %4107 = vmatpush.msra.mxu2 %v10223_v48  ;;  %4140 = vmatpush.msra.mxu3 %v12986_v63  ;;  %v4303_v48 = vld [vmem:[#allocation12] sm:$0xff] }
 0x8ff   :  { %4359 = vmatpush.msra.mxu0 %v4317_v53  ;;  %4108 = vmatmul.f32.vlgmr.msra.gmra.mxu2 %v10563_v3  ;;  %v4460_v43 = vld [vmem:[#allocation12 + $0x1a0] sm:$0xff] }
 0x900   :  { %4141 = vmatpush.msra.mxu3 %v12990_v4  ;;  %4434 = vmatpush.msrb.mxu2 %v4338_v46  ;;  %v4475_v46 = vld [vmem:[#allocation12 + $0x218] sm:$0xff] }
 0x901   :  { %4360 = vmatpush.msra.mxu0 %v4315_v21 }
 0x902   :  { %4142 = vmatpush.msra.mxu3 %v12994_v29  ;;  %4435 = vmatpush.msrb.mxu2 %v4336_v38  ;;  %v4334_v29 = vld [vmem:[#allocation12 + $0xf8] sm:$0xff] }
 0x903   :  { %4361 = vmatpush.msra.mxu0 %v4313_v56  ;;  %4397 = vmatpush.msrb.mxu1 %v4334_v29  ;;  %v4318_v38 = vld [vmem:[#allocation12 + $0x78] sm:$0xff]  ;;  %v4458_v56 = vld [vmem:[#allocation12 + $0x190] sm:$0xff] }
 0x904   :  { %4143 = vmatpush.msra.mxu3 %v12998_v39  ;;  %v4474_v39 = vld [vmem:[#allocation12 + $0x210] sm:$0xff] }
 0x905   :  { %4362 = vmatpush.msra.mxu0 %v4311_v28  ;;  %4487 = vmatpush.msra.mxu2 %v4474_v39  ;;  %v4467_v39 = vld [vmem:[#allocation12 + $0x1d8] sm:$0xff] }
 0x906   :  { %4144 = vmatpush.msra.mxu3 %v13002_v13  ;;  %4398 = vmatpush.msrb.mxu1 %v4332_v42 }
 0x907   :  { %4363 = vmatpush.msra.mxu0 %v4309_v59  ;;  %7359 = vmatmul.msk.f32.vlgmr.msrb.gmra.mxu2 %vm570_vm2, %v10602_v30 }
 0x908   :  { %4145 = vmatpush.msra.mxu3 %v13006_v1  ;;  %4488 = vmatpush.msra.mxu2 %v4472_v2 }
 0x909   :  { %4364 = vmatpush.msra.mxu0 %v4307_v60  ;;  %4399 = vmatpush.msrb.mxu1 %v4330_v36  ;;  %v4473_v60 = vld [vmem:[#allocation12 + $0x208] sm:$0xff] }
 0x90a   :  { %4146 = vmatpush.msra.mxu3 %v13056_v12  ;;  %4489 = vmatpush.msra.mxu2 %v4470_v45  ;;  %v4456_v12 = vld [vmem:[#allocation12 + $0x180] sm:$0xff] }
 0x90b   :  { %4365 = vmatpush.msra.mxu0 %v4305_v27  ;;  %4400 = vmatpush.msrb.mxu1 %v4328_v33  ;;  %v4316_v27 = vld [vmem:[#allocation12 + $0x68] sm:$0xff] }
 0x90c   :  { %4147 = vmatpush.msra.mxu3 %v13057_v44  ;;  %4490 = vmatpush.msra.mxu2 %v4468_v23  ;;  %v4314_v44 = vld [vmem:[#allocation12 + $0x58] sm:$0xff] }
 0x90d   :  { %4366 = vmatpush.msra.mxu0 %v4303_v48  ;;  %4148 = vmatmul.f32.vlgmr.msra.gmra.mxu3 %v10563_v3  ;;  %v4471_v48 = vld [vmem:[#allocation12 + $0x1f8] sm:$0xff] }
 0x90e   :  { %4367 = vmatmul.f32.vlgmr.msra.gmra.mxu0 %v10625_v57  ;;  %4524 = vmatpush.msrb.mxu3 %v4478_v49  ;;  %v4306_v23 = vld [vmem:[#allocation12 + $0x18] sm:$0xff] }
 0x90f   :  { %4401 = vmatpush.msrb.mxu1 %v4326_v41  ;;  %4491 = vmatpush.msra.mxu2 %v4466_v5  ;;  %v4304_v5 = vld [vmem:[#allocation12 + $0x8] sm:$0xff] }
 0x910   :  { %4525 = vmatpush.msrb.mxu3 %v4476_v54  ;;  %v4454_v54 = vld [vmem:[#allocation12 + $0x170] sm:$0xff] }
 0x911   :  { %4402 = vmatpush.msrb.mxu1 %v4324_v18  ;;  %4492 = vmatpush.msra.mxu2 %v4464_v11  ;;  %v4445_v18 = vld [vmem:[#allocation12 + $0x128] sm:$0xff] }
 0x912   :  { %4533 = vmatpush.msra.mxu3 %v4475_v46 }
 0x913   :  { %4403 = vmatpush.msrb.mxu1 %v4322_v0  ;;  %4493 = vmatpush.msra.mxu2 %v4462_v25 }
 0x914   :  { %4534 = vmatpush.msra.mxu3 %v4473_v60 }
 0x915   :  { %7362 = vmatmul.msk.f32.vlgmr.msrb.gmra.mxu3 %vm570_vm2, %v10602_v30  ;;  %4404 = vmatpush.msrb.mxu1 %v4320_v35  ;;  %v4479_v35 = vld [vmem:[#allocation12 + $0x238] sm:$0xff] }
 0x916   :  { %4494 = vmatpush.msra.mxu2 %v4460_v43  ;;  %4535 = vmatpush.msra.mxu3 %v4471_v48  ;;  %v4457_v43 = vld [vmem:[#allocation12 + $0x188] sm:$0xff]  ;;  %v4455_v48 = vld [vmem:[#allocation12 + $0x178] sm:$0xff] }
 0x917   :  { %4405 = vmatpush.msrb.mxu1 %v4318_v38  ;;  %4570 = vmatpush.msrb.mxu0 %v4479_v35  ;;  %v4609_v38 = vld [vmem:[#allocation12 + $0x328] sm:$0xff] }
 0x918   :  { %4495 = vmatpush.msra.mxu2 %v4458_v56 }
 0x919   :  { %4406 = vmatpush.msrb.mxu1 %v4316_v27 }
 0x91a   :  { %4496 = vmatpush.msra.mxu2 %v4456_v12  ;;  %v4477_v12 = vld [vmem:[#allocation12 + $0x228] sm:$0xff] }
 0x91b   :  { %4407 = vmatpush.msrb.mxu1 %v4314_v44  ;;  %v4606_v44 = vld [vmem:[#allocation12 + $0x310] sm:$0xff]  ;;  %4571 = vmatpush.msrb.mxu0 %v4477_v12 }
 0x91c   :  { %4497 = vmatpush.msra.mxu2 %v4454_v54 }
 0x960   :  { %v3949_v47 = vpop.f32.mrf.mxu2 }
 0x961   :  { %v4009_v32 = vpop.f32.mrf.mxu0 }
 0x962   :  { %v4049_v34 = vpop.f32.mrf.mxu1 }
 0x967   :  { %v3969_v63 = vpop.f32.mrf.mxu3 }
 0x968   :  { %v3970_v4 = vadd.f32 %v3969_v63, %v3949_v47  ;;  %v4469_v47 = vld [vmem:[#allocation12 + $0x1e8] sm:$0xff]  ;;  %v4452_v63 = vld [vmem:[#allocation12 + $0x160] sm:$0xff] }
 0x969   :  { %v4029_v13 = vpop.f32.mrf.mxu0  ;;  %v4089_v1 = vpop.f32.mrf.mxu2  ;;  %4536 = vmatpush.msra.mxu3 %v4469_v47  ;;  %4498 = vmatpush.msra.mxu2 %v4452_v63  ;;  %v4607_v47 = vld [vmem:[#allocation12 + $0x318] sm:$0xff] }
 0x96a   :  { %v4174_v61 = vrot.slane %v3970_v4, 2  ;;  %v4050_v10 = vadd.f32 %v4049_v34, %v4029_v13  ;;  %v4069_v14 = vpop.f32.mrf.mxu1  ;;  %v4312_v34 = vld [vmem:[#allocation12 + $0x48] sm:$0xff] }
 0x96b   :  { %v4090_v17 = vadd.f32 %v4089_v1, %v4069_v14  ;;  %4408 = vmatpush.msrb.mxu1 %v4312_v34  ;;  %4537 = vmatpush.msra.mxu3 %v4467_v39  ;;  %v4310_v1 = vld [vmem:[#allocation12 + $0x38] sm:$0xff]  ;;  %v4465_v14 = vld [vmem:[#allocation12 + $0x1c8] sm:$0xff]  ;;  %v4604_v34 = vld [vmem:[#allocation12 + $0x300] sm:$0xff] }
 0x96c   :  { %v4178_v55 = vadd.f32 %v4174_v61, %v13058_v50  ;;  %v4220_v40 = vrot.slane %v4050_v10, 2  ;;  %v4450_v61 = vld [vmem:[#allocation12 + $0x150] sm:$0xff]  ;;  %v4308_v50 = vld [vmem:[#allocation12 + $0x28] sm:$0xff] }
 0x96d   :  { %v4221_v6 = vrot.slane %v4090_v17, 2  ;;  %4409 = vmatpush.msrb.mxu1 %v4310_v1  ;;  %4499 = vmatpush.msra.mxu2 %v4450_v61 }
 0x96e   :  { %v7353_v9 = vmul.f32 -1.442695, %v4178_v55  ;;  %v4224_v16 = vadd.f32 %v4220_v40, %v13059_v62  ;;  %4538 = vmatpush.msra.mxu3 %v4465_v14  ;;  %v4448_v55 = vld [vmem:[#allocation12 + $0x140] sm:$0xff] }
 0x96f   :  { %v4225_v19 = vadd.f32 %v4221_v6, %v13060_v24  ;;  %v3989_v3 = vpop.f32.mrf.mxu3  ;;  %v13062_v40 = vld [vmem:[#allocation83_spill] sm:$0xff]  ;;  %4410 = vmatpush.msrb.mxu1 %v4308_v50  ;;  %4500 = vmatpush.msra.mxu2 %v4448_v55  ;;  %v4463_v6 = vld [vmem:[#allocation12 + $0x1b8] sm:$0xff]  ;;  %v4446_v24 = vld [vmem:[#allocation12 + $0x130] sm:$0xff] }
 0x970   :  { %7673 = vpow2.f32 %v7353_v9  ;;  %v7355_v52 = vmul.f32 -1.442695, %v4224_v16  ;;  %v4010_v8 = vadd.f32 %v4009_v32, %v3989_v3  ;;  %4539 = vmatpush.msra.mxu3 %v4463_v6  ;;  %v4461_v3 = vld [vmem:[#allocation12 + $0x1a8] sm:$0xff]  ;;  %v4603_v50 = vld [vmem:[#allocation12 + $0x2f8] sm:$0xff] }
 0x971   :  { %v7356_v22 = vmul.f32 -1.442695, %v4225_v19  ;;  %4411 = vmatpush.msrb.mxu1 %v4306_v23  ;;  %4501 = vmatpush.msra.mxu2 %v4446_v24  ;;  %v4601_v6 = vld [vmem:[#allocation12 + $0x2e8] sm:$0xff]  ;;  %v4598_v23 = vld [vmem:[#allocation12 + $0x2d0] sm:$0xff] }
 0x972   :  { %7675 = vpow2.f32 %v7355_v52  ;;  %v4175_v31 = vrot.slane %v4010_v8, 2  ;;  %4540 = vmatpush.msra.mxu3 %v4461_v3 }
 0x973   :  { %7677 = vpow2.f32 %v7356_v22  ;;  %v4444_v22 = vld [vmem:[#allocation12 + $0x120] sm:$0xff]  ;;  %4412 = vmatpush.msrb.mxu1 %v4304_v5  ;;  %v4280_v5 = vrot.slane %v10559_v15, 6 }
 0x974   :  { %v4179_v20 = vadd.f32 %v4175_v31, %v13061_v7  ;;  %4502 = vmatpush.msra.mxu2 %v4444_v22  ;;  %v4459_v7 = vld [vmem:[#allocation12 + $0x198] sm:$0xff] }
 0x975   :  { %4541 = vmatpush.msra.mxu3 %v4459_v7 }
 0x976   :  { %v7674_v37 = vpop.eup %7673  ;;  %v7354_v26 = vmul.f32 -1.442695, %v4179_v20  ;;  %v4610_v20 = vld [vmem:[#allocation12 + $0x330] sm:$0xff] }
 0x977   :  { %v10634_v53 = vadd.f32 1.0, %v7674_v37  ;;  %4623 = vmatpush.msra.mxu1 %v4610_v20  ;;  %4542 = vmatpush.msra.mxu3 %v4457_v43 }
 0x978   :  { %v7676_v21 = vpop.eup %7675  ;;  %7679 = vpow2.f32 %v7354_v26  ;;  %v4129_v62 = vpop.f32.mrf.mxu3  ;;  %v4611_v26 = vld [vmem:[#allocation12 + $0x338] sm:$0xff] }
 0x979   :  { %v7678_v28 = vpop.eup %7677  ;;  %7681 = vrcp.f32 %v10634_v53  ;;  %v10637_v59 = vadd.f32 1.0, %v7676_v21  ;;  %v4199_v45 = vand.u32 2147483648, %v10634_v53  ;;  %v4197_v33 = vand.u32 2147483647, %v10634_v53  ;;  %4669 = vmatpush.msrb.mxu2 %v4611_v26  ;;  %v4608_v21 = vld [vmem:[#allocation12 + $0x320] sm:$0xff]  ;;  %4543 = vmatpush.msra.mxu3 %v4455_v48 }
 0x97a   :  { %v10640_v49 = vadd.f32 1.0, %v7678_v28  ;;  %vm4193_vm12 = vweird.f32 %v10634_v53  ;;  %4624 = vmatpush.msra.mxu1 %v4608_v21  ;;  %v4595_v21 = vld [vmem:[#allocation12 + $0x2b8] sm:$0xff] }
 0x97b   :  { %7683 = vrcp.f32 %v10637_v59  ;;  %v4200_v11 = vor.u32 1.1754944e-38, %v4199_v45  ;;  %vm4198_vm15 = vcmp.eq.f32.partialorder %v4197_v33, 8.507059e+37  ;;  %v4245_v56 = vand.u32 2147483648, %v10637_v59  ;;  %4670 = vmatpush.msrb.mxu2 %v4609_v38  ;;  %v4600_v45 = vld [vmem:[#allocation12 + $0x2e0] sm:$0xff]  ;;  %v4447_v33 = vld [vmem:[#allocation12 + $0x138] sm:$0xff]  ;;  %v4614_v38 = vld [vmem:[#allocation12 + $0x350] sm:$0xff] }
 0x97c   :  { %7685 = vrcp.f32 %v10640_v49  ;;  %vm4239_vm5 = vweird.f32 %v10637_v59  ;;  %v4243_v54 = vand.u32 2147483647, %v10637_v59  ;;  %4625 = vmatpush.msra.mxu1 %v4606_v44  ;;  %4660 = vmatpush.msra.mxu0 %v4614_v38  ;;  %v4590_v44 = vld [vmem:[#allocation12 + $0x290] sm:$0xff] }
 0x97d   :  { %4671 = vmatpush.msrb.mxu2 %v4607_v47  ;;  %v4246_v61 = vor.u32 1.1754944e-38, %v4245_v56  ;;  %v4258_v56 = vand.u32 2147483647, %v10640_v49 }
 0x97e   :  { %v7680_v32 = vpop.eup %7679  ;;  %4626 = vmatpush.msra.mxu1 %v4604_v34  ;;  %vm4244_vm8 = vcmp.eq.f32.partialorder %v4243_v54, 8.507059e+37  ;;  %v4591_v54 = vld [vmem:[#allocation12 + $0x298] sm:$0xff]  ;;  %v4589_v34 = vld [vmem:[#allocation12 + $0x288] sm:$0xff] }
 0x97f   :  { %v10642_v4 = vpop.eup %7681  ;;  %v10644_v29 = vadd.f32 1.0, %v7680_v32  ;;  %v4453_v32 = vld [vmem:[#allocation12 + $0x168] sm:$0xff] }
 0x980   :  { %v4189_v13 = vmul.f32 %v10642_v4, %v10634_v53  ;;  %vm4194_vm4 = vweird.f32 %v10642_v4  ;;  %4544 = vmatpush.msra.mxu3 %v4453_v32  ;;  %v4588_v32 = vld [vmem:[#allocation12 + $0x280] sm:$0xff] }
 0x981   :  { %v10649_v10 = vpop.eup %7683  ;;  %7687 = vrcp.f32 %v10644_v29  ;;  %vm10668_vm14 = vmor %vm4193_vm12, %vm4194_vm4  ;;  %vm4208_vm6 = vweird.f32 %v10644_v29 }
 0x982   :  { %v4235_v42 = vmul.f32 %v10649_v10, %v10637_v59  ;;  %v4109_v2 = vpop.f32.mrf.mxu2  ;;  %v4190_v17 = vsub.f32 1.0, %v4189_v13  ;;  %v10659_v52 = vpop.eup %7685  ;;  %vm4240_vm3 = vweird.f32 %v10649_v10  ;;  %v4605_v13 = vld [vmem:[#allocation12 + $0x308] sm:$0xff] }
 0x983   :  { %v4110_v36 = vadd.f32 %v4109_v2, %v13062_v40  ;;  %v4250_v28 = vmul.f32 %v10659_v52, %v10640_v49  ;;  %vm10686_vm7 = vmor %vm4239_vm5, %vm4240_vm3  ;;  %4672 = vmatpush.msrb.mxu2 %v4605_v13  ;;  %v4451_v2 = vld [vmem:[#allocation12 + $0x158] sm:$0xff]  ;;  %vm4255_vm12 = vweird.f32 %v10659_v52  ;;  %vm4259_vm3 = vcmp.eq.f32.partialorder %v4258_v56, 8.507059e+37 }
 0x984   :  { %v4236_v9 = vsub.f32 1.0, %v4235_v42  ;;  %v4191_v16 = vmul.f32 %v10642_v4, %v4190_v17  ;;  %v4602_v17 = vld [vmem:[#allocation12 + $0x2f0] sm:$0xff]  ;;  %4545 = vmatpush.msra.mxu3 %v4451_v2 }
 0x985   :  { %v4130_v19 = vadd.f32 %v4129_v62, %v4110_v36  ;;  %v4251_v14 = vsub.f32 1.0, %v4250_v28  ;;  %4627 = vmatpush.msra.mxu1 %v4602_v17  ;;  %v4449_v36 = vld [vmem:[#allocation12 + $0x148] sm:$0xff]  ;;  %4673 = vmatpush.msrb.mxu2 %v4603_v50  ;;  %v4592_v28 = vld [vmem:[#allocation12 + $0x2a0] sm:$0xff]  ;;  %v4583_v50 = vld [vmem:[#allocation12 + $0x258] sm:$0xff] }
 0x986   :  { %v4237_v8 = vmul.f32 %v10649_v10, %v4236_v9  ;;  %v4192_v41 = vadd.f32 %v10642_v4, %v4191_v16  ;;  %v13068_v9 = vld [vmem:[#allocation85_spill] sm:$0xff]  ;;  %v4212_v16 = vand.u32 2147483647, %v10644_v29  ;;  %4546 = vmatpush.msra.mxu3 %v4449_v36  ;;  %v4581_v36 = vld [vmem:[#allocation12 + $0x248] sm:$0xff] }
 0x987   :  { %v10664_v31 = vpop.eup %7687  ;;  %v4266_v25 = vrot.slane %v4130_v19, 2  ;;  %v4252_v24 = vmul.f32 %v10659_v52, %v4251_v14  ;;  %v4169_v19 = vpop.f32.mrf.mxu0  ;;  %4628 = vmatpush.msra.mxu1 %v4600_v45  ;;  %4674 = vmatpush.msrb.mxu2 %v4601_v6  ;;  %v4582_v14 = vld [vmem:[#allocation12 + $0x250] sm:$0xff] }
 0x988   :  { %v4196_v0 = vsel %vm10668_vm14, %v10642_v4, %v4192_v41  ;;  %v4204_v37 = vmul.f32 %v10664_v31, %v10644_v29  ;;  %v4238_v53 = vadd.f32 %v10649_v10, %v4237_v8  ;;  %v13067_v4 = vld [vmem:[#allocation31_spill] sm:$0xff]  ;;  %vm4209_vm9 = vweird.f32 %v10664_v31  ;;  %v4599_v8 = vld [vmem:[#allocation12 + $0x2d8] sm:$0xff]  ;;  %4547 = vmatpush.msra.mxu3 %v4447_v33 }
 0x989   :  { %v4201_v46 = vsel %vm4198_vm15, %v4200_v11, %v4196_v0  ;;  %vm10704_vm10 = vmor %vm4208_vm6, %vm4209_vm9  ;;  %v4596_v11 = vld [vmem:[#allocation12 + $0x2c0] sm:$0xff]  ;;  %4629 = vmatpush.msra.mxu1 %v4598_v23  ;;  %v4597_v0 = vld [vmem:[#allocation12 + $0x2c8] sm:$0xff]  ;;  %vm4213_vm4 = vcmp.eq.f32.partialorder %v4212_v16, 8.507059e+37  ;;  %4675 = vmatpush.msrb.mxu2 %v4599_v8  ;;  %v4253_v15 = vadd.f32 %v10659_v52, %v4252_v24  ;;  %vm4254_vm14 = vweird.f32 %v10640_v49  ;;  %v10761_v24 = vpop.f32.mrf.mxu1 }
 0x98a   :  { %v4270_v60 = vmul.f32 %v4266_v25, %v4201_v46  ;;  %v4205_v27 = vsub.f32 1.0, %v4204_v37  ;;  %v4242_v59 = vsel %vm10686_vm7, %v10649_v10, %v4238_v53  ;;  %v4214_v10 = vand.u32 2147483648, %v10644_v29  ;;  %4548 = vmatpush.msra.mxu3 %v4445_v18  ;;  %v4594_v46 = vld [vmem:[#allocation12 + $0x2b0] sm:$0xff]  ;;  %vm10719_vm15 = vmor %vm4254_vm14, %vm4255_vm12  ;;  %v10765_v3 = vpop.f32.mrf.mxu2 }
 0x98b   :  { %v4247_v55 = vsel %vm4244_vm8, %v4246_v61, %v4242_v59  ;;  %4630 = vmatpush.msra.mxu1 %v4596_v11  ;;  %4676 = vmatpush.msrb.mxu2 %v4597_v0 }
 0x98c   :  { %v4272_v39 = vadd.f32 %v4270_v60, %v13067_v4  ;;  %v4206_v1 = vmul.f32 %v10664_v31, %v4205_v27  ;;  %v4276_v41 = vsub.f32 1.0, %v4247_v55  ;;  %v4215_v20 = vor.u32 1.1754944e-38, %v4214_v10  ;;  %v4593_v60 = vld [vmem:[#allocation12 + $0x2a8] sm:$0xff]  ;;  %v4612_v27 = vld [vmem:[#allocation12 + $0x340] sm:$0xff]  ;;  %v4587_v4 = vld [vmem:[#allocation12 + $0x278] sm:$0xff] }
 0x98d   :  { %v4284_v37 = vmul.f32 %v4280_v5, %v4247_v55  ;;  %4631 = vmatpush.msra.mxu1 %v4594_v46  ;;  %4677 = vmatpush.msrb.mxu2 %v4595_v21  ;;  %v4613_v55 = vld [vmem:[#allocation12 + $0x348] sm:$0xff] }
 0x98e   :  { %7689 = vtanh.f32 %v4272_v39  ;;  %v4207_v42 = vadd.f32 %v10664_v31, %v4206_v1  ;;  %4661 = vmatpush.msra.mxu0 %v4612_v27  ;;  %v4584_v39 = vld [vmem:[#allocation12 + $0x260] sm:$0xff]  ;;  %v4585_v1 = vld [vmem:[#allocation12 + $0x268] sm:$0xff] }
 0x98f   :  { %4632 = vmatpush.msra.mxu1 %v4592_v28  ;;  %4678 = vmatpush.msrb.mxu2 %v4593_v60  ;;  %v10759_v23 = vpop.f32.mrf.mxu0 }
 0x990   :  { %v4149_v40 = vpop.f32.mrf.mxu3  ;;  %v4211_v29 = vsel %vm10704_vm10, %v10664_v31, %v4207_v42  ;;  %v4260_v31 = vand.u32 2147483648, %v10640_v49  ;;  %v4257_v49 = vsel %vm10719_vm15, %v10659_v52, %v4253_v15  ;;  %v4281_v52 = vrot.slane %v10568_v58, 6  ;;  %v4615_v42 = vld [vmem:[#allocation12 + $0x358] sm:$0xff] }
 0x991   :  { %v4150_v62 = vadd.f32 %v4149_v40, %v13068_v9  ;;  %v4216_v35 = vsel %vm4213_vm4, %v4215_v20, %v4211_v29  ;;  %4633 = vmatpush.msra.mxu1 %v4590_v44  ;;  %4679 = vmatpush.msrb.mxu2 %v4591_v54  ;;  %v4580_v40 = vld [vmem:[#allocation12 + $0x240] sm:$0xff]  ;;  %v6673_v58 = vld [vmem:[%s12212_s17] sm:$0xff] }
 0x992   :  { %v4261_v47 = vor.u32 1.1754944e-38, %v4260_v31  ;;  %4706 = vmatpush.msrb.mxu3 %v4615_v42  ;;  %v10776_v29 = vld [vmem:[%s12205_s10 + $0x2] sm:$0x3]  ;;  %v10813_v44 = vld [vmem:[%s12208_s13 + $0x8] sm:$0xff] }
 0x993   :  { %v4170_v22 = vadd.f32 %v4169_v19, %v4150_v62  ;;  %4634 = vmatpush.msra.mxu1 %v4588_v32  ;;  %4680 = vmatpush.msrb.mxu2 %v4589_v34  ;;  %v4483_v18 = vperm.slane %v10776_v29, 0  ;;  %v4484_v11 = vperm.slane %v10776_v29, 1 }
 0x994   :  { %v7690_v7 = vpop.eup %7689  ;;  %v4262_v63 = vsel %vm4259_vm3, %v4261_v47, %v4257_v49  ;;  %4707 = vmatpush.msrb.mxu3 %v4613_v55 }
 0x995   :  { %v4278_v25 = vmul.f32 %v7690_v7, %v4276_v41  ;;  %v4267_v26 = vrot.slane %v4170_v22, 2  ;;  %v4277_v13 = vsub.f32 1.0, %v4262_v63  ;;  %4681 = vmatpush.msrb.mxu2 %v4587_v4  ;;  %v4285_v17 = vmul.f32 %v4281_v52, %v4262_v63 }
 0x997   :  { %v4286_v43 = vadd.f32 %v4284_v37, %v4278_v25  ;;  %v4271_v53 = vmul.f32 %v4267_v26, %v4216_v35  ;;  %4682 = vmatpush.msrb.mxu2 %v4585_v1  ;;  %v10789_v35 = vld [vmem:[%s12208_s13] sm:$0xff] }
 0x998   :  { %v4527_v8 = vpop.f32.mrf.mxu3 }
 0x999   :  { %4288 = vst [vmem:[#allocation2 + $0x10] sm:$0xc0] %v4286_v43  ;;  %v4273_v48 = vadd.f32 %v4271_v53, %v10084_v51  ;;  %v4586_v51 = vld [vmem:[#allocation12 + $0x270] sm:$0xff]  ;;  %4683 = vmatpush.msrb.mxu2 %v4583_v50 }
 0x99a   :  { %4292 = vst.sshfl [vmem:[#allocation1] sm:$0xff pattern:$0x73625140] %v4286_v43  ;;  %4635 = vmatpush.msra.mxu1 %v4586_v51  ;;  %v10794_v43 = vld [vmem:[%s12205_s10 + $0x4] sm:$0x3] }
 0x99b   :  { %7691 = vtanh.f32 %v4273_v48  ;;  %4684 = vmatpush.msrb.mxu2 %v4581_v36  ;;  %v4619_v56 = vperm.slane %v10794_v43, 0  ;;  %v4620_v47 = vperm.slane %v10794_v43, 1 }
 0x99c   :  { %4636 = vmatpush.msra.mxu1 %v4584_v39 }
 0x99e   :  { %4637 = vmatpush.msra.mxu1 %v4582_v14 }
 0x9a0   :  { %v4301_v59 = vld [vmem:[#allocation2 + $0x10] sm:$0xff]  ;;  %4638 = vmatpush.msra.mxu1 %v4580_v40 }
 0x9a1   :  { %v7692_v61 = vpop.eup %7691  ;;  %4370 = vmatmul.f32.gmra.mxu0 %v4301_v59 }
 0x9a2   :  { %v4279_v2 = vmul.f32 %v7692_v61, %v4277_v13 }
 0x9a4   :  { %v4287_v10 = vadd.f32 %v4285_v17, %v4279_v2 }
 0x9a6   :  { %4289 = vst.msk [vmem:[#allocation2 + $0x18] sm:$0xc0] %vm2852_vm13, %v4287_v10  ;;  %vm4297_vm13 = vmor %vm2120_vm11, %vm326_vm0 }
 0x9a7   :  { %4293 = vst.sshfl [vmem:[#allocation1 + $0x8] sm:$0xff pattern:$0x73625140] %v4287_v10 }
 0x9a8   :  { %6677 = vst [vmem:[#allocation1] ss:$4 sm:$0xff] %v6673_v58 }
 0x9a9   :  { %7364 = vmatmul.msk.f32.vlgmr.msrb.gmra.mxu0 %vm570_vm2, %v10602_v30 }
 0x9ad   :  { %v4302_v45 = vld [vmem:[#allocation2 + $0x18] sm:$0xff] }
 0x9ae   :  { %7358 = vmatmul.msk.f32.gmra.mxu1 %vm570_vm2, %v4302_v45  ;;  %7360 = vmatmul.msk.f32.gmra.mxu2 %vm570_vm2, %v4302_v45  ;;  %v4295_v6 = vld [vmem:[#allocation1 + $0x3] ss:$4 sm:$0xff] }
 0x9af   :  { %7363 = vmatmul.msk.f32.gmra.mxu3 %vm570_vm2, %v4302_v45  ;;  %v10737_v9 = vld.sshfl [vmem:[#allocation1 + $0x8] sm:$0xff pattern:$0x73625140]  ;;  %v10739_v62 = vld.sshfl [vmem:[#allocation1] sm:$0xff pattern:$0x73625140] }
 0x9b0   :  { %v10743_v16 = vld.sshfl [vmem:[#allocation1 + $0x10] sm:$0xff pattern:$0x73625140]  ;;  %v10745_v33 = vld.sshfl [vmem:[#allocation1 + $0x18] sm:$0xff pattern:$0x73625140] }
 0x9b1   :  { %7365 = vmatmul.msk.f32.gmra.mxu0 %vm570_vm2, %v4302_v45  ;;  %6964 = vst [vmem:[#allocation1] ss:$4 sm:$0xff] %v6673_v58 }
 0x9b2   :  { %4298 = vst.msk [vmem:[#allocation16] sm:$0xf] %vm4297_vm13, %v4295_v6 }
 0x9b6   :  { %4413 = vmatmul.f32.vlgmr.msrb.gmra.mxu1 %v10625_v57  ;;  %4503 = vmatmul.f32.vlgmr.msra.gmra.mxu2 %v10625_v57 }
 0x9b7   :  { %4549 = vmatmul.f32.vlgmr.msra.gmra.mxu3 %v10625_v57 }
 0x9b9   :  { %7367 = vmatmul.msk.f32.vlgmr.msra.gmra.mxu0 %vm570_vm2, %v10602_v30 }
 0x9be   :  { %4416 = vmatmul.f32.gmra.mxu1 %v4301_v59  ;;  %4506 = vmatmul.f32.gmra.mxu2 %v4301_v59 }
 0x9bf   :  { %4552 = vmatmul.f32.gmra.mxu3 %v4301_v59 }
 0x9c1   :  { %7368 = vmatmul.msk.f32.gmra.mxu0 %vm570_vm2, %v4302_v45 }
 0x9c6   :  { %4639 = vmatmul.f32.vlgmr.msra.gmra.mxu1 %v10625_v57  ;;  %4685 = vmatmul.f32.vlgmr.msrb.gmra.mxu2 %v10625_v57 }
 0x9c7   :  { %7369 = vmatmul.msk.f32.vlgmr.msrb.gmra.mxu3 %vm570_vm2, %v10602_v30 }
 0x9ce   :  { %4642 = vmatmul.f32.gmra.mxu1 %v4301_v59  ;;  %4688 = vmatmul.f32.gmra.mxu2 %v4301_v59 }
 0x9cf   :  { %7370 = vmatmul.msk.f32.gmra.mxu3 %vm570_vm2, %v4302_v45 }
 0xa1e   :  { %v10763_v19 = vpop.f32.mrf.mxu0 }
 0xa26   :  { %v4573_v5 = vpop.f32.mrf.mxu0 }
 0xa2b   :  { %v10767_v41 = vpop.f32.mrf.mxu1 }
 0xa2e   :  { %v10780_v25 = vpop.f32.mrf.mxu0 }
 0xa31   :  { %v10769_v57 = vpop.f32.mrf.mxu2 }
 0xa32   :  { %v4530_v22 = vpop.f32.mrf.mxu3 }
 0xa33   :  { %v10771_v30 = vpop.f32.mrf.mxu1 }
 0xa36   :  { %v4663_v49 = vpop.f32.mrf.mxu0 }
 0xa39   :  { %v4504_v7 = vpop.f32.mrf.mxu2 }
 0xa3a   :  { %v4505_v20 = vadd.f32 %v4504_v7, %v4483_v18  ;;  %v4550_v0 = vpop.f32.mrf.mxu3 }
 0xa3b   :  { %v4551_v37 = vadd.f32 %v4550_v0, %v4484_v11  ;;  %v10784_v26 = vpop.f32.mrf.mxu1 }
 0xa3c   :  { %v4528_v15 = vadd.f32 %v4527_v8, %v4505_v20 }
 0xa3d   :  { %v4574_v31 = vadd.f32 %v4573_v5, %v4551_v37 }
 0xa3e   :  { %v4831_v53 = vrot.slane %v4528_v15, 2  ;;  %v4983_v46 = vrot.slane %v4528_v15, 4  ;;  %7371 = vmatpush.msk.msrb.mxu0 %vm326_vm0, %v4528_v15  ;;  %v5139_v28 = vrot.slane %v4528_v15, 6  ;;  %v4666_v10 = vpop.f32.mrf.mxu0 }
 0xa3f   :  { %v4832_v21 = vrot.slane %v4574_v31, 2  ;;  %v4984_v38 = vrot.slane %v4574_v31, 4  ;;  %7374 = vmatpush.msk.msrb.mxu1 %vm326_vm0, %v4574_v31  ;;  %7372 = vmatmul.msk.f32.vlgmr.msrb.gmra.mxu0 %vm319_vm1, %v10789_v35  ;;  %v5140_v1 = vrot.slane %v4574_v31, 6 }
 0xa40   :  { %7375 = vmatmul.msk.f32.vlgmr.msrb.gmra.mxu1 %vm319_vm1, %v10789_v35  ;;  %7383 = vmatpush.msk.msra.mxu2 %vm326_vm0, %v4831_v53 }
 0xa41   :  { %7386 = vmatpush.msk.msra.mxu1 %vm326_vm0, %v4832_v21  ;;  %v4507_v60 = vpop.f32.mrf.mxu2  ;;  %7384 = vmatmul.msk.f32.vlgmr.msra.gmra.mxu2 %vm319_vm1, %v10789_v35 }
 0xa42   :  { %v4553_v27 = vpop.f32.mrf.mxu3  ;;  %7395 = vmatpush.msk.msrb.mxu2 %vm326_vm0, %v4983_v46  ;;  %v4508_v13 = vadd.f32 %v4507_v60, %v4483_v18 }
 0xa43   :  { %7398 = vmatpush.msk.msrb.mxu1 %vm326_vm0, %v4984_v38  ;;  %v4640_v12 = vpop.f32.mrf.mxu1  ;;  %v4554_v42 = vadd.f32 %v4553_v27, %v4484_v11 }
 0xa44   :  { %7407 = vmatpush.msk.msra.mxu2 %vm326_vm0, %v5139_v28  ;;  %v4641_v48 = vadd.f32 %v4640_v12, %v4619_v56  ;;  %v4531_v61 = vadd.f32 %v4530_v22, %v4508_v13 }
 0xa45   :  { %v4577_v17 = vadd.f32 %v10780_v25, %v4554_v42 }
 0xa46   :  { %v4664_v54 = vadd.f32 %v4663_v49, %v4641_v48  ;;  %v5451_v50 = vrot.slane %v4531_v61, 2  ;;  %v5607_v22 = vrot.slane %v4531_v61, 4  ;;  %v5763_v7 = vrot.slane %v4531_v61, 6 }
 0xa47   :  { %7373 = vmatmul.msk.f32.gmra.mxu0 %vm319_vm1, %v10813_v44  ;;  %v5452_v5 = vrot.slane %v4577_v17, 2  ;;  %v5608_v11 = vrot.slane %v4577_v17, 4  ;;  %v5764_v25 = vrot.slane %v4577_v17, 6 }
 0xa48   :  { %v4923_v32 = vrot.slane %v4664_v54, 2  ;;  %v5079_v34 = vrot.slane %v4664_v54, 4  ;;  %7376 = vmatmul.msk.f32.gmra.mxu1 %vm319_vm1, %v10813_v44  ;;  %7377 = vmatpush.msk.msra.mxu3 %vm326_vm0, %v4664_v54  ;;  %v5235_v14 = vrot.slane %v4664_v54, 6 }
 0xa49   :  { %v4686_v63 = vpop.f32.mrf.mxu2  ;;  %7378 = vmatmul.msk.f32.vlgmr.msra.gmra.mxu3 %vm319_vm1, %v10789_v35  ;;  %7385 = vmatmul.msk.f32.gmra.mxu2 %vm319_vm1, %v10813_v44 }
 0xa4a   :  { %v4687_v51 = vadd.f32 %v4686_v63, %v4620_v47  ;;  %7389 = vmatpush.msk.msrb.mxu3 %vm326_vm0, %v4923_v32  ;;  %v4709_v4 = vpop.f32.mrf.mxu3 }
 0xa4b   :  { %v4643_v55 = vpop.f32.mrf.mxu1 }
 0xa4c   :  { %7401 = vmatpush.msk.msra.mxu3 %vm326_vm0, %v5079_v34  ;;  %v4710_v39 = vadd.f32 %v4709_v4, %v4687_v51  ;;  %v4644_v40 = vadd.f32 %v4643_v55, %v4619_v56 }
 0xa4e   :  { %v4924_v52 = vrot.slane %v4710_v39, 2  ;;  %v5080_v59 = vrot.slane %v4710_v39, 4  ;;  %7380 = vmatpush.msk.msra.mxu0 %vm326_vm0, %v4710_v39  ;;  %v5236_v2 = vrot.slane %v4710_v39, 6  ;;  %v4667_v58 = vadd.f32 %v4666_v10, %v4644_v40 }
 0xa4f   :  { %7381 = vmatmul.msk.f32.vlgmr.msra.gmra.mxu0 %vm319_vm1, %v10789_v35 }
 0xa50   :  { %7387 = vmatmul.msk.f32.vlgmr.msra.gmra.mxu1 %vm319_vm1, %v10789_v35  ;;  %7392 = vmatpush.msk.msrb.mxu0 %vm326_vm0, %v4924_v52  ;;  %v5547_v29 = vrot.slane %v4667_v58, 2  ;;  %v5703_v20 = vrot.slane %v4667_v58, 4  ;;  %v5859_v37 = vrot.slane %v4667_v58, 6 }
 0xa51   :  { %7410 = vmatpush.msk.msra.mxu1 %vm326_vm0, %v5140_v1  ;;  %7379 = vmatmul.msk.f32.gmra.mxu3 %vm319_vm1, %v10813_v44  ;;  %v4689_v36 = vpop.f32.mrf.mxu2 }
 0xa52   :  { %7396 = vmatmul.msk.f32.vlgmr.msrb.gmra.mxu2 %vm319_vm1, %v10789_v35  ;;  %7404 = vmatpush.msk.msra.mxu0 %vm326_vm0, %v5080_v59  ;;  %v4690_v45 = vadd.f32 %v4689_v36, %v4620_v47  ;;  %v4712_v6 = vpop.f32.mrf.mxu3 }
 0xa53   :  { %7419 = vmatpush.msk.msrb.mxu2 %vm326_vm0, %v4531_v61 }
 0xa54   :  { %v4713_v8 = vadd.f32 %v4712_v6, %v4690_v45 }
 0xa56   :  { %v5548_v18 = vrot.slane %v4713_v8, 2  ;;  %v5704_v0 = vrot.slane %v4713_v8, 4  ;;  %v5860_v15 = vrot.slane %v4713_v8, 6 }
 0xa57   :  { %7382 = vmatmul.msk.f32.gmra.mxu0 %vm319_vm1, %v10813_v44 }
 0xa58   :  { %7388 = vmatmul.msk.f32.gmra.mxu1 %vm319_vm1, %v10813_v44 }
 0xa59   :  { %7390 = vmatmul.msk.f32.vlgmr.msrb.gmra.mxu3 %vm319_vm1, %v10789_v35 }
 0xa5a   :  { %7397 = vmatmul.msk.f32.gmra.mxu2 %vm319_vm1, %v10813_v44  ;;  %7413 = vmatpush.msk.msrb.mxu3 %vm326_vm0, %v5235_v14 }
 0xa5f   :  { %7393 = vmatmul.msk.f32.vlgmr.msrb.gmra.mxu0 %vm319_vm1, %v10789_v35 }
 0xa60   :  { %7399 = vmatmul.msk.f32.vlgmr.msrb.gmra.mxu1 %vm319_vm1, %v10789_v35  ;;  %7416 = vmatpush.msk.msrb.mxu0 %vm326_vm0, %v5236_v2 }
 0xa61   :  { %7422 = vmatpush.msk.msrb.mxu1 %vm326_vm0, %v4577_v17  ;;  %7391 = vmatmul.msk.f32.gmra.mxu3 %vm319_vm1, %v10813_v44 }
 0xa62   :  { %7408 = vmatmul.msk.f32.vlgmr.msra.gmra.mxu2 %vm319_vm1, %v10789_v35 }
 0xa63   :  { %7431 = vmatpush.msk.msra.mxu2 %vm326_vm0, %v5451_v50 }
 0xa67   :  { %7394 = vmatmul.msk.f32.gmra.mxu0 %vm319_vm1, %v10813_v44 }
 0xa68   :  { %7400 = vmatmul.msk.f32.gmra.mxu1 %vm319_vm1, %v10813_v44 }
 0xa69   :  { %7402 = vmatmul.msk.f32.vlgmr.msra.gmra.mxu3 %vm319_vm1, %v10789_v35 }
 0xa6a   :  { %7409 = vmatmul.msk.f32.gmra.mxu2 %vm319_vm1, %v10813_v44  ;;  %7425 = vmatpush.msk.msra.mxu3 %vm326_vm0, %v4667_v58 }
 0xa6f   :  { %7405 = vmatmul.msk.f32.vlgmr.msra.gmra.mxu0 %vm319_vm1, %v10789_v35 }
 0xa70   :  { %7411 = vmatmul.msk.f32.vlgmr.msra.gmra.mxu1 %vm319_vm1, %v10789_v35  ;;  %7428 = vmatpush.msk.msra.mxu0 %vm326_vm0, %v4713_v8 }
 0xa71   :  { %7434 = vmatpush.msk.msra.mxu1 %vm326_vm0, %v5452_v5  ;;  %7403 = vmatmul.msk.f32.gmra.mxu3 %vm319_vm1, %v10813_v44 }
 0xa72   :  { %7420 = vmatmul.msk.f32.vlgmr.msrb.gmra.mxu2 %vm319_vm1, %v10789_v35 }
 0xa73   :  { %7443 = vmatpush.msk.msrb.mxu2 %vm326_vm0, %v5607_v22 }
 0xa77   :  { %7406 = vmatmul.msk.f32.gmra.mxu0 %vm319_vm1, %v10813_v44 }
 0xa78   :  { %7412 = vmatmul.msk.f32.gmra.mxu1 %vm319_vm1, %v10813_v44 }
 0xa79   :  { %7414 = vmatmul.msk.f32.vlgmr.msrb.gmra.mxu3 %vm319_vm1, %v10789_v35 }
 0xa7a   :  { %7421 = vmatmul.msk.f32.gmra.mxu2 %vm319_vm1, %v10813_v44  ;;  %7437 = vmatpush.msk.msrb.mxu3 %vm326_vm0, %v5547_v29 }
 0xa7f   :  { %7417 = vmatmul.msk.f32.vlgmr.msrb.gmra.mxu0 %vm319_vm1, %v10789_v35 }
 0xa80   :  { %7423 = vmatmul.msk.f32.vlgmr.msrb.gmra.mxu1 %vm319_vm1, %v10789_v35  ;;  %7440 = vmatpush.msk.msrb.mxu0 %vm326_vm0, %v5548_v18 }
 0xa81   :  { %7446 = vmatpush.msk.msrb.mxu1 %vm326_vm0, %v5608_v11  ;;  %7415 = vmatmul.msk.f32.gmra.mxu3 %vm319_vm1, %v10813_v44 }
 0xa82   :  { %7432 = vmatmul.msk.f32.vlgmr.msra.gmra.mxu2 %vm319_vm1, %v10789_v35 }
 0xa83   :  { %7455 = vmatpush.msk.msra.mxu2 %vm326_vm0, %v5763_v7 }
 0xa87   :  { %7418 = vmatmul.msk.f32.gmra.mxu0 %vm319_vm1, %v10813_v44 }
 0xa88   :  { %7424 = vmatmul.msk.f32.gmra.mxu1 %vm319_vm1, %v10813_v44 }
 0xa89   :  { %7426 = vmatmul.msk.f32.vlgmr.msra.gmra.mxu3 %vm319_vm1, %v10789_v35 }
 0xa8a   :  { %7433 = vmatmul.msk.f32.gmra.mxu2 %vm319_vm1, %v10813_v44  ;;  %7449 = vmatpush.msk.msra.mxu3 %vm326_vm0, %v5703_v20 }
 0xa8f   :  { %7429 = vmatmul.msk.f32.vlgmr.msra.gmra.mxu0 %vm319_vm1, %v10789_v35 }
 0xa90   :  { %7435 = vmatmul.msk.f32.vlgmr.msra.gmra.mxu1 %vm319_vm1, %v10789_v35  ;;  %7452 = vmatpush.msk.msra.mxu0 %vm326_vm0, %v5704_v0 }
 0xa91   :  { %7458 = vmatpush.msk.msra.mxu1 %vm326_vm0, %v5764_v25  ;;  %7427 = vmatmul.msk.f32.gmra.mxu3 %vm319_vm1, %v10813_v44 }
 0xa92   :  { %7444 = vmatmul.msk.f32.vlgmr.msrb.gmra.mxu2 %vm319_vm1, %v10789_v35 }
 0xa97   :  { %7430 = vmatmul.msk.f32.gmra.mxu0 %vm319_vm1, %v10813_v44 }
 0xa98   :  { %7436 = vmatmul.msk.f32.gmra.mxu1 %vm319_vm1, %v10813_v44 }
 0xa99   :  { %7438 = vmatmul.msk.f32.vlgmr.msrb.gmra.mxu3 %vm319_vm1, %v10789_v35 }
 0xa9a   :  { %7445 = vmatmul.msk.f32.gmra.mxu2 %vm319_vm1, %v10813_v44  ;;  %7461 = vmatpush.msk.msrb.mxu3 %vm326_vm0, %v5859_v37 }
 0xa9f   :  { %7441 = vmatmul.msk.f32.vlgmr.msrb.gmra.mxu0 %vm319_vm1, %v10789_v35 }
 0xaa0   :  { %7447 = vmatmul.msk.f32.vlgmr.msrb.gmra.mxu1 %vm319_vm1, %v10789_v35  ;;  %7464 = vmatpush.msk.msrb.mxu0 %vm326_vm0, %v5860_v15 }
 0xaa1   :  { %7439 = vmatmul.msk.f32.gmra.mxu3 %vm319_vm1, %v10813_v44 }
 0xaa2   :  { %7456 = vmatmul.msk.f32.vlgmr.msra.gmra.mxu2 %vm319_vm1, %v10789_v35 }
 0xaa7   :  { %7442 = vmatmul.msk.f32.gmra.mxu0 %vm319_vm1, %v10813_v44 }
 0xaa8   :  { %7448 = vmatmul.msk.f32.gmra.mxu1 %vm319_vm1, %v10813_v44 }
 0xaa9   :  { %7450 = vmatmul.msk.f32.vlgmr.msra.gmra.mxu3 %vm319_vm1, %v10789_v35 }
 0xaaa   :  { %7457 = vmatmul.msk.f32.gmra.mxu2 %vm319_vm1, %v10813_v44 }
 0xaaf   :  { %7453 = vmatmul.msk.f32.vlgmr.msra.gmra.mxu0 %vm319_vm1, %v10789_v35 }
 0xab0   :  { %7459 = vmatmul.msk.f32.vlgmr.msra.gmra.mxu1 %vm319_vm1, %v10789_v35 }
 0xab1   :  { %7451 = vmatmul.msk.f32.gmra.mxu3 %vm319_vm1, %v10813_v44 }
 0xab7   :  { %7454 = vmatmul.msk.f32.gmra.mxu0 %vm319_vm1, %v10813_v44 }
 0xab8   :  { %7460 = vmatmul.msk.f32.gmra.mxu1 %vm319_vm1, %v10813_v44 }
 0xab9   :  { %7462 = vmatmul.msk.f32.vlgmr.msrb.gmra.mxu3 %vm319_vm1, %v10789_v35 }
 0xabc   :  { %v4746_v31 = vpop.f32.mrf.mxu0 }
 0xabd   :  { %v4769_v43 = vpop.f32.mrf.mxu1 }
 0xabf   :  { %7465 = vmatmul.msk.f32.vlgmr.msrb.gmra.mxu0 %vm319_vm1, %v10789_v35  ;;  %v4339_v35 = vld [vmem:[%s12205_s10] sm:$0x3] }
 0xac0   :  { %v4341_v54 = vperm.slane %v4339_v35, 0  ;;  %v4342_v47 = vperm.slane %v4339_v35, 1 }
 0xac1   :  { %7463 = vmatmul.msk.f32.gmra.mxu3 %vm319_vm1, %v10813_v44 }
 0xac2   :  { %v4415_v4 = vadd.f32 %v10771_v30, %v4342_v47  ;;  %v4372_v13 = vadd.f32 %v10763_v19, %v4341_v54  ;;  %v4418_v59 = vadd.f32 %v10784_v26, %v4342_v47 }
 0xac4   :  { %v4749_v53 = vpop.f32.mrf.mxu0  ;;  %v4854_v46 = vpop.f32.mrf.mxu2  ;;  %v10988_v52 = vadd.f32 %v10765_v3, %v4415_v4  ;;  %v10993_v1 = vadd.f32 %v10767_v41, %v4372_v13  ;;  %v11002_v3 = vadd.f32 %v10769_v57, %v4418_v59 }
 0xac5   :  { %v4772_v21 = vpop.f32.mrf.mxu1 }
 0xac6   :  { %v4776_v26 = vmul.f32 %v4769_v43, %v10988_v52  ;;  %v4777_v41 = vmul.f32 %v4749_v53, %v10993_v1  ;;  %v4778_v40 = vmul.f32 %v4772_v21, %v11002_v3 }
 0xac7   :  { %7466 = vmatmul.msk.f32.gmra.mxu0 %vm319_vm1, %v10813_v44  ;;  %v4369_v44 = vadd.f32 %v10759_v23, %v4341_v54 }
 0xac9   :  { %v10984_v39 = vadd.f32 %v10761_v24, %v4369_v44 }
 0xacb   :  { %v4883_v23 = vmul.f32 %v4854_v46, %v10984_v39  ;;  %v4775_v61 = vmul.f32 %v4746_v31, %v10984_v39 }
 0xacc   :  { %v10966_v38 = vpop.f32.mrf.mxu3  ;;  %v10968_v56 = vpop.f32.mrf.mxu0 }
 0xacd   :  { %v4857_v28 = vpop.f32.mrf.mxu2  ;;  %v4877_v60 = vpop.f32.mrf.mxu1  ;;  %v4887_v2 = vmax.f32 %v4775_v61, %v4883_v23 }
 0xace   :  { %v4884_v14 = vmul.f32 %v4877_v60, %v10988_v52  ;;  %v4885_v17 = vmul.f32 %v4857_v28, %v10993_v1 }
 0xacf   :  { %v4903_v10 = vsub.f32 %v4883_v23, %v4887_v2  ;;  %v4891_v58 = vsub.f32 %v4775_v61, %v4887_v2 }
 0xad0   :  { %v11007_v50 = vmax.f32 %v4776_v26, %v4884_v14  ;;  %v4889_v36 = vmax.f32 %v4777_v41, %v4885_v17 }
 0xad1   :  { %v4907_v7 = vmul.f32 1.442695, %v4903_v10  ;;  %v4895_v0 = vmul.f32 1.442695, %v4891_v58 }
 0xad2   :  { %v4892_v57 = vsub.f32 %v4776_v26, %v11007_v50  ;;  %v4904_v22 = vsub.f32 %v4884_v14, %v11007_v50  ;;  %v4905_v20 = vsub.f32 %v4885_v17, %v4889_v36  ;;  %v4893_v25 = vsub.f32 %v4777_v41, %v4889_v36 }
 0xad3   :  { %7693 = vpow2.f32 %v4907_v7 }
 0xad4   :  { %v10970_v27 = vpop.f32.mrf.mxu3  ;;  %v10972_v12 = vpop.f32.mrf.mxu0  ;;  %v4897_v15 = vmul.f32 1.442695, %v4892_v57  ;;  %v4909_v43 = vmul.f32 1.442695, %v4904_v22  ;;  %v4911_v21 = vmul.f32 1.442695, %v4905_v20  ;;  %7695 = vpow2.f32 %v4895_v0 }
 0xad5   :  { %v4880_v48 = vpop.f32.mrf.mxu1  ;;  %v5006_v49 = vpop.f32.mrf.mxu2  ;;  %v4899_v60 = vmul.f32 1.442695, %v4893_v25 }
 0xad6   :  { %v4886_v55 = vmul.f32 %v4880_v48, %v11002_v3  ;;  %v5035_v45 = vmul.f32 %v5006_v49, %v10984_v39  ;;  %7697 = vpow2.f32 %v4897_v15 }
 0xad7   :  { %7699 = vpow2.f32 %v4909_v43 }
 0xad8   :  { %v11013_v6 = vmax.f32 %v4778_v40, %v4886_v55  ;;  %v11021_v37 = vmax.f32 %v4887_v2, %v5035_v45  ;;  %7701 = vpow2.f32 %v4911_v21 }
 0xad9   :  { %7703 = vpow2.f32 %v4899_v60  ;;  %v7694_v61 = vpop.eup %7693 }
 0xada   :  { %v4894_v31 = vsub.f32 %v4778_v40, %v11013_v6  ;;  %v4906_v53 = vsub.f32 %v4886_v55, %v11013_v6  ;;  %v5043_v35 = vsub.f32 %v4887_v2, %v11021_v37  ;;  %v5055_v14 = vsub.f32 %v5035_v45, %v11021_v37  ;;  %v7696_v26 = vpop.eup %7695 }
 0xadb   :  { %v4919_v57 = vmul.f32 %v7696_v26, %v10966_v38  ;;  %v4915_v22 = vadd.f32 %v7696_v26, %v7694_v61 }
 0xadc   :  { %v10978_v32 = vpop.f32.mrf.mxu3  ;;  %v10980_v34 = vpop.f32.mrf.mxu0  ;;  %v4901_v48 = vmul.f32 1.442695, %v4894_v31  ;;  %v4913_v44 = vmul.f32 1.442695, %v4906_v53  ;;  %v5047_v59 = vmul.f32 1.442695, %v5043_v35 }
 0xadd   :  { %v5009_v63 = vpop.f32.mrf.mxu2  ;;  %v5029_v51 = vpop.f32.mrf.mxu1  ;;  %v4975_v55 = vmul.f32 %v7694_v61, %v10978_v32 }
 0xade   :  { %v5037_v29 = vmul.f32 %v5009_v63, %v10993_v1  ;;  %v5036_v28 = vmul.f32 %v5029_v51, %v10988_v52  ;;  %7705 = vpow2.f32 %v4901_v48  ;;  %v7698_v41 = vpop.eup %7697 }
 0xadf   :  { %7707 = vpow2.f32 %v4913_v44  ;;  %v7700_v40 = vpop.eup %7699  ;;  %v4920_v0 = vmul.f32 %v7698_v41, %v10968_v56  ;;  %v4979_v53 = vadd.f32 %v4975_v55, %v4919_v57 }
 0xae0   :  { %v11025_v46 = vmax.f32 %v4889_v36, %v5037_v29  ;;  %v11040_v51 = vmax.f32 %v11007_v50, %v5036_v28  ;;  %7709 = vpow2.f32 %v5047_v59  ;;  %v7702_v45 = vpop.eup %7701  ;;  %v11075_v43 = vadd.f32 %v7700_v40, %v7698_v41 }
 0xae1   :  { %v7704_v20 = vpop.eup %7703  ;;  %v4976_v60 = vmul.f32 %v7700_v40, %v10980_v34 }
 0xae2   :  { %v5045_v63 = vsub.f32 %v4889_v36, %v11025_v46  ;;  %v5057_v17 = vsub.f32 %v5037_v29, %v11025_v46  ;;  %v5056_v10 = vsub.f32 %v5036_v28, %v11040_v51  ;;  %v5059_v29 = vmul.f32 1.442695, %v5055_v14 }
 0xae3   :  { %v4921_v48 = vmul.f32 %v7704_v20, %v10970_v27  ;;  %v4980_v40 = vadd.f32 %v4976_v60, %v4920_v0 }
 0xae4   :  { %v10997_v30 = vpop.f32.mrf.mxu3  ;;  %v10999_v24 = vpop.f32.mrf.mxu0  ;;  %v5051_v2 = vmul.f32 1.442695, %v5045_v63  ;;  %v5063_v25 = vmul.f32 1.442695, %v5057_v17  ;;  %v5061_v56 = vmul.f32 1.442695, %v5056_v10 }
 0xae5   :  { %v5032_v42 = vpop.f32.mrf.mxu1  ;;  %v5162_v19 = vpop.f32.mrf.mxu2  ;;  %v4977_v34 = vmul.f32 %v7702_v45, %v10997_v30 }
 0xae6   :  { %v11030_v49 = vmul.f32 %v5032_v42, %v11002_v3  ;;  %v11043_v23 = vmul.f32 %v5162_v19, %v10984_v39  ;;  %v5044_v19 = vsub.f32 %v11007_v50, %v11040_v51  ;;  %7711 = vpow2.f32 %v5051_v2  ;;  %v7706_v38 = vpop.eup %7705 }
 0xae7   :  { %v7708_v28 = vpop.eup %7707  ;;  %7713 = vpow2.f32 %v5059_v29 }
 0xae8   :  { %v11048_v42 = vmax.f32 %v11013_v6, %v11030_v49  ;;  %v11057_v36 = vmax.f32 %v11021_v37, %v11043_v23  ;;  %v7710_v59 = vpop.eup %7709  ;;  %7715 = vpow2.f32 %v5063_v25  ;;  %v4978_v14 = vmul.f32 %v7708_v28, %v10999_v24 }
 0xae9   :  { %v5067_v30 = vmul.f32 %v7710_v59, %v4915_v22 }
 0xaea   :  { %v5046_v32 = vsub.f32 %v11013_v6, %v11048_v42  ;;  %v5049_v6 = vmul.f32 1.442695, %v5044_v19  ;;  %v5058_v21 = vsub.f32 %v11030_v49, %v11048_v42  ;;  %v5199_v35 = vsub.f32 %v11021_v37, %v11057_v36 }
 0xaeb   :  { %v4917_v49 = vadd.f32 %v7704_v20, %v7702_v45  ;;  %v4922_v37 = vmul.f32 %v7706_v38, %v10972_v12  ;;  %v5211_v41 = vsub.f32 %v11043_v23, %v11057_v36  ;;  %v4918_v19 = vadd.f32 %v7708_v28, %v7706_v38 }
 0xaec   :  { %v11015_v8 = vpop.f32.mrf.mxu3  ;;  %v11017_v5 = vpop.f32.mrf.mxu0  ;;  %v5053_v44 = vmul.f32 1.442695, %v5046_v32  ;;  %7717 = vpow2.f32 %v5049_v6  ;;  %v5065_v27 = vmul.f32 1.442695, %v5058_v21  ;;  %v5203_v2 = vmul.f32 1.442695, %v5199_v35 }
 0xaed   :  { %v5165_v18 = vpop.f32.mrf.mxu2  ;;  %v5185_v11 = vpop.f32.mrf.mxu1  ;;  %7719 = vpow2.f32 %v5061_v56  ;;  %v4982_v20 = vadd.f32 %v4978_v14, %v4922_v37  ;;  %v5215_v6 = vmul.f32 1.442695, %v5211_v41  ;;  %v5075_v21 = vmul.f32 %v7710_v59, %v4979_v53 }
 0xaee   :  { %v11060_v58 = vmul.f32 %v5165_v18, %v10993_v1  ;;  %v11071_v18 = vmul.f32 %v5185_v11, %v10988_v52  ;;  %v7712_v26 = vpop.eup %7711  ;;  %7721 = vpow2.f32 %v5053_v44 }
 0xaef   :  { %v7714_v57 = vpop.eup %7713  ;;  %v5069_v22 = vmul.f32 %v7712_v26, %v4917_v49  ;;  %7723 = vpow2.f32 %v5065_v27 }
 0xaf0   :  { %v11084_v11 = vmax.f32 %v11025_v46, %v11060_v58  ;;  %v11093_v61 = vmax.f32 %v11040_v51, %v11071_v18  ;;  %v7716_v32 = vpop.eup %7715  ;;  %7725 = vpow2.f32 %v5203_v2  ;;  %v5071_v38 = vadd.f32 %v7714_v57, %v5067_v30 }
 0xaf1   :  { %v5073_v44 = vadd.f32 %v7716_v32, %v5069_v22 }
 0xaf2   :  { %v5212_v23 = vsub.f32 %v11071_v18, %v11093_v61  ;;  %v5131_v18 = vmul.f32 %v7714_v57, %v11015_v8 }
 0xaf4   :  { %v11032_v54 = vpop.f32.mrf.mxu3  ;;  %v11034_v47 = vpop.f32.mrf.mxu0  ;;  %v5217_v49 = vmul.f32 1.442695, %v5212_v23  ;;  %v5135_v23 = vadd.f32 %v5131_v18, %v5075_v21 }
 0xaf5   :  { %v5188_v4 = vpop.f32.mrf.mxu1  ;;  %v11037_v13 = vpop.f32.mrf.mxu2 }
 0xaf6   :  { %v11088_v63 = vmul.f32 %v5188_v4, %v11002_v3  ;;  %v5201_v4 = vsub.f32 %v11025_v46, %v11084_v11  ;;  %v11101_v17 = vmul.f32 %v11037_v13, %v10984_v39  ;;  %v4981_v46 = vadd.f32 %v4977_v34, %v4921_v48 }
 0xaf7   :  { %v5200_v13 = vsub.f32 %v11040_v51, %v11093_v61  ;;  %v7718_v51 = vpop.eup %7717 }
 0xaf8   :  { %v11107_v12 = vmax.f32 %v11048_v42, %v11088_v63  ;;  %v5207_v0 = vmul.f32 1.442695, %v5201_v4  ;;  %v11124_v25 = vmax.f32 %v11057_v36, %v11101_v17  ;;  %v7720_v60 = vpop.eup %7719  ;;  %v5077_v35 = vmul.f32 %v7712_v26, %v4981_v46 }
 0xaf9   :  { %v5205_v56 = vmul.f32 1.442695, %v5200_v13  ;;  %v7722_v48 = vpop.eup %7721  ;;  %v5076_v37 = vmul.f32 %v7718_v51, %v4980_v40  ;;  %v5132_v14 = vmul.f32 %v7720_v60, %v11017_v5 }
 0xafa   :  { %v5202_v28 = vsub.f32 %v11048_v42, %v11107_v12  ;;  %v5214_v34 = vsub.f32 %v11088_v63, %v11107_v12  ;;  %v5068_v42 = vmul.f32 %v7718_v51, %v11075_v43  ;;  %7727 = vpow2.f32 %v5207_v0  ;;  %v7724_v59 = vpop.eup %7723 }
 0xafb   :  { %v5355_v8 = vsub.f32 %v11057_v36, %v11124_v25  ;;  %7729 = vpow2.f32 %v5215_v6  ;;  %v7726_v2 = vpop.eup %7725  ;;  %v5070_v43 = vmul.f32 %v7722_v48, %v4918_v19  ;;  %v5133_v36 = vmul.f32 %v7716_v32, %v11032_v54  ;;  %v6009_v32 = vld [vmem:[%s12206_s11 + $0xf0] sm:$0xff] }
 0xafc   :  { %v11065_v50 = vpop.f32.mrf.mxu3  ;;  %v11067_v7 = vpop.f32.mrf.mxu0  ;;  %v5209_v63 = vmul.f32 1.442695, %v5202_v28  ;;  %7731 = vpow2.f32 %v5205_v56  ;;  %v5221_v46 = vmul.f32 1.442695, %v5214_v34  ;;  %v5134_v40 = vmul.f32 %v7724_v59, %v11034_v47  ;;  %v6010_v47 = vld [vmem:[%s12206_s11 + $0xf8] sm:$0xff]  ;;  %6027 = vmatpush.msrb.mxu2 %v6009_v32  ;;  %v6007_v28 = vld [vmem:[%s12206_s11 + $0xe0] sm:$0xff] }
 0xafd   :  { %v5321_v15 = vpop.f32.mrf.mxu2  ;;  %v11073_v31 = vpop.f32.mrf.mxu1  ;;  %7733 = vpow2.f32 %v5217_v49  ;;  %v5359_v13 = vmul.f32 1.442695, %v5355_v8  ;;  %v5072_v54 = vadd.f32 %v7720_v60, %v5068_v42  ;;  %v5223_v22 = vmul.f32 %v7726_v2, %v5071_v38  ;;  %6073 = vmatpush.msra.mxu3 %v6010_v47  ;;  %v6008_v60 = vld [vmem:[%s12206_s11 + $0xe8] sm:$0xff]  ;;  %v6006_v8 = vld [vmem:[%s12206_s11 + $0xd8] sm:$0xff] }
 0xafe   :  { %v11120_v29 = vmul.f32 %v5321_v15, %v10993_v1  ;;  %v5213_v15 = vsub.f32 %v11060_v58, %v11084_v11  ;;  %v11142_v58 = vmul.f32 %v11073_v31, %v10988_v52  ;;  %v5078_v31 = vmul.f32 %v7722_v48, %v4982_v20  ;;  %6028 = vmatpush.msrb.mxu2 %v6007_v28 }
 0xaff   :  { %7735 = vpow2.f32 %v5209_v63  ;;  %v5074_v20 = vadd.f32 %v7724_v59, %v5070_v43  ;;  %v5136_v0 = vadd.f32 %v5132_v14, %v5076_v37  ;;  %v5137_v38 = vadd.f32 %v5133_v36, %v5077_v35  ;;  %6074 = vmatpush.msra.mxu3 %v6008_v60 }
 0xb00   :  { %v11135_v53 = vmax.f32 %v11084_v11, %v11120_v29  ;;  %v5219_v4 = vmul.f32 1.442695, %v5213_v15  ;;  %v11157_v57 = vmax.f32 %v11093_v61, %v11142_v58  ;;  %v5231_v37 = vmul.f32 %v7726_v2, %v5135_v23 }
 0xb01   :  { %6075 = vmatpush.msra.mxu3 %v6006_v8 }
 0xb02   :  { %v5357_v5 = vsub.f32 %v11084_v11, %v11135_v53  ;;  %v7728_v11 = vpop.eup %7727  ;;  %7737 = vpow2.f32 %v5219_v4  ;;  %v5356_v15 = vsub.f32 %v11093_v61, %v11157_v57  ;;  %v5369_v34 = vsub.f32 %v11120_v29, %v11135_v53  ;;  %v6005_v61 = vld [vmem:[%s12206_s11 + $0xd0] sm:$0xff] }
 0xb03   :  { %v7730_v51 = vpop.eup %7729  ;;  %7739 = vpow2.f32 %v5221_v46  ;;  %v5225_v48 = vmul.f32 %v7728_v11, %v5073_v44  ;;  %v5368_v44 = vsub.f32 %v11142_v58, %v11157_v57  ;;  %v5233_v14 = vmul.f32 %v7728_v11, %v5137_v38  ;;  %6029 = vmatpush.msrb.mxu2 %v6005_v61  ;;  %v6003_v58 = vld [vmem:[%s12206_s11 + $0xc0] sm:$0xff]  ;;  %v6001_v11 = vld [vmem:[%s12206_s11 + $0xb0] sm:$0xff] }
 0xb04   :  { %v11109_v24 = vpop.f32.mrf.mxu3  ;;  %v11111_v55 = vpop.f32.mrf.mxu0  ;;  %v5363_v6 = vmul.f32 1.442695, %v5357_v5  ;;  %7741 = vpow2.f32 %v5359_v13  ;;  %v5227_v35 = vadd.f32 %v7730_v51, %v5223_v22  ;;  %v5287_v49 = vmul.f32 %v7730_v51, %v11065_v50  ;;  %v5997_v61 = vld [vmem:[%s12206_s11 + $0x90] sm:$0xff] }
 0xb05   :  { %v11115_v10 = vpop.f32.mrf.mxu1  ;;  %v5474_v45 = vpop.f32.mrf.mxu2  ;;  %v5361_v13 = vmul.f32 1.442695, %v5356_v15  ;;  %6030 = vmatpush.msrb.mxu2 %v6003_v58  ;;  %v5375_v32 = vmul.f32 1.442695, %v5369_v34  ;;  %v5996_v58 = vld [vmem:[%s12206_s11 + $0x88] sm:$0xff] }
 0xb06   :  { %v11160_v19 = vmul.f32 %v5474_v45, %v10984_v39  ;;  %v5367_v45 = vsub.f32 %v11101_v17, %v11124_v25  ;;  %v11172_v21 = vmul.f32 %v11115_v10, %v11002_v3  ;;  %v7732_v18 = vpop.eup %7731  ;;  %v5138_v17 = vadd.f32 %v5134_v40, %v5078_v31  ;;  %v6004_v31 = vld [vmem:[%s12206_s11 + $0xc8] sm:$0xff] }
 0xb07   :  { %v7734_v10 = vpop.eup %7733  ;;  %v5224_v43 = vmul.f32 %v7732_v18, %v5072_v54  ;;  %7743 = vpow2.f32 %v5363_v6  ;;  %v5232_v5 = vmul.f32 %v7732_v18, %v5136_v0  ;;  %6076 = vmatpush.msra.mxu3 %v6004_v31  ;;  %v5291_v23 = vadd.f32 %v5287_v49, %v5231_v37  ;;  %6031 = vmatpush.msrb.mxu2 %v6001_v11 }
 0xb08   :  { %v11184_v56 = vmax.f32 %v11124_v25, %v11160_v19  ;;  %v5371_v59 = vmul.f32 1.442695, %v5367_v45  ;;  %v7736_v29 = vpop.eup %7735  ;;  %v11203_v4 = vmax.f32 %v11107_v12, %v11172_v21  ;;  %v5288_v40 = vmul.f32 %v7734_v10, %v11067_v7  ;;  %v6002_v7 = vld [vmem:[%s12206_s11 + $0xb8] sm:$0xff] }
 0xb09   :  { %v7738_v46 = vpop.eup %7737  ;;  %v5226_v45 = vmul.f32 %v7736_v29, %v5074_v20  ;;  %6077 = vmatpush.msra.mxu3 %v6002_v7  ;;  %v11232_v38 = vadd.f32 %v7734_v10, %v5224_v43  ;;  %v5999_v20 = vld [vmem:[%s12206_s11 + $0xa0] sm:$0xff]  ;;  %v5234_v15 = vmul.f32 %v7736_v29, %v5138_v17  ;;  %v5998_v17 = vld [vmem:[%s12206_s11 + $0x98] sm:$0xff] }
 0xb0a   :  { %v5511_v54 = vsub.f32 %v11124_v25, %v11184_v56  ;;  %v5229_v22 = vadd.f32 %v7738_v46, %v5225_v48  ;;  %7745 = vpow2.f32 %v5371_v59  ;;  %v5373_v25 = vmul.f32 1.442695, %v5368_v44  ;;  %6032 = vmatpush.msrb.mxu2 %v5999_v20 }
 0xb0b   :  { %v5289_v6 = vmul.f32 %v7738_v46, %v11109_v24  ;;  %v5358_v28 = vsub.f32 %v11107_v12, %v11203_v4  ;;  %v11247_v18 = vadd.f32 %v5288_v40, %v5232_v5  ;;  %7747 = vpow2.f32 %v5361_v13 }
 0xb0c   :  { %v11145_v27 = vpop.f32.mrf.mxu3  ;;  %v11147_v26 = vpop.f32.mrf.mxu0  ;;  %v5515_v24 = vmul.f32 1.442695, %v5511_v54  ;;  %7749 = vpow2.f32 %v5375_v32  ;;  %6033 = vmatpush.msrb.mxu2 %v5997_v61 }
 0xb0d   :  { %v5477_v30 = vpop.f32.mrf.mxu2  ;;  %v11150_v41 = vpop.f32.mrf.mxu1  ;;  %7751 = vpow2.f32 %v5373_v25  ;;  %v5293_v44 = vadd.f32 %v5289_v6, %v5233_v14  ;;  %v5370_v14 = vsub.f32 %v11172_v21, %v11203_v4  ;;  %v5993_v21 = vld [vmem:[%s12206_s11 + $0x70] sm:$0xff] }
 0xb0e   :  { %v11206_v36 = vmul.f32 %v5477_v30, %v10993_v1  ;;  %v7740_v30 = vpop.eup %7739  ;;  %v11230_v51 = vmul.f32 %v11150_v41, %v10988_v52  ;;  %v6000_v41 = vld [vmem:[%s12206_s11 + $0xa8] sm:$0xff]  ;;  %7753 = vpow2.f32 %v5515_v24 }
 0xb0f   :  { %v7742_v0 = vpop.eup %7741  ;;  %6078 = vmatpush.msra.mxu3 %v6000_v41  ;;  %v5290_v48 = vmul.f32 %v7740_v30, %v11111_v55  ;;  %v11262_v8 = vadd.f32 %v7740_v30, %v5226_v45  ;;  %v5523_v55 = vsub.f32 %v11160_v19, %v11184_v56  ;;  %v5995_v19 = vld [vmem:[%s12206_s11 + $0x80] sm:$0xff]  ;;  %v5377_v20 = vmul.f32 1.442695, %v5370_v14 }
 0xb10   :  { %v11239_v60 = vmax.f32 %v11135_v53, %v11206_v36  ;;  %v7744_v12 = vpop.eup %7743  ;;  %v5379_v10 = vmul.f32 %v7742_v0, %v5227_v35  ;;  %v11268_v35 = vmax.f32 %v11157_v57, %v11230_v51  ;;  %6034 = vmatpush.msrb.mxu2 %v5995_v19  ;;  %v5387_v13 = vmul.f32 %v7742_v0, %v5291_v23  ;;  %v5988_v19 = vld [vmem:[%s12206_s11 + $0x48] sm:$0xff] }
 0xb11   :  { %6079 = vmatpush.msra.mxu3 %v5998_v17  ;;  %v7746_v31 = vpop.eup %7745  ;;  %v5381_v46 = vmul.f32 %v7744_v12, %v5229_v22  ;;  %v11287_v40 = vadd.f32 %v5290_v48, %v5234_v15  ;;  %v5527_v32 = vmul.f32 1.442695, %v5523_v55  ;;  %v11307_v45 = vmul.f32 %v7744_v12, %v5293_v44  ;;  %v5990_v17 = vld [vmem:[%s12206_s11 + $0x58] sm:$0xff] }
 0xb12   :  { %v5513_v29 = vsub.f32 %v11135_v53, %v11239_v60  ;;  %v5383_v5 = vadd.f32 %v7746_v31, %v5379_v10  ;;  %v7748_v22 = vpop.eup %7747  ;;  %v5443_v11 = vmul.f32 %v7746_v31, %v11145_v27  ;;  %v5512_v23 = vsub.f32 %v11157_v57, %v11268_v35  ;;  %6035 = vmatpush.msrb.mxu2 %v5993_v21  ;;  %v5991_v27 = vld [vmem:[%s12206_s11 + $0x60] sm:$0xff]  ;;  %v5992_v57 = vld [vmem:[%s12206_s11 + $0x68] sm:$0xff]  ;;  %v5985_v21 = vld [vmem:[%s12206_s11 + $0x30] sm:$0xff] }
 0xb13   :  { %6080 = vmatpush.msra.mxu3 %v5996_v58  ;;  %v5525_v41 = vsub.f32 %v11206_v36, %v11239_v60  ;;  %v5380_v24 = vmul.f32 %v7748_v22, %v11232_v38  ;;  %v5388_v12 = vmul.f32 %v7748_v22, %v11247_v18  ;;  %v5524_v10 = vsub.f32 %v11230_v51, %v11268_v35  ;;  %v5989_v36 = vld [vmem:[%s12206_s11 + $0x50] sm:$0xff] }
 0xb14   :  { %v11189_v42 = vpop.f32.mrf.mxu3  ;;  %v11208_v2 = vpop.f32.mrf.mxu0  ;;  %v5519_v0 = vmul.f32 1.442695, %v5513_v29  ;;  %6036 = vmatpush.msrb.mxu2 %v5991_v27  ;;  %v5517_v38 = vmul.f32 1.442695, %v5512_v23  ;;  %v11360_v58 = vadd.f32 %v5443_v11, %v5387_v13  ;;  %v5986_v13 = vld [vmem:[%s12206_s11 + $0x38] sm:$0xff] }
 0xb15   :  { %v11199_v50 = vpop.f32.mrf.mxu1  ;;  %v5630_v63 = vpop.f32.mrf.mxu2  ;;  %v5531_v31 = vmul.f32 1.442695, %v5525_v41  ;;  %v5529_v14 = vmul.f32 1.442695, %v5524_v10 }
 0xb16   :  { %v11220_v47 = vmul.f32 %v5630_v63, %v10984_v39  ;;  %v5365_v63 = vmul.f32 1.442695, %v5358_v28  ;;  %v11285_v53 = vmul.f32 %v11199_v50, %v11002_v3  ;;  %v5994_v50 = vld [vmem:[%s12206_s11 + $0x78] sm:$0xff]  ;;  %6037 = vmatpush.msrb.mxu2 %v5989_v36 }
 0xb17   :  { %6081 = vmatpush.msra.mxu3 %v5994_v50 }
 0xb18   :  { %v11252_v49 = vmax.f32 %v11184_v56, %v11220_v47  ;;  %7755 = vpow2.f32 %v5365_v63  ;;  %v11326_v15 = vmax.f32 %v11203_v4, %v11285_v53 }
 0xb19   :  { %6082 = vmatpush.msra.mxu3 %v5992_v57  ;;  %7757 = vpow2.f32 %v5527_v32 }
 0xb1a   :  { %v5667_v54 = vsub.f32 %v11184_v56, %v11252_v49  ;;  %v11305_v56 = vpop.eup %7749  ;;  %v5679_v18 = vsub.f32 %v11220_v47, %v11252_v49  ;;  %7759 = vpow2.f32 %v5519_v0  ;;  %v5987_v47 = vld [vmem:[%s12206_s11 + $0x40] sm:$0xff] }
 0xb1b   :  { %v7752_v6 = vpop.eup %7751  ;;  %v11320_v28 = vadd.f32 %v11305_v56, %v5381_v46  ;;  %6083 = vmatpush.msra.mxu3 %v5990_v17  ;;  %7761 = vpow2.f32 %v5377_v20  ;;  %6038 = vmatpush.msrb.mxu2 %v5987_v47  ;;  %v5983_v0 = vld [vmem:[%s12206_s11 + $0x20] sm:$0xff]  ;;  %v5526_v20 = vsub.f32 %v11285_v53, %v11326_v15  ;;  %v5982_v53 = vld [vmem:[%s12206_s11 + $0x18] sm:$0xff] }
 0xb1c   :  { %v11254_v34 = vpop.f32.mrf.mxu3  ;;  %v11291_v30 = vpop.f32.mrf.mxu0  ;;  %v5671_v48 = vmul.f32 1.442695, %v5667_v54  ;;  %v5444_v44 = vmul.f32 %v7752_v6, %v11147_v26  ;;  %v5514_v26 = vsub.f32 %v11203_v4, %v11326_v15  ;;  %v5683_v4 = vmul.f32 1.442695, %v5679_v18  ;;  %v5979_v47 = vld [vmem:[%s12206_s11] sm:$0xff] }
 0xb1d   :  { %v5633_v59 = vpop.f32.mrf.mxu2  ;;  %v5653_v37 = vpop.f32.mrf.mxu1  ;;  %6084 = vmatpush.msra.mxu3 %v5988_v19  ;;  %6039 = vmatpush.msrb.mxu2 %v5985_v21  ;;  %v5980_v19 = vld [vmem:[%s12206_s11 + $0x8] sm:$0xff] }
 0xb1e   :  { %v11273_v43 = vmul.f32 %v5633_v59, %v10993_v1  ;;  %v11303_v7 = vmul.f32 %v5653_v37, %v10988_v52  ;;  %v11340_v55 = vpop.eup %7753  ;;  %7763 = vpow2.f32 %v5671_v48  ;;  %v11380_v22 = vadd.f32 %v5444_v44, %v5388_v12 }
 0xb1f   :  { %v5535_v46 = vmul.f32 %v11340_v55, %v5383_v5  ;;  %7765 = vpow2.f32 %v5517_v38  ;;  %6085 = vmatpush.msra.mxu3 %v5986_v13  ;;  %6040 = vmatpush.msrb.mxu2 %v5983_v0 }
 0xb20   :  { %v11311_v25 = vmax.f32 %v11239_v60, %v11273_v43  ;;  %v11346_v51 = vmax.f32 %v11268_v35, %v11303_v7  ;;  %7767 = vpow2.f32 %v5531_v31 }
 0xb21   :  { %7769 = vpow2.f32 %v5529_v14 }
 0xb22   :  { %v5669_v63 = vsub.f32 %v11239_v60, %v11311_v25  ;;  %v11364_v60 = vpop.eup %7755  ;;  %v5668_v50 = vsub.f32 %v11268_v35, %v11346_v51  ;;  %v5984_v35 = vld [vmem:[%s12206_s11 + $0x28] sm:$0xff]  ;;  %7771 = vpow2.f32 %v5683_v4 }
 0xb23   :  { %v11391_v27 = vpop.eup %7757  ;;  %v11395_v57 = vmul.f32 %v11364_v60, %v11262_v8  ;;  %6086 = vmatpush.msra.mxu3 %v5984_v35  ;;  %v5981_v8 = vld [vmem:[%s12206_s11 + $0x10] sm:$0xff] }
 0xb24   :  { %v11332_v61 = vpop.f32.mrf.mxu3  ;;  %v5675_v32 = vmul.f32 1.442695, %v5669_v63  ;;  %v11382_v11 = vpop.f32.mrf.mxu0  ;;  %v5539_v17 = vadd.f32 %v11391_v27, %v5535_v46  ;;  %v5673_v38 = vmul.f32 1.442695, %v5668_v50  ;;  %6041 = vmatpush.msrb.mxu2 %v5981_v8  ;;  %v5680_v46 = vsub.f32 %v11303_v7, %v11346_v51 }
 0xb25   :  { %v5656_v59 = vpop.f32.mrf.mxu1  ;;  %v5786_v37 = vpop.f32.mrf.mxu2  ;;  %6087 = vmatpush.msra.mxu3 %v5982_v53 }
 0xb26   :  { %v11352_v29 = vmul.f32 %v5656_v59, %v11002_v3  ;;  %v5815_v54 = vmul.f32 %v5786_v37, %v10984_v39  ;;  %v5384_v39 = vadd.f32 %v7752_v6, %v5380_v24  ;;  %v5521_v6 = vmul.f32 1.442695, %v5514_v26  ;;  %v11399_v41 = vpop.eup %7759  ;;  %6042 = vmatpush.msrb.mxu2 %v5979_v47 }
 0xb27   :  { %v5681_v24 = vsub.f32 %v11273_v43, %v11311_v25  ;;  %v11412_v36 = vpop.eup %7761  ;;  %7773 = vpow2.f32 %v5675_v32  ;;  %v5537_v31 = vmul.f32 %v11399_v41, %v11320_v28  ;;  %v5533_v26 = vmul.f32 1.442695, %v5526_v20  ;;  %6088 = vmatpush.msra.mxu3 %v5980_v19 }
 0xb28   :  { %v11378_v5 = vmax.f32 %v11326_v15, %v11352_v29  ;;  %v5819_v23 = vmax.f32 %v11252_v49, %v5815_v54  ;;  %v11417_v59 = vpop.eup %7763  ;;  %7775 = vpow2.f32 %v5521_v6  ;;  %v5685_v0 = vmul.f32 1.442695, %v5680_v46 }
 0xb29   :  { %v5687_v14 = vmul.f32 1.442695, %v5681_v24  ;;  %v5691_v13 = vmul.f32 %v11417_v59, %v5539_v17 }
 0xb2a   :  { %v5823_v12 = vsub.f32 %v11252_v49, %v5819_v23  ;;  %v5835_v10 = vsub.f32 %v5815_v54, %v5819_v23  ;;  %v5670_v49 = vsub.f32 %v11326_v15, %v11378_v5  ;;  %v11426_v15 = vpop.eup %7765 }
 0xb2b   :  { %v11437_v21 = vpop.eup %7767  ;;  %v5536_v7 = vmul.f32 %v11426_v15, %v5384_v39 }
 0xb2c   :  { %v11404_v48 = vpop.f32.mrf.mxu3  ;;  %v5827_v37 = vmul.f32 1.442695, %v5823_v12  ;;  %v5839_v44 = vmul.f32 1.442695, %v5835_v10  ;;  %v5677_v28 = vmul.f32 1.442695, %v5670_v49  ;;  %v11441_v50 = vpop.eup %7769  ;;  %v5541_v23 = vadd.f32 %v11437_v21, %v5537_v31 }
 0xb2d   :  { %v5789_v43 = vpop.f32.mrf.mxu2  ;;  %v5809_v18 = vpop.f32.mrf.mxu1  ;;  %v6014_v12 = vld [vmem:[%s12206_s11 + $0x118] sm:$0xff] }
 0xb2e   :  { %v5817_v63 = vmul.f32 %v5789_v43, %v10993_v1  ;;  %v11434_v1 = vmul.f32 %v11305_v56, %v11189_v42  ;;  %7777 = vpow2.f32 %v5827_v37  ;;  %v5816_v4 = vmul.f32 %v5809_v18, %v10988_v52  ;;  %v11445_v32 = vpop.eup %7771  ;;  %v11453_v20 = vpop.f32.mrf.mxu0  ;;  %6110 = vmatpush.msra.mxu0 %v6014_v12 }
 0xb2f   :  { %7779 = vpow2.f32 %v5673_v38  ;;  %v11449_v6 = vpop.eup %7773  ;;  %v5682_v52 = vsub.f32 %v11352_v29, %v11378_v5  ;;  %v5695_v8 = vadd.f32 %v11445_v32, %v5691_v13  ;;  %v5386_v43 = vadd.f32 %v11412_v36, %v11395_v57 }
 0xb30   :  { %v5821_v54 = vmax.f32 %v11311_v25, %v5817_v63  ;;  %7781 = vpow2.f32 %v5839_v44  ;;  %v5820_v35 = vmax.f32 %v11346_v51, %v5816_v4  ;;  %v11461_v10 = vpop.eup %7775  ;;  %v5540_v18 = vadd.f32 %v11441_v50, %v5536_v7  ;;  %v6012_v44 = vld [vmem:[%s12206_s11 + $0x108] sm:$0xff] }
 0xb31   :  { %7783 = vpow2.f32 %v5533_v26  ;;  %v5693_v47 = vmul.f32 %v11449_v6, %v5541_v23  ;;  %6111 = vmatpush.msra.mxu0 %v6012_v44  ;;  %v5538_v13 = vmul.f32 %v11461_v10, %v5386_v43  ;;  %v5543_v12 = vmul.f32 %v11340_v55, %v11360_v58  ;;  %v6200_v43 = vld [vmem:[#allocation13 + $0x288] sm:$0xff] }
 0xb32   :  { %v5825_v42 = vsub.f32 %v11311_v25, %v5821_v54  ;;  %v5837_v56 = vsub.f32 %v5817_v63, %v5821_v54  ;;  %7785 = vpow2.f32 %v5687_v14  ;;  %v6013_v25 = vld [vmem:[%s12206_s11 + $0x110] sm:$0xff]  ;;  %v5824_v53 = vsub.f32 %v11346_v51, %v5820_v35  ;;  %v6011_v51 = vld [vmem:[%s12206_s11 + $0x100] sm:$0xff] }
 0xb33   :  { %7787 = vpow2.f32 %v5677_v28  ;;  %v5836_v29 = vsub.f32 %v5816_v4, %v5820_v35  ;;  %6064 = vmatpush.msrb.mxu1 %v6013_v25  ;;  %v5390_v54 = vmul.f32 %v11364_v60, %v11287_v40  ;;  %v5446_v40 = vmul.f32 %v11412_v36, %v11208_v2 }
 0xb34   :  { %v5831_v39 = vmul.f32 1.442695, %v5825_v42  ;;  %v5843_v24 = vmul.f32 1.442695, %v5837_v56  ;;  %v11465_v17 = vpop.f32.mrf.mxu3  ;;  %v11467_v49 = vpop.eup %7777  ;;  %v5829_v19 = vmul.f32 1.442695, %v5824_v53  ;;  %v5600_v2 = vmul.f32 %v11441_v50, %v11291_v30 }
 0xb35   :  { %v5812_v38 = vpop.f32.mrf.mxu1  ;;  %v11479_v63 = vpop.eup %7779  ;;  %v5847_v57 = vmul.f32 %v11467_v49, %v5695_v8  ;;  %6065 = vmatpush.msrb.mxu1 %v6011_v51  ;;  %v5841_v26 = vmul.f32 1.442695, %v5836_v29  ;;  %v5450_v53 = vadd.f32 %v5446_v40, %v5390_v54  ;;  %v6205_v50 = vld [vmem:[#allocation13 + $0x2b0] sm:$0xff]  ;;  %v5601_v58 = vmul.f32 %v11437_v21, %v11332_v61  ;;  %v6195_v51 = vld [vmem:[#allocation13 + $0x260] sm:$0xff]  ;;  %v6190_v61 = vld [vmem:[#allocation13 + $0x238] sm:$0xff] }
 0xb36   :  { %7789 = vpow2.f32 %v5831_v39  ;;  %v5818_v37 = vmul.f32 %v5812_v38, %v11002_v3  ;;  %v11483_v31 = vpop.eup %7781  ;;  %v5689_v3 = vmul.f32 1.442695, %v5682_v52  ;;  %v5692_v7 = vmul.f32 %v11479_v63, %v5540_v18  ;;  %v6194_v38 = vld [vmem:[#allocation13 + $0x258] sm:$0xff]  ;;  %6310 = vmatpush.msrb.mxu3 %v6205_v50  ;;  %6273 = vmatpush.msra.mxu2 %v6195_v51  ;;  %v6165_v51 = vld [vmem:[#allocation13 + $0x170] sm:$0xff] }
 0xb37   :  { %7791 = vpow2.f32 %v5685_v0  ;;  %v7784_v14 = vpop.eup %7783  ;;  %v11490_v28 = vadd.f32 %v11483_v31, %v5847_v57  ;;  %v5449_v0 = vadd.f32 %v11434_v1, %v11307_v45  ;;  %v5599_v52 = vmul.f32 %v11391_v27, %v11254_v34  ;;  %v11517_v34 = vpop.f32.mrf.mxu0  ;;  %6227 = vmatpush.msra.mxu1 %v6194_v38 }
 0xb38   :  { %7793 = vpow2.f32 %v5843_v24  ;;  %v5822_v46 = vmax.f32 %v11378_v5, %v5818_v37  ;;  %v11492_v4 = vpop.eup %7785  ;;  %v5542_v25 = vadd.f32 %v7784_v14, %v5538_v13  ;;  %v5544_v45 = vmul.f32 %v11426_v15, %v11380_v22  ;;  %6311 = vmatpush.msrb.mxu3 %v6200_v43  ;;  %6274 = vmatpush.msra.mxu2 %v6190_v61 }
 0xb39   :  { %7795 = vpow2.f32 %v5829_v19  ;;  %v11496_v23 = vpop.eup %7787  ;;  %v5697_v60 = vadd.f32 %v11492_v4, %v5693_v47  ;;  %v5545_v29 = vmul.f32 %v11399_v41, %v5449_v0  ;;  %v5603_v55 = vadd.f32 %v5599_v52, %v5543_v12  ;;  %v6189_v41 = vld [vmem:[#allocation13 + $0x230] sm:$0xff]  ;;  %v6180_v0 = vld [vmem:[#allocation13 + $0x1e8] sm:$0xff] }
 0xb3a   :  { %7797 = vpow2.f32 %v5841_v26  ;;  %v5826_v42 = vsub.f32 %v11378_v5, %v5822_v46  ;;  %v5838_v56 = vsub.f32 %v5818_v37, %v5822_v46  ;;  %v5694_v22 = vmul.f32 %v11496_v23, %v5542_v25  ;;  %6228 = vmatpush.msra.mxu1 %v6189_v41  ;;  %v6175_v25 = vld [vmem:[#allocation13 + $0x1c0] sm:$0xff]  ;;  %v6169_v12 = vld [vmem:[#allocation13 + $0x190] sm:$0xff] }
 0xb3b   :  { %7799 = vrcp.f32 %v11490_v28  ;;  %v5604_v47 = vadd.f32 %v5600_v2, %v5544_v45  ;;  %v5546_v57 = vmul.f32 %v11461_v10, %v5450_v53  ;;  %v5755_v19 = vmul.f32 %v11445_v32, %v11404_v48  ;;  %v6185_v10 = vld [vmem:[#allocation13 + $0x210] sm:$0xff] }
 0xb3c   :  { %v11504_v35 = vpop.eup %7789  ;;  %7801 = vpow2.f32 %v5689_v3  ;;  %v5833_v5 = vmul.f32 1.442695, %v5826_v42  ;;  %v5845_v39 = vmul.f32 1.442695, %v5838_v56  ;;  %v5882_v15 = vpop.f32.mrf.mxu3  ;;  %v6184_v3 = vld [vmem:[#allocation13 + $0x208] sm:$0xff]  ;;  %v5602_v26 = vmul.f32 %v7784_v14, %v11382_v11  ;;  %v6179_v42 = vld [vmem:[#allocation13 + $0x1e0] sm:$0xff]  ;;  %6275 = vmatpush.msra.mxu2 %v6185_v10 }
 0xb3d   :  { %v7792_v24 = vpop.eup %7791  ;;  %v5849_v36 = vmul.f32 %v11504_v35, %v5697_v60  ;;  %v5699_v32 = vmul.f32 %v11417_v59, %v5603_v55  ;;  %v5700_v13 = vmul.f32 %v11479_v63, %v5604_v47  ;;  %v5605_v14 = vadd.f32 %v5601_v58, %v5545_v29  ;;  %6229 = vmatpush.msra.mxu1 %v6184_v3 }
 0xb3e   :  { %v11513_v1 = vpop.eup %7793  ;;  %v5696_v8 = vadd.f32 %v7792_v24, %v5692_v7  ;;  %7803 = vpow2.f32 %v5833_v5  ;;  %v5756_v7 = vmul.f32 %v7792_v24, %v11453_v20  ;;  %v5757_v60 = vmul.f32 %v11492_v4, %v11465_v17  ;;  %v6174_v20 = vld [vmem:[#allocation13 + $0x1b8] sm:$0xff]  ;;  %6276 = vmatpush.msra.mxu2 %v6180_v0 }
 0xb3f   :  { %v11519_v27 = vpop.eup %7795  ;;  %v11524_v30 = vadd.f32 %v11513_v1, %v5849_v36  ;;  %7805 = vpow2.f32 %v5845_v39  ;;  %v5759_v40 = vadd.f32 %v5755_v19, %v5699_v32  ;;  %v5930_v63 = vand.u32 2147483648, %v11490_v28  ;;  %6230 = vmatpush.msra.mxu1 %v6179_v42  ;;  %v5905_v29 = vpop.f32.mrf.mxu0  ;;  %v6154_v0 = vld [vmem:[#allocation13 + $0x118] sm:$0xff] }
 0xb40   :  { %v11526_v18 = vpop.eup %7797  ;;  %v5848_v37 = vmul.f32 %v11519_v27, %v5696_v8  ;;  %v5911_v5 = vmul.f32 %v11483_v31, %v5882_v15  ;;  %v5928_v24 = vand.u32 2147483647, %v11490_v28  ;;  %v5606_v17 = vadd.f32 %v5602_v26, %v5546_v57  ;;  %v6204_v31 = vld [vmem:[#allocation13 + $0x2a8] sm:$0xff]  ;;  %v6170_v15 = vld [vmem:[#allocation13 + $0x198] sm:$0xff]  ;;  %6277 = vmatpush.msra.mxu2 %v6175_v25 }
 0xb41   :  { %v11531_v44 = vpop.eup %7799  ;;  %7807 = vrcp.f32 %v11524_v30  ;;  %v5760_v4 = vadd.f32 %v5756_v7, %v5700_v13  ;;  %v5701_v2 = vmul.f32 %v11449_v6, %v5605_v14  ;;  %v5855_v8 = vmul.f32 %v11467_v49, %v5759_v40  ;;  %6231 = vmatpush.msra.mxu1 %v6174_v20  ;;  %6264 = vmatpush.msrb.mxu0 %v6204_v31  ;;  %v6199_v6 = vld [vmem:[#allocation13 + $0x280] sm:$0xff]  ;;  %v6160_v7 = vld [vmem:[#allocation13 + $0x148] sm:$0xff] }
 0xb42   :  { %v11537_v21 = vpop.eup %7801  ;;  %v11541_v46 = vadd.f32 %v11526_v18, %v5848_v37  ;;  %v5920_v54 = vmul.f32 %v11531_v44, %v11490_v28  ;;  %vm5925_vm11 = vweird.f32 %v11531_v44  ;;  %vm5924_vm5 = vweird.f32 %v11490_v28  ;;  %v6164_v28 = vld [vmem:[#allocation13 + $0x168] sm:$0xff]  ;;  %6278 = vmatpush.msra.mxu2 %v6170_v15 }
 0xb43   :  { %v5698_v48 = vadd.f32 %v11537_v21, %v5694_v22  ;;  %v5761_v50 = vadd.f32 %v5757_v60, %v5701_v2  ;;  %v11574_v38 = vmul.f32 %v11496_v23, %v5606_v17  ;;  %vm5926_vm7 = vmor %vm5924_vm5, %vm5925_vm11  ;;  %v5931_v49 = vor.u32 1.1754944e-38, %v5930_v63  ;;  %6232 = vmatpush.msra.mxu1 %v6169_v12  ;;  %6265 = vmatpush.msrb.mxu0 %v6199_v6  ;;  %v6149_v63 = vld [vmem:[#allocation13 + $0xf0] sm:$0xff]  ;;  %v6182_v2 = vld [vmem:[#allocation13 + $0x1f8] sm:$0xff] }
 0xb44   :  { %v11549_v11 = vpop.eup %7803  ;;  %7809 = vrcp.f32 %v11541_v46  ;;  %v5921_v56 = vsub.f32 1.0, %v5920_v54  ;;  %v5885_v43 = vpop.f32.mrf.mxu3  ;;  %v5915_v58 = vadd.f32 %v5911_v5, %v5855_v8  ;;  %vm5929_vm8 = vcmp.eq.f32.partialorder %v5928_v24, 8.507059e+37  ;;  %v6159_v54 = vld [vmem:[#allocation13 + $0x140] sm:$0xff]  ;;  %6279 = vmatpush.msra.mxu2 %v6165_v51  ;;  %v6144_v12 = vld [vmem:[#allocation13 + $0xc8] sm:$0xff] }
 0xb45   :  { %v5850_v59 = vmul.f32 %v11549_v11, %v5698_v48  ;;  %v11556_v52 = vpop.eup %7805  ;;  %v5958_v57 = vand.u32 2147483647, %v11524_v30  ;;  %v5960_v19 = vand.u32 2147483648, %v11524_v30  ;;  %v5913_v61 = vmul.f32 %v11513_v1, %v5885_v43  ;;  %6233 = vmatpush.msra.mxu1 %v6164_v28  ;;  %v6139_v28 = vld [vmem:[#allocation13 + $0xa0] sm:$0xff] }
 0xb46   :  { %v5922_v39 = vmul.f32 %v11531_v44, %v5921_v56  ;;  %v5758_v10 = vmul.f32 %v11537_v21, %v11517_v34  ;;  %v5856_v48 = vmul.f32 %v11519_v27, %v5760_v4  ;;  %v5857_v13 = vmul.f32 %v11504_v35, %v5761_v50  ;;  %v6192_v56 = vld [vmem:[#allocation13 + $0x248] sm:$0xff]  ;;  %v6155_v21 = vld [vmem:[#allocation13 + $0x120] sm:$0xff]  ;;  %6280 = vmatpush.msra.mxu2 %v6160_v7  ;;  %v6137_v7 = vld [vmem:[#allocation13 + $0x90] sm:$0xff] }
 0xb47   :  { %v11562_v45 = vpop.eup %7807  ;;  %v11566_v36 = vadd.f32 %v11556_v52, %v5850_v59  ;;  %v5912_v42 = vmul.f32 %v11526_v18, %v5905_v29  ;;  %v5945_v1 = vand.u32 2147483648, %v11541_v46  ;;  %vm5954_vm6 = vweird.f32 %v11524_v30  ;;  %6234 = vmatpush.msra.mxu1 %v6159_v54  ;;  %v6187_v59 = vld [vmem:[#allocation13 + $0x220] sm:$0xff]  ;;  %v5908_v17 = vpop.f32.mrf.mxu0  ;;  %v6157_v54 = vld [vmem:[#allocation13 + $0x130] sm:$0xff] }
 0xb48   :  { %v5923_v53 = vadd.f32 %v11531_v44, %v5922_v39  ;;  %v5950_v22 = vmul.f32 %v11562_v45, %v11524_v30  ;;  %vm5955_vm9 = vweird.f32 %v11562_v45  ;;  %v5943_v35 = vand.u32 2147483647, %v11541_v46  ;;  %v6150_v39 = vld [vmem:[#allocation13 + $0xf8] sm:$0xff]  ;;  %6281 = vmatpush.msra.mxu2 %v6155_v21  ;;  %v6120_v21 = vld [vmem:[#allocation13 + $0x8] sm:$0xff] }
 0xb49   :  { %7811 = vrcp.f32 %v11566_v36  ;;  %vm5956_vm4 = vmor %vm5954_vm6, %vm5955_vm9  ;;  %v5961_v18 = vor.u32 1.1754944e-38, %v5960_v19  ;;  %v5917_v40 = vadd.f32 %v5913_v61, %v5857_v13  ;;  %vm5959_vm12 = vcmp.eq.f32.partialorder %v5958_v57, 8.507059e+37  ;;  %6235 = vmatpush.msra.mxu1 %v6154_v0  ;;  %v6186_v57 = vld [vmem:[#allocation13 + $0x218] sm:$0xff]  ;;  %v6129_v19 = vld [vmem:[#allocation13 + $0x50] sm:$0xff] }
 0xb4a   :  { %v11579_v55 = vpop.eup %7809  ;;  %v5927_v37 = vsel %vm5926_vm7, %v11531_v44, %v5923_v53  ;;  %v5951_v41 = vsub.f32 1.0, %v5950_v22  ;;  %v6197_v44 = vld [vmem:[#allocation13 + $0x270] sm:$0xff]  ;;  %vm5939_vm14 = vweird.f32 %v11541_v46  ;;  %v5762_v24 = vadd.f32 %v5758_v10, %v11574_v38  ;;  %6282 = vmatpush.msra.mxu2 %v6150_v39  ;;  %v6176_v10 = vld [vmem:[#allocation13 + $0x1c8] sm:$0xff]  ;;  %v6142_v13 = vld [vmem:[#allocation13 + $0xb8] sm:$0xff] }
 0xb4b   :  { %v5932_v23 = vsel %vm5929_vm8, %v5931_v49, %v5927_v37  ;;  %v5935_v47 = vmul.f32 %v11579_v55, %v11541_v46  ;;  %vm5940_vm10 = vweird.f32 %v11579_v55  ;;  %v5946_v25 = vor.u32 1.1754944e-38, %v5945_v1  ;;  %6236 = vmatpush.msra.mxu1 %v6149_v63  ;;  %v6177_v38 = vld [vmem:[#allocation13 + $0x1d0] sm:$0xff]  ;;  %v6196_v49 = vld [vmem:[#allocation13 + $0x268] sm:$0xff]  ;;  %v6130_v1 = vld [vmem:[#allocation13 + $0x58] sm:$0xff] }
 0xb4c   :  { %v5933_v3 = vmul.f32 %v5932_v23, %v5915_v58  ;;  %v5952_v26 = vmul.f32 %v11562_v45, %v5951_v41  ;;  %vm5941_vm15 = vmor %vm5939_vm14, %vm5940_vm10  ;;  %v5916_v31 = vadd.f32 %v5912_v42, %v5856_v48  ;;  %vm5944_vm3 = vcmp.eq.f32.partialorder %v5943_v35, 8.507059e+37  ;;  %v6140_v41 = vld [vmem:[#allocation13 + $0xa8] sm:$0xff]  ;;  %v6119_v0 = vld [vmem:[#allocation13] sm:$0xff] }
 0xb4d   :  { %v5936_v32 = vsub.f32 1.0, %v5935_v47  ;;  %v5975_v46 = vand.u32 2147483648, %v11566_v36  ;;  %v5973_v22 = vand.u32 2147483647, %v11566_v36  ;;  %v5858_v6 = vmul.f32 %v11549_v11, %v5762_v24  ;;  %6237 = vmatpush.msra.mxu1 %v6144_v12  ;;  %v6172_v11 = vld [vmem:[#allocation13 + $0x1a8] sm:$0xff]  ;;  %v6167_v47 = vld [vmem:[#allocation13 + $0x180] sm:$0xff] }
 0xb4e   :  { %6043 = vmatmul.f32.vlgmr.msrb.gmra.mxu2 %v5933_v3  ;;  %6089 = vmatmul.f32.vlgmr.msra.gmra.mxu3 %v5933_v3  ;;  %v5953_v14 = vadd.f32 %v11562_v45, %v5952_v26  ;;  %v5914_v50 = vmul.f32 %v11556_v52, %v5908_v17  ;;  %vm5969_vm11 = vweird.f32 %v11566_v36  ;;  %v6191_v52 = vld [vmem:[#allocation13 + $0x240] sm:$0xff]  ;;  %v6162_v26 = vld [vmem:[#allocation13 + $0x158] sm:$0xff]  ;;  %v6152_v48 = vld [vmem:[#allocation13 + $0x108] sm:$0xff] }
 0xb4f   :  { %v11597_v34 = vpop.eup %7811  ;;  %v5937_v27 = vmul.f32 %v11579_v55, %v5936_v32  ;;  %6365 = vmatpush.msra.mxu3 %v6197_v44  ;;  %v5976_v58 = vor.u32 1.1754944e-38, %v5975_v46  ;;  %vm5974_vm7 = vcmp.eq.f32.partialorder %v5973_v22, 8.507059e+37  ;;  %6238 = vmatpush.msra.mxu1 %v6139_v28  ;;  %v6135_v3 = vld [vmem:[#allocation13 + $0x80] sm:$0xff]  ;;  %v6181_v44 = vld [vmem:[#allocation13 + $0x1f0] sm:$0xff]  ;;  %v6124_v42 = vld [vmem:[#allocation13 + $0x28] sm:$0xff] }
 0xb50   :  { %v5965_v30 = vmul.f32 %v11597_v34, %v11566_v36  ;;  %v5957_v60 = vsel %vm5956_vm4, %v11562_v45, %v5953_v14  ;;  %vm5970_vm13 = vweird.f32 %v11597_v34  ;;  %v6134_v36 = vld [vmem:[#allocation13 + $0x78] sm:$0xff]  ;;  %v5918_v51 = vadd.f32 %v5914_v50, %v5858_v6  ;;  %v6147_v32 = vld [vmem:[#allocation13 + $0xe0] sm:$0xff]  ;;  %v6136_v39 = vld [vmem:[#allocation13 + $0x88] sm:$0xff] }
 0xb51   :  { %v5938_v20 = vadd.f32 %v11579_v55, %v5937_v27  ;;  %v5962_v5 = vsel %vm5959_vm12, %v5961_v18, %v5957_v60  ;;  %6366 = vmatpush.msra.mxu3 %v6192_v56  ;;  %vm5971_vm5 = vmor %vm5969_vm11, %vm5970_vm13  ;;  %6239 = vmatpush.msra.mxu1 %v6134_v36  ;;  %v6171_v14 = vld [vmem:[#allocation13 + $0x1a0] sm:$0xff]  ;;  %v6132_v56 = vld [vmem:[#allocation13 + $0x68] sm:$0xff] }
 0xb52   :  { %v5966_v45 = vsub.f32 1.0, %v5965_v30  ;;  %v5963_v4 = vmul.f32 %v5962_v5, %v5917_v40  ;;  %v6166_v27 = vld [vmem:[#allocation13 + $0x178] sm:$0xff]  ;;  %v6127_v35 = vld [vmem:[#allocation13 + $0x40] sm:$0xff]  ;;  %v6161_v40 = vld [vmem:[#allocation13 + $0x150] sm:$0xff] }
 0xb53   :  { %v5942_v8 = vsel %vm5941_vm15, %v11579_v55, %v5938_v20  ;;  %6367 = vmatpush.msra.mxu3 %v6187_v59  ;;  %v6145_v55 = vld [vmem:[#allocation13 + $0xd0] sm:$0xff]  ;;  %6240 = vmatpush.msra.mxu1 %v6129_v19  ;;  %v6206_v18 = vld [vmem:[#allocation13 + $0x2b8] sm:$0xff]  ;;  %v6156_v59 = vld [vmem:[#allocation13 + $0x128] sm:$0xff] }
 0xb54   :  { %v5947_v53 = vsel %vm5944_vm3, %v5946_v25, %v5942_v8  ;;  %v5967_v29 = vmul.f32 %v11597_v34, %v5966_v45  ;;  %6283 = vmatpush.msra.mxu2 %v6145_v55  ;;  %v6122_v30 = vld [vmem:[#allocation13 + $0x18] sm:$0xff]  ;;  %v6201_v60 = vld [vmem:[#allocation13 + $0x290] sm:$0xff]  ;;  %v6151_v63 = vld [vmem:[#allocation13 + $0x100] sm:$0xff] }
 0xb55   :  { %v5948_v15 = vmul.f32 %v5947_v53, %v5916_v31  ;;  %6368 = vmatpush.msra.mxu3 %v6182_v2  ;;  %6241 = vmatpush.msra.mxu1 %v6124_v42  ;;  %v6146_v20 = vld [vmem:[#allocation13 + $0xd8] sm:$0xff]  ;;  %v6141_v5 = vld [vmem:[#allocation13 + $0xb0] sm:$0xff]  ;;  %v6131_v24 = vld [vmem:[#allocation13 + $0x60] sm:$0xff] }
 0xb56   :  { %v5968_v43 = vadd.f32 %v11597_v34, %v5967_v29  ;;  %6046 = vmatmul.f32.gmra.mxu2 %v5963_v4  ;;  %6092 = vmatmul.f32.gmra.mxu3 %v5963_v4  ;;  %v6126_v25 = vld [vmem:[#allocation13 + $0x38] sm:$0xff]  ;;  %v6207_v17 = vld [vmem:[#allocation13 + $0x2c0] sm:$0xff]  ;;  %v6121_v45 = vld [vmem:[#allocation13 + $0x10] sm:$0xff] }
 0xb57   :  { %7467 = vmatmul.msk.f32.vlgmr.msrb.gmra.mxu1 %vm570_vm2, %v5948_v15  ;;  %7469 = vmatmul.msk.f32.vlgmr.msra.gmra.mxu0 %vm570_vm2, %v5948_v15  ;;  %v6202_v4 = vld [vmem:[#allocation13 + $0x298] sm:$0xff]  ;;  %v6193_v28 = vld [vmem:[#allocation13 + $0x250] sm:$0xff]  ;;  %v6208_v55 = vld [vmem:[#allocation13 + $0x2c8] sm:$0xff] }
 0xb58   :  { %v5972_v37 = vsel %vm5971_vm5, %v11597_v34, %v5968_v43  ;;  %6369 = vmatpush.msra.mxu3 %v6177_v38  ;;  %6319 = vmatpush.msra.mxu0 %v6196_v49  ;;  %v6125_v34 = vld [vmem:[#allocation13 + $0x30] sm:$0xff]  ;;  %v11635_v38 = vld [vmem:[#allocation15 + $0xf8] sm:$0xff]  ;;  %v6198_v49 = vld [vmem:[#allocation13 + $0x278] sm:$0xff] }
 0xb59   :  { %v5977_v23 = vsel %vm5974_vm7, %v5976_v58, %v5972_v37  ;;  %6284 = vmatpush.msra.mxu2 %v6140_v41  ;;  %6242 = vmatpush.msra.mxu1 %v6119_v0  ;;  %v6015_v2 = vld [vmem:[%s12207_s12] sm:$0x3]  ;;  %v11643_v43 = vld [vmem:[#allocation15 + $0xf0] sm:$0xff]  ;;  %v6188_v41 = vld [vmem:[#allocation13 + $0x228] sm:$0xff] }
 0xb5a   :  { %6370 = vmatpush.msra.mxu3 %v6172_v11  ;;  %6320 = vmatpush.msra.mxu0 %v6191_v52  ;;  %v5978_v61 = vmul.f32 %v5977_v23, %v5918_v51  ;;  %v6017_v12 = vperm.slane %v6015_v2, 0  ;;  %v6018_v31 = vperm.slane %v6015_v2, 1  ;;  %v11646_v36 = vld [vmem:[#allocation15 + $0xe8] sm:$0xff]  ;;  %v6203_v51 = vld [vmem:[#allocation13 + $0x2a0] sm:$0xff]  ;;  %v11673_v42 = vld [vmem:[#allocation15 + $0x78] sm:$0xff] }
 0xb5b   :  { %6285 = vmatpush.msra.mxu2 %v6135_v3  ;;  %6356 = vmatpush.msrb.mxu1 %v6206_v18  ;;  %v6183_v19 = vld [vmem:[#allocation13 + $0x200] sm:$0xff]  ;;  %v6148_v18 = vld [vmem:[#allocation13 + $0xe8] sm:$0xff] }
 0xb5c   :  { %6371 = vmatpush.msra.mxu3 %v6167_v47  ;;  %6321 = vmatpush.msra.mxu0 %v6186_v57  ;;  %v11649_v57 = vld [vmem:[#allocation15 + $0xe0] sm:$0xff]  ;;  %v11688_v0 = vld [vmem:[#allocation15 + $0xb0] sm:$0xff]  ;;  %v11736_v2 = vld [vmem:[#allocation15 + $0x1d8] sm:$0xff] }
 0xb5d   :  { %6286 = vmatpush.msra.mxu2 %v6130_v1  ;;  %6357 = vmatpush.msrb.mxu1 %v6201_v60  ;;  %v11678_v1 = vld [vmem:[#allocation15 + $0xb8] sm:$0xff]  ;;  %v6138_v60 = vld [vmem:[#allocation13 + $0x98] sm:$0xff] }
 0xb5e   :  { %6372 = vmatpush.msra.mxu3 %v6162_v26  ;;  %6322 = vmatpush.msra.mxu0 %v6181_v44  ;;  %v11657_v26 = vld [vmem:[#allocation15 + $0xd8] sm:$0xff]  ;;  %v6178_v44 = vld [vmem:[#allocation13 + $0x1d8] sm:$0xff] }
 0xb5f   :  { %7468 = vmatmul.msk.f32.gmra.mxu1 %vm570_vm2, %v5978_v61  ;;  %7470 = vmatmul.msk.f32.gmra.mxu0 %vm570_vm2, %v5978_v61 }
 0xb60   :  { %6373 = vmatpush.msra.mxu3 %v6157_v54  ;;  %6323 = vmatpush.msra.mxu0 %v6176_v10  ;;  %v11665_v54 = vld [vmem:[#allocation15 + $0xd0] sm:$0xff]  ;;  %v6173_v10 = vld [vmem:[#allocation13 + $0x1b0] sm:$0xff] }
 0xb61   :  { %6287 = vmatpush.msra.mxu2 %v6125_v34  ;;  %v6153_v34 = vld [vmem:[#allocation13 + $0x110] sm:$0xff] }
 0xb62   :  { %6374 = vmatpush.msra.mxu3 %v6152_v48  ;;  %6324 = vmatpush.msra.mxu0 %v6171_v14  ;;  %v11668_v48 = vld [vmem:[#allocation15 + $0xc8] sm:$0xff] }
 0xb63   :  { %6288 = vmatpush.msra.mxu2 %v6120_v21  ;;  %v6158_v14 = vld [vmem:[#allocation13 + $0x138] sm:$0xff]  ;;  %v11697_v21 = vld [vmem:[#allocation15 + $0xa0] sm:$0xff] }
 0xb64   :  { %6375 = vmatpush.msra.mxu3 %v6147_v32  ;;  %6325 = vmatpush.msra.mxu0 %v6166_v27  ;;  %v6168_v32 = vld [vmem:[#allocation13 + $0x188] sm:$0xff]  ;;  %v11691_v27 = vld [vmem:[#allocation15 + $0x68] sm:$0xff] }
 0xb65   :  { %6402 = vmatpush.msrb.mxu2 %v6207_v17  ;;  %v11725_v17 = vld [vmem:[#allocation15 + $0x1f0] sm:$0xff] }
 0xb66   :  { %6376 = vmatpush.msra.mxu3 %v6142_v13  ;;  %6326 = vmatpush.msra.mxu0 %v6161_v40  ;;  %v11671_v13 = vld [vmem:[#allocation15 + $0xc0] sm:$0xff]  ;;  %v6143_v40 = vld [vmem:[#allocation13 + $0xc0] sm:$0xff] }
 0xb67   :  { %6403 = vmatpush.msrb.mxu2 %v6202_v4  ;;  %v11733_v4 = vld [vmem:[#allocation15 + $0x1e0] sm:$0xff] }
 0xb68   :  { %6377 = vmatpush.msra.mxu3 %v6137_v7  ;;  %6327 = vmatpush.msra.mxu0 %v6156_v59  ;;  %v6163_v7 = vld [vmem:[#allocation13 + $0x160] sm:$0xff] }
 0xb69   :  { %v11710_v59 = vld [vmem:[#allocation15 + $0x90] sm:$0xff] }
 0xb6a   :  { %6378 = vmatpush.msra.mxu3 %v6132_v56  ;;  %6328 = vmatpush.msra.mxu0 %v6151_v63  ;;  %v11683_v56 = vld [vmem:[#allocation15 + $0x70] sm:$0xff]  ;;  %v6133_v63 = vld [vmem:[#allocation13 + $0x70] sm:$0xff] }
 0xb6c   :  { %6379 = vmatpush.msra.mxu3 %v6127_v35  ;;  %6329 = vmatpush.msra.mxu0 %v6146_v20  ;;  %v11693_v35 = vld [vmem:[#allocation15 + $0xa8] sm:$0xff] }
 0xb6d   :  { %v11713_v20 = vld [vmem:[#allocation15 + $0x88] sm:$0xff] }
 0xb6e   :  { %6380 = vmatpush.msra.mxu3 %v6122_v30  ;;  %6330 = vmatpush.msra.mxu0 %v6141_v5  ;;  %v11702_v30 = vld [vmem:[#allocation15 + $0x98] sm:$0xff] }
 0xb6f   :  { %v6128_v5 = vld [vmem:[#allocation13 + $0x48] sm:$0xff] }
 0xb70   :  { %6331 = vmatpush.msra.mxu0 %v6136_v39  ;;  %v11716_v39 = vld [vmem:[#allocation15 + $0x80] sm:$0xff] }
 0xb72   :  { %6332 = vmatpush.msra.mxu0 %v6131_v24  ;;  %v6123_v24 = vld [vmem:[#allocation13 + $0x20] sm:$0xff] }
 0xb74   :  { %6333 = vmatpush.msra.mxu0 %v6126_v25  ;;  %v11719_v25 = vld [vmem:[#allocation15 + $0x1f8] sm:$0xff] }
 0xb76   :  { %6334 = vmatpush.msra.mxu0 %v6121_v45  ;;  %v11730_v45 = vld [vmem:[#allocation15 + $0x1e8] sm:$0xff] }
 0xbd1   :  { %v6044_v8 = vpop.f32.mrf.mxu2  ;;  %v6090_v46 = vpop.f32.mrf.mxu3 }
 0xbd2   :  { %v6045_v53 = vadd.f32 %v6044_v8, %v6017_v12  ;;  %v6091_v29 = vadd.f32 %v6090_v46, %v6018_v31  ;;  %v11751_v8 = vld [vmem:[#allocation15 + $0x1c0] sm:$0xff]  ;;  %v11753_v46 = vld [vmem:[#allocation15 + $0x58] sm:$0xff] }
 0xbd4   :  { %v6067_v22 = vpop.f32.mrf.mxu1  ;;  %v6113_v15 = vpop.f32.mrf.mxu0 }
 0xbd5   :  { %v11631_v6 = vadd.f32 %v6067_v22, %v6045_v53  ;;  %v11633_v50 = vadd.f32 %v6113_v15, %v6091_v29  ;;  %v11757_v53 = vld [vmem:[#allocation15 + $0x1b8] sm:$0xff]  ;;  %v11759_v29 = vld [vmem:[#allocation15 + $0x50] sm:$0xff]  ;;  %v11767_v15 = vld [vmem:[#allocation15 + $0x48] sm:$0xff] }
 0xbd6   :  { %v11761_v22 = vld [vmem:[#allocation15 + $0x1b0] sm:$0xff] }
 0xbd7   :  { %6243 = vmatmul.f32.vlgmr.msra.gmra.mxu1 %v11631_v6  ;;  %7471 = vmatmul.msk.f32.vlgmr.msrb.gmra.mxu0 %vm570_vm2, %v11633_v50 }
 0xbd8   :  { %6289 = vmatmul.f32.vlgmr.msra.gmra.mxu2 %v11631_v6  ;;  %7473 = vmatmul.msk.f32.vlgmr.msrb.gmra.mxu3 %vm570_vm2, %v11633_v50 }
 0xbd9   :  { %6585 = vmatpush.msrb.mxu3 %v11635_v38  ;;  %6411 = vmatpush.msra.mxu1 %v6198_v49  ;;  %v6047_v58 = vpop.f32.mrf.mxu2  ;;  %v6093_v11 = vpop.f32.mrf.mxu3  ;;  %v11775_v49 = vld [vmem:[#allocation15 + $0x1a0] sm:$0xff] }
 0xbda   :  { %v6048_v52 = vadd.f32 %v6047_v58, %v6017_v12  ;;  %v6094_v37 = vadd.f32 %v6093_v11, %v6018_v31  ;;  %6448 = vmatpush.msrb.mxu0 %v6208_v55  ;;  %6565 = vmatpush.msra.mxu2 %v11673_v42  ;;  %v11745_v12 = vld [vmem:[#allocation15 + $0x1c8] sm:$0xff]  ;;  %v11749_v31 = vld [vmem:[#allocation15 + $0x60] sm:$0xff]  ;;  %13074 = vst [vmem:[#allocation118_spill] sm:$0xff] %v11775_v49  ;;  %v11781_v55 = vld [vmem:[#allocation15 + $0x198] sm:$0xff] }
 0xbdb   :  { %6586 = vmatpush.msrb.mxu3 %v11643_v43  ;;  %6412 = vmatpush.msra.mxu1 %v6193_v28  ;;  %v11779_v28 = vld [vmem:[#allocation15 + $0x38] sm:$0xff]  ;;  %13075 = vst [vmem:[#allocation119_spill] sm:$0xff] %v11781_v55  ;;  %v11788_v11 = vld [vmem:[#allocation15 + $0x30] sm:$0xff] }
 0xbdc   :  { %v6070_v23 = vpop.f32.mrf.mxu1  ;;  %v6116_v47 = vpop.f32.mrf.mxu0  ;;  %6449 = vmatpush.msrb.mxu0 %v6203_v51  ;;  %6566 = vmatpush.msra.mxu2 %v11683_v56  ;;  %v11785_v58 = vld [vmem:[#allocation15 + $0x178] sm:$0xff]  ;;  %v11799_v51 = vld [vmem:[#allocation15 + $0x188] sm:$0xff] }
 0xbdd   :  { %6587 = vmatpush.msrb.mxu3 %v11646_v36  ;;  %v11652_v3 = vadd.f32 %v6070_v23, %v6048_v52  ;;  %v11654_v61 = vadd.f32 %v6116_v47, %v6094_v37  ;;  %6413 = vmatpush.msra.mxu1 %v6188_v41  ;;  %v11790_v52 = vld [vmem:[#allocation15 + $0x190] sm:$0xff]  ;;  %v11797_v41 = vld [vmem:[#allocation15 + $0x28] sm:$0xff]  ;;  %13077 = vst [vmem:[#allocation121_spill] sm:$0xff] %v11799_v51  ;;  %v11806_v47 = vld [vmem:[#allocation15 + $0x20] sm:$0xff] }
 0xbde   :  { %6567 = vmatpush.msra.mxu2 %v11691_v27  ;;  %13076 = vst [vmem:[#allocation120_spill] sm:$0xff] %v11790_v52  ;;  %v11794_v37 = vld [vmem:[#allocation15 + $0x170] sm:$0xff]  ;;  %v11803_v23 = vld [vmem:[#allocation15 + $0x168] sm:$0xff] }
 0xbdf   :  { %6588 = vmatpush.msrb.mxu3 %v11649_v57  ;;  %6414 = vmatpush.msra.mxu1 %v6183_v19  ;;  %v11808_v19 = vld [vmem:[#allocation15 + $0x180] sm:$0xff] }
 0xbe0   :  { %6246 = vmatmul.f32.gmra.mxu1 %v11652_v3  ;;  %7472 = vmatmul.msk.f32.gmra.mxu0 %vm570_vm2, %v11654_v61  ;;  %13078 = vst [vmem:[#allocation122_spill] sm:$0xff] %v11808_v19 }
 0xbe1   :  { %6292 = vmatmul.f32.gmra.mxu2 %v11652_v3  ;;  %7474 = vmatmul.msk.f32.gmra.mxu3 %vm570_vm2, %v11654_v61 }
 0xbe2   :  { %6589 = vmatpush.msrb.mxu3 %v11657_v26  ;;  %6415 = vmatpush.msra.mxu1 %v6178_v44  ;;  %v11819_v44 = vld [vmem:[#allocation15 + $0x158] sm:$0xff] }
 0xbe3   :  { %6568 = vmatpush.msra.mxu2 %v11749_v31 }
 0xbe4   :  { %6590 = vmatpush.msrb.mxu3 %v11665_v54  ;;  %6416 = vmatpush.msra.mxu1 %v6173_v10  ;;  %v11823_v10 = vld [vmem:[#allocation15 + $0x10] sm:$0xff] }
 0xbe5   :  { %6569 = vmatpush.msra.mxu2 %v11753_v46 }
 0xbe6   :  { %6591 = vmatpush.msrb.mxu3 %v11668_v48  ;;  %6417 = vmatpush.msra.mxu1 %v6168_v32  ;;  %v11826_v32 = vld [vmem:[#allocation15 + $0x150] sm:$0xff] }
 0xbe7   :  { %6570 = vmatpush.msra.mxu2 %v11759_v29 }
 0xbe8   :  { %6592 = vmatpush.msrb.mxu3 %v11671_v13  ;;  %6418 = vmatpush.msra.mxu1 %v6163_v7  ;;  %v11833_v7 = vld [vmem:[#allocation15 + $0x148] sm:$0xff] }
 0xbe9   :  { %6335 = vmatmul.f32.vlgmr.msra.gmra.mxu0 %v11631_v6  ;;  %7475 = vmatmul.msk.f32.vlgmr.msrb.gmra.mxu1 %vm570_vm2, %v11633_v50 }
 0xbea   :  { %6381 = vmatmul.f32.vlgmr.msra.gmra.mxu3 %v11631_v6  ;;  %7477 = vmatmul.msk.f32.vlgmr.msrb.gmra.mxu2 %vm570_vm2, %v11633_v50 }
 0xbeb   :  { %6593 = vmatpush.msrb.mxu3 %v11678_v1  ;;  %6419 = vmatpush.msra.mxu1 %v6158_v14  ;;  %v11840_v14 = vld [vmem:[#allocation15 + $0x140] sm:$0xff] }
 0xbec   :  { %6571 = vmatpush.msra.mxu2 %v11767_v15  ;;  %6605 = vmatpush.msra.mxu0 %v11785_v58 }
 0xbed   :  { %6594 = vmatpush.msrb.mxu3 %v11688_v0  ;;  %6420 = vmatpush.msra.mxu1 %v6153_v34  ;;  %v11842_v34 = vld [vmem:[#allocation15 + $0x200] sm:$0x3] }
 0xbee   :  { %6606 = vmatpush.msra.mxu0 %v11794_v37 }
 0xbef   :  { %6595 = vmatpush.msrb.mxu3 %v11693_v35  ;;  %6421 = vmatpush.msra.mxu1 %v6148_v18 }
 0xbf0   :  { %6607 = vmatpush.msra.mxu0 %v11803_v23 }
 0xbf1   :  { %6596 = vmatpush.msrb.mxu3 %v11697_v21  ;;  %6422 = vmatpush.msra.mxu1 %v6143_v40  ;;  %v11848_v40 = vld [vmem:[#allocation15 + $0x138] sm:$0xff] }
 0xbf2   :  { %6338 = vmatmul.f32.gmra.mxu0 %v11652_v3  ;;  %7476 = vmatmul.msk.f32.gmra.mxu1 %vm570_vm2, %v11654_v61 }
 0xbf3   :  { %6384 = vmatmul.f32.gmra.mxu3 %v11652_v3  ;;  %7478 = vmatmul.msk.f32.gmra.mxu2 %vm570_vm2, %v11654_v61 }
 0xbf4   :  { %6597 = vmatpush.msrb.mxu3 %v11702_v30  ;;  %6423 = vmatpush.msra.mxu1 %v6138_v60  ;;  %v11857_v60 = vld [vmem:[#allocation15 + $0x130] sm:$0xff] }
 0xbf6   :  { %6598 = vmatpush.msrb.mxu3 %v11710_v59  ;;  %6424 = vmatpush.msra.mxu1 %v6133_v63 }
 0xbf8   :  { %6599 = vmatpush.msrb.mxu3 %v11713_v20  ;;  %6425 = vmatpush.msra.mxu1 %v6128_v5  ;;  %v11866_v5 = vld [vmem:[#allocation15 + $0x120] sm:$0xff] }
 0xbfa   :  { %6600 = vmatpush.msrb.mxu3 %v11716_v39  ;;  %6426 = vmatpush.msra.mxu1 %v6123_v24 }
 0xbfb   :  { %6427 = vmatmul.f32.vlgmr.msra.gmra.mxu1 %v11631_v6  ;;  %7479 = vmatmul.msk.f32.vlgmr.msrb.gmra.mxu0 %vm570_vm2, %v11633_v50  ;;  %v11769_v6 = vld [vmem:[#allocation15 + $0x1a8] sm:$0xff]  ;;  %v11773_v50 = vld [vmem:[#allocation15 + $0x40] sm:$0xff] }
 0xbfc   :  { %7485 = vmatpush.msk.msra.mxu3 %vm326_vm0, %v10737_v9  ;;  %6625 = vmatpush.msrb.mxu1 %v11719_v25  ;;  %v11740_v9 = vld [vmem:[#allocation15 + $0x1d0] sm:$0xff]  ;;  %13073 = vst [vmem:[#allocation117_spill] sm:$0xff] %v11769_v6 }
 0xbfd   :  { %6572 = vmatpush.msra.mxu2 %v11773_v50 }
 0xbfe   :  { %6626 = vmatpush.msrb.mxu1 %v11725_v17 }
 0xbff   :  { %6573 = vmatpush.msra.mxu2 %v11779_v28 }
 0xc00   :  { %6627 = vmatpush.msrb.mxu1 %v11730_v45 }
 0xc01   :  { %6574 = vmatpush.msra.mxu2 %v11788_v11 }
 0xc02   :  { %6628 = vmatpush.msrb.mxu1 %v11733_v4 }
 0xc03   :  { %6430 = vmatmul.f32.gmra.mxu1 %v11652_v3  ;;  %7480 = vmatmul.msk.f32.gmra.mxu0 %vm570_vm2, %v11654_v61  ;;  %v11812_v3 = vld [vmem:[#allocation15 + $0x160] sm:$0xff]  ;;  %v11816_v61 = vld [vmem:[#allocation15 + $0x18] sm:$0xff] }
 0xc04   :  { %6629 = vmatpush.msrb.mxu1 %v11736_v2  ;;  %6575 = vmatpush.msra.mxu2 %v11797_v41 }
 0xc05   :  { %6608 = vmatpush.msra.mxu0 %v11812_v3 }
 0xc06   :  { %6630 = vmatpush.msrb.mxu1 %v11740_v9  ;;  %6576 = vmatpush.msra.mxu2 %v11806_v47 }
 0xc07   :  { %6609 = vmatpush.msra.mxu0 %v11819_v44 }
 0xc08   :  { %6631 = vmatpush.msrb.mxu1 %v11745_v12  ;;  %6577 = vmatpush.msra.mxu2 %v11816_v61 }
 0xc09   :  { %6610 = vmatpush.msra.mxu0 %v11826_v32 }
 0xc0a   :  { %6632 = vmatpush.msrb.mxu1 %v11751_v8  ;;  %6578 = vmatpush.msra.mxu2 %v11823_v10 }
 0xc0b   :  { %6611 = vmatpush.msra.mxu0 %v11833_v7 }
 0xc0c   :  { %6633 = vmatpush.msrb.mxu1 %v11757_v53 }
 0xc0d   :  { %6612 = vmatpush.msra.mxu0 %v11840_v14 }
 0xc0e   :  { %6634 = vmatpush.msrb.mxu1 %v11761_v22 }
 0xc0f   :  { %6613 = vmatpush.msra.mxu0 %v11848_v40 }
 0xc10   :  { %6635 = vmatpush.msrb.mxu1 %v11769_v6 }
 0xc11   :  { %6614 = vmatpush.msra.mxu0 %v11857_v60 }
 0xc12   :  { %6636 = vmatpush.msrb.mxu1 %v11775_v49  ;;  %v11874_v49 = vld [vmem:[#allocation15 + $0x110] sm:$0xff] }
 0xc13   :  { %13080 = vst [vmem:[#allocation67_spill] sm:$0xff] %v11874_v49 }
 0xc14   :  { %6637 = vmatpush.msrb.mxu1 %v11781_v55 }
 0xc16   :  { %6638 = vmatpush.msrb.mxu1 %v11790_v52 }
 0xc18   :  { %6639 = vmatpush.msrb.mxu1 %v11799_v51  ;;  %v11870_v51 = vld [vmem:[#allocation15 + $0x118] sm:$0xff] }
 0xc19   :  { %13079 = vst [vmem:[#allocation72_spill] sm:$0xff] %v11870_v51 }
 0xc1a   :  { %6640 = vmatpush.msrb.mxu1 %v11808_v19 }
 0xc1c   :  { %6883 = vmatpush.msra.mxu1 %v11635_v38  ;;  %v11830_v38 = vld [vmem:[#allocation15 + $0x8] sm:$0xff] }
 0xc1d   :  { %6579 = vmatpush.msra.mxu2 %v11830_v38 }
 0xc1e   :  { %6884 = vmatpush.msra.mxu1 %v11643_v43  ;;  %v11837_v43 = vld [vmem:[#allocation15] sm:$0xff] }
 0xc1f   :  { %6580 = vmatpush.msra.mxu2 %v11837_v43 }
 0xc20   :  { %6885 = vmatpush.msra.mxu1 %v11646_v36 }
 0xc21   :  { %7481 = vmatpush.msk.msrb.mxu2 %vm326_vm0, %v11842_v34 }
 0xc22   :  { %6886 = vmatpush.msra.mxu1 %v11649_v57  ;;  %v11853_v57 = vld [vmem:[%s12210_s15] sm:$0x1f] }
 0xc23   :  { %v6211_v63 = vperm.slane %v11853_v57, 0 }
 0xc24   :  { %6887 = vmatpush.msra.mxu1 %v11657_v26  ;;  %v11862_v26 = vld [vmem:[#allocation15 + $0x128] sm:$0xff] }
 0xc25   :  { %6615 = vmatpush.msra.mxu0 %v11862_v26 }
 0xc26   :  { %6888 = vmatpush.msra.mxu1 %v11665_v54 }
 0xc27   :  { %6616 = vmatpush.msra.mxu0 %v11866_v5 }
 0xc28   :  { %6889 = vmatpush.msra.mxu1 %v11668_v48 }
 0xc29   :  { %6617 = vmatpush.msra.mxu0 %v11870_v51 }
 0xc2a   :  { %6890 = vmatpush.msra.mxu1 %v11671_v13  ;;  %v6212_v13 = vperm.slane %v11853_v57, 1 }
 0xc2b   :  { %6618 = vmatpush.msra.mxu0 %v11874_v49 }
 0xc2c   :  { %6891 = vmatpush.msra.mxu1 %v11678_v1  ;;  %v11883_v1 = vld [vmem:[#allocation15 + $0x108] sm:$0xff] }
 0xc2d   :  { %13083 = vst [vmem:[#allocation66_spill] sm:$0xff] %v11883_v1  ;;  %6619 = vmatpush.msra.mxu0 %v11883_v1 }
 0xc2e   :  { %6892 = vmatpush.msra.mxu1 %v11688_v0  ;;  %v11889_v0 = vld [vmem:[#allocation15 + $0x100] sm:$0xff] }
 0xc2f   :  { %13084 = vst [vmem:[#allocation77_spill] sm:$0xff] %v11889_v0  ;;  %6620 = vmatpush.msra.mxu0 %v11889_v0  ;;  %v6213_v0 = vperm.slane %v11853_v57, 2 }
 0xc30   :  { %6893 = vmatpush.msra.mxu1 %v11693_v35 }
 0xc31   :  { %7487 = vmatpush.msk.msrb.mxu0 %vm326_vm0, %v10743_v16 }
 0xc32   :  { %6894 = vmatpush.msra.mxu1 %v11697_v21 }
 0xc34   :  { %6895 = vmatpush.msra.mxu1 %v11702_v30 }
 0xc36   :  { %6896 = vmatpush.msra.mxu1 %v11710_v59 }
 0xc38   :  { %6897 = vmatpush.msra.mxu1 %v11713_v20 }
 0xc3a   :  { %6898 = vmatpush.msra.mxu1 %v11716_v39 }
 0xc54   :  { %v6244_v36 = vpop.f32.mrf.mxu1  ;;  %v6267_v18 = vpop.f32.mrf.mxu0 }
 0xc55   :  { %v6245_v54 = vadd.f32 %v6244_v36, %v6211_v63 }
 0xc57   :  { %v11878_v6 = vadd.f32 %v6267_v18, %v6245_v54 }
 0xc59   :  { %13081 = vst [vmem:[#allocation64_spill] sm:$0xff] %v11878_v6 }
 0xc5b   :  { %v6290_v24 = vpop.f32.mrf.mxu2  ;;  %v6313_v19 = vpop.f32.mrf.mxu3 }
 0xc5d   :  { %v6247_v52 = vpop.f32.mrf.mxu1  ;;  %v6270_v55 = vpop.f32.mrf.mxu0 }
 0xc5e   :  { %v6248_v48 = vadd.f32 %v6247_v52, %v6211_v63  ;;  %v6291_v63 = vadd.f32 %v6290_v24, %v6212_v13 }
 0xc60   :  { %v11880_v36 = vadd.f32 %v6270_v55, %v6248_v48  ;;  %v11896_v21 = vadd.f32 %v6313_v19, %v6291_v63 }
 0xc62   :  { %13082 = vst [vmem:[#allocation65_spill] sm:$0xff] %v11880_v36  ;;  %v6457_v52 = vadd.f32 %v11880_v36, %v11878_v6 }
 0xc63   :  { %13085 = vst [vmem:[#allocation68_spill] sm:$0xff] %v11896_v21 }
 0xc64   :  { %v6458_v18 = vrot.slane %v6457_v52, 4  ;;  %v6293_v54 = vpop.f32.mrf.mxu2  ;;  %v6316_v55 = vpop.f32.mrf.mxu3 }
 0xc65   :  { %v6294_v35 = vadd.f32 %v6293_v54, %v6212_v13 }
 0xc66   :  { %v6459_v48 = vadd.f32 %v6458_v18, %v6457_v52  ;;  %v6336_v1 = vpop.f32.mrf.mxu0  ;;  %v6359_v49 = vpop.f32.mrf.mxu1 }
 0xc67   :  { %v11898_v36 = vadd.f32 %v6316_v55, %v6294_v35  ;;  %v6337_v19 = vadd.f32 %v6336_v1, %v6213_v0 }
 0xc68   :  { %v6460_v24 = vrot.slane %v6459_v48, 2 }
 0xc69   :  { %13086 = vst [vmem:[#allocation71_spill] sm:$0xff] %v11898_v36  ;;  %v6464_v6 = vadd.f32 %v11898_v36, %v11896_v21  ;;  %v6214_v36 = vperm.slane %v11853_v57, 3 }
 0xc6a   :  { %v6461_v30 = vadd.f32 %v6460_v24, %v6459_v48  ;;  %v11908_v48 = vadd.f32 %v6359_v49, %v6337_v19  ;;  %v6215_v49 = vperm.slane %v11853_v57, 4 }
 0xc6b   :  { %v6465_v16 = vrot.slane %v6464_v6, 4 }
 0xc6c   :  { %v6462_v13 = vrot.slane %v6461_v30, 1 }
 0xc6d   :  { %v6466_v52 = vadd.f32 %v6465_v16, %v6464_v6  ;;  %v6382_v18 = vpop.f32.mrf.mxu3  ;;  %v6405_v63 = vpop.f32.mrf.mxu2 }
 0xc6e   :  { %v6463_v59 = vadd.f32 %v6462_v13, %v6461_v30  ;;  %v6383_v30 = vadd.f32 %v6382_v18, %v6214_v36 }
 0xc6f   :  { %v6467_v54 = vrot.slane %v6466_v52, 2  ;;  %v6339_v55 = vpop.f32.mrf.mxu0  ;;  %v6362_v35 = vpop.f32.mrf.mxu1 }
 0xc70   :  { %v6340_v51 = vadd.f32 %v6339_v55, %v6213_v0  ;;  %6581 = vmatmul.f32.vlgmr.msra.gmra.mxu2 %v6463_v59  ;;  %v11914_v55 = vadd.f32 %v6405_v63, %v6383_v30 }
 0xc71   :  { %v6468_v20 = vadd.f32 %v6467_v54, %v6466_v52  ;;  %7483 = vmatpush.msk.msra.mxu2 %vm326_vm0, %v10739_v62 }
 0xc72   :  { %v11910_v39 = vadd.f32 %v6362_v35, %v6340_v51 }
 0xc73   :  { %v6469_v6 = vrot.slane %v6468_v20, 1 }
 0xc74   :  { %v6471_v1 = vadd.f32 %v11910_v39, %v11908_v48 }
 0xc75   :  { %v6470_v24 = vadd.f32 %v6469_v6, %v6468_v20 }
 0xc76   :  { %v6472_v16 = vrot.slane %v6471_v1, 4  ;;  %v6385_v13 = vpop.f32.mrf.mxu3  ;;  %v6408_v59 = vpop.f32.mrf.mxu2 }
 0xc77   :  { %v6386_v0 = vadd.f32 %v6385_v13, %v6214_v36  ;;  %6601 = vmatmul.f32.vlgmr.msrb.gmra.mxu3 %v6470_v24 }
 0xc78   :  { %v6473_v52 = vadd.f32 %v6472_v16, %v6471_v1  ;;  %v6428_v54 = vpop.f32.mrf.mxu1  ;;  %v6451_v51 = vpop.f32.mrf.mxu0 }
 0xc79   :  { %v11916_v62 = vadd.f32 %v6408_v59, %v6386_v0  ;;  %v6429_v6 = vadd.f32 %v6428_v54, %v6215_v49 }
 0xc7a   :  { %v6474_v19 = vrot.slane %v6473_v52, 2 }
 0xc7b   :  { %v6478_v35 = vadd.f32 %v11916_v62, %v11914_v55  ;;  %v11921_v13 = vadd.f32 %v6451_v51, %v6429_v6 }
 0xc7c   :  { %v6475_v20 = vadd.f32 %v6474_v19, %v6473_v52  ;;  %v6967_v19 = vld.sshfl [vmem:[#allocation1] sm:$0xff pattern:$0x73625140] }
 0xc7d   :  { %v6479_v18 = vrot.slane %v6478_v35, 4  ;;  %v6485_v52 = vsel %vm319_vm1, %v11921_v13, 0.0 }
 0xc7e   :  { %v6476_v21 = vrot.slane %v6475_v20, 1 }
 0xc7f   :  { %v6480_v36 = vadd.f32 %v6479_v18, %v6478_v35 }
 0xc80   :  { %v6477_v24 = vadd.f32 %v6476_v21, %v6475_v20  ;;  %v6431_v1 = vpop.f32.mrf.mxu1  ;;  %v6454_v30 = vpop.f32.mrf.mxu0 }
 0xc81   :  { %v6481_v16 = vrot.slane %v6480_v36, 2  ;;  %v6432_v63 = vadd.f32 %v6431_v1, %v6215_v49 }
 0xc82   :  { %6621 = vmatmul.f32.vlgmr.msra.gmra.mxu0 %v6477_v24 }
 0xc83   :  { %v6482_v0 = vadd.f32 %v6481_v16, %v6480_v36  ;;  %v11923_v57 = vadd.f32 %v6454_v30, %v6432_v63  ;;  %6863 = vmatpush.msra.mxu0 %v11673_v42  ;;  %v13098_v63 = vld [vmem:[#allocation65_spill] sm:$0xff]  ;;  %v13099_v30 = vld [vmem:[#allocation68_spill] sm:$0xff] }
 0xc85   :  { %v6483_v59 = vrot.slane %v6482_v0, 1  ;;  %v6486_v54 = vsel %vm319_vm1, %v11923_v57, 0.0  ;;  %6864 = vmatpush.msra.mxu0 %v11683_v56 }
 0xc86   :  { %v6487_v21 = vadd.f32 %v6486_v54, %v6485_v52 }
 0xc87   :  { %v6484_v51 = vadd.f32 %v6483_v59, %v6482_v0  ;;  %6865 = vmatpush.msra.mxu0 %v11691_v27  ;;  %v13100_v0 = vld [vmem:[#allocation71_spill] sm:$0xff] }
 0xc88   :  { %v6488_v49 = vrot.slane %v6487_v21, 4 }
 0xc89   :  { %6641 = vmatmul.f32.vlgmr.msrb.gmra.mxu1 %v6484_v51  ;;  %6866 = vmatpush.msra.mxu0 %v11749_v31  ;;  %v6674_v31 = vld [vmem:[%s12212_s17 + $0x8] sm:$0x3]  ;;  %s8290_s17 = smov [#allocation16]  }
 0xc8a   :  { %v6489_v35 = vadd.f32 %v6488_v49, %v6487_v21  ;;  %7495 = vmatpush.msk.msrb.mxu1 %vm326_vm0, %v6967_v19  ;;  %6679 = vst [vmem:[#allocation1 + $0x20] ss:$4 sm:$0xff] %v6674_v31  ;;  %s7233_s1 = sshll.u32 %s8290_s17, 4  ;;  %s7234_s1 = int_to_ptr.vmem [resolvable:$true] %s7233_s1 }
 0xc8b   :  { %6867 = vmatpush.msra.mxu0 %v11753_v46  ;;  %7238 = dma.vmem_to_hbm [thread:$0]  %s7234_s1, 64, %s7236_s24, [#allocation6]  }
 0xc8c   :  { %v6490_v42 = vrot.slane %v6489_v35, 2 }
 0xc8d   :  { %6868 = vmatpush.msra.mxu0 %v11759_v29 }
 0xc8e   :  { %v6491_v20 = vadd.f32 %v6490_v42, %v6489_v35 }
 0xc8f   :  { %6869 = vmatpush.msra.mxu0 %v11767_v15 }
 0xc90   :  { %v6492_v56 = vrot.slane %v6491_v20, 1 }
 0xc91   :  { %6870 = vmatpush.msra.mxu0 %v11773_v50  ;;  %v6684_v46 = vld.sshfl [vmem:[#allocation1 + $0x20] sm:$0xff pattern:$0x73625140] }
 0xc92   :  { %v6493_v27 = vadd.f32 %v6492_v56, %v6491_v20  ;;  %7491 = vmatpush.msk.msrb.mxu3 %vm326_vm0, %v6684_v46  ;;  %6966 = vst [vmem:[#allocation1 + $0x20] ss:$4 sm:$0xff] %v6674_v31 }
 0xc93   :  { %6871 = vmatpush.msra.mxu0 %v11779_v28 }
 0xc94   :  { %7482 = vmatmul.msk.f32.vlgmr.msrb.gmra.mxu2 %vm319_vm1, %v6493_v27 }
 0xc95   :  { %7489 = vmatpush.msk.msrb.mxu2 %vm326_vm0, %v10745_v33  ;;  %6872 = vmatpush.msra.mxu0 %v11788_v11  ;;  %v8289_v33 = vmov 4112.0  }
 0xc96   :  { %7813 = vrcp.f32 %v8289_v33 }
 0xc97   :  { %6873 = vmatpush.msra.mxu0 %v11797_v41 }
 0xc99   :  { %6874 = vmatpush.msra.mxu0 %v11806_v47 }
 0xc9b   :  { %6875 = vmatpush.msra.mxu0 %v11816_v61 }
 0xc9c   :  { %v7814_v29 = vpop.eup %7813 }
 0xc9d   :  { %6876 = vmatpush.msra.mxu0 %v11823_v10  ;;  %v6666_v15 = vmul.f32 4112.0, %v7814_v29  ;;  %vm6670_vm2 = vweird.f32 %v7814_v29 }
 0xc9f   :  { %6877 = vmatpush.msra.mxu0 %v11830_v38  ;;  %v6667_v50 = vsub.f32 1.0, %v6666_v15 }
 0xca1   :  { %6878 = vmatpush.msra.mxu0 %v11837_v43  ;;  %v6668_v41 = vmul.f32 %v7814_v29, %v6667_v50 }
 0xca3   :  { %v6669_v38 = vadd.f32 %v7814_v29, %v6668_v41 }
 0xca5   :  { %v11953_v36 = vsel %vm6670_vm2, %v7814_v29, %v6669_v38 }
 0xcf3   :  { %v6582_v28 = vpop.f32.mrf.mxu2 }
 0xcfa   :  { %v6602_v11 = vpop.f32.mrf.mxu3 }
 0xcfb   :  { %v6603_v61 = vadd.f32 %v6602_v11, %v6582_v28 }
 0xcff   :  { %v6622_v47 = vpop.f32.mrf.mxu0 }
 0xd00   :  { %v6623_v43 = vadd.f32 %v6622_v47, %v6603_v61 }
 0xd06   :  { %v6642_v10 = vpop.f32.mrf.mxu1 }
 0xd07   :  { %v6643_v18 = vadd.f32 %v6642_v10, %v6623_v43 }
 0xd17   :  { %v6662_v6 = vpop.f32.mrf.mxu2 }
 0xd18   :  { %v6663_v24 = vadd.f32 %v6662_v6, %v6643_v18 }
 0xd1a   :  { %v6672_v1 = vmul.f32 %v11953_v36, %v6663_v24 }
 0xd1c   :  { %7484 = vmatmul.msk.f32.vlgmr.msra.gmra.mxu2 %vm319_vm1, %v6672_v1  ;;  %7486 = vmatmul.msk.f32.vlgmr.msra.gmra.mxu3 %vm319_vm1, %v6672_v1 }
 0xd1d   :  { %7488 = vmatmul.msk.f32.vlgmr.msrb.gmra.mxu0 %vm319_vm1, %v6672_v1  ;;  %6903 = vmatpush.msra.mxu2 %v11785_v58  ;;  %v13096_v58 = vld [vmem:[#allocation122_spill] sm:$0xff] }
 0xd1e   :  { %6923 = vmatpush.msra.mxu3 %v11719_v25  ;;  %7493 = vmatpush.msk.msrb.mxu0 %vm326_vm0, %v11842_v34  ;;  %v13087_v25 = vld [vmem:[#allocation117_spill] sm:$0xff] }
 0xd1f   :  { %6904 = vmatpush.msra.mxu2 %v11794_v37 }
 0xd20   :  { %6924 = vmatpush.msra.mxu3 %v11725_v17  ;;  %v13088_v17 = vld [vmem:[#allocation72_spill] sm:$0xff] }
 0xd21   :  { %6905 = vmatpush.msra.mxu2 %v11803_v23 }
 0xd22   :  { %6925 = vmatpush.msra.mxu3 %v11730_v45  ;;  %v13089_v45 = vld [vmem:[#allocation118_spill] sm:$0xff] }
 0xd23   :  { %6906 = vmatpush.msra.mxu2 %v11812_v3 }
 0xd24   :  { %7490 = vmatmul.msk.f32.vlgmr.msrb.gmra.mxu2 %vm319_vm1, %v6672_v1  ;;  %7492 = vmatmul.msk.f32.vlgmr.msrb.gmra.mxu3 %vm319_vm1, %v6672_v1 }
 0xd25   :  { %6907 = vmatpush.msra.mxu2 %v11819_v44  ;;  %6926 = vmatpush.msra.mxu3 %v11733_v4  ;;  %v13090_v4 = vld [vmem:[#allocation67_spill] sm:$0xff] }
 0xd27   :  { %6908 = vmatpush.msra.mxu2 %v11826_v32  ;;  %6927 = vmatpush.msra.mxu3 %v11736_v2  ;;  %v13091_v2 = vld [vmem:[#allocation119_spill] sm:$0xff] }
 0xd29   :  { %6909 = vmatpush.msra.mxu2 %v11833_v7  ;;  %6928 = vmatpush.msra.mxu3 %v11740_v9  ;;  %v13092_v9 = vld [vmem:[#allocation66_spill] sm:$0xff] }
 0xd2b   :  { %6910 = vmatpush.msra.mxu2 %v11840_v14  ;;  %6929 = vmatpush.msra.mxu3 %v11745_v12  ;;  %v13093_v12 = vld [vmem:[#allocation120_spill] sm:$0xff] }
 0xd2d   :  { %6911 = vmatpush.msra.mxu2 %v11848_v40  ;;  %6930 = vmatpush.msra.mxu3 %v11751_v8  ;;  %v13094_v8 = vld [vmem:[#allocation77_spill] sm:$0xff] }
 0xd2f   :  { %6912 = vmatpush.msra.mxu2 %v11857_v60  ;;  %6931 = vmatpush.msra.mxu3 %v11757_v53  ;;  %v6968_v53 = vld.sshfl [vmem:[#allocation1 + $0x8] sm:$0xff pattern:$0x73625140] }
 0xd31   :  { %6913 = vmatpush.msra.mxu2 %v11862_v26  ;;  %6932 = vmatpush.msra.mxu3 %v11761_v22  ;;  %v13095_v22 = vld [vmem:[#allocation121_spill] sm:$0xff] }
 0xd33   :  { %6914 = vmatpush.msra.mxu2 %v11866_v5  ;;  %6933 = vmatpush.msra.mxu3 %v13087_v25  ;;  %v13097_v5 = vld [vmem:[#allocation64_spill] sm:$0xff] }
 0xd35   :  { %6915 = vmatpush.msra.mxu2 %v13088_v17  ;;  %6934 = vmatpush.msra.mxu3 %v13089_v45 }
 0xd37   :  { %6916 = vmatpush.msra.mxu2 %v13090_v4  ;;  %6935 = vmatpush.msra.mxu3 %v13091_v2 }
 0xd39   :  { %6917 = vmatpush.msra.mxu2 %v13092_v9  ;;  %6936 = vmatpush.msra.mxu3 %v13093_v12 }
 0xd3b   :  { %6918 = vmatpush.msra.mxu2 %v13094_v8  ;;  %6937 = vmatpush.msra.mxu3 %v13095_v22 }
 0xd3d   :  { %7497 = vmatpush.msk.msrb.mxu2 %vm326_vm0, %v6968_v53  ;;  %6938 = vmatpush.msra.mxu3 %v13096_v58 }
 0xd9a   :  { %v6755_v37 = vpop.f32.mrf.mxu0 }
 0xd9b   :  { %v6800_v23 = vperm.slane %v6755_v37, 0 }
 0xd9d   :  { %v11997_v3 = vsub.f32 %v11908_v48, %v6800_v23  ;;  %v12000_v44 = vsub.f32 %v11910_v39, %v6800_v23 }
 0xd9f   :  { %v6815_v32 = vmul.f32 %v11997_v3, %v11997_v3  ;;  %v6820_v7 = vmul.f32 %v12000_v44, %v12000_v44  ;;  %v6715_v14 = vpop.f32.mrf.mxu2  ;;  %v6735_v34 = vpop.f32.mrf.mxu3 }
 0xda0   :  { %v6798_v40 = vperm.slane %v6715_v14, 0  ;;  %v6799_v60 = vperm.slane %v6735_v34, 0 }
 0xda1   :  { %v6837_v26 = vadd.f32 %v6820_v7, %v6815_v32 }
 0xda2   :  { %v12007_v16 = vsub.f32 %v13097_v5, %v6798_v40  ;;  %v12010_v48 = vsub.f32 %v13098_v63, %v6798_v40  ;;  %v12013_v39 = vsub.f32 %v13099_v30, %v6799_v60  ;;  %v12016_v59 = vsub.f32 %v13100_v0, %v6799_v60  ;;  %v6970_v5 = vld.sshfl [vmem:[#allocation1 + $0x18] sm:$0xff pattern:$0x73625140]  ;;  %v6971_v63 = vld.sshfl [vmem:[#allocation1 + $0x20] sm:$0xff pattern:$0x73625140] }
 0xda3   :  { %v6838_v52 = vrot.slane %v6837_v26, 4 }
 0xda4   :  { %v6813_v54 = vmul.f32 %v12007_v16, %v12007_v16  ;;  %v6818_v21 = vmul.f32 %v12010_v48, %v12010_v48  ;;  %v6814_v51 = vmul.f32 %v12013_v39, %v12013_v39  ;;  %v6819_v49 = vmul.f32 %v12016_v59, %v12016_v59 }
 0xda5   :  { %v6839_v19 = vadd.f32 %v6838_v52, %v6837_v26  ;;  %v6969_v26 = vld.sshfl [vmem:[#allocation1 + $0x10] sm:$0xff pattern:$0x73625140] }
 0xda6   :  { %v6823_v35 = vadd.f32 %v6818_v21, %v6813_v54  ;;  %v6830_v42 = vadd.f32 %v6819_v49, %v6814_v51  ;;  %7499 = vmatpush.msk.msrb.mxu3 %vm326_vm0, %v6969_v26 }
 0xda7   :  { %v6840_v20 = vrot.slane %v6839_v19, 2  ;;  %v6775_v56 = vpop.f32.mrf.mxu2  ;;  %v6795_v27 = vpop.f32.mrf.mxu3 }
 0xda8   :  { %v6824_v31 = vrot.slane %v6823_v35, 4  ;;  %v6831_v33 = vrot.slane %v6830_v42, 4  ;;  %v6801_v46 = vperm.slane %v6775_v56, 0  ;;  %v6802_v29 = vperm.slane %v6795_v27, 0 }
 0xda9   :  { %v6841_v15 = vadd.f32 %v6840_v20, %v6839_v19 }
 0xdaa   :  { %v6825_v50 = vadd.f32 %v6824_v31, %v6823_v35  ;;  %v6832_v28 = vadd.f32 %v6831_v33, %v6830_v42  ;;  %v12027_v11 = vsub.f32 %v11914_v55, %v6801_v46  ;;  %v12030_v41 = vsub.f32 %v11916_v62, %v6801_v46 }
 0xdab   :  { %v6842_v47 = vrot.slane %v6841_v15, 1  ;;  %v12033_v61 = vsub.f32 %v11921_v13, %v6802_v29  ;;  %v12036_v10 = vsub.f32 %v11923_v57, %v6802_v29 }
 0xdac   :  { %v6826_v38 = vrot.slane %v6825_v50, 2  ;;  %v6833_v43 = vrot.slane %v6832_v28, 2  ;;  %v6816_v18 = vmul.f32 %v12027_v11, %v12027_v11  ;;  %v6821_v6 = vmul.f32 %v12030_v41, %v12030_v41 }
 0xdad   :  { %v6817_v55 = vmul.f32 %v12033_v61, %v12033_v61  ;;  %v6822_v62 = vmul.f32 %v12036_v10, %v12036_v10  ;;  %v6843_v24 = vadd.f32 %v6842_v47, %v6841_v15 }
 0xdae   :  { %v6827_v13 = vadd.f32 %v6826_v38, %v6825_v50  ;;  %v6834_v1 = vadd.f32 %v6833_v43, %v6832_v28  ;;  %v6844_v25 = vadd.f32 %v6821_v6, %v6816_v18  ;;  %v12071_v43 = vld [vmem:[%s12210_s15 + $0x5] sm:$0x1f]  ;;  %v12077_v18 = vld [vmem:[%s12210_s15 + $0xa] sm:$0x1f] }
 0xdaf   :  { %v6851_v57 = vsel %vm319_vm1, %v6817_v55, 0.0  ;;  %v6852_v17 = vsel %vm319_vm1, %v6822_v62, 0.0  ;;  %6919 = vmatmul.f32.vlgmr.msra.gmra.mxu2 %v6843_v24  ;;  %v7153_v62 = vperm.slane %v12071_v43, 0 }
 0xdb0   :  { %v6828_v45 = vrot.slane %v6827_v13, 1  ;;  %v6835_v4 = vrot.slane %v6834_v1, 1  ;;  %v6845_v2 = vrot.slane %v6844_v25, 4  ;;  %v6853_v9 = vadd.f32 %v6852_v17, %v6851_v57 }
 0xdb1   :  { %v7179_v57 = vperm.slane %v12077_v18, 3 }
 0xdb2   :  { %v6846_v12 = vadd.f32 %v6845_v2, %v6844_v25  ;;  %v6854_v8 = vrot.slane %v6853_v9, 4  ;;  %v6829_v53 = vadd.f32 %v6828_v45, %v6827_v13  ;;  %v6836_v22 = vadd.f32 %v6835_v4, %v6834_v1 }
 0xdb3   :  { %v7176_v1 = vperm.slane %v12077_v18, 0  ;;  %v7156_v25 = vperm.slane %v12071_v43, 3  ;;  %v7154_v4 = vperm.slane %v12071_v43, 1  ;;  %v7177_v2 = vperm.slane %v12077_v18, 1 }
 0xdb4   :  { %v6847_v58 = vrot.slane %v6846_v12, 2  ;;  %v6855_v37 = vadd.f32 %v6854_v8, %v6853_v9  ;;  %6879 = vmatmul.f32.vlgmr.msra.gmra.mxu0 %v6829_v53  ;;  %6899 = vmatmul.f32.vlgmr.msra.gmra.mxu1 %v6836_v22  ;;  %v7155_v9 = vperm.slane %v12071_v43, 2  ;;  %v7178_v22 = vperm.slane %v12077_v18, 2 }
 0xdb5   :  { %7501 = vmatpush.msk.msra.mxu0 %vm326_vm0, %v6970_v5  ;;  %7503 = vmatpush.msk.msra.mxu1 %vm326_vm0, %v6971_v63 }
 0xdb6   :  { %v6848_v23 = vadd.f32 %v6847_v58, %v6846_v12  ;;  %v6856_v32 = vrot.slane %v6855_v37, 2 }
 0xdb8   :  { %v6849_v7 = vrot.slane %v6848_v23, 1  ;;  %v6857_v14 = vadd.f32 %v6856_v32, %v6855_v37  ;;  %v7157_v32 = vperm.slane %v12071_v43, 4 }
 0xdba   :  { %v6858_v34 = vrot.slane %v6857_v14, 1  ;;  %v6850_v40 = vadd.f32 %v6849_v7, %v6848_v23 }
 0xdbc   :  { %v6859_v60 = vadd.f32 %v6858_v34, %v6857_v14  ;;  %6939 = vmatmul.f32.vlgmr.msra.gmra.mxu3 %v6850_v40 }
 0xdbe   :  { %7494 = vmatmul.msk.f32.vlgmr.msrb.gmra.mxu0 %vm319_vm1, %v6859_v60 }
 0xe31   :  { %v6880_v30 = vpop.f32.mrf.mxu0  ;;  %v6900_v0 = vpop.f32.mrf.mxu1 }
 0xe32   :  { %v6901_v52 = vadd.f32 %v6900_v0, %v6880_v30  ;;  %v6920_v54 = vpop.f32.mrf.mxu2 }
 0xe34   :  { %v6921_v21 = vadd.f32 %v6920_v54, %v6901_v52 }
 0xe3b   :  { %v6960_v19 = vpop.f32.mrf.mxu0 }
 0xe3f   :  { %v6940_v51 = vpop.f32.mrf.mxu3 }
 0xe40   :  { %v6941_v49 = vadd.f32 %v6940_v51, %v6921_v21 }
 0xe42   :  { %v6961_v35 = vadd.f32 %v6960_v19, %v6941_v49 }
 0xe44   :  { %v6963_v42 = vmul.f32 %v6961_v35, %v11953_v36 }
 0xe46   :  { %7496 = vmatmul.msk.f32.vlgmr.msrb.gmra.mxu1 %vm319_vm1, %v6963_v42  ;;  %7498 = vmatmul.msk.f32.vlgmr.msrb.gmra.mxu2 %vm319_vm1, %v6963_v42 }
 0xe47   :  { %7500 = vmatmul.msk.f32.vlgmr.msrb.gmra.mxu3 %vm319_vm1, %v6963_v42  ;;  %7502 = vmatmul.msk.f32.vlgmr.msra.gmra.mxu0 %vm319_vm1, %v6963_v42 }
 0xe4e   :  { %7504 = vmatmul.msk.f32.vlgmr.msra.gmra.mxu1 %vm319_vm1, %v6963_v42 }
 0xec3   :  { %v7002_v36 = vpop.f32.mrf.mxu1 }
 0xec4   :  { %v7003_v20 = vadd.f32 1e-05, %v7002_v36  ;;  %v7062_v56 = vpop.f32.mrf.mxu0 }
 0xec5   :  { %v7063_v27 = vadd.f32 1e-05, %v7062_v56 }
 0xec6   :  { %7815 = vrsqrt.f32 %v7003_v20  ;;  %vm7091_vm9 = vweird.f32 %v7003_v20 }
 0xec7   :  { %7817 = vrsqrt.f32 %v7063_v27  ;;  %vm7121_vm10 = vweird.f32 %v7063_v27 }
 0xec9   :  { %v7022_v31 = vpop.f32.mrf.mxu2 }
 0xeca   :  { %v12061_v33 = vadd.f32 1e-05, %v7022_v31  ;;  %v7042_v46 = vpop.f32.mrf.mxu3 }
 0xecb   :  { %v12063_v29 = vadd.f32 1e-05, %v7042_v46  ;;  %v7082_v15 = vpop.f32.mrf.mxu1 }
 0xecc   :  { %v7816_v50 = vpop.eup %7815  ;;  %7819 = vrsqrt.f32 %v12061_v33  ;;  %v12066_v28 = vadd.f32 1e-05, %v7082_v15  ;;  %vm7101_vm4 = vweird.f32 %v12061_v33 }
 0xecd   :  { %v7818_v47 = vpop.eup %7817  ;;  %v7086_v38 = vmul.f32 %v7816_v50, %v7003_v20  ;;  %7821 = vrsqrt.f32 %v12063_v29  ;;  %vm7092_vm0 = vweird.f32 %v7816_v50  ;;  %vm7111_vm14 = vweird.f32 %v12063_v29 }
 0xece   :  { %v7116_v6 = vmul.f32 %v7818_v47, %v7063_v27  ;;  %7823 = vrsqrt.f32 %v12066_v28  ;;  %vm7122_vm8 = vweird.f32 %v7818_v47  ;;  %vm7093_vm6 = vmor %vm7091_vm9, %vm7092_vm0  ;;  %vm7131_vm5 = vweird.f32 %v12066_v28 }
 0xecf   :  { %v7087_v55 = vmul.f32 %v7816_v50, %v7086_v38  ;;  %vm7123_vm12 = vmor %vm7121_vm10, %vm7122_vm8 }
 0xed0   :  { %v7117_v24 = vmul.f32 %v7818_v47, %v7116_v6 }
 0xed1   :  { %v7088_v13 = vmul.f32 0.5, %v7087_v55 }
 0xed2   :  { %v7820_v17 = vpop.eup %7819  ;;  %v7118_v45 = vmul.f32 0.5, %v7117_v24 }
 0xed3   :  { %v7822_v12 = vpop.eup %7821  ;;  %v7089_v8 = vsub.f32 1.5, %v7088_v13  ;;  %v7096_v53 = vmul.f32 %v7820_v17, %v12061_v33  ;;  %vm7102_vm15 = vweird.f32 %v7820_v17 }
 0xed4   :  { %v7824_v58 = vpop.eup %7823  ;;  %v7119_v37 = vsub.f32 1.5, %v7118_v45  ;;  %v7106_v23 = vmul.f32 %v7822_v12, %v12063_v29  ;;  %vm7112_vm3 = vweird.f32 %v7822_v12  ;;  %vm7103_vm11 = vmor %vm7101_vm4, %vm7102_vm15 }
 0xed5   :  { %v7090_v7 = vmul.f32 %v7816_v50, %v7089_v8  ;;  %v7097_v14 = vmul.f32 %v7820_v17, %v7096_v53  ;;  %v7126_v34 = vmul.f32 %v7824_v58, %v12066_v28  ;;  %vm7132_vm13 = vweird.f32 %v7824_v58  ;;  %vm7113_vm7 = vmor %vm7111_vm14, %vm7112_vm3 }
 0xed6   :  { %v7120_v40 = vmul.f32 %v7818_v47, %v7119_v37  ;;  %v7107_v60 = vmul.f32 %v7822_v12, %v7106_v23  ;;  %vm7133_vm2 = vmor %vm7131_vm5, %vm7132_vm13 }
 0xed7   :  { %v7094_v26 = vsel %vm7093_vm6, %v7816_v50, %v7090_v7  ;;  %v7098_v5 = vmul.f32 0.5, %v7097_v14  ;;  %v7127_v63 = vmul.f32 %v7824_v58, %v7126_v34  ;;  %v8064_v34 = vld [vmem:[%s12542_s20 + $0x40] sm:$0xff] }
 0xed8   :  { %v7135_v30 = vperm.slane %v7094_v26, 0  ;;  %v7124_v0 = vsel %vm7123_vm12, %v7818_v47, %v7120_v40  ;;  %v7108_v52 = vmul.f32 0.5, %v7107_v60 }
 0xed9   :  { %v7138_v54 = vperm.slane %v7124_v0, 0  ;;  %v7099_v21 = vsub.f32 1.5, %v7098_v5  ;;  %v7128_v51 = vmul.f32 0.5, %v7127_v63  ;;  %v8065_v5 = vld [vmem:[%s12542_s20 + $0x8] sm:$0xff]  ;;  %v8066_v0 = vld [vmem:[%s12542_s20 + $0x30] sm:$0xff] }
 0xeda   :  { %v7140_v49 = vmul.f32 %v7135_v30, %v12007_v16  ;;  %v7145_v19 = vmul.f32 %v7135_v30, %v12010_v48  ;;  %v7109_v35 = vsub.f32 1.5, %v7108_v52 }
 0xedb   :  { %v7143_v42 = vmul.f32 %v7138_v54, %v12027_v11  ;;  %v7148_v36 = vmul.f32 %v7138_v54, %v12030_v41  ;;  %v7100_v20 = vmul.f32 %v7820_v17, %v7099_v21  ;;  %v7129_v56 = vsub.f32 1.5, %v7128_v51  ;;  %v8067_v21 = vld [vmem:[%s12542_s20 + $0x10] sm:$0xff] }
 0xedc   :  { %v7163_v27 = vmul.f32 %v7153_v62, %v7140_v49  ;;  %v7168_v31 = vmul.f32 %v7153_v62, %v7145_v19  ;;  %v7110_v46 = vmul.f32 %v7822_v12, %v7109_v35  ;;  %v8068_v19 = vld [vmem:[%s12542_s20 + $0x38] sm:$0xff] }
 0xedd   :  { %v7166_v16 = vmul.f32 %v7156_v25, %v7143_v42  ;;  %v7171_v15 = vmul.f32 %v7156_v25, %v7148_v36  ;;  %v7104_v48 = vsel %vm7103_vm11, %v7820_v17, %v7100_v20  ;;  %v7130_v11 = vmul.f32 %v7824_v58, %v7129_v56  ;;  %v8069_v36 = vld [vmem:[%s12542_s20 + $0x20] sm:$0xff]  ;;  %v8070_v56 = vld [vmem:[%s12542_s20 + $0x48] sm:$0xff] }
 0xede   :  { %v7186_v41 = vadd.f32 %v7176_v1, %v7163_v27  ;;  %v7191_v50 = vadd.f32 %v7176_v1, %v7168_v31  ;;  %v7136_v47 = vperm.slane %v7104_v48, 0  ;;  %v7114_v38 = vsel %vm7113_vm7, %v7822_v12, %v7110_v46 }
 0xedf   :  { %v7189_v6 = vadd.f32 %v7179_v57, %v7166_v16  ;;  %v7194_v33 = vadd.f32 %v7179_v57, %v7171_v15  ;;  %v7137_v55 = vperm.slane %v7114_v38, 0  ;;  %v7134_v62 = vsel %vm7133_vm2, %v7824_v58, %v7130_v11 }
 0xee0   :  { %7825 = vtanh.f32 %v7186_v41  ;;  %v7141_v28 = vmul.f32 %v7136_v47, %v12013_v39  ;;  %v7146_v24 = vmul.f32 %v7136_v47, %v12016_v59  ;;  %v7139_v13 = vperm.slane %v7134_v62, 0 }
 0xee1   :  { %7827 = vtanh.f32 %v7191_v50  ;;  %v7142_v29 = vmul.f32 %v7137_v55, %v11997_v3  ;;  %v7147_v25 = vmul.f32 %v7137_v55, %v12000_v44  ;;  %v7180_v1 = vperm.slane %v12077_v18, 4  ;;  %v8062_v18 = vld [vmem:[%s12542_s20 + $0x28] sm:$0xff] }
 0xee2   :  { %7829 = vtanh.f32 %v7189_v6  ;;  %v7164_v17 = vmul.f32 %v7154_v4, %v7141_v28  ;;  %v7169_v57 = vmul.f32 %v7154_v4, %v7146_v24  ;;  %v7144_v45 = vmul.f32 %v7139_v13, %v12033_v61 }
 0xee3   :  { %7831 = vtanh.f32 %v7194_v33  ;;  %v7165_v39 = vmul.f32 %v7155_v9, %v7142_v29  ;;  %v7170_v3 = vmul.f32 %v7155_v9, %v7147_v25  ;;  %v7149_v44 = vmul.f32 %v7139_v13, %v12036_v10 }
 0xee4   :  { %v7187_v59 = vadd.f32 %v7177_v2, %v7164_v17  ;;  %v7192_v12 = vadd.f32 %v7177_v2, %v7169_v57  ;;  %v7167_v4 = vmul.f32 %v7157_v32, %v7144_v45  ;;  %v8061_v2 = vld [vmem:[%s12542_s20] sm:$0xff] }
 0xee5   :  { %v7188_v61 = vadd.f32 %v7178_v22, %v7165_v39  ;;  %v7193_v8 = vadd.f32 %v7178_v22, %v7170_v3  ;;  %v7172_v9 = vmul.f32 %v7157_v32, %v7149_v44  ;;  %v8063_v32 = vld [vmem:[%s12542_s20 + $0x18] sm:$0xff] }
 0xee6   :  { %v7826_v53 = vpop.eup %7825  ;;  %7833 = vtanh.f32 %v7187_v59  ;;  %v7190_v10 = vadd.f32 %v7180_v1, %v7167_v4 }
 0xee7   :  { %v7828_v58 = vpop.eup %7827  ;;  %v7206_v37 = vmul.f32 %v8061_v2, %v7826_v53  ;;  %7835 = vtanh.f32 %v7192_v12  ;;  %v7195_v23 = vadd.f32 %v7180_v1, %v7172_v9 }
 0xee8   :  { %v7830_v7 = vpop.eup %7829  ;;  %v7211_v22 = vmul.f32 %v8062_v18, %v7828_v58  ;;  %7837 = vtanh.f32 %v7188_v61 }
 0xee9   :  { %v7832_v43 = vpop.eup %7831  ;;  %7216 = vst [vmem:[%s12213_s18] sm:$0xff] %v7206_v37  ;;  %v7209_v14 = vmul.f32 %v8063_v32, %v7830_v7  ;;  %7839 = vtanh.f32 %v7193_v8 }
 0xeea   :  { %7221 = vst [vmem:[%s12213_s18 + $0x28] sm:$0xff] %v7211_v22  ;;  %v7214_v40 = vmul.f32 %v8064_v34, %v7832_v43  ;;  %7841 = vtanh.f32 %v7190_v10 }
 0xeeb   :  { %7219 = vst [vmem:[%s12213_s18 + $0x18] sm:$0xff] %v7209_v14  ;;  %7843 = vtanh.f32 %v7195_v23 }
 0xeec   :  { %v7834_v60 = vpop.eup %7833  ;;  %7224 = vst [vmem:[%s12213_s18 + $0x40] sm:$0xff] %v7214_v40 }
 0xeed   :  { %v7836_v26 = vpop.eup %7835  ;;  %v7207_v63 = vmul.f32 %v8065_v5, %v7834_v60 }
 0xeee   :  { %v7838_v30 = vpop.eup %7837  ;;  %v7212_v52 = vmul.f32 %v8066_v0, %v7836_v26 }
 0xeef   :  { %v7840_v54 = vpop.eup %7839  ;;  %7217 = vst [vmem:[%s12213_s18 + $0x8] sm:$0xff] %v7207_v63  ;;  %v7208_v51 = vmul.f32 %v8067_v21, %v7838_v30 }
 0xef0   :  { %v7842_v49 = vpop.eup %7841  ;;  %7222 = vst [vmem:[%s12213_s18 + $0x30] sm:$0xff] %v7212_v52  ;;  %v7213_v35 = vmul.f32 %v8068_v19, %v7840_v54 }
 0xef1   :  { %v7844_v42 = vpop.eup %7843  ;;  %7218 = vst [vmem:[%s12213_s18 + $0x10] sm:$0xff] %v7208_v51  ;;  %v7210_v20 = vmul.f32 %v8069_v36, %v7842_v49 }
 0xef2   :  { %7223 = vst [vmem:[%s12213_s18 + $0x38] sm:$0xff] %v7213_v35  ;;  %v7215_v27 = vmul.f32 %v8070_v56, %v7844_v42 }
 0xef3   :  { %7220 = vst.msk [vmem:[%s12213_s18 + $0x20] sm:$0xff] %vm319_vm1, %v7210_v20 }
 0xef4   :  { %7225 = vst.msk [vmem:[%s12213_s18 + $0x48] sm:$0xff] %vm319_vm1, %v7215_v27 }
 0xef5   :  { %8271 = dma.done.wait [#allocation6], 64  }
 0xef6   :  { %8272 = vsyncadd [#allocation6], 4294967232 }
 0xef7   :  { %7245 = vsyncpa [#allocation5], 1 }
 0xef8   :  { %7246 = vsyncpa [#allocation8], 1 }
 0xef9   :  { %7247 = vsyncpa [#allocation11], 1 }
 0xefa   :  { %7248 = vsyncpa [#allocation14], 1 }
 0xefb   :  { %7249 = vsyncpa [#allocation6], 1 }

</bundles_post_ra>
